<compile_context>
chip_gen: v6e
topology: v6e:2x2x1
jax: 0.10.0
libtpu: 0.0.40
codegen_flags: <defaults>
</compile_context>

<pallas_src>
import functools

import jax
import jax.numpy as jnp
from jax.experimental import pallas as pl
from jax.experimental.pallas import tpu as pltpu

K = 2      # kernel size along every spatial dim
TM = 128   # output-row (sublane) tile for the per-depth matmuls


def _row_tiles(h, tm, min_tail=64):
    """Split h rows into tiles of ~tm, folding a short tail into the previous tile."""
    tiles = []
    r = 0
    while r < h:
        rem = h - r
        if rem <= tm:
            size = rem
        elif rem - tm < min_tail:
            size = rem                      # absorb the short tail (e.g. 257 -> 128,129)
        else:
            size = tm
        tiles.append((r, size))
        r += size
    return tiles


def _pick_bd(d_out, bd_max=8):
    """Largest divisor of d_out that is <= bd_max (keeps depth blocks exact)."""
    for bd in range(min(bd_max, d_out), 0, -1):
        if d_out % bd == 0:
            return bd
    return 1


def _convt_sigmoid_kernel(x_ref, xh_ref, w_ref, b_ref, o_ref, *, row_tiles):
    # x_ref : (BD, H_pad, Cin)        bf16  padded input depths [db*BD, db*BD+BD)
    # xh_ref: (1, H_pad, Cin)         bf16  halo: padded input depth db*BD + BD
    # w_ref : (W_out*K*K, Cin, Cout)  bf16  per-output-W-column flipped taps
    # b_ref : (1, Cout)               f32
    # o_ref : (BD, H_out, W_out*Cout) f32   output depths [db*BD, db*BD+BD)
    BD = o_ref.shape[0]
    Cout = b_ref.shape[1]
    W_out = o_ref.shape[2] // Cout

    bvec = b_ref[...]                        # hoisted: loaded once per grid step

    def patch(depth_idx, r0, nrows):
        # depth_idx in [0, BD]; BD selects the halo slab. All indices are static.
        if depth_idx < BD:
            return x_ref[depth_idx, r0:r0 + nrows, :]
        return xh_ref[0, r0:r0 + nrows, :]

    for d in range(BD):
        for w in range(W_out):
            for (r, tm) in row_tiles:
                acc = jnp.zeros((tm, Cout), jnp.float32)
                for kd in range(K):
                    for kh in range(K):
                        acc = acc + jnp.dot(
                            patch(d + kd, r + kh, tm),
                            w_ref[w * K * K + kd * K + kh],
                            preferred_element_type=jnp.float32)
                o_ref[d, r:r + tm, w * Cout:(w + 1) * Cout] = (
                    jax.nn.sigmoid(acc + bvec).astype(o_ref.dtype))


def conv_transpose3d_sigmoid(x_ndhwc, weight, bias, output_padding=(1, 0, 0), bd_max=8):
    """x_ndhwc: (N, D, H, 1, Cin); weight: (Cin, Cout, 2, 2, 2) [PyTorch layout]; bias: (Cout,)."""
    N, D, H, W, Cin = x_ndhwc.shape
    Cout = weight.shape[1]
    opd, oph, opw = output_padding
    assert W == 1 and oph == 0 and opw == 0, "kernel is specialized for the module's W=1 input"

    D_out = D + (K - 1) + opd
    H_out = H + (K - 1)
    W_out = W + (K - 1)                      # = 2

    # Squeeze W (metadata reshape), cast to bf16 BEFORE padding, pad D/H only.
    x3 = x_ndhwc.reshape(N, D, H, Cin).astype(jnp.bfloat16)
    x_pad = jnp.pad(x3, ((0, 0), (K - 1, K - 1 + opd), (K - 1, K - 1), (0, 0)))
    D_pad, H_pad = x_pad.shape[1], x_pad.shape[2]          # D_out + 1, H + 2

    # Spatially flipped weights; per output W column keep only the single kw tap
    # that sees real (non zero-padded) data:  w_out=0 -> flipped kw=1, w_out=1 -> kw=0.
    wf = jnp.flip(weight, axis=(2, 3, 4)).transpose(2, 3, 4, 0, 1)   # (kd, kh, kw, ci, co)
    wsel = jnp.stack([wf[:, :, 1], wf[:, :, 0]], axis=0)             # (W_out, kd, kh, ci, co)
    wstack = wsel.reshape(W_out * K * K, Cin, Cout).astype(jnp.bfloat16)
    b2 = bias.reshape(1, Cout).astype(jnp.float32)

    BD = _pick_bd(D_out, bd_max)
    nblocks = D_out // BD
    row_tiles = tuple(_row_tiles(H_out, TM))

    kernel = functools.partial(_convt_sigmoid_kernel, row_tiles=row_tiles)

    flops = 2 * N * D_out * H_out * W_out * Cout * Cin * K * K    # 4 valid taps per output
    in_bytes = (N * D_pad * H_pad * Cin * 2) * (1 + 1.0 / BD) + W_out * K * K * Cin * Cout * 2
    out_bytes = N * D_out * H_out * W_out * Cout * 4

    out_flat = pl.pallas_call(
        kernel,
        out_shape=jax.ShapeDtypeStruct((N, D_out, H_out, W_out * Cout), jnp.float32),
        grid=(N, nblocks),
        in_specs=[
            # Main depth block: padded depths [db*BD, db*BD+BD).
            pl.BlockSpec((None, BD, H_pad, Cin), lambda n, db: (n, db, 0, 0)),
            # Halo: single padded depth db*BD + BD (always <= D_pad-1).
            pl.BlockSpec((None, 1, H_pad, Cin), lambda n, db: (n, db * BD + BD, 0, 0)),
            pl.BlockSpec((W_out * K * K, Cin, Cout), lambda n, db: (0, 0, 0)),
            pl.BlockSpec((1, Cout), lambda n, db: (0, 0)),
        ],
        out_specs=pl.BlockSpec((None, BD, H_out, W_out * Cout), lambda n, db: (n, db, 0, 0)),
        compiler_params=pltpu.CompilerParams(
            dimension_semantics=("parallel", "parallel"),
            vmem_limit_bytes=48 * 1024 * 1024),
        cost_estimate=pl.CostEstimate(
            flops=flops,
            transcendentals=N * D_out * H_out * W_out * Cout,
            bytes_accessed=int(in_bytes + out_bytes)),
    )(x_pad, x_pad, wstack, b2)

    # Free metadata reshape to (N, D_out, H_out, W_out, Cout).
    return out_flat.reshape(N, D_out, H_out, W_out, Cout)


def reference(x_ndhwc, weight, bias, output_padding=(1, 0, 0)):
    """Pure-JAX reference with the same bf16-operand / f32-accumulate math."""
    N, D, H, W, Cin = x_ndhwc.shape
    Cout = weight.shape[1]
    opd, oph, opw = output_padding
    D_out, H_out, W_out = D + 1 + opd, H + 1 + oph, W + 1 + opw
    x_pad = jnp.pad(
        x_ndhwc,
        ((0, 0), (1, 1 + opd), (1, 1 + oph), (1, 1 + opw), (0, 0))).astype(jnp.bfloat16)
    wf = jnp.flip(weight, axis=(2, 3, 4)).transpose(2, 3, 4, 0, 1).astype(jnp.bfloat16)
    acc = jnp.zeros((N, D_out, H_out, W_out, Cout), jnp.float32)
    for kd in range(K):
        for kh in range(K):
            for kw in range(K):
                acc = acc + jnp.einsum(
                    "ndhwc,co->ndhwo",
                    x_pad[:, kd:kd + D_out, kh:kh + H_out, kw:kw + W_out, :],
                    wf[kd, kh, kw],
                    preferred_element_type=jnp.float32)
    return jax.nn.sigmoid(acc + bias.astype(jnp.float32))


if __name__ == "__main__":
    key = jax.random.PRNGKey(0)
    k1, k2, k3 = jax.random.split(key, 3)

    # Module fixes Cin = Cout = 256 and W = 1; use small D/H (real input is
    # (1, 256, 256, 256, 1) in NCDHW). D=14 -> D_out=16 -> BD=8, 2 depth blocks,
    # exercising the halo path across a block boundary.
    N, Cin, Cout = 1, 256, 256
    D, H, W = 14, 8, 1

    x_ncdhw = jax.random.normal(k1, (N, Cin, D, H, W), jnp.float32)

    # PyTorch ConvTranspose3d weight layout: (in_channels, out_channels, kD, kH, kW).
    bound = 1.0 / float((Cin * K * K * K) ** 0.5)
    weight = jax.random.uniform(k2, (Cin, Cout, K, K, K), jnp.float32, -bound, bound)
    bias = jax.random.uniform(k3, (Cout,), jnp.float32, -bound, bound)

    x_ndhwc = jnp.transpose(x_ncdhw, (0, 2, 3, 4, 1))  # NCDHW -> NDHWC

    out = conv_transpose3d_sigmoid(x_ndhwc, weight, bias)
    out = jax.block_until_ready(out)

    assert out.shape == (N, D + 2, H + 1, W + 1, Cout), out.shape
    ref = reference(x_ndhwc, weight, bias)
    max_err = float(jnp.max(jnp.abs(out - ref)))
    assert max_err < 2e-3, f"max abs err {max_err}"
    print("KERNEL_OK")
</pallas_src>

<mosaic_0001>
module attributes {stable_mosaic.version = 11 : i64} {
  func.func @_convt_sigmoid_kernel(%arg0: i32, %arg1: i32, %arg2: memref<1x8x10x256xbf16, #tpu.memory_space<vmem>>, %arg3: memref<1x1x10x256xbf16, #tpu.memory_space<vmem>>, %arg4: memref<8x256x256xbf16, #tpu.memory_space<vmem>>, %arg5: memref<1x256xf32, #tpu.memory_space<vmem>>, %arg6: memref<1x8x9x512xf32, #tpu.memory_space<vmem>>) attributes {dimension_semantics = [#tpu.dimension_semantics<parallel>, #tpu.dimension_semantics<parallel>], iteration_bounds = array<i64: 1, 2>, scalar_prefetch = 0 : i64, scratch_operands = 0 : i64, tpu.core_type = #tpu.core_type<tc>, window_params = [{transform_indices = @transform_0, window_bounds = array<i64: 1, 8, 10, 256>}, {transform_indices = @transform_1, window_bounds = array<i64: 1, 1, 10, 256>}, {pipeline_mode = #tpu.pipeline_mode<synchronous>, transform_indices = @transform_2, window_bounds = array<i64: 8, 256, 256>}, {pipeline_mode = #tpu.pipeline_mode<synchronous>, transform_indices = @transform_3, window_bounds = array<i64: 1, 256>}, {transform_indices = @transform_4, window_bounds = array<i64: 1, 8, 9, 512>}]} {
    %c0 = arith.constant 0 : index
    %c0_0 = arith.constant 0 : index
    %0 = vector.load %arg5[%c0, %c0_0] : memref<1x256xf32, #tpu.memory_space<vmem>>, vector<1x256xf32>
    %cst = arith.constant 0.000000e+00 : f32
    %1 = vector.broadcast %cst : f32 to vector<9x256xf32>
    %c0_1 = arith.constant 0 : index
    %c0_2 = arith.constant 0 : index
    %c0_3 = arith.constant 0 : index
    %c0_4 = arith.constant 0 : index
    %2 = vector.load %arg2[%c0_1, %c0_2, %c0_3, %c0_4] : memref<1x8x10x256xbf16, #tpu.memory_space<vmem>>, vector<1x1x9x256xbf16>
    %3 = vector.shape_cast %2 : vector<1x1x9x256xbf16> to vector<9x256xbf16>
    %c0_5 = arith.constant 0 : index
    %c0_6 = arith.constant 0 : index
    %c0_7 = arith.constant 0 : index
    %4 = vector.load %arg4[%c0_5, %c0_6, %c0_7] : memref<8x256x256xbf16, #tpu.memory_space<vmem>>, vector<1x256x256xbf16>
    %5 = vector.shape_cast %4 : vector<1x256x256xbf16> to vector<256x256xbf16>
    %cst_8 = arith.constant dense<0.000000e+00> : vector<9x256xf32>
    %6 = tpu.matmul %3, %5, %cst_8 {dimension_numbers = #tpu.dot_dimension_numbers<[1], [0], [0], [1], [0, 0, 1, 1], [], []>} : vector<9x256xbf16>, vector<256x256xbf16>, vector<9x256xf32> -> vector<9x256xf32>
    %7 = arith.addf %1, %6 : vector<9x256xf32>
    %c0_9 = arith.constant 0 : index
    %c0_10 = arith.constant 0 : index
    %c1 = arith.constant 1 : index
    %c0_11 = arith.constant 0 : index
    %8 = vector.load %arg2[%c0_9, %c0_10, %c1, %c0_11] : memref<1x8x10x256xbf16, #tpu.memory_space<vmem>>, vector<1x1x9x256xbf16>
    %9 = vector.shape_cast %8 : vector<1x1x9x256xbf16> to vector<9x256xbf16>
    %c1_12 = arith.constant 1 : index
    %c0_13 = arith.constant 0 : index
    %c0_14 = arith.constant 0 : index
    %10 = vector.load %arg4[%c1_12, %c0_13, %c0_14] : memref<8x256x256xbf16, #tpu.memory_space<vmem>>, vector<1x256x256xbf16>
    %11 = vector.shape_cast %10 : vector<1x256x256xbf16> to vector<256x256xbf16>
    %cst_15 = arith.constant dense<0.000000e+00> : vector<9x256xf32>
    %12 = tpu.matmul %9, %11, %cst_15 {dimension_numbers = #tpu.dot_dimension_numbers<[1], [0], [0], [1], [0, 0, 1, 1], [], []>} : vector<9x256xbf16>, vector<256x256xbf16>, vector<9x256xf32> -> vector<9x256xf32>
    %13 = arith.addf %7, %12 : vector<9x256xf32>
    %c0_16 = arith.constant 0 : index
    %c1_17 = arith.constant 1 : index
    %c0_18 = arith.constant 0 : index
    %c0_19 = arith.constant 0 : index
    %14 = vector.load %arg2[%c0_16, %c1_17, %c0_18, %c0_19] : memref<1x8x10x256xbf16, #tpu.memory_space<vmem>>, vector<1x1x9x256xbf16>
    %15 = vector.shape_cast %14 : vector<1x1x9x256xbf16> to vector<9x256xbf16>
    %c2 = arith.constant 2 : index
    %c0_20 = arith.constant 0 : index
    %c0_21 = arith.constant 0 : index
    %16 = vector.load %arg4[%c2, %c0_20, %c0_21] : memref<8x256x256xbf16, #tpu.memory_space<vmem>>, vector<1x256x256xbf16>
    %17 = vector.shape_cast %16 : vector<1x256x256xbf16> to vector<256x256xbf16>
    %cst_22 = arith.constant dense<0.000000e+00> : vector<9x256xf32>
    %18 = tpu.matmul %15, %17, %cst_22 {dimension_numbers = #tpu.dot_dimension_numbers<[1], [0], [0], [1], [0, 0, 1, 1], [], []>} : vector<9x256xbf16>, vector<256x256xbf16>, vector<9x256xf32> -> vector<9x256xf32>
    %19 = arith.addf %13, %18 : vector<9x256xf32>
    %c0_23 = arith.constant 0 : index
    %c1_24 = arith.constant 1 : index
    %c1_25 = arith.constant 1 : index
    %c0_26 = arith.constant 0 : index
    %20 = vector.load %arg2[%c0_23, %c1_24, %c1_25, %c0_26] : memref<1x8x10x256xbf16, #tpu.memory_space<vmem>>, vector<1x1x9x256xbf16>
    %21 = vector.shape_cast %20 : vector<1x1x9x256xbf16> to vector<9x256xbf16>
    %c3 = arith.constant 3 : index
    %c0_27 = arith.constant 0 : index
    %c0_28 = arith.constant 0 : index
    %22 = vector.load %arg4[%c3, %c0_27, %c0_28] : memref<8x256x256xbf16, #tpu.memory_space<vmem>>, vector<1x256x256xbf16>
    %23 = vector.shape_cast %22 : vector<1x256x256xbf16> to vector<256x256xbf16>
    %cst_29 = arith.constant dense<0.000000e+00> : vector<9x256xf32>
    %24 = tpu.matmul %21, %23, %cst_29 {dimension_numbers = #tpu.dot_dimension_numbers<[1], [0], [0], [1], [0, 0, 1, 1], [], []>} : vector<9x256xbf16>, vector<256x256xbf16>, vector<9x256xf32> -> vector<9x256xf32>
    %25 = arith.addf %19, %24 : vector<9x256xf32>
    %26 = vector.broadcast %0 : vector<1x256xf32> to vector<9x256xf32>
    %27 = arith.addf %25, %26 : vector<9x256xf32>
    %28 = arith.negf %27 : vector<9x256xf32>
    %29 = math.exp %28 : vector<9x256xf32>
    %cst_30 = arith.constant 1.000000e+00 : f32
    %30 = vector.broadcast %cst_30 : f32 to vector<9x256xf32>
    %31 = arith.addf %30, %29 : vector<9x256xf32>
    %32 = arith.divf %30, %31 : vector<9x256xf32>
    %c0_31 = arith.constant 0 : index
    %c0_32 = arith.constant 0 : index
    %c0_33 = arith.constant 0 : index
    %c0_34 = arith.constant 0 : index
    %33 = vector.load %arg6[%c0_31, %c0_32, %c0_33, %c0_34] : memref<1x8x9x512xf32, #tpu.memory_space<vmem>>, vector<1x1x9x256xf32>
    %34 = vector.shape_cast %33 : vector<1x1x9x256xf32> to vector<9x256xf32>
    %35 = vector.shape_cast %32 : vector<9x256xf32> to vector<1x1x9x256xf32>
    tpu.vector_store %arg6[%c0_31, %c0_32, %c0_33, %c0_34], %35 {strides = array<i32>} : memref<1x8x9x512xf32, #tpu.memory_space<vmem>>, vector<1x1x9x256xf32>,
    %cst_35 = arith.constant 0.000000e+00 : f32
    %36 = vector.broadcast %cst_35 : f32 to vector<9x256xf32>
    %c0_36 = arith.constant 0 : index
    %c0_37 = arith.constant 0 : index
    %c0_38 = arith.constant 0 : index
    %c0_39 = arith.constant 0 : index
    %37 = vector.load %arg2[%c0_36, %c0_37, %c0_38, %c0_39] : memref<1x8x10x256xbf16, #tpu.memory_space<vmem>>, vector<1x1x9x256xbf16>
    %38 = vector.shape_cast %37 : vector<1x1x9x256xbf16> to vector<9x256xbf16>
    %c4 = arith.constant 4 : index
    %c0_40 = arith.constant 0 : index
    %c0_41 = arith.constant 0 : index
    %39 = vector.load %arg4[%c4, %c0_40, %c0_41] : memref<8x256x256xbf16, #tpu.memory_space<vmem>>, vector<1x256x256xbf16>
    %40 = vector.shape_cast %39 : vector<1x256x256xbf16> to vector<256x256xbf16>
    %cst_42 = arith.constant dense<0.000000e+00> : vector<9x256xf32>
    %41 = tpu.matmul %38, %40, %cst_42 {dimension_numbers = #tpu.dot_dimension_numbers<[1], [0], [0], [1], [0, 0, 1, 1], [], []>} : vector<9x256xbf16>, vector<256x256xbf16>, vector<9x256xf32> -> vector<9x256xf32>
    %42 = arith.addf %36, %41 : vector<9x256xf32>
    %c0_43 = arith.constant 0 : index
    %c0_44 = arith.constant 0 : index
    %c1_45 = arith.constant 1 : index
    %c0_46 = arith.constant 0 : index
    %43 = vector.load %arg2[%c0_43, %c0_44, %c1_45, %c0_46] : memref<1x8x10x256xbf16, #tpu.memory_space<vmem>>, vector<1x1x9x256xbf16>
    %44 = vector.shape_cast %43 : vector<1x1x9x256xbf16> to vector<9x256xbf16>
    %c5 = arith.constant 5 : index
    %c0_47 = arith.constant 0 : index
    %c0_48 = arith.constant 0 : index
    %45 = vector.load %arg4[%c5, %c0_47, %c0_48] : memref<8x256x256xbf16, #tpu.memory_space<vmem>>, vector<1x256x256xbf16>
    %46 = vector.shape_cast %45 : vector<1x256x256xbf16> to vector<256x256xbf16>
    %cst_49 = arith.constant dense<0.000000e+00> : vector<9x256xf32>
    %47 = tpu.matmul %44, %46, %cst_49 {dimension_numbers = #tpu.dot_dimension_numbers<[1], [0], [0], [1], [0, 0, 1, 1], [], []>} : vector<9x256xbf16>, vector<256x256xbf16>, vector<9x256xf32> -> vector<9x256xf32>
    %48 = arith.addf %42, %47 : vector<9x256xf32>
    %c0_50 = arith.constant 0 : index
    %c1_51 = arith.constant 1 : index
    %c0_52 = arith.constant 0 : index
    %c0_53 = arith.constant 0 : index
    %49 = vector.load %arg2[%c0_50, %c1_51, %c0_52, %c0_53] : memref<1x8x10x256xbf16, #tpu.memory_space<vmem>>, vector<1x1x9x256xbf16>
    %50 = vector.shape_cast %49 : vector<1x1x9x256xbf16> to vector<9x256xbf16>
    %c6 = arith.constant 6 : index
    %c0_54 = arith.constant 0 : index
    %c0_55 = arith.constant 0 : index
    %51 = vector.load %arg4[%c6, %c0_54, %c0_55] : memref<8x256x256xbf16, #tpu.memory_space<vmem>>, vector<1x256x256xbf16>
    %52 = vector.shape_cast %51 : vector<1x256x256xbf16> to vector<256x256xbf16>
    %cst_56 = arith.constant dense<0.000000e+00> : vector<9x256xf32>
    %53 = tpu.matmul %50, %52, %cst_56 {dimension_numbers = #tpu.dot_dimension_numbers<[1], [0], [0], [1], [0, 0, 1, 1], [], []>} : vector<9x256xbf16>, vector<256x256xbf16>, vector<9x256xf32> -> vector<9x256xf32>
    %54 = arith.addf %48, %53 : vector<9x256xf32>
    %c0_57 = arith.constant 0 : index
    %c1_58 = arith.constant 1 : index
    %c1_59 = arith.constant 1 : index
    %c0_60 = arith.constant 0 : index
    %55 = vector.load %arg2[%c0_57, %c1_58, %c1_59, %c0_60] : memref<1x8x10x256xbf16, #tpu.memory_space<vmem>>, vector<1x1x9x256xbf16>
    %56 = vector.shape_cast %55 : vector<1x1x9x256xbf16> to vector<9x256xbf16>
    %c7 = arith.constant 7 : index
    %c0_61 = arith.constant 0 : index
    %c0_62 = arith.constant 0 : index
    %57 = vector.load %arg4[%c7, %c0_61, %c0_62] : memref<8x256x256xbf16, #tpu.memory_space<vmem>>, vector<1x256x256xbf16>
    %58 = vector.shape_cast %57 : vector<1x256x256xbf16> to vector<256x256xbf16>
    %cst_63 = arith.constant dense<0.000000e+00> : vector<9x256xf32>
    %59 = tpu.matmul %56, %58, %cst_63 {dimension_numbers = #tpu.dot_dimension_numbers<[1], [0], [0], [1], [0, 0, 1, 1], [], []>} : vector<9x256xbf16>, vector<256x256xbf16>, vector<9x256xf32> -> vector<9x256xf32>
    %60 = arith.addf %54, %59 : vector<9x256xf32>
    %61 = vector.broadcast %0 : vector<1x256xf32> to vector<9x256xf32>
    %62 = arith.addf %60, %61 : vector<9x256xf32>
    %63 = arith.negf %62 : vector<9x256xf32>
    %64 = math.exp %63 : vector<9x256xf32>
    %cst_64 = arith.constant 1.000000e+00 : f32
    %65 = vector.broadcast %cst_64 : f32 to vector<9x256xf32>
    %66 = arith.addf %65, %64 : vector<9x256xf32>
    %67 = arith.divf %65, %66 : vector<9x256xf32>
    %c0_65 = arith.constant 0 : index
    %c0_66 = arith.constant 0 : index
    %c0_67 = arith.constant 0 : index
    %c256 = arith.constant 256 : index
    %68 = vector.load %arg6[%c0_65, %c0_66, %c0_67, %c256] : memref<1x8x9x512xf32, #tpu.memory_space<vmem>>, vector<1x1x9x256xf32>
    %69 = vector.shape_cast %68 : vector<1x1x9x256xf32> to vector<9x256xf32>
    %70 = vector.shape_cast %67 : vector<9x256xf32> to vector<1x1x9x256xf32>
    tpu.vector_store %arg6[%c0_65, %c0_66, %c0_67, %c256], %70 {strides = array<i32>} : memref<1x8x9x512xf32, #tpu.memory_space<vmem>>, vector<1x1x9x256xf32>,
    %cst_68 = arith.constant 0.000000e+00 : f32
    %71 = vector.broadcast %cst_68 : f32 to vector<9x256xf32>
    %c0_69 = arith.constant 0 : index
    %c1_70 = arith.constant 1 : index
    %c0_71 = arith.constant 0 : index
    %c0_72 = arith.constant 0 : index
    %72 = vector.load %arg2[%c0_69, %c1_70, %c0_71, %c0_72] : memref<1x8x10x256xbf16, #tpu.memory_space<vmem>>, vector<1x1x9x256xbf16>
    %73 = vector.shape_cast %72 : vector<1x1x9x256xbf16> to vector<9x256xbf16>
    %c0_73 = arith.constant 0 : index
    %c0_74 = arith.constant 0 : index
    %c0_75 = arith.constant 0 : index
    %74 = vector.load %arg4[%c0_73, %c0_74, %c0_75] : memref<8x256x256xbf16, #tpu.memory_space<vmem>>, vector<1x256x256xbf16>
    %75 = vector.shape_cast %74 : vector<1x256x256xbf16> to vector<256x256xbf16>
    %cst_76 = arith.constant dense<0.000000e+00> : vector<9x256xf32>
    %76 = tpu.matmul %73, %75, %cst_76 {dimension_numbers = #tpu.dot_dimension_numbers<[1], [0], [0], [1], [0, 0, 1, 1], [], []>} : vector<9x256xbf16>, vector<256x256xbf16>, vector<9x256xf32> -> vector<9x256xf32>
    %77 = arith.addf %71, %76 : vector<9x256xf32>
    %c0_77 = arith.constant 0 : index
    %c1_78 = arith.constant 1 : index
    %c1_79 = arith.constant 1 : index
    %c0_80 = arith.constant 0 : index
    %78 = vector.load %arg2[%c0_77, %c1_78, %c1_79, %c0_80] : memref<1x8x10x256xbf16, #tpu.memory_space<vmem>>, vector<1x1x9x256xbf16>
    %79 = vector.shape_cast %78 : vector<1x1x9x256xbf16> to vector<9x256xbf16>
    %c1_81 = arith.constant 1 : index
    %c0_82 = arith.constant 0 : index
    %c0_83 = arith.constant 0 : index
    %80 = vector.load %arg4[%c1_81, %c0_82, %c0_83] : memref<8x256x256xbf16, #tpu.memory_space<vmem>>, vector<1x256x256xbf16>
    %81 = vector.shape_cast %80 : vector<1x256x256xbf16> to vector<256x256xbf16>
    %cst_84 = arith.constant dense<0.000000e+00> : vector<9x256xf32>
    %82 = tpu.matmul %79, %81, %cst_84 {dimension_numbers = #tpu.dot_dimension_numbers<[1], [0], [0], [1], [0, 0, 1, 1], [], []>} : vector<9x256xbf16>, vector<256x256xbf16>, vector<9x256xf32> -> vector<9x256xf32>
    %83 = arith.addf %77, %82 : vector<9x256xf32>
    %c0_85 = arith.constant 0 : index
    %c2_86 = arith.constant 2 : index
    %c0_87 = arith.constant 0 : index
    %c0_88 = arith.constant 0 : index
    %84 = vector.load %arg2[%c0_85, %c2_86, %c0_87, %c0_88] : memref<1x8x10x256xbf16, #tpu.memory_space<vmem>>, vector<1x1x9x256xbf16>
    %85 = vector.shape_cast %84 : vector<1x1x9x256xbf16> to vector<9x256xbf16>
    %c2_89 = arith.constant 2 : index
    %c0_90 = arith.constant 0 : index
    %c0_91 = arith.constant 0 : index
    %86 = vector.load %arg4[%c2_89, %c0_90, %c0_91] : memref<8x256x256xbf16, #tpu.memory_space<vmem>>, vector<1x256x256xbf16>
    %87 = vector.shape_cast %86 : vector<1x256x256xbf16> to vector<256x256xbf16>
    %cst_92 = arith.constant dense<0.000000e+00> : vector<9x256xf32>
    %88 = tpu.matmul %85, %87, %cst_92 {dimension_numbers = #tpu.dot_dimension_numbers<[1], [0], [0], [1], [0, 0, 1, 1], [], []>} : vector<9x256xbf16>, vector<256x256xbf16>, vector<9x256xf32> -> vector<9x256xf32>
    %89 = arith.addf %83, %88 : vector<9x256xf32>
    %c0_93 = arith.constant 0 : index
    %c2_94 = arith.constant 2 : index
    %c1_95 = arith.constant 1 : index
    %c0_96 = arith.constant 0 : index
    %90 = vector.load %arg2[%c0_93, %c2_94, %c1_95, %c0_96] : memref<1x8x10x256xbf16, #tpu.memory_space<vmem>>, vector<1x1x9x256xbf16>
    %91 = vector.shape_cast %90 : vector<1x1x9x256xbf16> to vector<9x256xbf16>
    %c3_97 = arith.constant 3 : index
    %c0_98 = arith.constant 0 : index
    %c0_99 = arith.constant 0 : index
    %92 = vector.load %arg4[%c3_97, %c0_98, %c0_99] : memref<8x256x256xbf16, #tpu.memory_space<vmem>>, vector<1x256x256xbf16>
    %93 = vector.shape_cast %92 : vector<1x256x256xbf16> to vector<256x256xbf16>
    %cst_100 = arith.constant dense<0.000000e+00> : vector<9x256xf32>
    %94 = tpu.matmul %91, %93, %cst_100 {dimension_numbers = #tpu.dot_dimension_numbers<[1], [0], [0], [1], [0, 0, 1, 1], [], []>} : vector<9x256xbf16>, vector<256x256xbf16>, vector<9x256xf32> -> vector<9x256xf32>
    %95 = arith.addf %89, %94 : vector<9x256xf32>
    %96 = vector.broadcast %0 : vector<1x256xf32> to vector<9x256xf32>
    %97 = arith.addf %95, %96 : vector<9x256xf32>
    %98 = arith.negf %97 : vector<9x256xf32>
    %99 = math.exp %98 : vector<9x256xf32>
    %cst_101 = arith.constant 1.000000e+00 : f32
    %100 = vector.broadcast %cst_101 : f32 to vector<9x256xf32>
    %101 = arith.addf %100, %99 : vector<9x256xf32>
    %102 = arith.divf %100, %101 : vector<9x256xf32>
    %c0_102 = arith.constant 0 : index
    %c1_103 = arith.constant 1 : index
    %c0_104 = arith.constant 0 : index
    %c0_105 = arith.constant 0 : index
    %103 = vector.load %arg6[%c0_102, %c1_103, %c0_104, %c0_105] : memref<1x8x9x512xf32, #tpu.memory_space<vmem>>, vector<1x1x9x256xf32>
    %104 = vector.shape_cast %103 : vector<1x1x9x256xf32> to vector<9x256xf32>
    %105 = vector.shape_cast %102 : vector<9x256xf32> to vector<1x1x9x256xf32>
    tpu.vector_store %arg6[%c0_102, %c1_103, %c0_104, %c0_105], %105 {strides = array<i32>} : memref<1x8x9x512xf32, #tpu.memory_space<vmem>>, vector<1x1x9x256xf32>,
    %cst_106 = arith.constant 0.000000e+00 : f32
    %106 = vector.broadcast %cst_106 : f32 to vector<9x256xf32>
    %c0_107 = arith.constant 0 : index
    %c1_108 = arith.constant 1 : index
    %c0_109 = arith.constant 0 : index
    %c0_110 = arith.constant 0 : index
    %107 = vector.load %arg2[%c0_107, %c1_108, %c0_109, %c0_110] : memref<1x8x10x256xbf16, #tpu.memory_space<vmem>>, vector<1x1x9x256xbf16>
    %108 = vector.shape_cast %107 : vector<1x1x9x256xbf16> to vector<9x256xbf16>
    %c4_111 = arith.constant 4 : index
    %c0_112 = arith.constant 0 : index
    %c0_113 = arith.constant 0 : index
    %109 = vector.load %arg4[%c4_111, %c0_112, %c0_113] : memref<8x256x256xbf16, #tpu.memory_space<vmem>>, vector<1x256x256xbf16>
    %110 = vector.shape_cast %109 : vector<1x256x256xbf16> to vector<256x256xbf16>
    %cst_114 = arith.constant dense<0.000000e+00> : vector<9x256xf32>
    %111 = tpu.matmul %108, %110, %cst_114 {dimension_numbers = #tpu.dot_dimension_numbers<[1], [0], [0], [1], [0, 0, 1, 1], [], []>} : vector<9x256xbf16>, vector<256x256xbf16>, vector<9x256xf32> -> vector<9x256xf32>
    %112 = arith.addf %106, %111 : vector<9x256xf32>
    %c0_115 = arith.constant 0 : index
    %c1_116 = arith.constant 1 : index
    %c1_117 = arith.constant 1 : index
    %c0_118 = arith.constant 0 : index
    %113 = vector.load %arg2[%c0_115, %c1_116, %c1_117, %c0_118] : memref<1x8x10x256xbf16, #tpu.memory_space<vmem>>, vector<1x1x9x256xbf16>
    %114 = vector.shape_cast %113 : vector<1x1x9x256xbf16> to vector<9x256xbf16>
    %c5_119 = arith.constant 5 : index
    %c0_120 = arith.constant 0 : index
    %c0_121 = arith.constant 0 : index
    %115 = vector.load %arg4[%c5_119, %c0_120, %c0_121] : memref<8x256x256xbf16, #tpu.memory_space<vmem>>, vector<1x256x256xbf16>
    %116 = vector.shape_cast %115 : vector<1x256x256xbf16> to vector<256x256xbf16>
    %cst_122 = arith.constant dense<0.000000e+00> : vector<9x256xf32>
    %117 = tpu.matmul %114, %116, %cst_122 {dimension_numbers = #tpu.dot_dimension_numbers<[1], [0], [0], [1], [0, 0, 1, 1], [], []>} : vector<9x256xbf16>, vector<256x256xbf16>, vector<9x256xf32> -> vector<9x256xf32>
    %118 = arith.addf %112, %117 : vector<9x256xf32>
    %c0_123 = arith.constant 0 : index
    %c2_124 = arith.constant 2 : index
    %c0_125 = arith.constant 0 : index
    %c0_126 = arith.constant 0 : index
    %119 = vector.load %arg2[%c0_123, %c2_124, %c0_125, %c0_126] : memref<1x8x10x256xbf16, #tpu.memory_space<vmem>>, vector<1x1x9x256xbf16>
    %120 = vector.shape_cast %119 : vector<1x1x9x256xbf16> to vector<9x256xbf16>
    %c6_127 = arith.constant 6 : index
    %c0_128 = arith.constant 0 : index
    %c0_129 = arith.constant 0 : index
    %121 = vector.load %arg4[%c6_127, %c0_128, %c0_129] : memref<8x256x256xbf16, #tpu.memory_space<vmem>>, vector<1x256x256xbf16>
    %122 = vector.shape_cast %121 : vector<1x256x256xbf16> to vector<256x256xbf16>
    %cst_130 = arith.constant dense<0.000000e+00> : vector<9x256xf32>
    %123 = tpu.matmul %120, %122, %cst_130 {dimension_numbers = #tpu.dot_dimension_numbers<[1], [0], [0], [1], [0, 0, 1, 1], [], []>} : vector<9x256xbf16>, vector<256x256xbf16>, vector<9x256xf32> -> vector<9x256xf32>
    %124 = arith.addf %118, %123 : vector<9x256xf32>
    %c0_131 = arith.constant 0 : index
    %c2_132 = arith.constant 2 : index
    %c1_133 = arith.constant 1 : index
    %c0_134 = arith.constant 0 : index
    %125 = vector.load %arg2[%c0_131, %c2_132, %c1_133, %c0_134] : memref<1x8x10x256xbf16, #tpu.memory_space<vmem>>, vector<1x1x9x256xbf16>
    %126 = vector.shape_cast %125 : vector<1x1x9x256xbf16> to vector<9x256xbf16>
    %c7_135 = arith.constant 7 : index
    %c0_136 = arith.constant 0 : index
    %c0_137 = arith.constant 0 : index
    %127 = vector.load %arg4[%c7_135, %c0_136, %c0_137] : memref<8x256x256xbf16, #tpu.memory_space<vmem>>, vector<1x256x256xbf16>
    %128 = vector.shape_cast %127 : vector<1x256x256xbf16> to vector<256x256xbf16>
    %cst_138 = arith.constant dense<0.000000e+00> : vector<9x256xf32>
    %129 = tpu.matmul %126, %128, %cst_138 {dimension_numbers = #tpu.dot_dimension_numbers<[1], [0], [0], [1], [0, 0, 1, 1], [], []>} : vector<9x256xbf16>, vector<256x256xbf16>, vector<9x256xf32> -> vector<9x256xf32>
    %130 = arith.addf %124, %129 : vector<9x256xf32>
    %131 = vector.broadcast %0 : vector<1x256xf32> to vector<9x256xf32>
    %132 = arith.addf %130, %131 : vector<9x256xf32>
    %133 = arith.negf %132 : vector<9x256xf32>
    %134 = math.exp %133 : vector<9x256xf32>
    %cst_139 = arith.constant 1.000000e+00 : f32
    %135 = vector.broadcast %cst_139 : f32 to vector<9x256xf32>
    %136 = arith.addf %135, %134 : vector<9x256xf32>
    %137 = arith.divf %135, %136 : vector<9x256xf32>
    %c0_140 = arith.constant 0 : index
    %c1_141 = arith.constant 1 : index
    %c0_142 = arith.constant 0 : index
    %c256_143 = arith.constant 256 : index
    %138 = vector.load %arg6[%c0_140, %c1_141, %c0_142, %c256_143] : memref<1x8x9x512xf32, #tpu.memory_space<vmem>>, vector<1x1x9x256xf32>
    %139 = vector.shape_cast %138 : vector<1x1x9x256xf32> to vector<9x256xf32>
    %140 = vector.shape_cast %137 : vector<9x256xf32> to vector<1x1x9x256xf32>
    tpu.vector_store %arg6[%c0_140, %c1_141, %c0_142, %c256_143], %140 {strides = array<i32>} : memref<1x8x9x512xf32, #tpu.memory_space<vmem>>, vector<1x1x9x256xf32>,
    %cst_144 = arith.constant 0.000000e+00 : f32
    %141 = vector.broadcast %cst_144 : f32 to vector<9x256xf32>
    %c0_145 = arith.constant 0 : index
    %c2_146 = arith.constant 2 : index
    %c0_147 = arith.constant 0 : index
    %c0_148 = arith.constant 0 : index
    %142 = vector.load %arg2[%c0_145, %c2_146, %c0_147, %c0_148] : memref<1x8x10x256xbf16, #tpu.memory_space<vmem>>, vector<1x1x9x256xbf16>
    %143 = vector.shape_cast %142 : vector<1x1x9x256xbf16> to vector<9x256xbf16>
    %c0_149 = arith.constant 0 : index
    %c0_150 = arith.constant 0 : index
    %c0_151 = arith.constant 0 : index
    %144 = vector.load %arg4[%c0_149, %c0_150, %c0_151] : memref<8x256x256xbf16, #tpu.memory_space<vmem>>, vector<1x256x256xbf16>
    %145 = vector.shape_cast %144 : vector<1x256x256xbf16> to vector<256x256xbf16>
    %cst_152 = arith.constant dense<0.000000e+00> : vector<9x256xf32>
    %146 = tpu.matmul %143, %145, %cst_152 {dimension_numbers = #tpu.dot_dimension_numbers<[1], [0], [0], [1], [0, 0, 1, 1], [], []>} : vector<9x256xbf16>, vector<256x256xbf16>, vector<9x256xf32> -> vector<9x256xf32>
    %147 = arith.addf %141, %146 : vector<9x256xf32>
    %c0_153 = arith.constant 0 : index
    %c2_154 = arith.constant 2 : index
    %c1_155 = arith.constant 1 : index
    %c0_156 = arith.constant 0 : index
    %148 = vector.load %arg2[%c0_153, %c2_154, %c1_155, %c0_156] : memref<1x8x10x256xbf16, #tpu.memory_space<vmem>>, vector<1x1x9x256xbf16>
    %149 = vector.shape_cast %148 : vector<1x1x9x256xbf16> to vector<9x256xbf16>
    %c1_157 = arith.constant 1 : index
    %c0_158 = arith.constant 0 : index
    %c0_159 = arith.constant 0 : index
    %150 = vector.load %arg4[%c1_157, %c0_158, %c0_159] : memref<8x256x256xbf16, #tpu.memory_space<vmem>>, vector<1x256x256xbf16>
    %151 = vector.shape_cast %150 : vector<1x256x256xbf16> to vector<256x256xbf16>
    %cst_160 = arith.constant dense<0.000000e+00> : vector<9x256xf32>
    %152 = tpu.matmul %149, %151, %cst_160 {dimension_numbers = #tpu.dot_dimension_numbers<[1], [0], [0], [1], [0, 0, 1, 1], [], []>} : vector<9x256xbf16>, vector<256x256xbf16>, vector<9x256xf32> -> vector<9x256xf32>
    %153 = arith.addf %147, %152 : vector<9x256xf32>
    %c0_161 = arith.constant 0 : index
    %c3_162 = arith.constant 3 : index
    %c0_163 = arith.constant 0 : index
    %c0_164 = arith.constant 0 : index
    %154 = vector.load %arg2[%c0_161, %c3_162, %c0_163, %c0_164] : memref<1x8x10x256xbf16, #tpu.memory_space<vmem>>, vector<1x1x9x256xbf16>
    %155 = vector.shape_cast %154 : vector<1x1x9x256xbf16> to vector<9x256xbf16>
    %c2_165 = arith.constant 2 : index
    %c0_166 = arith.constant 0 : index
    %c0_167 = arith.constant 0 : index
    %156 = vector.load %arg4[%c2_165, %c0_166, %c0_167] : memref<8x256x256xbf16, #tpu.memory_space<vmem>>, vector<1x256x256xbf16>
    %157 = vector.shape_cast %156 : vector<1x256x256xbf16> to vector<256x256xbf16>
    %cst_168 = arith.constant dense<0.000000e+00> : vector<9x256xf32>
    %158 = tpu.matmul %155, %157, %cst_168 {dimension_numbers = #tpu.dot_dimension_numbers<[1], [0], [0], [1], [0, 0, 1, 1], [], []>} : vector<9x256xbf16>, vector<256x256xbf16>, vector<9x256xf32> -> vector<9x256xf32>
    %159 = arith.addf %153, %158 : vector<9x256xf32>
    %c0_169 = arith.constant 0 : index
    %c3_170 = arith.constant 3 : index
    %c1_171 = arith.constant 1 : index
    %c0_172 = arith.constant 0 : index
    %160 = vector.load %arg2[%c0_169, %c3_170, %c1_171, %c0_172] : memref<1x8x10x256xbf16, #tpu.memory_space<vmem>>, vector<1x1x9x256xbf16>
    %161 = vector.shape_cast %160 : vector<1x1x9x256xbf16> to vector<9x256xbf16>
    %c3_173 = arith.constant 3 : index
    %c0_174 = arith.constant 0 : index
    %c0_175 = arith.constant 0 : index
    %162 = vector.load %arg4[%c3_173, %c0_174, %c0_175] : memref<8x256x256xbf16, #tpu.memory_space<vmem>>, vector<1x256x256xbf16>
    %163 = vector.shape_cast %162 : vector<1x256x256xbf16> to vector<256x256xbf16>
    %cst_176 = arith.constant dense<0.000000e+00> : vector<9x256xf32>
    %164 = tpu.matmul %161, %163, %cst_176 {dimension_numbers = #tpu.dot_dimension_numbers<[1], [0], [0], [1], [0, 0, 1, 1], [], []>} : vector<9x256xbf16>, vector<256x256xbf16>, vector<9x256xf32> -> vector<9x256xf32>
    %165 = arith.addf %159, %164 : vector<9x256xf32>
    %166 = vector.broadcast %0 : vector<1x256xf32> to vector<9x256xf32>
    %167 = arith.addf %165, %166 : vector<9x256xf32>
    %168 = arith.negf %167 : vector<9x256xf32>
    %169 = math.exp %168 : vector<9x256xf32>
    %cst_177 = arith.constant 1.000000e+00 : f32
    %170 = vector.broadcast %cst_177 : f32 to vector<9x256xf32>
    %171 = arith.addf %170, %169 : vector<9x256xf32>
    %172 = arith.divf %170, %171 : vector<9x256xf32>
    %c0_178 = arith.constant 0 : index
    %c2_179 = arith.constant 2 : index
    %c0_180 = arith.constant 0 : index
    %c0_181 = arith.constant 0 : index
    %173 = vector.load %arg6[%c0_178, %c2_179, %c0_180, %c0_181] : memref<1x8x9x512xf32, #tpu.memory_space<vmem>>, vector<1x1x9x256xf32>
    %174 = vector.shape_cast %173 : vector<1x1x9x256xf32> to vector<9x256xf32>
    %175 = vector.shape_cast %172 : vector<9x256xf32> to vector<1x1x9x256xf32>
    tpu.vector_store %arg6[%c0_178, %c2_179, %c0_180, %c0_181], %175 {strides = array<i32>} : memref<1x8x9x512xf32, #tpu.memory_space<vmem>>, vector<1x1x9x256xf32>,
    %cst_182 = arith.constant 0.000000e+00 : f32
    %176 = vector.broadcast %cst_182 : f32 to vector<9x256xf32>
    %c0_183 = arith.constant 0 : index
    %c2_184 = arith.constant 2 : index
    %c0_185 = arith.constant 0 : index
    %c0_186 = arith.constant 0 : index
    %177 = vector.load %arg2[%c0_183, %c2_184, %c0_185, %c0_186] : memref<1x8x10x256xbf16, #tpu.memory_space<vmem>>, vector<1x1x9x256xbf16>
    %178 = vector.shape_cast %177 : vector<1x1x9x256xbf16> to vector<9x256xbf16>
    %c4_187 = arith.constant 4 : index
    %c0_188 = arith.constant 0 : index
    %c0_189 = arith.constant 0 : index
    %179 = vector.load %arg4[%c4_187, %c0_188, %c0_189] : memref<8x256x256xbf16, #tpu.memory_space<vmem>>, vector<1x256x256xbf16>
    %180 = vector.shape_cast %179 : vector<1x256x256xbf16> to vector<256x256xbf16>
    %cst_190 = arith.constant dense<0.000000e+00> : vector<9x256xf32>
    %181 = tpu.matmul %178, %180, %cst_190 {dimension_numbers = #tpu.dot_dimension_numbers<[1], [0], [0], [1], [0, 0, 1, 1], [], []>} : vector<9x256xbf16>, vector<256x256xbf16>, vector<9x256xf32> -> vector<9x256xf32>
    %182 = arith.addf %176, %181 : vector<9x256xf32>
    %c0_191 = arith.constant 0 : index
    %c2_192 = arith.constant 2 : index
    %c1_193 = arith.constant 1 : index
    %c0_194 = arith.constant 0 : index
    %183 = vector.load %arg2[%c0_191, %c2_192, %c1_193, %c0_194] : memref<1x8x10x256xbf16, #tpu.memory_space<vmem>>, vector<1x1x9x256xbf16>
    %184 = vector.shape_cast %183 : vector<1x1x9x256xbf16> to vector<9x256xbf16>
    %c5_195 = arith.constant 5 : index
    %c0_196 = arith.constant 0 : index
    %c0_197 = arith.constant 0 : index
    %185 = vector.load %arg4[%c5_195, %c0_196, %c0_197] : memref<8x256x256xbf16, #tpu.memory_space<vmem>>, vector<1x256x256xbf16>
    %186 = vector.shape_cast %185 : vector<1x256x256xbf16> to vector<256x256xbf16>
    %cst_198 = arith.constant dense<0.000000e+00> : vector<9x256xf32>
    %187 = tpu.matmul %184, %186, %cst_198 {dimension_numbers = #tpu.dot_dimension_numbers<[1], [0], [0], [1], [0, 0, 1, 1], [], []>} : vector<9x256xbf16>, vector<256x256xbf16>, vector<9x256xf32> -> vector<9x256xf32>
    %188 = arith.addf %182, %187 : vector<9x256xf32>
    %c0_199 = arith.constant 0 : index
    %c3_200 = arith.constant 3 : index
    %c0_201 = arith.constant 0 : index
    %c0_202 = arith.constant 0 : index
    %189 = vector.load %arg2[%c0_199, %c3_200, %c0_201, %c0_202] : memref<1x8x10x256xbf16, #tpu.memory_space<vmem>>, vector<1x1x9x256xbf16>
    %190 = vector.shape_cast %189 : vector<1x1x9x256xbf16> to vector<9x256xbf16>
    %c6_203 = arith.constant 6 : index
    %c0_204 = arith.constant 0 : index
    %c0_205 = arith.constant 0 : index
    %191 = vector.load %arg4[%c6_203, %c0_204, %c0_205] : memref<8x256x256xbf16, #tpu.memory_space<vmem>>, vector<1x256x256xbf16>
    %192 = vector.shape_cast %191 : vector<1x256x256xbf16> to vector<256x256xbf16>
    %cst_206 = arith.constant dense<0.000000e+00> : vector<9x256xf32>
    %193 = tpu.matmul %190, %192, %cst_206 {dimension_numbers = #tpu.dot_dimension_numbers<[1], [0], [0], [1], [0, 0, 1, 1], [], []>} : vector<9x256xbf16>, vector<256x256xbf16>, vector<9x256xf32> -> vector<9x256xf32>
    %194 = arith.addf %188, %193 : vector<9x256xf32>
    %c0_207 = arith.constant 0 : index
    %c3_208 = arith.constant 3 : index
    %c1_209 = arith.constant 1 : index
    %c0_210 = arith.constant 0 : index
    %195 = vector.load %arg2[%c0_207, %c3_208, %c1_209, %c0_210] : memref<1x8x10x256xbf16, #tpu.memory_space<vmem>>, vector<1x1x9x256xbf16>
    %196 = vector.shape_cast %195 : vector<1x1x9x256xbf16> to vector<9x256xbf16>
    %c7_211 = arith.constant 7 : index
    %c0_212 = arith.constant 0 : index
    %c0_213 = arith.constant 0 : index
    %197 = vector.load %arg4[%c7_211, %c0_212, %c0_213] : memref<8x256x256xbf16, #tpu.memory_space<vmem>>, vector<1x256x256xbf16>
    %198 = vector.shape_cast %197 : vector<1x256x256xbf16> to vector<256x256xbf16>
    %cst_214 = arith.constant dense<0.000000e+00> : vector<9x256xf32>
    %199 = tpu.matmul %196, %198, %cst_214 {dimension_numbers = #tpu.dot_dimension_numbers<[1], [0], [0], [1], [0, 0, 1, 1], [], []>} : vector<9x256xbf16>, vector<256x256xbf16>, vector<9x256xf32> -> vector<9x256xf32>
    %200 = arith.addf %194, %199 : vector<9x256xf32>
    %201 = vector.broadcast %0 : vector<1x256xf32> to vector<9x256xf32>
    %202 = arith.addf %200, %201 : vector<9x256xf32>
    %203 = arith.negf %202 : vector<9x256xf32>
    %204 = math.exp %203 : vector<9x256xf32>
    %cst_215 = arith.constant 1.000000e+00 : f32
    %205 = vector.broadcast %cst_215 : f32 to vector<9x256xf32>
    %206 = arith.addf %205, %204 : vector<9x256xf32>
    %207 = arith.divf %205, %206 : vector<9x256xf32>
    %c0_216 = arith.constant 0 : index
    %c2_217 = arith.constant 2 : index
    %c0_218 = arith.constant 0 : index
    %c256_219 = arith.constant 256 : index
    %208 = vector.load %arg6[%c0_216, %c2_217, %c0_218, %c256_219] : memref<1x8x9x512xf32, #tpu.memory_space<vmem>>, vector<1x1x9x256xf32>
    %209 = vector.shape_cast %208 : vector<1x1x9x256xf32> to vector<9x256xf32>
    %210 = vector.shape_cast %207 : vector<9x256xf32> to vector<1x1x9x256xf32>
    tpu.vector_store %arg6[%c0_216, %c2_217, %c0_218, %c256_219], %210 {strides = array<i32>} : memref<1x8x9x512xf32, #tpu.memory_space<vmem>>, vector<1x1x9x256xf32>,
    %cst_220 = arith.constant 0.000000e+00 : f32
    %211 = vector.broadcast %cst_220 : f32 to vector<9x256xf32>
    %c0_221 = arith.constant 0 : index
    %c3_222 = arith.constant 3 : index
    %c0_223 = arith.constant 0 : index
    %c0_224 = arith.constant 0 : index
    %212 = vector.load %arg2[%c0_221, %c3_222, %c0_223, %c0_224] : memref<1x8x10x256xbf16, #tpu.memory_space<vmem>>, vector<1x1x9x256xbf16>
    %213 = vector.shape_cast %212 : vector<1x1x9x256xbf16> to vector<9x256xbf16>
    %c0_225 = arith.constant 0 : index
    %c0_226 = arith.constant 0 : index
    %c0_227 = arith.constant 0 : index
    %214 = vector.load %arg4[%c0_225, %c0_226, %c0_227] : memref<8x256x256xbf16, #tpu.memory_space<vmem>>, vector<1x256x256xbf16>
    %215 = vector.shape_cast %214 : vector<1x256x256xbf16> to vector<256x256xbf16>
    %cst_228 = arith.constant dense<0.000000e+00> : vector<9x256xf32>
    %216 = tpu.matmul %213, %215, %cst_228 {dimension_numbers = #tpu.dot_dimension_numbers<[1], [0], [0], [1], [0, 0, 1, 1], [], []>} : vector<9x256xbf16>, vector<256x256xbf16>, vector<9x256xf32> -> vector<9x256xf32>
    %217 = arith.addf %211, %216 : vector<9x256xf32>
    %c0_229 = arith.constant 0 : index
    %c3_230 = arith.constant 3 : index
    %c1_231 = arith.constant 1 : index
    %c0_232 = arith.constant 0 : index
    %218 = vector.load %arg2[%c0_229, %c3_230, %c1_231, %c0_232] : memref<1x8x10x256xbf16, #tpu.memory_space<vmem>>, vector<1x1x9x256xbf16>
    %219 = vector.shape_cast %218 : vector<1x1x9x256xbf16> to vector<9x256xbf16>
    %c1_233 = arith.constant 1 : index
    %c0_234 = arith.constant 0 : index
    %c0_235 = arith.constant 0 : index
    %220 = vector.load %arg4[%c1_233, %c0_234, %c0_235] : memref<8x256x256xbf16, #tpu.memory_space<vmem>>, vector<1x256x256xbf16>
    %221 = vector.shape_cast %220 : vector<1x256x256xbf16> to vector<256x256xbf16>
    %cst_236 = arith.constant dense<0.000000e+00> : vector<9x256xf32>
    %222 = tpu.matmul %219, %221, %cst_236 {dimension_numbers = #tpu.dot_dimension_numbers<[1], [0], [0], [1], [0, 0, 1, 1], [], []>} : vector<9x256xbf16>, vector<256x256xbf16>, vector<9x256xf32> -> vector<9x256xf32>
    %223 = arith.addf %217, %222 : vector<9x256xf32>
    %c0_237 = arith.constant 0 : index
    %c4_238 = arith.constant 4 : index
    %c0_239 = arith.constant 0 : index
    %c0_240 = arith.constant 0 : index
    %224 = vector.load %arg2[%c0_237, %c4_238, %c0_239, %c0_240] : memref<1x8x10x256xbf16, #tpu.memory_space<vmem>>, vector<1x1x9x256xbf16>
    %225 = vector.shape_cast %224 : vector<1x1x9x256xbf16> to vector<9x256xbf16>
    %c2_241 = arith.constant 2 : index
    %c0_242 = arith.constant 0 : index
    %c0_243 = arith.constant 0 : index
    %226 = vector.load %arg4[%c2_241, %c0_242, %c0_243] : memref<8x256x256xbf16, #tpu.memory_space<vmem>>, vector<1x256x256xbf16>
    %227 = vector.shape_cast %226 : vector<1x256x256xbf16> to vector<256x256xbf16>
    %cst_244 = arith.constant dense<0.000000e+00> : vector<9x256xf32>
    %228 = tpu.matmul %225, %227, %cst_244 {dimension_numbers = #tpu.dot_dimension_numbers<[1], [0], [0], [1], [0, 0, 1, 1], [], []>} : vector<9x256xbf16>, vector<256x256xbf16>, vector<9x256xf32> -> vector<9x256xf32>
    %229 = arith.addf %223, %228 : vector<9x256xf32>
    %c0_245 = arith.constant 0 : index
    %c4_246 = arith.constant 4 : index
    %c1_247 = arith.constant 1 : index
    %c0_248 = arith.constant 0 : index
    %230 = vector.load %arg2[%c0_245, %c4_246, %c1_247, %c0_248] : memref<1x8x10x256xbf16, #tpu.memory_space<vmem>>, vector<1x1x9x256xbf16>
    %231 = vector.shape_cast %230 : vector<1x1x9x256xbf16> to vector<9x256xbf16>
    %c3_249 = arith.constant 3 : index
    %c0_250 = arith.constant 0 : index
    %c0_251 = arith.constant 0 : index
    %232 = vector.load %arg4[%c3_249, %c0_250, %c0_251] : memref<8x256x256xbf16, #tpu.memory_space<vmem>>, vector<1x256x256xbf16>
    %233 = vector.shape_cast %232 : vector<1x256x256xbf16> to vector<256x256xbf16>
    %cst_252 = arith.constant dense<0.000000e+00> : vector<9x256xf32>
    %234 = tpu.matmul %231, %233, %cst_252 {dimension_numbers = #tpu.dot_dimension_numbers<[1], [0], [0], [1], [0, 0, 1, 1], [], []>} : vector<9x256xbf16>, vector<256x256xbf16>, vector<9x256xf32> -> vector<9x256xf32>
    %235 = arith.addf %229, %234 : vector<9x256xf32>
    %236 = vector.broadcast %0 : vector<1x256xf32> to vector<9x256xf32>
    %237 = arith.addf %235, %236 : vector<9x256xf32>
    %238 = arith.negf %237 : vector<9x256xf32>
    %239 = math.exp %238 : vector<9x256xf32>
    %cst_253 = arith.constant 1.000000e+00 : f32
    %240 = vector.broadcast %cst_253 : f32 to vector<9x256xf32>
    %241 = arith.addf %240, %239 : vector<9x256xf32>
    %242 = arith.divf %240, %241 : vector<9x256xf32>
    %c0_254 = arith.constant 0 : index
    %c3_255 = arith.constant 3 : index
    %c0_256 = arith.constant 0 : index
    %c0_257 = arith.constant 0 : index
    %243 = vector.load %arg6[%c0_254, %c3_255, %c0_256, %c0_257] : memref<1x8x9x512xf32, #tpu.memory_space<vmem>>, vector<1x1x9x256xf32>
    %244 = vector.shape_cast %243 : vector<1x1x9x256xf32> to vector<9x256xf32>
    %245 = vector.shape_cast %242 : vector<9x256xf32> to vector<1x1x9x256xf32>
    tpu.vector_store %arg6[%c0_254, %c3_255, %c0_256, %c0_257], %245 {strides = array<i32>} : memref<1x8x9x512xf32, #tpu.memory_space<vmem>>, vector<1x1x9x256xf32>,
    %cst_258 = arith.constant 0.000000e+00 : f32
    %246 = vector.broadcast %cst_258 : f32 to vector<9x256xf32>
    %c0_259 = arith.constant 0 : index
    %c3_260 = arith.constant 3 : index
    %c0_261 = arith.constant 0 : index
    %c0_262 = arith.constant 0 : index
    %247 = vector.load %arg2[%c0_259, %c3_260, %c0_261, %c0_262] : memref<1x8x10x256xbf16, #tpu.memory_space<vmem>>, vector<1x1x9x256xbf16>
    %248 = vector.shape_cast %247 : vector<1x1x9x256xbf16> to vector<9x256xbf16>
    %c4_263 = arith.constant 4 : index
    %c0_264 = arith.constant 0 : index
    %c0_265 = arith.constant 0 : index
    %249 = vector.load %arg4[%c4_263, %c0_264, %c0_265] : memref<8x256x256xbf16, #tpu.memory_space<vmem>>, vector<1x256x256xbf16>
    %250 = vector.shape_cast %249 : vector<1x256x256xbf16> to vector<256x256xbf16>
    %cst_266 = arith.constant dense<0.000000e+00> : vector<9x256xf32>
    %251 = tpu.matmul %248, %250, %cst_266 {dimension_numbers = #tpu.dot_dimension_numbers<[1], [0], [0], [1], [0, 0, 1, 1], [], []>} : vector<9x256xbf16>, vector<256x256xbf16>, vector<9x256xf32> -> vector<9x256xf32>
    %252 = arith.addf %246, %251 : vector<9x256xf32>
    %c0_267 = arith.constant 0 : index
    %c3_268 = arith.constant 3 : index
    %c1_269 = arith.constant 1 : index
    %c0_270 = arith.constant 0 : index
    %253 = vector.load %arg2[%c0_267, %c3_268, %c1_269, %c0_270] : memref<1x8x10x256xbf16, #tpu.memory_space<vmem>>, vector<1x1x9x256xbf16>
    %254 = vector.shape_cast %253 : vector<1x1x9x256xbf16> to vector<9x256xbf16>
    %c5_271 = arith.constant 5 : index
    %c0_272 = arith.constant 0 : index
    %c0_273 = arith.constant 0 : index
    %255 = vector.load %arg4[%c5_271, %c0_272, %c0_273] : memref<8x256x256xbf16, #tpu.memory_space<vmem>>, vector<1x256x256xbf16>
    %256 = vector.shape_cast %255 : vector<1x256x256xbf16> to vector<256x256xbf16>
    %cst_274 = arith.constant dense<0.000000e+00> : vector<9x256xf32>
    %257 = tpu.matmul %254, %256, %cst_274 {dimension_numbers = #tpu.dot_dimension_numbers<[1], [0], [0], [1], [0, 0, 1, 1], [], []>} : vector<9x256xbf16>, vector<256x256xbf16>, vector<9x256xf32> -> vector<9x256xf32>
    %258 = arith.addf %252, %257 : vector<9x256xf32>
    %c0_275 = arith.constant 0 : index
    %c4_276 = arith.constant 4 : index
    %c0_277 = arith.constant 0 : index
    %c0_278 = arith.constant 0 : index
    %259 = vector.load %arg2[%c0_275, %c4_276, %c0_277, %c0_278] : memref<1x8x10x256xbf16, #tpu.memory_space<vmem>>, vector<1x1x9x256xbf16>
    %260 = vector.shape_cast %259 : vector<1x1x9x256xbf16> to vector<9x256xbf16>
    %c6_279 = arith.constant 6 : index
    %c0_280 = arith.constant 0 : index
    %c0_281 = arith.constant 0 : index
    %261 = vector.load %arg4[%c6_279, %c0_280, %c0_281] : memref<8x256x256xbf16, #tpu.memory_space<vmem>>, vector<1x256x256xbf16>
    %262 = vector.shape_cast %261 : vector<1x256x256xbf16> to vector<256x256xbf16>
    %cst_282 = arith.constant dense<0.000000e+00> : vector<9x256xf32>
    %263 = tpu.matmul %260, %262, %cst_282 {dimension_numbers = #tpu.dot_dimension_numbers<[1], [0], [0], [1], [0, 0, 1, 1], [], []>} : vector<9x256xbf16>, vector<256x256xbf16>, vector<9x256xf32> -> vector<9x256xf32>
    %264 = arith.addf %258, %263 : vector<9x256xf32>
    %c0_283 = arith.constant 0 : index
    %c4_284 = arith.constant 4 : index
    %c1_285 = arith.constant 1 : index
    %c0_286 = arith.constant 0 : index
    %265 = vector.load %arg2[%c0_283, %c4_284, %c1_285, %c0_286] : memref<1x8x10x256xbf16, #tpu.memory_space<vmem>>, vector<1x1x9x256xbf16>
    %266 = vector.shape_cast %265 : vector<1x1x9x256xbf16> to vector<9x256xbf16>
    %c7_287 = arith.constant 7 : index
    %c0_288 = arith.constant 0 : index
    %c0_289 = arith.constant 0 : index
    %267 = vector.load %arg4[%c7_287, %c0_288, %c0_289] : memref<8x256x256xbf16, #tpu.memory_space<vmem>>, vector<1x256x256xbf16>
    %268 = vector.shape_cast %267 : vector<1x256x256xbf16> to vector<256x256xbf16>
    %cst_290 = arith.constant dense<0.000000e+00> : vector<9x256xf32>
    %269 = tpu.matmul %266, %268, %cst_290 {dimension_numbers = #tpu.dot_dimension_numbers<[1], [0], [0], [1], [0, 0, 1, 1], [], []>} : vector<9x256xbf16>, vector<256x256xbf16>, vector<9x256xf32> -> vector<9x256xf32>
    %270 = arith.addf %264, %269 : vector<9x256xf32>
    %271 = vector.broadcast %0 : vector<1x256xf32> to vector<9x256xf32>
    %272 = arith.addf %270, %271 : vector<9x256xf32>
    %273 = arith.negf %272 : vector<9x256xf32>
    %274 = math.exp %273 : vector<9x256xf32>
    %cst_291 = arith.constant 1.000000e+00 : f32
    %275 = vector.broadcast %cst_291 : f32 to vector<9x256xf32>
    %276 = arith.addf %275, %274 : vector<9x256xf32>
    %277 = arith.divf %275, %276 : vector<9x256xf32>
    %c0_292 = arith.constant 0 : index
    %c3_293 = arith.constant 3 : index
    %c0_294 = arith.constant 0 : index
    %c256_295 = arith.constant 256 : index
    %278 = vector.load %arg6[%c0_292, %c3_293, %c0_294, %c256_295] : memref<1x8x9x512xf32, #tpu.memory_space<vmem>>, vector<1x1x9x256xf32>
    %279 = vector.shape_cast %278 : vector<1x1x9x256xf32> to vector<9x256xf32>
    %280 = vector.shape_cast %277 : vector<9x256xf32> to vector<1x1x9x256xf32>
    tpu.vector_store %arg6[%c0_292, %c3_293, %c0_294, %c256_295], %280 {strides = array<i32>} : memref<1x8x9x512xf32, #tpu.memory_space<vmem>>, vector<1x1x9x256xf32>,
    %cst_296 = arith.constant 0.000000e+00 : f32
    %281 = vector.broadcast %cst_296 : f32 to vector<9x256xf32>
    %c0_297 = arith.constant 0 : index
    %c4_298 = arith.constant 4 : index
    %c0_299 = arith.constant 0 : index
    %c0_300 = arith.constant 0 : index
    %282 = vector.load %arg2[%c0_297, %c4_298, %c0_299, %c0_300] : memref<1x8x10x256xbf16, #tpu.memory_space<vmem>>, vector<1x1x9x256xbf16>
    %283 = vector.shape_cast %282 : vector<1x1x9x256xbf16> to vector<9x256xbf16>
    %c0_301 = arith.constant 0 : index
    %c0_302 = arith.constant 0 : index
    %c0_303 = arith.constant 0 : index
    %284 = vector.load %arg4[%c0_301, %c0_302, %c0_303] : memref<8x256x256xbf16, #tpu.memory_space<vmem>>, vector<1x256x256xbf16>
    %285 = vector.shape_cast %284 : vector<1x256x256xbf16> to vector<256x256xbf16>
    %cst_304 = arith.constant dense<0.000000e+00> : vector<9x256xf32>
    %286 = tpu.matmul %283, %285, %cst_304 {dimension_numbers = #tpu.dot_dimension_numbers<[1], [0], [0], [1], [0, 0, 1, 1], [], []>} : vector<9x256xbf16>, vector<256x256xbf16>, vector<9x256xf32> -> vector<9x256xf32>
    %287 = arith.addf %281, %286 : vector<9x256xf32>
    %c0_305 = arith.constant 0 : index
    %c4_306 = arith.constant 4 : index
    %c1_307 = arith.constant 1 : index
    %c0_308 = arith.constant 0 : index
    %288 = vector.load %arg2[%c0_305, %c4_306, %c1_307, %c0_308] : memref<1x8x10x256xbf16, #tpu.memory_space<vmem>>, vector<1x1x9x256xbf16>
    %289 = vector.shape_cast %288 : vector<1x1x9x256xbf16> to vector<9x256xbf16>
    %c1_309 = arith.constant 1 : index
    %c0_310 = arith.constant 0 : index
    %c0_311 = arith.constant 0 : index
    %290 = vector.load %arg4[%c1_309, %c0_310, %c0_311] : memref<8x256x256xbf16, #tpu.memory_space<vmem>>, vector<1x256x256xbf16>
    %291 = vector.shape_cast %290 : vector<1x256x256xbf16> to vector<256x256xbf16>
    %cst_312 = arith.constant dense<0.000000e+00> : vector<9x256xf32>
    %292 = tpu.matmul %289, %291, %cst_312 {dimension_numbers = #tpu.dot_dimension_numbers<[1], [0], [0], [1], [0, 0, 1, 1], [], []>} : vector<9x256xbf16>, vector<256x256xbf16>, vector<9x256xf32> -> vector<9x256xf32>
    %293 = arith.addf %287, %292 : vector<9x256xf32>
    %c0_313 = arith.constant 0 : index
    %c5_314 = arith.constant 5 : index
    %c0_315 = arith.constant 0 : index
    %c0_316 = arith.constant 0 : index
    %294 = vector.load %arg2[%c0_313, %c5_314, %c0_315, %c0_316] : memref<1x8x10x256xbf16, #tpu.memory_space<vmem>>, vector<1x1x9x256xbf16>
    %295 = vector.shape_cast %294 : vector<1x1x9x256xbf16> to vector<9x256xbf16>
    %c2_317 = arith.constant 2 : index
    %c0_318 = arith.constant 0 : index
    %c0_319 = arith.constant 0 : index
    %296 = vector.load %arg4[%c2_317, %c0_318, %c0_319] : memref<8x256x256xbf16, #tpu.memory_space<vmem>>, vector<1x256x256xbf16>
    %297 = vector.shape_cast %296 : vector<1x256x256xbf16> to vector<256x256xbf16>
    %cst_320 = arith.constant dense<0.000000e+00> : vector<9x256xf32>
    %298 = tpu.matmul %295, %297, %cst_320 {dimension_numbers = #tpu.dot_dimension_numbers<[1], [0], [0], [1], [0, 0, 1, 1], [], []>} : vector<9x256xbf16>, vector<256x256xbf16>, vector<9x256xf32> -> vector<9x256xf32>
    %299 = arith.addf %293, %298 : vector<9x256xf32>
    %c0_321 = arith.constant 0 : index
    %c5_322 = arith.constant 5 : index
    %c1_323 = arith.constant 1 : index
    %c0_324 = arith.constant 0 : index
    %300 = vector.load %arg2[%c0_321, %c5_322, %c1_323, %c0_324] : memref<1x8x10x256xbf16, #tpu.memory_space<vmem>>, vector<1x1x9x256xbf16>
    %301 = vector.shape_cast %300 : vector<1x1x9x256xbf16> to vector<9x256xbf16>
    %c3_325 = arith.constant 3 : index
    %c0_326 = arith.constant 0 : index
    %c0_327 = arith.constant 0 : index
    %302 = vector.load %arg4[%c3_325, %c0_326, %c0_327] : memref<8x256x256xbf16, #tpu.memory_space<vmem>>, vector<1x256x256xbf16>
    %303 = vector.shape_cast %302 : vector<1x256x256xbf16> to vector<256x256xbf16>
    %cst_328 = arith.constant dense<0.000000e+00> : vector<9x256xf32>
    %304 = tpu.matmul %301, %303, %cst_328 {dimension_numbers = #tpu.dot_dimension_numbers<[1], [0], [0], [1], [0, 0, 1, 1], [], []>} : vector<9x256xbf16>, vector<256x256xbf16>, vector<9x256xf32> -> vector<9x256xf32>
    %305 = arith.addf %299, %304 : vector<9x256xf32>
    %306 = vector.broadcast %0 : vector<1x256xf32> to vector<9x256xf32>
    %307 = arith.addf %305, %306 : vector<9x256xf32>
    %308 = arith.negf %307 : vector<9x256xf32>
    %309 = math.exp %308 : vector<9x256xf32>
    %cst_329 = arith.constant 1.000000e+00 : f32
    %310 = vector.broadcast %cst_329 : f32 to vector<9x256xf32>
    %311 = arith.addf %310, %309 : vector<9x256xf32>
    %312 = arith.divf %310, %311 : vector<9x256xf32>
    %c0_330 = arith.constant 0 : index
    %c4_331 = arith.constant 4 : index
    %c0_332 = arith.constant 0 : index
    %c0_333 = arith.constant 0 : index
    %313 = vector.load %arg6[%c0_330, %c4_331, %c0_332, %c0_333] : memref<1x8x9x512xf32, #tpu.memory_space<vmem>>, vector<1x1x9x256xf32>
    %314 = vector.shape_cast %313 : vector<1x1x9x256xf32> to vector<9x256xf32>
    %315 = vector.shape_cast %312 : vector<9x256xf32> to vector<1x1x9x256xf32>
    tpu.vector_store %arg6[%c0_330, %c4_331, %c0_332, %c0_333], %315 {strides = array<i32>} : memref<1x8x9x512xf32, #tpu.memory_space<vmem>>, vector<1x1x9x256xf32>,
    %cst_334 = arith.constant 0.000000e+00 : f32
    %316 = vector.broadcast %cst_334 : f32 to vector<9x256xf32>
    %c0_335 = arith.constant 0 : index
    %c4_336 = arith.constant 4 : index
    %c0_337 = arith.constant 0 : index
    %c0_338 = arith.constant 0 : index
    %317 = vector.load %arg2[%c0_335, %c4_336, %c0_337, %c0_338] : memref<1x8x10x256xbf16, #tpu.memory_space<vmem>>, vector<1x1x9x256xbf16>
    %318 = vector.shape_cast %317 : vector<1x1x9x256xbf16> to vector<9x256xbf16>
    %c4_339 = arith.constant 4 : index
    %c0_340 = arith.constant 0 : index
    %c0_341 = arith.constant 0 : index
    %319 = vector.load %arg4[%c4_339, %c0_340, %c0_341] : memref<8x256x256xbf16, #tpu.memory_space<vmem>>, vector<1x256x256xbf16>
    %320 = vector.shape_cast %319 : vector<1x256x256xbf16> to vector<256x256xbf16>
    %cst_342 = arith.constant dense<0.000000e+00> : vector<9x256xf32>
    %321 = tpu.matmul %318, %320, %cst_342 {dimension_numbers = #tpu.dot_dimension_numbers<[1], [0], [0], [1], [0, 0, 1, 1], [], []>} : vector<9x256xbf16>, vector<256x256xbf16>, vector<9x256xf32> -> vector<9x256xf32>
    %322 = arith.addf %316, %321 : vector<9x256xf32>
    %c0_343 = arith.constant 0 : index
    %c4_344 = arith.constant 4 : index
    %c1_345 = arith.constant 1 : index
    %c0_346 = arith.constant 0 : index
    %323 = vector.load %arg2[%c0_343, %c4_344, %c1_345, %c0_346] : memref<1x8x10x256xbf16, #tpu.memory_space<vmem>>, vector<1x1x9x256xbf16>
    %324 = vector.shape_cast %323 : vector<1x1x9x256xbf16> to vector<9x256xbf16>
    %c5_347 = arith.constant 5 : index
    %c0_348 = arith.constant 0 : index
    %c0_349 = arith.constant 0 : index
    %325 = vector.load %arg4[%c5_347, %c0_348, %c0_349] : memref<8x256x256xbf16, #tpu.memory_space<vmem>>, vector<1x256x256xbf16>
    %326 = vector.shape_cast %325 : vector<1x256x256xbf16> to vector<256x256xbf16>
    %cst_350 = arith.constant dense<0.000000e+00> : vector<9x256xf32>
    %327 = tpu.matmul %324, %326, %cst_350 {dimension_numbers = #tpu.dot_dimension_numbers<[1], [0], [0], [1], [0, 0, 1, 1], [], []>} : vector<9x256xbf16>, vector<256x256xbf16>, vector<9x256xf32> -> vector<9x256xf32>
    %328 = arith.addf %322, %327 : vector<9x256xf32>
    %c0_351 = arith.constant 0 : index
    %c5_352 = arith.constant 5 : index
    %c0_353 = arith.constant 0 : index
    %c0_354 = arith.constant 0 : index
    %329 = vector.load %arg2[%c0_351, %c5_352, %c0_353, %c0_354] : memref<1x8x10x256xbf16, #tpu.memory_space<vmem>>, vector<1x1x9x256xbf16>
    %330 = vector.shape_cast %329 : vector<1x1x9x256xbf16> to vector<9x256xbf16>
    %c6_355 = arith.constant 6 : index
    %c0_356 = arith.constant 0 : index
    %c0_357 = arith.constant 0 : index
    %331 = vector.load %arg4[%c6_355, %c0_356, %c0_357] : memref<8x256x256xbf16, #tpu.memory_space<vmem>>, vector<1x256x256xbf16>
    %332 = vector.shape_cast %331 : vector<1x256x256xbf16> to vector<256x256xbf16>
    %cst_358 = arith.constant dense<0.000000e+00> : vector<9x256xf32>
    %333 = tpu.matmul %330, %332, %cst_358 {dimension_numbers = #tpu.dot_dimension_numbers<[1], [0], [0], [1], [0, 0, 1, 1], [], []>} : vector<9x256xbf16>, vector<256x256xbf16>, vector<9x256xf32> -> vector<9x256xf32>
    %334 = arith.addf %328, %333 : vector<9x256xf32>
    %c0_359 = arith.constant 0 : index
    %c5_360 = arith.constant 5 : index
    %c1_361 = arith.constant 1 : index
    %c0_362 = arith.constant 0 : index
    %335 = vector.load %arg2[%c0_359, %c5_360, %c1_361, %c0_362] : memref<1x8x10x256xbf16, #tpu.memory_space<vmem>>, vector<1x1x9x256xbf16>
    %336 = vector.shape_cast %335 : vector<1x1x9x256xbf16> to vector<9x256xbf16>
    %c7_363 = arith.constant 7 : index
    %c0_364 = arith.constant 0 : index
    %c0_365 = arith.constant 0 : index
    %337 = vector.load %arg4[%c7_363, %c0_364, %c0_365] : memref<8x256x256xbf16, #tpu.memory_space<vmem>>, vector<1x256x256xbf16>
    %338 = vector.shape_cast %337 : vector<1x256x256xbf16> to vector<256x256xbf16>
    %cst_366 = arith.constant dense<0.000000e+00> : vector<9x256xf32>
    %339 = tpu.matmul %336, %338, %cst_366 {dimension_numbers = #tpu.dot_dimension_numbers<[1], [0], [0], [1], [0, 0, 1, 1], [], []>} : vector<9x256xbf16>, vector<256x256xbf16>, vector<9x256xf32> -> vector<9x256xf32>
    %340 = arith.addf %334, %339 : vector<9x256xf32>
    %341 = vector.broadcast %0 : vector<1x256xf32> to vector<9x256xf32>
    %342 = arith.addf %340, %341 : vector<9x256xf32>
    %343 = arith.negf %342 : vector<9x256xf32>
    %344 = math.exp %343 : vector<9x256xf32>
    %cst_367 = arith.constant 1.000000e+00 : f32
    %345 = vector.broadcast %cst_367 : f32 to vector<9x256xf32>
    %346 = arith.addf %345, %344 : vector<9x256xf32>
    %347 = arith.divf %345, %346 : vector<9x256xf32>
    %c0_368 = arith.constant 0 : index
    %c4_369 = arith.constant 4 : index
    %c0_370 = arith.constant 0 : index
    %c256_371 = arith.constant 256 : index
    %348 = vector.load %arg6[%c0_368, %c4_369, %c0_370, %c256_371] : memref<1x8x9x512xf32, #tpu.memory_space<vmem>>, vector<1x1x9x256xf32>
    %349 = vector.shape_cast %348 : vector<1x1x9x256xf32> to vector<9x256xf32>
    %350 = vector.shape_cast %347 : vector<9x256xf32> to vector<1x1x9x256xf32>
    tpu.vector_store %arg6[%c0_368, %c4_369, %c0_370, %c256_371], %350 {strides = array<i32>} : memref<1x8x9x512xf32, #tpu.memory_space<vmem>>, vector<1x1x9x256xf32>,
    %cst_372 = arith.constant 0.000000e+00 : f32
    %351 = vector.broadcast %cst_372 : f32 to vector<9x256xf32>
    %c0_373 = arith.constant 0 : index
    %c5_374 = arith.constant 5 : index
    %c0_375 = arith.constant 0 : index
    %c0_376 = arith.constant 0 : index
    %352 = vector.load %arg2[%c0_373, %c5_374, %c0_375, %c0_376] : memref<1x8x10x256xbf16, #tpu.memory_space<vmem>>, vector<1x1x9x256xbf16>
    %353 = vector.shape_cast %352 : vector<1x1x9x256xbf16> to vector<9x256xbf16>
    %c0_377 = arith.constant 0 : index
    %c0_378 = arith.constant 0 : index
    %c0_379 = arith.constant 0 : index
    %354 = vector.load %arg4[%c0_377, %c0_378, %c0_379] : memref<8x256x256xbf16, #tpu.memory_space<vmem>>, vector<1x256x256xbf16>
    %355 = vector.shape_cast %354 : vector<1x256x256xbf16> to vector<256x256xbf16>
    %cst_380 = arith.constant dense<0.000000e+00> : vector<9x256xf32>
    %356 = tpu.matmul %353, %355, %cst_380 {dimension_numbers = #tpu.dot_dimension_numbers<[1], [0], [0], [1], [0, 0, 1, 1], [], []>} : vector<9x256xbf16>, vector<256x256xbf16>, vector<9x256xf32> -> vector<9x256xf32>
    %357 = arith.addf %351, %356 : vector<9x256xf32>
    %c0_381 = arith.constant 0 : index
    %c5_382 = arith.constant 5 : index
    %c1_383 = arith.constant 1 : index
    %c0_384 = arith.constant 0 : index
    %358 = vector.load %arg2[%c0_381, %c5_382, %c1_383, %c0_384] : memref<1x8x10x256xbf16, #tpu.memory_space<vmem>>, vector<1x1x9x256xbf16>
    %359 = vector.shape_cast %358 : vector<1x1x9x256xbf16> to vector<9x256xbf16>
    %c1_385 = arith.constant 1 : index
    %c0_386 = arith.constant 0 : index
    %c0_387 = arith.constant 0 : index
    %360 = vector.load %arg4[%c1_385, %c0_386, %c0_387] : memref<8x256x256xbf16, #tpu.memory_space<vmem>>, vector<1x256x256xbf16>
    %361 = vector.shape_cast %360 : vector<1x256x256xbf16> to vector<256x256xbf16>
    %cst_388 = arith.constant dense<0.000000e+00> : vector<9x256xf32>
    %362 = tpu.matmul %359, %361, %cst_388 {dimension_numbers = #tpu.dot_dimension_numbers<[1], [0], [0], [1], [0, 0, 1, 1], [], []>} : vector<9x256xbf16>, vector<256x256xbf16>, vector<9x256xf32> -> vector<9x256xf32>
    %363 = arith.addf %357, %362 : vector<9x256xf32>
    %c0_389 = arith.constant 0 : index
    %c6_390 = arith.constant 6 : index
    %c0_391 = arith.constant 0 : index
    %c0_392 = arith.constant 0 : index
    %364 = vector.load %arg2[%c0_389, %c6_390, %c0_391, %c0_392] : memref<1x8x10x256xbf16, #tpu.memory_space<vmem>>, vector<1x1x9x256xbf16>
    %365 = vector.shape_cast %364 : vector<1x1x9x256xbf16> to vector<9x256xbf16>
    %c2_393 = arith.constant 2 : index
    %c0_394 = arith.constant 0 : index
    %c0_395 = arith.constant 0 : index
    %366 = vector.load %arg4[%c2_393, %c0_394, %c0_395] : memref<8x256x256xbf16, #tpu.memory_space<vmem>>, vector<1x256x256xbf16>
    %367 = vector.shape_cast %366 : vector<1x256x256xbf16> to vector<256x256xbf16>
    %cst_396 = arith.constant dense<0.000000e+00> : vector<9x256xf32>
    %368 = tpu.matmul %365, %367, %cst_396 {dimension_numbers = #tpu.dot_dimension_numbers<[1], [0], [0], [1], [0, 0, 1, 1], [], []>} : vector<9x256xbf16>, vector<256x256xbf16>, vector<9x256xf32> -> vector<9x256xf32>
    %369 = arith.addf %363, %368 : vector<9x256xf32>
    %c0_397 = arith.constant 0 : index
    %c6_398 = arith.constant 6 : index
    %c1_399 = arith.constant 1 : index
    %c0_400 = arith.constant 0 : index
    %370 = vector.load %arg2[%c0_397, %c6_398, %c1_399, %c0_400] : memref<1x8x10x256xbf16, #tpu.memory_space<vmem>>, vector<1x1x9x256xbf16>
    %371 = vector.shape_cast %370 : vector<1x1x9x256xbf16> to vector<9x256xbf16>
    %c3_401 = arith.constant 3 : index
    %c0_402 = arith.constant 0 : index
    %c0_403 = arith.constant 0 : index
    %372 = vector.load %arg4[%c3_401, %c0_402, %c0_403] : memref<8x256x256xbf16, #tpu.memory_space<vmem>>, vector<1x256x256xbf16>
    %373 = vector.shape_cast %372 : vector<1x256x256xbf16> to vector<256x256xbf16>
    %cst_404 = arith.constant dense<0.000000e+00> : vector<9x256xf32>
    %374 = tpu.matmul %371, %373, %cst_404 {dimension_numbers = #tpu.dot_dimension_numbers<[1], [0], [0], [1], [0, 0, 1, 1], [], []>} : vector<9x256xbf16>, vector<256x256xbf16>, vector<9x256xf32> -> vector<9x256xf32>
    %375 = arith.addf %369, %374 : vector<9x256xf32>
    %376 = vector.broadcast %0 : vector<1x256xf32> to vector<9x256xf32>
    %377 = arith.addf %375, %376 : vector<9x256xf32>
    %378 = arith.negf %377 : vector<9x256xf32>
    %379 = math.exp %378 : vector<9x256xf32>
    %cst_405 = arith.constant 1.000000e+00 : f32
    %380 = vector.broadcast %cst_405 : f32 to vector<9x256xf32>
    %381 = arith.addf %380, %379 : vector<9x256xf32>
    %382 = arith.divf %380, %381 : vector<9x256xf32>
    %c0_406 = arith.constant 0 : index
    %c5_407 = arith.constant 5 : index
    %c0_408 = arith.constant 0 : index
    %c0_409 = arith.constant 0 : index
    %383 = vector.load %arg6[%c0_406, %c5_407, %c0_408, %c0_409] : memref<1x8x9x512xf32, #tpu.memory_space<vmem>>, vector<1x1x9x256xf32>
    %384 = vector.shape_cast %383 : vector<1x1x9x256xf32> to vector<9x256xf32>
    %385 = vector.shape_cast %382 : vector<9x256xf32> to vector<1x1x9x256xf32>
    tpu.vector_store %arg6[%c0_406, %c5_407, %c0_408, %c0_409], %385 {strides = array<i32>} : memref<1x8x9x512xf32, #tpu.memory_space<vmem>>, vector<1x1x9x256xf32>,
    %cst_410 = arith.constant 0.000000e+00 : f32
    %386 = vector.broadcast %cst_410 : f32 to vector<9x256xf32>
    %c0_411 = arith.constant 0 : index
    %c5_412 = arith.constant 5 : index
    %c0_413 = arith.constant 0 : index
    %c0_414 = arith.constant 0 : index
    %387 = vector.load %arg2[%c0_411, %c5_412, %c0_413, %c0_414] : memref<1x8x10x256xbf16, #tpu.memory_space<vmem>>, vector<1x1x9x256xbf16>
    %388 = vector.shape_cast %387 : vector<1x1x9x256xbf16> to vector<9x256xbf16>
    %c4_415 = arith.constant 4 : index
    %c0_416 = arith.constant 0 : index
    %c0_417 = arith.constant 0 : index
    %389 = vector.load %arg4[%c4_415, %c0_416, %c0_417] : memref<8x256x256xbf16, #tpu.memory_space<vmem>>, vector<1x256x256xbf16>
    %390 = vector.shape_cast %389 : vector<1x256x256xbf16> to vector<256x256xbf16>
    %cst_418 = arith.constant dense<0.000000e+00> : vector<9x256xf32>
    %391 = tpu.matmul %388, %390, %cst_418 {dimension_numbers = #tpu.dot_dimension_numbers<[1], [0], [0], [1], [0, 0, 1, 1], [], []>} : vector<9x256xbf16>, vector<256x256xbf16>, vector<9x256xf32> -> vector<9x256xf32>
    %392 = arith.addf %386, %391 : vector<9x256xf32>
    %c0_419 = arith.constant 0 : index
    %c5_420 = arith.constant 5 : index
    %c1_421 = arith.constant 1 : index
    %c0_422 = arith.constant 0 : index
    %393 = vector.load %arg2[%c0_419, %c5_420, %c1_421, %c0_422] : memref<1x8x10x256xbf16, #tpu.memory_space<vmem>>, vector<1x1x9x256xbf16>
    %394 = vector.shape_cast %393 : vector<1x1x9x256xbf16> to vector<9x256xbf16>
    %c5_423 = arith.constant 5 : index
    %c0_424 = arith.constant 0 : index
    %c0_425 = arith.constant 0 : index
    %395 = vector.load %arg4[%c5_423, %c0_424, %c0_425] : memref<8x256x256xbf16, #tpu.memory_space<vmem>>, vector<1x256x256xbf16>
    %396 = vector.shape_cast %395 : vector<1x256x256xbf16> to vector<256x256xbf16>
    %cst_426 = arith.constant dense<0.000000e+00> : vector<9x256xf32>
    %397 = tpu.matmul %394, %396, %cst_426 {dimension_numbers = #tpu.dot_dimension_numbers<[1], [0], [0], [1], [0, 0, 1, 1], [], []>} : vector<9x256xbf16>, vector<256x256xbf16>, vector<9x256xf32> -> vector<9x256xf32>
    %398 = arith.addf %392, %397 : vector<9x256xf32>
    %c0_427 = arith.constant 0 : index
    %c6_428 = arith.constant 6 : index
    %c0_429 = arith.constant 0 : index
    %c0_430 = arith.constant 0 : index
    %399 = vector.load %arg2[%c0_427, %c6_428, %c0_429, %c0_430] : memref<1x8x10x256xbf16, #tpu.memory_space<vmem>>, vector<1x1x9x256xbf16>
    %400 = vector.shape_cast %399 : vector<1x1x9x256xbf16> to vector<9x256xbf16>
    %c6_431 = arith.constant 6 : index
    %c0_432 = arith.constant 0 : index
    %c0_433 = arith.constant 0 : index
    %401 = vector.load %arg4[%c6_431, %c0_432, %c0_433] : memref<8x256x256xbf16, #tpu.memory_space<vmem>>, vector<1x256x256xbf16>
    %402 = vector.shape_cast %401 : vector<1x256x256xbf16> to vector<256x256xbf16>
    %cst_434 = arith.constant dense<0.000000e+00> : vector<9x256xf32>
    %403 = tpu.matmul %400, %402, %cst_434 {dimension_numbers = #tpu.dot_dimension_numbers<[1], [0], [0], [1], [0, 0, 1, 1], [], []>} : vector<9x256xbf16>, vector<256x256xbf16>, vector<9x256xf32> -> vector<9x256xf32>
    %404 = arith.addf %398, %403 : vector<9x256xf32>
    %c0_435 = arith.constant 0 : index
    %c6_436 = arith.constant 6 : index
    %c1_437 = arith.constant 1 : index
    %c0_438 = arith.constant 0 : index
    %405 = vector.load %arg2[%c0_435, %c6_436, %c1_437, %c0_438] : memref<1x8x10x256xbf16, #tpu.memory_space<vmem>>, vector<1x1x9x256xbf16>
    %406 = vector.shape_cast %405 : vector<1x1x9x256xbf16> to vector<9x256xbf16>
    %c7_439 = arith.constant 7 : index
    %c0_440 = arith.constant 0 : index
    %c0_441 = arith.constant 0 : index
    %407 = vector.load %arg4[%c7_439, %c0_440, %c0_441] : memref<8x256x256xbf16, #tpu.memory_space<vmem>>, vector<1x256x256xbf16>
    %408 = vector.shape_cast %407 : vector<1x256x256xbf16> to vector<256x256xbf16>
    %cst_442 = arith.constant dense<0.000000e+00> : vector<9x256xf32>
    %409 = tpu.matmul %406, %408, %cst_442 {dimension_numbers = #tpu.dot_dimension_numbers<[1], [0], [0], [1], [0, 0, 1, 1], [], []>} : vector<9x256xbf16>, vector<256x256xbf16>, vector<9x256xf32> -> vector<9x256xf32>
    %410 = arith.addf %404, %409 : vector<9x256xf32>
    %411 = vector.broadcast %0 : vector<1x256xf32> to vector<9x256xf32>
    %412 = arith.addf %410, %411 : vector<9x256xf32>
    %413 = arith.negf %412 : vector<9x256xf32>
    %414 = math.exp %413 : vector<9x256xf32>
    %cst_443 = arith.constant 1.000000e+00 : f32
    %415 = vector.broadcast %cst_443 : f32 to vector<9x256xf32>
    %416 = arith.addf %415, %414 : vector<9x256xf32>
    %417 = arith.divf %415, %416 : vector<9x256xf32>
    %c0_444 = arith.constant 0 : index
    %c5_445 = arith.constant 5 : index
    %c0_446 = arith.constant 0 : index
    %c256_447 = arith.constant 256 : index
    %418 = vector.load %arg6[%c0_444, %c5_445, %c0_446, %c256_447] : memref<1x8x9x512xf32, #tpu.memory_space<vmem>>, vector<1x1x9x256xf32>
    %419 = vector.shape_cast %418 : vector<1x1x9x256xf32> to vector<9x256xf32>
    %420 = vector.shape_cast %417 : vector<9x256xf32> to vector<1x1x9x256xf32>
    tpu.vector_store %arg6[%c0_444, %c5_445, %c0_446, %c256_447], %420 {strides = array<i32>} : memref<1x8x9x512xf32, #tpu.memory_space<vmem>>, vector<1x1x9x256xf32>,
    %cst_448 = arith.constant 0.000000e+00 : f32
    %421 = vector.broadcast %cst_448 : f32 to vector<9x256xf32>
    %c0_449 = arith.constant 0 : index
    %c6_450 = arith.constant 6 : index
    %c0_451 = arith.constant 0 : index
    %c0_452 = arith.constant 0 : index
    %422 = vector.load %arg2[%c0_449, %c6_450, %c0_451, %c0_452] : memref<1x8x10x256xbf16, #tpu.memory_space<vmem>>, vector<1x1x9x256xbf16>
    %423 = vector.shape_cast %422 : vector<1x1x9x256xbf16> to vector<9x256xbf16>
    %c0_453 = arith.constant 0 : index
    %c0_454 = arith.constant 0 : index
    %c0_455 = arith.constant 0 : index
    %424 = vector.load %arg4[%c0_453, %c0_454, %c0_455] : memref<8x256x256xbf16, #tpu.memory_space<vmem>>, vector<1x256x256xbf16>
    %425 = vector.shape_cast %424 : vector<1x256x256xbf16> to vector<256x256xbf16>
    %cst_456 = arith.constant dense<0.000000e+00> : vector<9x256xf32>
    %426 = tpu.matmul %423, %425, %cst_456 {dimension_numbers = #tpu.dot_dimension_numbers<[1], [0], [0], [1], [0, 0, 1, 1], [], []>} : vector<9x256xbf16>, vector<256x256xbf16>, vector<9x256xf32> -> vector<9x256xf32>
    %427 = arith.addf %421, %426 : vector<9x256xf32>
    %c0_457 = arith.constant 0 : index
    %c6_458 = arith.constant 6 : index
    %c1_459 = arith.constant 1 : index
    %c0_460 = arith.constant 0 : index
    %428 = vector.load %arg2[%c0_457, %c6_458, %c1_459, %c0_460] : memref<1x8x10x256xbf16, #tpu.memory_space<vmem>>, vector<1x1x9x256xbf16>
    %429 = vector.shape_cast %428 : vector<1x1x9x256xbf16> to vector<9x256xbf16>
    %c1_461 = arith.constant 1 : index
    %c0_462 = arith.constant 0 : index
    %c0_463 = arith.constant 0 : index
    %430 = vector.load %arg4[%c1_461, %c0_462, %c0_463] : memref<8x256x256xbf16, #tpu.memory_space<vmem>>, vector<1x256x256xbf16>
    %431 = vector.shape_cast %430 : vector<1x256x256xbf16> to vector<256x256xbf16>
    %cst_464 = arith.constant dense<0.000000e+00> : vector<9x256xf32>
    %432 = tpu.matmul %429, %431, %cst_464 {dimension_numbers = #tpu.dot_dimension_numbers<[1], [0], [0], [1], [0, 0, 1, 1], [], []>} : vector<9x256xbf16>, vector<256x256xbf16>, vector<9x256xf32> -> vector<9x256xf32>
    %433 = arith.addf %427, %432 : vector<9x256xf32>
    %c0_465 = arith.constant 0 : index
    %c7_466 = arith.constant 7 : index
    %c0_467 = arith.constant 0 : index
    %c0_468 = arith.constant 0 : index
    %434 = vector.load %arg2[%c0_465, %c7_466, %c0_467, %c0_468] : memref<1x8x10x256xbf16, #tpu.memory_space<vmem>>, vector<1x1x9x256xbf16>
    %435 = vector.shape_cast %434 : vector<1x1x9x256xbf16> to vector<9x256xbf16>
    %c2_469 = arith.constant 2 : index
    %c0_470 = arith.constant 0 : index
    %c0_471 = arith.constant 0 : index
    %436 = vector.load %arg4[%c2_469, %c0_470, %c0_471] : memref<8x256x256xbf16, #tpu.memory_space<vmem>>, vector<1x256x256xbf16>
    %437 = vector.shape_cast %436 : vector<1x256x256xbf16> to vector<256x256xbf16>
    %cst_472 = arith.constant dense<0.000000e+00> : vector<9x256xf32>
    %438 = tpu.matmul %435, %437, %cst_472 {dimension_numbers = #tpu.dot_dimension_numbers<[1], [0], [0], [1], [0, 0, 1, 1], [], []>} : vector<9x256xbf16>, vector<256x256xbf16>, vector<9x256xf32> -> vector<9x256xf32>
    %439 = arith.addf %433, %438 : vector<9x256xf32>
    %c0_473 = arith.constant 0 : index
    %c7_474 = arith.constant 7 : index
    %c1_475 = arith.constant 1 : index
    %c0_476 = arith.constant 0 : index
    %440 = vector.load %arg2[%c0_473, %c7_474, %c1_475, %c0_476] : memref<1x8x10x256xbf16, #tpu.memory_space<vmem>>, vector<1x1x9x256xbf16>
    %441 = vector.shape_cast %440 : vector<1x1x9x256xbf16> to vector<9x256xbf16>
    %c3_477 = arith.constant 3 : index
    %c0_478 = arith.constant 0 : index
    %c0_479 = arith.constant 0 : index
    %442 = vector.load %arg4[%c3_477, %c0_478, %c0_479] : memref<8x256x256xbf16, #tpu.memory_space<vmem>>, vector<1x256x256xbf16>
    %443 = vector.shape_cast %442 : vector<1x256x256xbf16> to vector<256x256xbf16>
    %cst_480 = arith.constant dense<0.000000e+00> : vector<9x256xf32>
    %444 = tpu.matmul %441, %443, %cst_480 {dimension_numbers = #tpu.dot_dimension_numbers<[1], [0], [0], [1], [0, 0, 1, 1], [], []>} : vector<9x256xbf16>, vector<256x256xbf16>, vector<9x256xf32> -> vector<9x256xf32>
    %445 = arith.addf %439, %444 : vector<9x256xf32>
    %446 = vector.broadcast %0 : vector<1x256xf32> to vector<9x256xf32>
    %447 = arith.addf %445, %446 : vector<9x256xf32>
    %448 = arith.negf %447 : vector<9x256xf32>
    %449 = math.exp %448 : vector<9x256xf32>
    %cst_481 = arith.constant 1.000000e+00 : f32
    %450 = vector.broadcast %cst_481 : f32 to vector<9x256xf32>
    %451 = arith.addf %450, %449 : vector<9x256xf32>
    %452 = arith.divf %450, %451 : vector<9x256xf32>
    %c0_482 = arith.constant 0 : index
    %c6_483 = arith.constant 6 : index
    %c0_484 = arith.constant 0 : index
    %c0_485 = arith.constant 0 : index
    %453 = vector.load %arg6[%c0_482, %c6_483, %c0_484, %c0_485] : memref<1x8x9x512xf32, #tpu.memory_space<vmem>>, vector<1x1x9x256xf32>
    %454 = vector.shape_cast %453 : vector<1x1x9x256xf32> to vector<9x256xf32>
    %455 = vector.shape_cast %452 : vector<9x256xf32> to vector<1x1x9x256xf32>
    tpu.vector_store %arg6[%c0_482, %c6_483, %c0_484, %c0_485], %455 {strides = array<i32>} : memref<1x8x9x512xf32, #tpu.memory_space<vmem>>, vector<1x1x9x256xf32>,
    %cst_486 = arith.constant 0.000000e+00 : f32
    %456 = vector.broadcast %cst_486 : f32 to vector<9x256xf32>
    %c0_487 = arith.constant 0 : index
    %c6_488 = arith.constant 6 : index
    %c0_489 = arith.constant 0 : index
    %c0_490 = arith.constant 0 : index
    %457 = vector.load %arg2[%c0_487, %c6_488, %c0_489, %c0_490] : memref<1x8x10x256xbf16, #tpu.memory_space<vmem>>, vector<1x1x9x256xbf16>
    %458 = vector.shape_cast %457 : vector<1x1x9x256xbf16> to vector<9x256xbf16>
    %c4_491 = arith.constant 4 : index
    %c0_492 = arith.constant 0 : index
    %c0_493 = arith.constant 0 : index
    %459 = vector.load %arg4[%c4_491, %c0_492, %c0_493] : memref<8x256x256xbf16, #tpu.memory_space<vmem>>, vector<1x256x256xbf16>
    %460 = vector.shape_cast %459 : vector<1x256x256xbf16> to vector<256x256xbf16>
    %cst_494 = arith.constant dense<0.000000e+00> : vector<9x256xf32>
    %461 = tpu.matmul %458, %460, %cst_494 {dimension_numbers = #tpu.dot_dimension_numbers<[1], [0], [0], [1], [0, 0, 1, 1], [], []>} : vector<9x256xbf16>, vector<256x256xbf16>, vector<9x256xf32> -> vector<9x256xf32>
    %462 = arith.addf %456, %461 : vector<9x256xf32>
    %c0_495 = arith.constant 0 : index
    %c6_496 = arith.constant 6 : index
    %c1_497 = arith.constant 1 : index
    %c0_498 = arith.constant 0 : index
    %463 = vector.load %arg2[%c0_495, %c6_496, %c1_497, %c0_498] : memref<1x8x10x256xbf16, #tpu.memory_space<vmem>>, vector<1x1x9x256xbf16>
    %464 = vector.shape_cast %463 : vector<1x1x9x256xbf16> to vector<9x256xbf16>
    %c5_499 = arith.constant 5 : index
    %c0_500 = arith.constant 0 : index
    %c0_501 = arith.constant 0 : index
    %465 = vector.load %arg4[%c5_499, %c0_500, %c0_501] : memref<8x256x256xbf16, #tpu.memory_space<vmem>>, vector<1x256x256xbf16>
    %466 = vector.shape_cast %465 : vector<1x256x256xbf16> to vector<256x256xbf16>
    %cst_502 = arith.constant dense<0.000000e+00> : vector<9x256xf32>
    %467 = tpu.matmul %464, %466, %cst_502 {dimension_numbers = #tpu.dot_dimension_numbers<[1], [0], [0], [1], [0, 0, 1, 1], [], []>} : vector<9x256xbf16>, vector<256x256xbf16>, vector<9x256xf32> -> vector<9x256xf32>
    %468 = arith.addf %462, %467 : vector<9x256xf32>
    %c0_503 = arith.constant 0 : index
    %c7_504 = arith.constant 7 : index
    %c0_505 = arith.constant 0 : index
    %c0_506 = arith.constant 0 : index
    %469 = vector.load %arg2[%c0_503, %c7_504, %c0_505, %c0_506] : memref<1x8x10x256xbf16, #tpu.memory_space<vmem>>, vector<1x1x9x256xbf16>
    %470 = vector.shape_cast %469 : vector<1x1x9x256xbf16> to vector<9x256xbf16>
    %c6_507 = arith.constant 6 : index
    %c0_508 = arith.constant 0 : index
    %c0_509 = arith.constant 0 : index
    %471 = vector.load %arg4[%c6_507, %c0_508, %c0_509] : memref<8x256x256xbf16, #tpu.memory_space<vmem>>, vector<1x256x256xbf16>
    %472 = vector.shape_cast %471 : vector<1x256x256xbf16> to vector<256x256xbf16>
    %cst_510 = arith.constant dense<0.000000e+00> : vector<9x256xf32>
    %473 = tpu.matmul %470, %472, %cst_510 {dimension_numbers = #tpu.dot_dimension_numbers<[1], [0], [0], [1], [0, 0, 1, 1], [], []>} : vector<9x256xbf16>, vector<256x256xbf16>, vector<9x256xf32> -> vector<9x256xf32>
    %474 = arith.addf %468, %473 : vector<9x256xf32>
    %c0_511 = arith.constant 0 : index
    %c7_512 = arith.constant 7 : index
    %c1_513 = arith.constant 1 : index
    %c0_514 = arith.constant 0 : index
    %475 = vector.load %arg2[%c0_511, %c7_512, %c1_513, %c0_514] : memref<1x8x10x256xbf16, #tpu.memory_space<vmem>>, vector<1x1x9x256xbf16>
    %476 = vector.shape_cast %475 : vector<1x1x9x256xbf16> to vector<9x256xbf16>
    %c7_515 = arith.constant 7 : index
    %c0_516 = arith.constant 0 : index
    %c0_517 = arith.constant 0 : index
    %477 = vector.load %arg4[%c7_515, %c0_516, %c0_517] : memref<8x256x256xbf16, #tpu.memory_space<vmem>>, vector<1x256x256xbf16>
    %478 = vector.shape_cast %477 : vector<1x256x256xbf16> to vector<256x256xbf16>
    %cst_518 = arith.constant dense<0.000000e+00> : vector<9x256xf32>
    %479 = tpu.matmul %476, %478, %cst_518 {dimension_numbers = #tpu.dot_dimension_numbers<[1], [0], [0], [1], [0, 0, 1, 1], [], []>} : vector<9x256xbf16>, vector<256x256xbf16>, vector<9x256xf32> -> vector<9x256xf32>
    %480 = arith.addf %474, %479 : vector<9x256xf32>
    %481 = vector.broadcast %0 : vector<1x256xf32> to vector<9x256xf32>
    %482 = arith.addf %480, %481 : vector<9x256xf32>
    %483 = arith.negf %482 : vector<9x256xf32>
    %484 = math.exp %483 : vector<9x256xf32>
    %cst_519 = arith.constant 1.000000e+00 : f32
    %485 = vector.broadcast %cst_519 : f32 to vector<9x256xf32>
    %486 = arith.addf %485, %484 : vector<9x256xf32>
    %487 = arith.divf %485, %486 : vector<9x256xf32>
    %c0_520 = arith.constant 0 : index
    %c6_521 = arith.constant 6 : index
    %c0_522 = arith.constant 0 : index
    %c256_523 = arith.constant 256 : index
    %488 = vector.load %arg6[%c0_520, %c6_521, %c0_522, %c256_523] : memref<1x8x9x512xf32, #tpu.memory_space<vmem>>, vector<1x1x9x256xf32>
    %489 = vector.shape_cast %488 : vector<1x1x9x256xf32> to vector<9x256xf32>
    %490 = vector.shape_cast %487 : vector<9x256xf32> to vector<1x1x9x256xf32>
    tpu.vector_store %arg6[%c0_520, %c6_521, %c0_522, %c256_523], %490 {strides = array<i32>} : memref<1x8x9x512xf32, #tpu.memory_space<vmem>>, vector<1x1x9x256xf32>,
    %cst_524 = arith.constant 0.000000e+00 : f32
    %491 = vector.broadcast %cst_524 : f32 to vector<9x256xf32>
    %c0_525 = arith.constant 0 : index
    %c7_526 = arith.constant 7 : index
    %c0_527 = arith.constant 0 : index
    %c0_528 = arith.constant 0 : index
    %492 = vector.load %arg2[%c0_525, %c7_526, %c0_527, %c0_528] : memref<1x8x10x256xbf16, #tpu.memory_space<vmem>>, vector<1x1x9x256xbf16>
    %493 = vector.shape_cast %492 : vector<1x1x9x256xbf16> to vector<9x256xbf16>
    %c0_529 = arith.constant 0 : index
    %c0_530 = arith.constant 0 : index
    %c0_531 = arith.constant 0 : index
    %494 = vector.load %arg4[%c0_529, %c0_530, %c0_531] : memref<8x256x256xbf16, #tpu.memory_space<vmem>>, vector<1x256x256xbf16>
    %495 = vector.shape_cast %494 : vector<1x256x256xbf16> to vector<256x256xbf16>
    %cst_532 = arith.constant dense<0.000000e+00> : vector<9x256xf32>
    %496 = tpu.matmul %493, %495, %cst_532 {dimension_numbers = #tpu.dot_dimension_numbers<[1], [0], [0], [1], [0, 0, 1, 1], [], []>} : vector<9x256xbf16>, vector<256x256xbf16>, vector<9x256xf32> -> vector<9x256xf32>
    %497 = arith.addf %491, %496 : vector<9x256xf32>
    %c0_533 = arith.constant 0 : index
    %c7_534 = arith.constant 7 : index
    %c1_535 = arith.constant 1 : index
    %c0_536 = arith.constant 0 : index
    %498 = vector.load %arg2[%c0_533, %c7_534, %c1_535, %c0_536] : memref<1x8x10x256xbf16, #tpu.memory_space<vmem>>, vector<1x1x9x256xbf16>
    %499 = vector.shape_cast %498 : vector<1x1x9x256xbf16> to vector<9x256xbf16>
    %c1_537 = arith.constant 1 : index
    %c0_538 = arith.constant 0 : index
    %c0_539 = arith.constant 0 : index
    %500 = vector.load %arg4[%c1_537, %c0_538, %c0_539] : memref<8x256x256xbf16, #tpu.memory_space<vmem>>, vector<1x256x256xbf16>
    %501 = vector.shape_cast %500 : vector<1x256x256xbf16> to vector<256x256xbf16>
    %cst_540 = arith.constant dense<0.000000e+00> : vector<9x256xf32>
    %502 = tpu.matmul %499, %501, %cst_540 {dimension_numbers = #tpu.dot_dimension_numbers<[1], [0], [0], [1], [0, 0, 1, 1], [], []>} : vector<9x256xbf16>, vector<256x256xbf16>, vector<9x256xf32> -> vector<9x256xf32>
    %503 = arith.addf %497, %502 : vector<9x256xf32>
    %c0_541 = arith.constant 0 : index
    %c0_542 = arith.constant 0 : index
    %c0_543 = arith.constant 0 : index
    %c0_544 = arith.constant 0 : index
    %504 = vector.load %arg3[%c0_541, %c0_542, %c0_543, %c0_544] : memref<1x1x10x256xbf16, #tpu.memory_space<vmem>>, vector<1x1x9x256xbf16>
    %505 = vector.shape_cast %504 : vector<1x1x9x256xbf16> to vector<9x256xbf16>
    %c2_545 = arith.constant 2 : index
    %c0_546 = arith.constant 0 : index
    %c0_547 = arith.constant 0 : index
    %506 = vector.load %arg4[%c2_545, %c0_546, %c0_547] : memref<8x256x256xbf16, #tpu.memory_space<vmem>>, vector<1x256x256xbf16>
    %507 = vector.shape_cast %506 : vector<1x256x256xbf16> to vector<256x256xbf16>
    %cst_548 = arith.constant dense<0.000000e+00> : vector<9x256xf32>
    %508 = tpu.matmul %505, %507, %cst_548 {dimension_numbers = #tpu.dot_dimension_numbers<[1], [0], [0], [1], [0, 0, 1, 1], [], []>} : vector<9x256xbf16>, vector<256x256xbf16>, vector<9x256xf32> -> vector<9x256xf32>
    %509 = arith.addf %503, %508 : vector<9x256xf32>
    %c0_549 = arith.constant 0 : index
    %c0_550 = arith.constant 0 : index
    %c1_551 = arith.constant 1 : index
    %c0_552 = arith.constant 0 : index
    %510 = vector.load %arg3[%c0_549, %c0_550, %c1_551, %c0_552] : memref<1x1x10x256xbf16, #tpu.memory_space<vmem>>, vector<1x1x9x256xbf16>
    %511 = vector.shape_cast %510 : vector<1x1x9x256xbf16> to vector<9x256xbf16>
    %c3_553 = arith.constant 3 : index
    %c0_554 = arith.constant 0 : index
    %c0_555 = arith.constant 0 : index
    %512 = vector.load %arg4[%c3_553, %c0_554, %c0_555] : memref<8x256x256xbf16, #tpu.memory_space<vmem>>, vector<1x256x256xbf16>
    %513 = vector.shape_cast %512 : vector<1x256x256xbf16> to vector<256x256xbf16>
    %cst_556 = arith.constant dense<0.000000e+00> : vector<9x256xf32>
    %514 = tpu.matmul %511, %513, %cst_556 {dimension_numbers = #tpu.dot_dimension_numbers<[1], [0], [0], [1], [0, 0, 1, 1], [], []>} : vector<9x256xbf16>, vector<256x256xbf16>, vector<9x256xf32> -> vector<9x256xf32>
    %515 = arith.addf %509, %514 : vector<9x256xf32>
    %516 = vector.broadcast %0 : vector<1x256xf32> to vector<9x256xf32>
    %517 = arith.addf %515, %516 : vector<9x256xf32>
    %518 = arith.negf %517 : vector<9x256xf32>
    %519 = math.exp %518 : vector<9x256xf32>
    %cst_557 = arith.constant 1.000000e+00 : f32
    %520 = vector.broadcast %cst_557 : f32 to vector<9x256xf32>
    %521 = arith.addf %520, %519 : vector<9x256xf32>
    %522 = arith.divf %520, %521 : vector<9x256xf32>
    %c0_558 = arith.constant 0 : index
    %c7_559 = arith.constant 7 : index
    %c0_560 = arith.constant 0 : index
    %c0_561 = arith.constant 0 : index
    %523 = vector.load %arg6[%c0_558, %c7_559, %c0_560, %c0_561] : memref<1x8x9x512xf32, #tpu.memory_space<vmem>>, vector<1x1x9x256xf32>
    %524 = vector.shape_cast %523 : vector<1x1x9x256xf32> to vector<9x256xf32>
    %525 = vector.shape_cast %522 : vector<9x256xf32> to vector<1x1x9x256xf32>
    tpu.vector_store %arg6[%c0_558, %c7_559, %c0_560, %c0_561], %525 {strides = array<i32>} : memref<1x8x9x512xf32, #tpu.memory_space<vmem>>, vector<1x1x9x256xf32>,
    %cst_562 = arith.constant 0.000000e+00 : f32
    %526 = vector.broadcast %cst_562 : f32 to vector<9x256xf32>
    %c0_563 = arith.constant 0 : index
    %c7_564 = arith.constant 7 : index
    %c0_565 = arith.constant 0 : index
    %c0_566 = arith.constant 0 : index
    %527 = vector.load %arg2[%c0_563, %c7_564, %c0_565, %c0_566] : memref<1x8x10x256xbf16, #tpu.memory_space<vmem>>, vector<1x1x9x256xbf16>
    %528 = vector.shape_cast %527 : vector<1x1x9x256xbf16> to vector<9x256xbf16>
    %c4_567 = arith.constant 4 : index
    %c0_568 = arith.constant 0 : index
    %c0_569 = arith.constant 0 : index
    %529 = vector.load %arg4[%c4_567, %c0_568, %c0_569] : memref<8x256x256xbf16, #tpu.memory_space<vmem>>, vector<1x256x256xbf16>
    %530 = vector.shape_cast %529 : vector<1x256x256xbf16> to vector<256x256xbf16>
    %cst_570 = arith.constant dense<0.000000e+00> : vector<9x256xf32>
    %531 = tpu.matmul %528, %530, %cst_570 {dimension_numbers = #tpu.dot_dimension_numbers<[1], [0], [0], [1], [0, 0, 1, 1], [], []>} : vector<9x256xbf16>, vector<256x256xbf16>, vector<9x256xf32> -> vector<9x256xf32>
    %532 = arith.addf %526, %531 : vector<9x256xf32>
    %c0_571 = arith.constant 0 : index
    %c7_572 = arith.constant 7 : index
    %c1_573 = arith.constant 1 : index
    %c0_574 = arith.constant 0 : index
    %533 = vector.load %arg2[%c0_571, %c7_572, %c1_573, %c0_574] : memref<1x8x10x256xbf16, #tpu.memory_space<vmem>>, vector<1x1x9x256xbf16>
    %534 = vector.shape_cast %533 : vector<1x1x9x256xbf16> to vector<9x256xbf16>
    %c5_575 = arith.constant 5 : index
    %c0_576 = arith.constant 0 : index
    %c0_577 = arith.constant 0 : index
    %535 = vector.load %arg4[%c5_575, %c0_576, %c0_577] : memref<8x256x256xbf16, #tpu.memory_space<vmem>>, vector<1x256x256xbf16>
    %536 = vector.shape_cast %535 : vector<1x256x256xbf16> to vector<256x256xbf16>
    %cst_578 = arith.constant dense<0.000000e+00> : vector<9x256xf32>
    %537 = tpu.matmul %534, %536, %cst_578 {dimension_numbers = #tpu.dot_dimension_numbers<[1], [0], [0], [1], [0, 0, 1, 1], [], []>} : vector<9x256xbf16>, vector<256x256xbf16>, vector<9x256xf32> -> vector<9x256xf32>
    %538 = arith.addf %532, %537 : vector<9x256xf32>
    %c0_579 = arith.constant 0 : index
    %c0_580 = arith.constant 0 : index
    %c0_581 = arith.constant 0 : index
    %c0_582 = arith.constant 0 : index
    %539 = vector.load %arg3[%c0_579, %c0_580, %c0_581, %c0_582] : memref<1x1x10x256xbf16, #tpu.memory_space<vmem>>, vector<1x1x9x256xbf16>
    %540 = vector.shape_cast %539 : vector<1x1x9x256xbf16> to vector<9x256xbf16>
    %c6_583 = arith.constant 6 : index
    %c0_584 = arith.constant 0 : index
    %c0_585 = arith.constant 0 : index
    %541 = vector.load %arg4[%c6_583, %c0_584, %c0_585] : memref<8x256x256xbf16, #tpu.memory_space<vmem>>, vector<1x256x256xbf16>
    %542 = vector.shape_cast %541 : vector<1x256x256xbf16> to vector<256x256xbf16>
    %cst_586 = arith.constant dense<0.000000e+00> : vector<9x256xf32>
    %543 = tpu.matmul %540, %542, %cst_586 {dimension_numbers = #tpu.dot_dimension_numbers<[1], [0], [0], [1], [0, 0, 1, 1], [], []>} : vector<9x256xbf16>, vector<256x256xbf16>, vector<9x256xf32> -> vector<9x256xf32>
    %544 = arith.addf %538, %543 : vector<9x256xf32>
    %c0_587 = arith.constant 0 : index
    %c0_588 = arith.constant 0 : index
    %c1_589 = arith.constant 1 : index
    %c0_590 = arith.constant 0 : index
    %545 = vector.load %arg3[%c0_587, %c0_588, %c1_589, %c0_590] : memref<1x1x10x256xbf16, #tpu.memory_space<vmem>>, vector<1x1x9x256xbf16>
    %546 = vector.shape_cast %545 : vector<1x1x9x256xbf16> to vector<9x256xbf16>
    %c7_591 = arith.constant 7 : index
    %c0_592 = arith.constant 0 : index
    %c0_593 = arith.constant 0 : index
    %547 = vector.load %arg4[%c7_591, %c0_592, %c0_593] : memref<8x256x256xbf16, #tpu.memory_space<vmem>>, vector<1x256x256xbf16>
    %548 = vector.shape_cast %547 : vector<1x256x256xbf16> to vector<256x256xbf16>
    %cst_594 = arith.constant dense<0.000000e+00> : vector<9x256xf32>
    %549 = tpu.matmul %546, %548, %cst_594 {dimension_numbers = #tpu.dot_dimension_numbers<[1], [0], [0], [1], [0, 0, 1, 1], [], []>} : vector<9x256xbf16>, vector<256x256xbf16>, vector<9x256xf32> -> vector<9x256xf32>
    %550 = arith.addf %544, %549 : vector<9x256xf32>
    %551 = vector.broadcast %0 : vector<1x256xf32> to vector<9x256xf32>
    %552 = arith.addf %550, %551 : vector<9x256xf32>
    %553 = arith.negf %552 : vector<9x256xf32>
    %554 = math.exp %553 : vector<9x256xf32>
    %cst_595 = arith.constant 1.000000e+00 : f32
    %555 = vector.broadcast %cst_595 : f32 to vector<9x256xf32>
    %556 = arith.addf %555, %554 : vector<9x256xf32>
    %557 = arith.divf %555, %556 : vector<9x256xf32>
    %c0_596 = arith.constant 0 : index
    %c7_597 = arith.constant 7 : index
    %c0_598 = arith.constant 0 : index
    %c256_599 = arith.constant 256 : index
    %558 = vector.load %arg6[%c0_596, %c7_597, %c0_598, %c256_599] : memref<1x8x9x512xf32, #tpu.memory_space<vmem>>, vector<1x1x9x256xf32>
    %559 = vector.shape_cast %558 : vector<1x1x9x256xf32> to vector<9x256xf32>
    %560 = vector.shape_cast %557 : vector<9x256xf32> to vector<1x1x9x256xf32>
    tpu.vector_store %arg6[%c0_596, %c7_597, %c0_598, %c256_599], %560 {strides = array<i32>} : memref<1x8x9x512xf32, #tpu.memory_space<vmem>>, vector<1x1x9x256xf32>,
    return
  }
  func.func @transform_0(%arg0: i32, %arg1: i32) -> (i32, i32, i32, i32) {
    %c0_i32 = arith.constant 0 : i32
    %c0_i32_0 = arith.constant 0 : i32
    %c0_i32_1 = arith.constant 0 : i32
    return %arg0, %arg1, %c0_i32, %c0_i32_0 : i32, i32, i32, i32
  }
  func.func @transform_1(%arg0: i32, %arg1: i32) -> (i32, i32, i32, i32) {
    %c8_i32 = arith.constant 8 : i32
    %0 = arith.muli %arg1, %c8_i32 : i32
    %c8_i32_0 = arith.constant 8 : i32
    %1 = arith.addi %0, %c8_i32_0 : i32
    %c0_i32 = arith.constant 0 : i32
    %c0_i32_1 = arith.constant 0 : i32
    %c0_i32_2 = arith.constant 0 : i32
    return %arg0, %1, %c0_i32, %c0_i32_1 : i32, i32, i32, i32
  }
  func.func @transform_2(%arg0: i32, %arg1: i32) -> (i32, i32, i32) {
    %c0_i32 = arith.constant 0 : i32
    %c0_i32_0 = arith.constant 0 : i32
    %c0_i32_1 = arith.constant 0 : i32
    %c0_i32_2 = arith.constant 0 : i32
    return %c0_i32, %c0_i32_0, %c0_i32_1 : i32, i32, i32
  }
  func.func @transform_3(%arg0: i32, %arg1: i32) -> (i32, i32) {
    %c0_i32 = arith.constant 0 : i32
    %c0_i32_0 = arith.constant 0 : i32
    %c0_i32_1 = arith.constant 0 : i32
    return %c0_i32, %c0_i32_0 : i32, i32
  }
  func.func @transform_4(%arg0: i32, %arg1: i32) -> (i32, i32, i32, i32) {
    %c0_i32 = arith.constant 0 : i32
    %c0_i32_0 = arith.constant 0 : i32
    %c0_i32_1 = arith.constant 0 : i32
    return %arg0, %arg1, %c0_i32, %c0_i32_0 : i32, i32, i32, i32
  }
}

</mosaic_0001>

<bundles_post_ra>
// kernel: tpu_custom_call.1
= control target key start
LH: loop header
LB: loop body
LE: loop exit
PB: predicated region body
PF: predicated region fallthrough
CT: control target
= control target key end

     0   :  { %9 = vsyncpa [#allocation3], 0  ;;  %s22908_s15 = smov 0   ;;  %s22910_s16 = smov 0   ;;  %s23413_s0 = inlined_call_operand.vmem [shape: bf16[1,17,10,256], index: 0, kind: input, shape index: {}]   ;;  %s23414_s1 = inlined_call_operand.vmem [shape: bf16[1,17,10,256], index: 1, kind: input, shape index: {}]   ;;  %s23415_s2 = inlined_call_operand.hbm [shape: bf16[8,256,256], index: 2, kind: input, shape index: {}]   ;;  %s23416_s3 = inlined_call_operand.vmem [shape: f32[1,256], index: 3, kind: input, shape index: {}]   ;;  %s23417_s4 = inlined_call_operand.vmem [shape: f32[1,16,9,512], index: 4, kind: output, shape index: {}]  }
   0x1   :  { %s22912_s17 = smov 0  }
   0x2 LB: > { %s17073_s18 = sadd.s32 4294967295, %s22878_s17   ;;  %s24_s19 = sadd.s32 1, %s22874_s16  ;;  %s22878_s17 = sphi %s22912_s17, %s15_s17   ;;  %s22874_s16 = sphi %s22910_s16, %s23421_s16   ;;  %s22870_s15 = sphi %s22908_s15, %s23420_s15  }
   0x3   : > { %p25_p0 = scmp.ge.s32.totalorder %s24_s19, 2  ;;  %p17077_p1 = scmp.ge.s32.totalorder %s22878_s17, 1 }
   0x4   : > { %p162_p2 = scmp.lt.s32.totalorder %s22878_s17, 3  ;;  %p22933_p4 = scmp.eq.s32.totalorder %s17073_s18, 0 }
   0x5   : > { %s23423_s19 = smov (%p25_p0, %s24_s19), 0  ;;  %s22880_s22 = smov [#allocation2]  }
   0x6   : > { %p22929_p3 = pnand %p17077_p1, %p162_p2  ;;  %s174_s23 = sshll.u32 %s22880_s22, 4  ;;  %s175_s23 = int_to_ptr.vmem [resolvable:$true] %s174_s23 }
   0x7   : > { %s22837_s24 = scalar_lea.vmem %s175_s23, 32768  ;;  %p22845_p11 = scmp.lt.s32.totalorder %s175_s23, %s175_s23 }
   0x8   : > { %p19388_p5 = pneg %p22929_p3  ;;  %p22838_p8 = scmp.ne.s32.totalorder %s175_s23, %s22837_s24 }
   0x9   : > { %p22846_p12 = scmp.lt.s32.totalorder %s22837_s24, %s22837_s24 }
   0xa   : > { %p19389_p6 = pnand %p22933_p4, %p19388_p5 }
   0xb   : > { %p22847_p13 = por %p22846_p12, %p22845_p11 }
   0xc   : > { %p22828_p7 = pneg %p19389_p6 }
   0xe   : > { %p22840_p9 = pnand %p22838_p8, %p22828_p7 }
  0x10   : > { %p22841_p10 = pneg %p22840_p9 }
  0x12   : > { %p22848_p0 = pnand %p22847_p13, %p22841_p10 }
  0x14   : > { %22851 = shalt.err (!%p22848_p0)
}
  0x15   : > { %s22881_s25 = smov 128   ;;  %s22882_s26 = smov 8  }
  0x16   : > { %19391 = dma.hbm_to_vmem [thread:$0]  (!%p19389_p6), %s23415_s2, 32768, %s175_s23, [#allocation3], %s22881_s25, %s22881_s25, %s22882_s26  }
  0x17   : > { %235 = sbr.rel (%p22929_p3) target bundleno = 2316 (0x90c), region = 36 }
  0x1c   : > { %22865 = dma.done.wait (%p22933_p4), [#allocation3], 32768  }
  0x1d   : > { %22867 = vsyncadd (%p22933_p4), [#allocation3], 4294934528  ;;  %v19421_v0 = vld [vmem:[#allocation2 + $0x174] ss:$8 sps:$4 sm:$0xff]   ;;  %v19425_v2 = vld [vmem:[#allocation2 + $0x170] ss:$8 sps:$4 sm:$0xff]  }
  0x1e   : > { %v19423_v1 = vld [vmem:[#allocation2 + $0x74] ss:$8 sps:$4 sm:$0xff]   ;;  %587 = vmatprep.subr.bf16.mxu0 %v19421_v0  ;;  %v19426_v3 = vld [vmem:[#allocation2 + $0x70] ss:$8 sps:$4 sm:$0xff]   ;;  %v19427_v4 = vld [vmem:[#allocation2 + $0x164] ss:$8 sps:$4 sm:$0xff]  }
  0x1f   : > { %792 = vmatprep.subr.bf16.mxu1 %v19423_v1  ;;  %588 = vmatpush1.bf16.msra.mxu0 %v19425_v2  ;;  %v19429_v5 = vld [vmem:[#allocation2 + $0x64] ss:$8 sps:$4 sm:$0xff]   ;;  %v19431_v6 = vld [vmem:[#allocation2 + $0x160] ss:$8 sps:$4 sm:$0xff]   ;;  %v19433_v8 = vld [vmem:[#allocation2 + $0x154] ss:$8 sps:$4 sm:$0xff]  }
  0x20   : > { %793 = vmatpush1.bf16.msra.mxu1 %v19426_v3  ;;  %589 = vmatprep.subr.bf16.mxu0 %v19427_v4  ;;  %v19432_v7 = vld [vmem:[#allocation2 + $0x60] ss:$8 sps:$4 sm:$0xff]   ;;  %v19435_v9 = vld [vmem:[#allocation2 + $0x54] ss:$8 sps:$4 sm:$0xff]   ;;  %v19437_v10 = vld [vmem:[#allocation2 + $0x150] ss:$8 sps:$4 sm:$0xff]  }
  0x21   : > { %794 = vmatprep.subr.bf16.mxu1 %v19429_v5  ;;  %v19438_v11 = vld [vmem:[#allocation2 + $0x50] ss:$8 sps:$4 sm:$0xff]   ;;  %v19439_v12 = vld [vmem:[#allocation2 + $0x144] ss:$8 sps:$4 sm:$0xff]   ;;  %v19443_v14 = vld [vmem:[#allocation2 + $0x140] ss:$8 sps:$4 sm:$0xff]  }
  0x22   : > { %v19441_v13 = vld [vmem:[#allocation2 + $0x44] ss:$8 sps:$4 sm:$0xff]   ;;  %v19444_v15 = vld [vmem:[#allocation2 + $0x40] ss:$8 sps:$4 sm:$0xff]   ;;  %v19445_v16 = vld [vmem:[#allocation2 + $0x134] ss:$8 sps:$4 sm:$0xff]  }
  0x23   : > { %590 = vmatpush1.bf16.msra.mxu0 %v19431_v6  ;;  %v19447_v17 = vld [vmem:[#allocation2 + $0x34] ss:$8 sps:$4 sm:$0xff]   ;;  %v19449_v18 = vld [vmem:[#allocation2 + $0x130] ss:$8 sps:$4 sm:$0xff]   ;;  %v19451_v20 = vld [vmem:[#allocation2 + $0x124] ss:$8 sps:$4 sm:$0xff]  }
  0x24   : > { %795 = vmatpush1.bf16.msra.mxu1 %v19432_v7  ;;  %591 = vmatprep.subr.bf16.mxu0 %v19433_v8  ;;  %v19450_v19 = vld [vmem:[#allocation2 + $0x30] ss:$8 sps:$4 sm:$0xff]   ;;  %v19453_v21 = vld [vmem:[#allocation2 + $0x24] ss:$8 sps:$4 sm:$0xff]   ;;  %v19455_v22 = vld [vmem:[#allocation2 + $0x120] ss:$8 sps:$4 sm:$0xff]  }
  0x25   : > { %796 = vmatprep.subr.bf16.mxu1 %v19435_v9  ;;  %v19456_v23 = vld [vmem:[#allocation2 + $0x20] ss:$8 sps:$4 sm:$0xff]   ;;  %v19457_v24 = vld [vmem:[#allocation2 + $0x114] ss:$8 sps:$4 sm:$0xff]   ;;  %v19461_v26 = vld [vmem:[#allocation2 + $0x110] ss:$8 sps:$4 sm:$0xff]  }
  0x26   : > { %v19459_v25 = vld [vmem:[#allocation2 + $0x14] ss:$8 sps:$4 sm:$0xff]   ;;  %v19462_v27 = vld [vmem:[#allocation2 + $0x10] ss:$8 sps:$4 sm:$0xff]   ;;  %v19463_v28 = vld [vmem:[#allocation2 + $0x104] ss:$8 sps:$4 sm:$0xff]  }
  0x27   : > { %592 = vmatpush1.bf16.msra.mxu0 %v19437_v10  ;;  %v19465_v29 = vld [vmem:[#allocation2 + $0x4] ss:$8 sps:$4 sm:$0xff]   ;;  %s22951_s29 = sshll.u32 %s22870_s15, 3  ;;  %v19467_v30 = vld [vmem:[#allocation2 + $0x100] ss:$8 sps:$4 sm:$0xff]  }
  0x28   : > { %797 = vmatpush1.bf16.msra.mxu1 %v19438_v11  ;;  %593 = vmatprep.subr.bf16.mxu0 %v19439_v12  ;;  %v19468_v31 = vld [vmem:[#allocation2] ss:$8 sps:$4 sm:$0xff]   ;;  %v19469_v32 = vld [vmem:[#allocation2 + $0x1f4] ss:$8 sps:$4 sm:$0xff]   ;;  %p297_p1 = scmp.lt.s32.totalorder %s22951_s29, 16  ;;  %p327_p2 = scmp.lt.s32.totalorder %s22951_s29, 15 }
  0x29   : > { %798 = vmatprep.subr.bf16.mxu1 %v19441_v13  ;;  %v19471_v33 = vld [vmem:[#allocation2 + $0xf4] ss:$8 sps:$4 sm:$0xff]   ;;  %v19473_v34 = vld [vmem:[#allocation2 + $0x1f0] ss:$8 sps:$4 sm:$0xff]   ;;  %v19475_v36 = vld [vmem:[#allocation2 + $0x1e4] ss:$8 sps:$4 sm:$0xff]  }
  0x2a   : > { %v19474_v35 = vld [vmem:[#allocation2 + $0xf0] ss:$8 sps:$4 sm:$0xff]   ;;  %s298_s30 = scalar_select %p297_p1, %s22951_s29, 16  ;;  %v19477_v37 = vld [vmem:[#allocation2 + $0xe4] ss:$8 sps:$4 sm:$0xff]  }
  0x2b   : > { %594 = vmatpush1.bf16.msra.mxu0 %v19443_v14  ;;  %v19479_v38 = vld [vmem:[#allocation2 + $0x1e0] ss:$8 sps:$4 sm:$0xff]   ;;  %v19481_v40 = vld [vmem:[#allocation2 + $0x1d4] ss:$8 sps:$4 sm:$0xff]   ;;  %v19485_v42 = vld [vmem:[#allocation2 + $0x1d0] ss:$8 sps:$4 sm:$0xff]  }
  0x2c   : > { %799 = vmatpush1.bf16.msra.mxu1 %v19444_v15  ;;  %595 = vmatprep.subr.bf16.mxu0 %v19445_v16  ;;  %v19480_v39 = vld [vmem:[#allocation2 + $0xe0] ss:$8 sps:$4 sm:$0xff]   ;;  %s19381_s5 = sshll.u32 %s298_s30, 4  ;;  %v19483_v41 = vld [vmem:[#allocation2 + $0xd4] ss:$8 sps:$4 sm:$0xff]   ;;  %s312_s18 = sadd.s32 8, %s22951_s29 }
  0x2d   : > { %800 = vmatprep.subr.bf16.mxu1 %v19447_v17  ;;  %v19486_v43 = vld [vmem:[#allocation2 + $0xd0] ss:$8 sps:$4 sm:$0xff]   ;;  %s22958_s8 = scalar_lea.vmem %s23413_s0, %s19381_s5  ;;  %v19487_v44 = vld [vmem:[#allocation2 + $0x1c4] ss:$8 sps:$4 sm:$0xff]   ;;  %v19491_v48 = vld [vmem:[#allocation2 + $0x1c0] ss:$8 sps:$4 sm:$0xff]  }
  0x2e   : > { %v19489_v45 = vld [vmem:[#allocation2 + $0xc4] ss:$8 sps:$4 sm:$0xff]   ;;  %v19492_v49 = vld [vmem:[#allocation2 + $0xc0] ss:$8 sps:$4 sm:$0xff]   ;;  %v19493_v51 = vld [vmem:[#allocation2 + $0x1b4] ss:$8 sps:$4 sm:$0xff]  }
  0x2f   : > { %596 = vmatpush1.bf16.msra.mxu0 %v19449_v18  ;;  %v22961_v46 = vld [vmem:[%s22958_s8] sm:$0xff]  ;;  %v337_v47 = vld [vmem:[%s22958_s8 + $0x8] sm:$0x11]  ;;  %v19495_v52 = vld [vmem:[#allocation2 + $0xb4] ss:$8 sps:$4 sm:$0xff]   ;;  %s328_s11 = scalar_select %p327_p2, %s22951_s29, 15 }
  0x30   : > { %801 = vmatpush1.bf16.msra.mxu1 %v19450_v19  ;;  %597 = vmatprep.subr.bf16.mxu0 %v19451_v20  ;;  %v17092_v50 = vcombine.high %v22961_v46, %v337_v47  ;;  %v19497_v55 = vld [vmem:[#allocation2 + $0x1b0] ss:$8 sps:$4 sm:$0xff]   ;;  %v19499_v58 = vld [vmem:[#allocation2 + $0x1a4] ss:$8 sps:$4 sm:$0xff]   ;;  %v19503_v61 = vld [vmem:[#allocation2 + $0x1a0] ss:$8 sps:$4 sm:$0xff]   ;;  %v17091_v62 = vcombine.low %v22961_v46, %v337_v47 }
  0x31   : > { %802 = vmatprep.subr.bf16.mxu1 %v19453_v21  ;;  %v19498_v56 = vld [vmem:[#allocation2 + $0xb0] ss:$8 sps:$4 sm:$0xff]   ;;  %v19501_v59 = vld [vmem:[#allocation2 + $0xa4] ss:$8 sps:$4 sm:$0xff]   ;;  %v19504_v63 = vld [vmem:[#allocation2 + $0xa0] ss:$8 sps:$4 sm:$0xff]  }
  0x32   : > { %v419_v53 = vshrl.u32 %v17092_v50, 16  ;;  %v421_v54 = vshll.u32 %v17092_v50, 16  ;;  %824 = vmatprep.mubr.bf16.mxu1 %v17092_v50  ;;  %v19505_v0 = vld [vmem:[#allocation2 + $0x194] ss:$8 sps:$4 sm:$0xff]   ;;  %v19509_v2 = vld [vmem:[#allocation2 + $0x190] ss:$8 sps:$4 sm:$0xff]  }
  0x33   : > { %598 = vmatpush1.bf16.msra.mxu0 %v19455_v22  ;;  %v19507_v1 = vld [vmem:[#allocation2 + $0x94] ss:$8 sps:$4 sm:$0xff]   ;;  %v414_v3 = vshll.u32 %v17091_v62, 16  ;;  %v19510_v4 = vld [vmem:[#allocation2 + $0x90] ss:$8 sps:$4 sm:$0xff]   ;;  %v412_v8 = vshrl.u32 %v17091_v62, 16 }
  0x34   : > { %803 = vmatpush1.bf16.msra.mxu1 %v19456_v23  ;;  %599 = vmatprep.subr.bf16.mxu0 %v19457_v24  ;;  %v423_v57 = vrot.slane %v421_v54, 1  ;;  %v19511_v5 = vld [vmem:[#allocation2 + $0x184] ss:$8 sps:$4 sm:$0xff]   ;;  %v19515_v7 = vld [vmem:[#allocation2 + $0x180] ss:$8 sps:$4 sm:$0xff]   ;;  %s19383_s12 = sshll.u32 %s328_s11, 6 }
  0x35   : > { %804 = vmatprep.subr.bf16.mxu1 %v19459_v25  ;;  %v19513_v6 = vld [vmem:[#allocation2 + $0x84] ss:$8 sps:$4 sm:$0xff]   ;;  %v416_v9 = vrot.slane %v414_v3, 1  ;;  %v19516_v10 = vld [vmem:[#allocation2 + $0x80] ss:$8 sps:$4 sm:$0xff]   ;;  %s23031_s15 = scalar_lea.vmem %s23417_s4, %s19383_s12  ;;  %p315_p3 = scmp.lt.s32.totalorder %s312_s18, 16 }
  0x36   : > { %v424_v60 = vor.u32 %v423_v57, %v419_v53  ;;  %v19521_v11 = vld [vmem:[#allocation2 + $0x274] ss:$8 sps:$4 sm:$0xff]   ;;  %v19519_v14 = vld [vmem:[#allocation2 + $0x270] ss:$8 sps:$4 sm:$0xff]   ;;  %v19527_v16 = vld [vmem:[#allocation2 + $0x264] ss:$8 sps:$4 sm:$0xff]  }
  0x37   : > { %600 = vmatpush1.bf16.msra.mxu0 %v19461_v26  ;;  %v19524_v12 = vld [vmem:[#allocation2 + $0x374] ss:$8 sps:$4 sm:$0xff]   ;;  %v417_v13 = vor.u32 %v416_v9, %v412_v8  ;;  %v19522_v15 = vld [vmem:[#allocation2 + $0x370] ss:$8 sps:$4 sm:$0xff]   ;;  %v19530_v17 = vld [vmem:[#allocation2 + $0x364] ss:$8 sps:$4 sm:$0xff]  }
  0x38   : > { %805 = vmatpush1.bf16.msra.mxu1 %v19462_v27  ;;  %601 = vmatprep.subr.bf16.mxu0 %v19463_v28  ;;  %v19525_v18 = vld [vmem:[#allocation2 + $0x260] ss:$8 sps:$4 sm:$0xff]   ;;  %v19533_v20 = vld [vmem:[#allocation2 + $0x254] ss:$8 sps:$4 sm:$0xff]   ;;  %v19531_v22 = vld [vmem:[#allocation2 + $0x250] ss:$8 sps:$4 sm:$0xff]  }
  0x39   : > { %806 = vmatprep.subr.bf16.mxu1 %v19465_v29  ;;  %619 = vmatprep.mubr.bf16.mxu0 %v424_v60  ;;  %v19528_v19 = vld [vmem:[#allocation2 + $0x360] ss:$8 sps:$4 sm:$0xff]   ;;  %v19536_v21 = vld [vmem:[#allocation2 + $0x354] ss:$8 sps:$4 sm:$0xff]   ;;  %v19534_v23 = vld [vmem:[#allocation2 + $0x350] ss:$8 sps:$4 sm:$0xff]  }
  0x3a   : > { %v19539_v24 = vld [vmem:[#allocation2 + $0x244] ss:$8 sps:$4 sm:$0xff]   ;;  %v19537_v26 = vld [vmem:[#allocation2 + $0x240] ss:$8 sps:$4 sm:$0xff]   ;;  %v19545_v28 = vld [vmem:[#allocation2 + $0x234] ss:$8 sps:$4 sm:$0xff]  }
  0x3b   : > { %602 = vmatpush1.bf16.msra.mxu0 %v19467_v30  ;;  %v19542_v25 = vld [vmem:[#allocation2 + $0x344] ss:$8 sps:$4 sm:$0xff]   ;;  %v19540_v27 = vld [vmem:[#allocation2 + $0x340] ss:$8 sps:$4 sm:$0xff]   ;;  %v19548_v29 = vld [vmem:[#allocation2 + $0x334] ss:$8 sps:$4 sm:$0xff]  }
  0x3c   : > { %807 = vmatpush1.bf16.msra.mxu1 %v19468_v31  ;;  %603 = vmatprep.subr.bf16.mxu0 %v19469_v32  ;;  %v19543_v30 = vld [vmem:[#allocation2 + $0x230] ss:$8 sps:$4 sm:$0xff]   ;;  %v19551_v32 = vld [vmem:[#allocation2 + $0x224] ss:$8 sps:$4 sm:$0xff]   ;;  %v19581_v60 = vld [vmem:[#allocation2 + $0x2d4] ss:$8 sps:$4 sm:$0xff]  }
  0x3d   : > { %808 = vmatprep.subr.bf16.mxu1 %v19471_v33  ;;  %v19546_v31 = vld [vmem:[#allocation2 + $0x330] ss:$8 sps:$4 sm:$0xff]   ;;  %v19554_v33 = vld [vmem:[#allocation2 + $0x324] ss:$8 sps:$4 sm:$0xff]   ;;  %v19588_v3 = vld [vmem:[#allocation2 + $0x3c0] ss:$8 sps:$4 sm:$0xff]  }
  0x3e   : > { %v19567_v54 = vld [vmem:[#allocation2 + $0x2f0] ss:$8 sps:$4 sm:$0xff]   ;;  %v19578_v57 = vld [vmem:[#allocation2 + $0x3e4] ss:$8 sps:$4 sm:$0xff]   ;;  %s23425_s18 = smov (!%p315_p3, %s312_s18), 16 }
  0x3f   : > { %604 = vmatpush2.bf16.msra.mxu0 %v19473_v34  ;;  %v19549_v34 = vld [vmem:[#allocation2 + $0x220] ss:$8 sps:$4 sm:$0xff]   ;;  %v19599_v8 = vld [vmem:[#allocation2 + $0x2a4] ss:$8 sps:$4 sm:$0xff]   ;;  %s19382_s20 = sshll.u32 %s23425_s18, 4 }
  0x40   : > { %809 = vmatpush2.bf16.msra.mxu1 %v19474_v35  ;;  %605 = vmatprep.subr.bf16.mxu0 %v19475_v36  ;;  %v19552_v35 = vld [vmem:[#allocation2 + $0x320] ss:$8 sps:$4 sm:$0xff]   ;;  %v19557_v36 = vld [vmem:[#allocation2 + $0x214] ss:$8 sps:$4 sm:$0xff]   ;;  %v19602_v9 = vld [vmem:[#allocation2 + $0x3a4] ss:$8 sps:$4 sm:$0xff]   ;;  %s23344_s23 = scalar_lea.vmem %s23414_s1, %s19382_s20 }
  0x41   : > { %810 = vmatprep.subr.bf16.mxu1 %v19477_v37  ;;  %v19560_v37 = vld [vmem:[#allocation2 + $0x314] ss:$8 sps:$4 sm:$0xff]  }
  0x43   : > { %606 = vmatpush2.bf16.msra.mxu0 %v19479_v38  ;;  %v22967_v38 = vld [vmem:[%s22958_s8 + $0x10] sm:$0xff] }
  0x44   : > { %811 = vmatpush2.bf16.msra.mxu1 %v19480_v39  ;;  %607 = vmatprep.subr.bf16.mxu0 %v19481_v40  ;;  %v22970_v39 = vld [vmem:[%s22958_s8 + $0x18] sm:$0x11] }
  0x45   : > { %812 = vmatprep.subr.bf16.mxu1 %v19483_v41  ;;  %v19555_v40 = vld [vmem:[#allocation2 + $0x210] ss:$8 sps:$4 sm:$0xff]   ;;  %v17160_v41 = vcombine.high %v22967_v38, %v22970_v39 }
  0x47   : > { %608 = vmatpush2.bf16.msra.mxu0 %v19485_v42  ;;  %v19558_v42 = vld [vmem:[#allocation2 + $0x310] ss:$8 sps:$4 sm:$0xff]   ;;  %v1131_v47 = vshll.u32 %v17160_v41, 16 }
  0x48   : > { %813 = vmatpush2.bf16.msra.mxu1 %v19486_v43  ;;  %609 = vmatprep.subr.bf16.mxu0 %v19487_v44  ;;  %v19563_v43 = vld [vmem:[#allocation2 + $0x204] ss:$8 sps:$4 sm:$0xff]  }
  0x49   : > { %814 = vmatprep.subr.bf16.mxu1 %v19489_v45  ;;  %v19566_v44 = vld [vmem:[#allocation2 + $0x304] ss:$8 sps:$4 sm:$0xff]   ;;  %v1129_v45 = vshrl.u32 %v17160_v41, 16  ;;  %v1133_v50 = vrot.slane %v1131_v47, 1  ;;  %v19638_v47 = vld [vmem:[#allocation2 + $0x440] ss:$8 sps:$4 sm:$0xff]  }
  0x4b   : > { %610 = vmatpush2.bf16.msra.mxu0 %v19491_v48  ;;  %v19561_v48 = vld [vmem:[#allocation2 + $0x200] ss:$8 sps:$4 sm:$0xff]   ;;  %v1134_v53 = vor.u32 %v1133_v50, %v1129_v45  ;;  %v19641_v50 = vld [vmem:[#allocation2 + $0x530] ss:$8 sps:$4 sm:$0xff]  }
  0x4c   : > { %815 = vmatpush2.bf16.msra.mxu1 %v19492_v49  ;;  %611 = vmatprep.subr.bf16.mxu0 %v19493_v51  ;;  %v19564_v49 = vld [vmem:[#allocation2 + $0x300] ss:$8 sps:$4 sm:$0xff]   ;;  %v19569_v51 = vld [vmem:[#allocation2 + $0x2f4] ss:$8 sps:$4 sm:$0xff]  }
  0x4d   : > { %816 = vmatprep.subr.bf16.mxu1 %v19495_v52  ;;  %v19572_v52 = vld [vmem:[#allocation2 + $0x3f4] ss:$8 sps:$4 sm:$0xff]   ;;  %v19635_v45 = vld [vmem:[#allocation2 + $0x540] ss:$8 sps:$4 sm:$0xff]  }
  0x4f   : > { %612 = vmatpush2.bf16.msra.mxu0 %v19497_v55  ;;  %v19570_v55 = vld [vmem:[#allocation2 + $0x3f0] ss:$8 sps:$4 sm:$0xff]  }
  0x50   : > { %817 = vmatpush2.bf16.msra.mxu1 %v19498_v56  ;;  %613 = vmatprep.subr.bf16.mxu0 %v19499_v58  ;;  %v19575_v56 = vld [vmem:[#allocation2 + $0x2e4] ss:$8 sps:$4 sm:$0xff]   ;;  %v19573_v58 = vld [vmem:[#allocation2 + $0x2e0] ss:$8 sps:$4 sm:$0xff]  }
  0x51   : > { %818 = vmatprep.subr.bf16.mxu1 %v19501_v59  ;;  %v19576_v59 = vld [vmem:[#allocation2 + $0x3e0] ss:$8 sps:$4 sm:$0xff]  }
  0x53   : > { %614 = vmatpush2.bf16.msra.mxu0 %v19503_v61  ;;  %v19584_v61 = vld [vmem:[#allocation2 + $0x3d4] ss:$8 sps:$4 sm:$0xff]  }
  0x54   : > { %819 = vmatpush2.bf16.msra.mxu1 %v19504_v63  ;;  %615 = vmatprep.subr.bf16.mxu0 %v19505_v0  ;;  %v19582_v63 = vld [vmem:[#allocation2 + $0x3d0] ss:$8 sps:$4 sm:$0xff]   ;;  %v19587_v0 = vld [vmem:[#allocation2 + $0x2c4] ss:$8 sps:$4 sm:$0xff]  }
  0x55   : > { %820 = vmatprep.subr.bf16.mxu1 %v19507_v1  ;;  %v19590_v1 = vld [vmem:[#allocation2 + $0x3c4] ss:$8 sps:$4 sm:$0xff]  }
  0x57   : > { %616 = vmatpush2.bf16.msra.mxu0 %v19509_v2  ;;  %v19585_v2 = vld [vmem:[#allocation2 + $0x2c0] ss:$8 sps:$4 sm:$0xff]  }
  0x58   : > { %821 = vmatpush2.bf16.msra.mxu1 %v19510_v4  ;;  %617 = vmatprep.subr.bf16.mxu0 %v19511_v5  ;;  %v19593_v4 = vld [vmem:[#allocation2 + $0x2b4] ss:$8 sps:$4 sm:$0xff]  }
  0x59   : > { %822 = vmatprep.subr.bf16.mxu1 %v19513_v6  ;;  %v19596_v5 = vld [vmem:[#allocation2 + $0x3b4] ss:$8 sps:$4 sm:$0xff]   ;;  %v19591_v6 = vld [vmem:[#allocation2 + $0x2b0] ss:$8 sps:$4 sm:$0xff]  }
  0x5b   : > { %618 = vmatpush2.bf16.msra.mxu0 %v19515_v7  ;;  %v19594_v7 = vld [vmem:[#allocation2 + $0x3b0] ss:$8 sps:$4 sm:$0xff]  }
  0x5c   : > { %823 = vmatpush2.bf16.msra.mxu1 %v19516_v10  ;;  %1041 = vmatprep.subr.bf16.mxu0 %v19521_v11  ;;  %v19597_v10 = vld [vmem:[#allocation2 + $0x2a0] ss:$8 sps:$4 sm:$0xff]  }
  0x5d   : > { %1297 = vmatprep.subr.bf16.mxu1 %v19524_v12  ;;  %v19600_v11 = vld [vmem:[#allocation2 + $0x3a0] ss:$8 sps:$4 sm:$0xff]   ;;  %v17159_v12 = vcombine.low %v22967_v38, %v22970_v39 }
  0x5e   : > { %620 = vmatmul.mubr.bf16.vlgmr.msra.gmra.mxu0 %v417_v13  ;;  %v19605_v13 = vld [vmem:[#allocation2 + $0x294] ss:$8 sps:$4 sm:$0xff]  }
  0x5f   : > { %825 = vmatmul.mubr.bf16.vlgmr.msra.gmra.mxu1 %v17091_v62  ;;  %1042 = vmatpush1.bf16.msra.mxu0 %v19519_v14  ;;  %v19579_v62 = vld [vmem:[#allocation2 + $0x2d0] ss:$8 sps:$4 sm:$0xff]   ;;  %v19608_v14 = vld [vmem:[#allocation2 + $0x394] ss:$8 sps:$4 sm:$0xff]  }
  0x60   : > { %1298 = vmatpush1.bf16.msra.mxu1 %v19522_v15  ;;  %1043 = vmatprep.subr.bf16.mxu0 %v19527_v16  ;;  %v19603_v15 = vld [vmem:[#allocation2 + $0x290] ss:$8 sps:$4 sm:$0xff]  }
  0x61   : > { %1299 = vmatprep.subr.bf16.mxu1 %v19530_v17  ;;  %1073 = vmatprep.mubr.bf16.mxu0 %v17160_v41  ;;  %v19606_v16 = vld [vmem:[#allocation2 + $0x390] ss:$8 sps:$4 sm:$0xff]   ;;  %v1124_v17 = vshll.u32 %v17159_v12, 16 }
  0x62   : > { %1329 = vmatprep.mubr.bf16.mxu1 %v1134_v53  ;;  %v19632_v41 = vld [vmem:[#allocation2 + $0x450] ss:$8 sps:$4 sm:$0xff]   ;;  %v19652_v53 = vld [vmem:[#allocation2 + $0x424] ss:$8 sps:$4 sm:$0xff]  }
  0x63   : > { %1044 = vmatpush1.bf16.msra.mxu0 %v19525_v18  ;;  %v19611_v18 = vld [vmem:[#allocation2 + $0x284] ss:$8 sps:$4 sm:$0xff]  }
  0x64   : > { %1300 = vmatpush1.bf16.msra.mxu1 %v19528_v19  ;;  %1045 = vmatprep.subr.bf16.mxu0 %v19533_v20  ;;  %v19614_v19 = vld [vmem:[#allocation2 + $0x384] ss:$8 sps:$4 sm:$0xff]   ;;  %v19609_v20 = vld [vmem:[#allocation2 + $0x280] ss:$8 sps:$4 sm:$0xff]  }
  0x65   : > { %1301 = vmatprep.subr.bf16.mxu1 %v19536_v21  ;;  %v19612_v21 = vld [vmem:[#allocation2 + $0x380] ss:$8 sps:$4 sm:$0xff]  }
  0x67   : > { %1046 = vmatpush1.bf16.msra.mxu0 %v19531_v22  ;;  %v1122_v22 = vshrl.u32 %v17159_v12, 16 }
  0x68   : > { %1302 = vmatpush1.bf16.msra.mxu1 %v19534_v23  ;;  %1047 = vmatprep.subr.bf16.mxu0 %v19539_v24  ;;  %v1126_v23 = vrot.slane %v1124_v17, 1  ;;  %v19619_v24 = vld [vmem:[#allocation2 + $0x574] ss:$8 sps:$4 sm:$0xff]  }
  0x69   : > { %1303 = vmatprep.subr.bf16.mxu1 %v19542_v25  ;;  %v19622_v25 = vld [vmem:[#allocation2 + $0x474] ss:$8 sps:$4 sm:$0xff]  }
  0x6a   : > { %v19694_v17 = vld [vmem:[#allocation2 + $0x4b4] ss:$8 sps:$4 sm:$0xff]  }
  0x6b   : > { %1048 = vmatpush1.bf16.msra.mxu0 %v19537_v26  ;;  %v1127_v26 = vor.u32 %v1126_v23, %v1122_v22  ;;  %v19695_v22 = vld [vmem:[#allocation2 + $0x5a0] ss:$8 sps:$4 sm:$0xff]  }
  0x6c   : > { %1304 = vmatpush1.bf16.msra.mxu1 %v19540_v27  ;;  %1049 = vmatprep.subr.bf16.mxu0 %v19545_v28  ;;  %v19617_v27 = vld [vmem:[#allocation2 + $0x570] ss:$8 sps:$4 sm:$0xff]   ;;  %v19698_v23 = vld [vmem:[#allocation2 + $0x4a0] ss:$8 sps:$4 sm:$0xff]  }
  0x6d   : > { %1305 = vmatprep.subr.bf16.mxu1 %v19548_v29  ;;  %v19620_v28 = vld [vmem:[#allocation2 + $0x470] ss:$8 sps:$4 sm:$0xff]   ;;  %v19625_v29 = vld [vmem:[#allocation2 + $0x564] ss:$8 sps:$4 sm:$0xff]  }
  0x6f   : > { %1050 = vmatpush1.bf16.msra.mxu0 %v19543_v30  ;;  %v19628_v30 = vld [vmem:[#allocation2 + $0x464] ss:$8 sps:$4 sm:$0xff]  }
  0x70   : > { %1306 = vmatpush1.bf16.msra.mxu1 %v19546_v31  ;;  %1051 = vmatprep.subr.bf16.mxu0 %v19551_v32  ;;  %v22977_v31 = vld [vmem:[%s22958_s8 + $0x8] sm:$0x11] }
  0x71   : > { %1307 = vmatprep.subr.bf16.mxu1 %v19554_v33  ;;  %v19623_v32 = vld [vmem:[#allocation2 + $0x560] ss:$8 sps:$4 sm:$0xff]   ;;  %v17230_v33 = vcombine.high %v22961_v46, %v22977_v31 }
  0x73   : > { %1052 = vmatpush1.bf16.msra.mxu0 %v19549_v34  ;;  %v19626_v34 = vld [vmem:[#allocation2 + $0x460] ss:$8 sps:$4 sm:$0xff]   ;;  %v1473_v39 = vshll.u32 %v17230_v33, 16 }
  0x74   : > { %1308 = vmatpush1.bf16.msra.mxu1 %v19552_v35  ;;  %1053 = vmatprep.subr.bf16.mxu0 %v19557_v36  ;;  %v19631_v35 = vld [vmem:[#allocation2 + $0x554] ss:$8 sps:$4 sm:$0xff]  }
  0x75   : > { %1309 = vmatprep.subr.bf16.mxu1 %v19560_v37  ;;  %v19634_v36 = vld [vmem:[#allocation2 + $0x454] ss:$8 sps:$4 sm:$0xff]   ;;  %v1471_v37 = vshrl.u32 %v17230_v33, 16 }
  0x77   : > { %1054 = vmatpush1.bf16.msra.mxu0 %v19555_v40  ;;  %v19629_v40 = vld [vmem:[#allocation2 + $0x550] ss:$8 sps:$4 sm:$0xff]  }
  0x78   : > { %1310 = vmatpush1.bf16.msra.mxu1 %v19558_v42  ;;  %1055 = vmatprep.subr.bf16.mxu0 %v19563_v43  ;;  %v1475_v42 = vrot.slane %v1473_v39, 1  ;;  %v19637_v43 = vld [vmem:[#allocation2 + $0x544] ss:$8 sps:$4 sm:$0xff]  }
  0x79   : > { %1311 = vmatprep.subr.bf16.mxu1 %v19566_v44  ;;  %v19640_v44 = vld [vmem:[#allocation2 + $0x444] ss:$8 sps:$4 sm:$0xff]  }
  0x7a   : > { %v1476_v46 = vor.u32 %v1475_v42, %v1471_v37  ;;  %v19710_v37 = vld [vmem:[#allocation2 + $0x480] ss:$8 sps:$4 sm:$0xff]  }
  0x7b   : > { %1056 = vmatpush1.bf16.msra.mxu0 %v19561_v48  ;;  %v19643_v48 = vld [vmem:[#allocation2 + $0x534] ss:$8 sps:$4 sm:$0xff]  }
  0x7c   : > { %1312 = vmatpush1.bf16.msra.mxu1 %v19564_v49  ;;  %1057 = vmatprep.subr.bf16.mxu0 %v19569_v51  ;;  %v19646_v49 = vld [vmem:[#allocation2 + $0x434] ss:$8 sps:$4 sm:$0xff]   ;;  %v19644_v51 = vld [vmem:[#allocation2 + $0x430] ss:$8 sps:$4 sm:$0xff]  }
  0x7d   : > { %1313 = vmatprep.subr.bf16.mxu1 %v19572_v52  ;;  %v19649_v52 = vld [vmem:[#allocation2 + $0x524] ss:$8 sps:$4 sm:$0xff]  }
  0x7f   : > { %1058 = vmatpush2.bf16.msra.mxu0 %v19567_v54  ;;  %v19647_v54 = vld [vmem:[#allocation2 + $0x520] ss:$8 sps:$4 sm:$0xff]  }
  0x80   : > { %1314 = vmatpush2.bf16.msra.mxu1 %v19570_v55  ;;  %1059 = vmatprep.subr.bf16.mxu0 %v19575_v56  ;;  %v19650_v55 = vld [vmem:[#allocation2 + $0x420] ss:$8 sps:$4 sm:$0xff]   ;;  %v19655_v56 = vld [vmem:[#allocation2 + $0x514] ss:$8 sps:$4 sm:$0xff]  }
  0x81   : > { %1315 = vmatprep.subr.bf16.mxu1 %v19578_v57  ;;  %v19658_v57 = vld [vmem:[#allocation2 + $0x414] ss:$8 sps:$4 sm:$0xff]  }
  0x83   : > { %1060 = vmatpush2.bf16.msra.mxu0 %v19573_v58  ;;  %v19653_v58 = vld [vmem:[#allocation2 + $0x510] ss:$8 sps:$4 sm:$0xff]  }
  0x84   : > { %1316 = vmatpush2.bf16.msra.mxu1 %v19576_v59  ;;  %1061 = vmatprep.subr.bf16.mxu0 %v19581_v60  ;;  %v19656_v59 = vld [vmem:[#allocation2 + $0x410] ss:$8 sps:$4 sm:$0xff]   ;;  %v19661_v60 = vld [vmem:[#allocation2 + $0x504] ss:$8 sps:$4 sm:$0xff]  }
  0x85   : > { %1317 = vmatprep.subr.bf16.mxu1 %v19584_v61  ;;  %v19664_v61 = vld [vmem:[#allocation2 + $0x404] ss:$8 sps:$4 sm:$0xff]  }
  0x87   : > { %1062 = vmatpush2.bf16.msra.mxu0 %v19579_v62  ;;  %v19659_v62 = vld [vmem:[#allocation2 + $0x500] ss:$8 sps:$4 sm:$0xff]  }
  0x88   : > { %1318 = vmatpush2.bf16.msra.mxu1 %v19582_v63  ;;  %1063 = vmatprep.subr.bf16.mxu0 %v19587_v0  ;;  %v19662_v63 = vld [vmem:[#allocation2 + $0x400] ss:$8 sps:$4 sm:$0xff]   ;;  %v19667_v0 = vld [vmem:[#allocation2 + $0x5f4] ss:$8 sps:$4 sm:$0xff]  }
  0x89   : > { %1319 = vmatprep.subr.bf16.mxu1 %v19590_v1  ;;  %v19670_v1 = vld [vmem:[#allocation2 + $0x4f4] ss:$8 sps:$4 sm:$0xff]  }
  0x8b   : > { %1064 = vmatpush2.bf16.msra.mxu0 %v19585_v2  ;;  %v19665_v2 = vld [vmem:[#allocation2 + $0x5f0] ss:$8 sps:$4 sm:$0xff]  }
  0x8c   : > { %1320 = vmatpush2.bf16.msra.mxu1 %v19588_v3  ;;  %1065 = vmatprep.subr.bf16.mxu0 %v19593_v4  ;;  %v19668_v3 = vld [vmem:[#allocation2 + $0x4f0] ss:$8 sps:$4 sm:$0xff]   ;;  %v19673_v4 = vld [vmem:[#allocation2 + $0x5e4] ss:$8 sps:$4 sm:$0xff]  }
  0x8d   : > { %1321 = vmatprep.subr.bf16.mxu1 %v19596_v5  ;;  %v19676_v5 = vld [vmem:[#allocation2 + $0x4e4] ss:$8 sps:$4 sm:$0xff]  }
  0x8f   : > { %1066 = vmatpush2.bf16.msra.mxu0 %v19591_v6  ;;  %v19671_v6 = vld [vmem:[#allocation2 + $0x5e0] ss:$8 sps:$4 sm:$0xff]  }
  0x90   : > { %1322 = vmatpush2.bf16.msra.mxu1 %v19594_v7  ;;  %1067 = vmatprep.subr.bf16.mxu0 %v19599_v8  ;;  %v19674_v7 = vld [vmem:[#allocation2 + $0x4e0] ss:$8 sps:$4 sm:$0xff]   ;;  %v19679_v8 = vld [vmem:[#allocation2 + $0x5d4] ss:$8 sps:$4 sm:$0xff]  }
  0x91   : > { %1323 = vmatprep.subr.bf16.mxu1 %v19602_v9  ;;  %v19682_v9 = vld [vmem:[#allocation2 + $0x4d4] ss:$8 sps:$4 sm:$0xff]  }
  0x93   : > { %1068 = vmatpush2.bf16.msra.mxu0 %v19597_v10  ;;  %v19677_v10 = vld [vmem:[#allocation2 + $0x5d0] ss:$8 sps:$4 sm:$0xff]  }
  0x94   : > { %1324 = vmatpush2.bf16.msra.mxu1 %v19600_v11  ;;  %1069 = vmatprep.subr.bf16.mxu0 %v19605_v13  ;;  %v19680_v11 = vld [vmem:[#allocation2 + $0x4d0] ss:$8 sps:$4 sm:$0xff]   ;;  %v19688_v13 = vld [vmem:[#allocation2 + $0x4c4] ss:$8 sps:$4 sm:$0xff]  }
  0x95   : > { %1325 = vmatprep.subr.bf16.mxu1 %v19608_v14  ;;  %v19683_v14 = vld [vmem:[#allocation2 + $0x5c0] ss:$8 sps:$4 sm:$0xff]  }
  0x97   : > { %1070 = vmatpush2.bf16.msra.mxu0 %v19603_v15  ;;  %v19686_v15 = vld [vmem:[#allocation2 + $0x4c0] ss:$8 sps:$4 sm:$0xff]  }
  0x98   : > { %1326 = vmatpush2.bf16.msra.mxu1 %v19606_v16  ;;  %1071 = vmatprep.subr.bf16.mxu0 %v19611_v18  ;;  %v19691_v16 = vld [vmem:[#allocation2 + $0x5b4] ss:$8 sps:$4 sm:$0xff]   ;;  %v19689_v18 = vld [vmem:[#allocation2 + $0x5b0] ss:$8 sps:$4 sm:$0xff]  }
  0x99   : > { %1327 = vmatprep.subr.bf16.mxu1 %v19614_v19  ;;  %v19692_v19 = vld [vmem:[#allocation2 + $0x4b0] ss:$8 sps:$4 sm:$0xff]  }
  0x9b   : > { %1072 = vmatpush2.bf16.msra.mxu0 %v19609_v20  ;;  %v19697_v20 = vld [vmem:[#allocation2 + $0x5a4] ss:$8 sps:$4 sm:$0xff]  }
  0x9c   : > { %1328 = vmatpush2.bf16.msra.mxu1 %v19612_v21  ;;  %1639 = vmatprep.subr.bf16.mxu0 %v19619_v24  ;;  %v19700_v21 = vld [vmem:[#allocation2 + $0x4a4] ss:$8 sps:$4 sm:$0xff]  }
  0x9d   : > { %1844 = vmatprep.subr.bf16.mxu1 %v19622_v25  ;;  %v22813_v24 = vld [vmem:[%s22958_s8] sm:$0xff] }
  0x9e   : > { %1074 = vmatmul.mubr.bf16.vlgmr.msra.gmra.mxu0 %v17159_v12  ;;  %v19685_v12 = vld [vmem:[#allocation2 + $0x5c4] ss:$8 sps:$4 sm:$0xff]   ;;  %v17229_v25 = vcombine.low %v22813_v24, %v22977_v31 }
  0x9f   : > { %1330 = vmatmul.mubr.bf16.vlgmr.msra.gmra.mxu1 %v1127_v26  ;;  %1640 = vmatpush1.bf16.msra.mxu0 %v19617_v27  ;;  %v22984_v26 = vld [vmem:[%s22958_s8 + $0x18] sm:$0x11]  ;;  %v19712_v31 = vld [vmem:[#allocation2 + $0x484] ss:$8 sps:$4 sm:$0xff]  }
  0xa0   : > { %1845 = vmatpush1.bf16.msra.mxu1 %v19620_v28  ;;  %1641 = vmatprep.subr.bf16.mxu0 %v19625_v29  ;;  %v19703_v27 = vld [vmem:[#allocation2 + $0x594] ss:$8 sps:$4 sm:$0xff]   ;;  %v17298_v29 = vcombine.high %v22967_v38, %v22984_v26  ;;  %v1464_v39 = vshrl.u32 %v17229_v25, 16  ;;  %v19783_v24 = vld [vmem:[#allocation2 + $0x6c4] ss:$8 sps:$4 sm:$0xff]  }
  0xa1   : > { %1846 = vmatprep.subr.bf16.mxu1 %v19628_v30  ;;  %1876 = vmatprep.mubr.bf16.mxu1 %v17230_v33  ;;  %v19706_v28 = vld [vmem:[#allocation2 + $0x494] ss:$8 sps:$4 sm:$0xff]   ;;  %v19701_v30 = vld [vmem:[#allocation2 + $0x590] ss:$8 sps:$4 sm:$0xff]   ;;  %v1466_v33 = vshll.u32 %v17229_v25, 16 }
  0xa2   : > { %1671 = vmatprep.mubr.bf16.mxu0 %v1476_v46  ;;  %v19720_v38 = vld [vmem:[#allocation2 + $0x774] ss:$8 sps:$4 sm:$0xff]   ;;  %v2180_v42 = vshrl.u32 %v17298_v29, 16  ;;  %v19715_v46 = vld [vmem:[#allocation2 + $0x670] ss:$8 sps:$4 sm:$0xff]  }
  0xa3   : > { %1642 = vmatpush1.bf16.msra.mxu0 %v19623_v32  ;;  %v19704_v32 = vld [vmem:[#allocation2 + $0x490] ss:$8 sps:$4 sm:$0xff]  }
  0xa4   : > { %1847 = vmatpush1.bf16.msra.mxu1 %v19626_v34  ;;  %1643 = vmatprep.subr.bf16.mxu0 %v19631_v35  ;;  %v19709_v34 = vld [vmem:[#allocation2 + $0x584] ss:$8 sps:$4 sm:$0xff]   ;;  %v19707_v35 = vld [vmem:[#allocation2 + $0x580] ss:$8 sps:$4 sm:$0xff]  }
  0xa5   : > { %1848 = vmatprep.subr.bf16.mxu1 %v19634_v36  ;;  %v2182_v36 = vshll.u32 %v17298_v29, 16 }
  0xa7   : > { %1644 = vmatpush1.bf16.msra.mxu0 %v19629_v40  ;;  %v1468_v40 = vrot.slane %v1466_v33, 1  ;;  %v19790_v33 = vld [vmem:[#allocation2 + $0x7b0] ss:$8 sps:$4 sm:$0xff]  }
  0xa8   : > { %1849 = vmatpush1.bf16.msra.mxu1 %v19632_v41  ;;  %1645 = vmatprep.subr.bf16.mxu0 %v19637_v43  ;;  %v19717_v41 = vld [vmem:[#allocation2 + $0x674] ss:$8 sps:$4 sm:$0xff]   ;;  %v2184_v43 = vrot.slane %v2182_v36, 1 }
  0xa9   : > { %1850 = vmatprep.subr.bf16.mxu1 %v19640_v44  ;;  %v1469_v44 = vor.u32 %v1468_v40, %v1464_v39  ;;  %v22989_v36 = vld [vmem:[%s22958_s8 + $0x10] sm:$0xff]  ;;  %v22994_v40 = vld [vmem:[%s22958_s8 + $0x18] sm:$0x11] }
  0xab   : > { %1646 = vmatpush1.bf16.msra.mxu0 %v19635_v45  ;;  %v19718_v45 = vld [vmem:[#allocation2 + $0x770] ss:$8 sps:$4 sm:$0xff]  }
  0xac   : > { %1851 = vmatpush1.bf16.msra.mxu1 %v19638_v47  ;;  %1647 = vmatprep.subr.bf16.mxu0 %v19643_v48  ;;  %v19723_v47 = vld [vmem:[#allocation2 + $0x664] ss:$8 sps:$4 sm:$0xff]  }
  0xad   : > { %1852 = vmatprep.subr.bf16.mxu1 %v19646_v49  ;;  %v19726_v48 = vld [vmem:[#allocation2 + $0x764] ss:$8 sps:$4 sm:$0xff]   ;;  %v2185_v49 = vor.u32 %v2184_v43, %v2180_v42  ;;  %v19804_v42 = vld [vmem:[#allocation2 + $0x794] ss:$8 sps:$4 sm:$0xff]   ;;  %v17370_v43 = vcombine.high %v22989_v36, %v22994_v40 }
  0xaf   : > { %1648 = vmatpush1.bf16.msra.mxu0 %v19641_v50  ;;  %v19721_v50 = vld [vmem:[#allocation2 + $0x660] ss:$8 sps:$4 sm:$0xff]  }
  0xb0   : > { %1853 = vmatpush1.bf16.msra.mxu1 %v19644_v51  ;;  %1649 = vmatprep.subr.bf16.mxu0 %v19649_v52  ;;  %v19724_v51 = vld [vmem:[#allocation2 + $0x760] ss:$8 sps:$4 sm:$0xff]   ;;  %v19729_v52 = vld [vmem:[#allocation2 + $0x654] ss:$8 sps:$4 sm:$0xff]  }
  0xb1   : > { %1854 = vmatprep.subr.bf16.mxu1 %v19652_v53  ;;  %v19732_v53 = vld [vmem:[#allocation2 + $0x754] ss:$8 sps:$4 sm:$0xff]  }
  0xb3   : > { %1650 = vmatpush1.bf16.msra.mxu0 %v19647_v54  ;;  %v19727_v54 = vld [vmem:[#allocation2 + $0x650] ss:$8 sps:$4 sm:$0xff]  }
  0xb4   : > { %1855 = vmatpush1.bf16.msra.mxu1 %v19650_v55  ;;  %1651 = vmatprep.subr.bf16.mxu0 %v19655_v56  ;;  %v19730_v55 = vld [vmem:[#allocation2 + $0x750] ss:$8 sps:$4 sm:$0xff]   ;;  %v19735_v56 = vld [vmem:[#allocation2 + $0x644] ss:$8 sps:$4 sm:$0xff]  }
  0xb5   : > { %1856 = vmatprep.subr.bf16.mxu1 %v19658_v57  ;;  %v19738_v57 = vld [vmem:[#allocation2 + $0x744] ss:$8 sps:$4 sm:$0xff]  }
  0xb7   : > { %1652 = vmatpush1.bf16.msra.mxu0 %v19653_v58  ;;  %v19733_v58 = vld [vmem:[#allocation2 + $0x640] ss:$8 sps:$4 sm:$0xff]  }
  0xb8   : > { %1857 = vmatpush1.bf16.msra.mxu1 %v19656_v59  ;;  %1653 = vmatprep.subr.bf16.mxu0 %v19661_v60  ;;  %v19736_v59 = vld [vmem:[#allocation2 + $0x740] ss:$8 sps:$4 sm:$0xff]   ;;  %v19741_v60 = vld [vmem:[#allocation2 + $0x634] ss:$8 sps:$4 sm:$0xff]  }
  0xb9   : > { %1858 = vmatprep.subr.bf16.mxu1 %v19664_v61  ;;  %v19744_v61 = vld [vmem:[#allocation2 + $0x734] ss:$8 sps:$4 sm:$0xff]  }
  0xbb   : > { %1654 = vmatpush1.bf16.msra.mxu0 %v19659_v62  ;;  %v19739_v62 = vld [vmem:[#allocation2 + $0x630] ss:$8 sps:$4 sm:$0xff]  }
  0xbc   : > { %1859 = vmatpush1.bf16.msra.mxu1 %v19662_v63  ;;  %1655 = vmatprep.subr.bf16.mxu0 %v19667_v0  ;;  %v19742_v63 = vld [vmem:[#allocation2 + $0x730] ss:$8 sps:$4 sm:$0xff]   ;;  %v19747_v0 = vld [vmem:[#allocation2 + $0x624] ss:$8 sps:$4 sm:$0xff]  }
  0xbd   : > { %1860 = vmatprep.subr.bf16.mxu1 %v19670_v1  ;;  %v19750_v1 = vld [vmem:[#allocation2 + $0x724] ss:$8 sps:$4 sm:$0xff]  }
  0xbf   : > { %1656 = vmatpush2.bf16.msra.mxu0 %v19665_v2  ;;  %v19745_v2 = vld [vmem:[#allocation2 + $0x620] ss:$8 sps:$4 sm:$0xff]  }
  0xc0   : > { %1861 = vmatpush2.bf16.msra.mxu1 %v19668_v3  ;;  %1657 = vmatprep.subr.bf16.mxu0 %v19673_v4  ;;  %v19748_v3 = vld [vmem:[#allocation2 + $0x720] ss:$8 sps:$4 sm:$0xff]   ;;  %v19753_v4 = vld [vmem:[#allocation2 + $0x614] ss:$8 sps:$4 sm:$0xff]  }
  0xc1   : > { %1862 = vmatprep.subr.bf16.mxu1 %v19676_v5  ;;  %v19756_v5 = vld [vmem:[#allocation2 + $0x714] ss:$8 sps:$4 sm:$0xff]  }
  0xc3   : > { %1658 = vmatpush2.bf16.msra.mxu0 %v19671_v6  ;;  %v19751_v6 = vld [vmem:[#allocation2 + $0x610] ss:$8 sps:$4 sm:$0xff]  }
  0xc4   : > { %1863 = vmatpush2.bf16.msra.mxu1 %v19674_v7  ;;  %1659 = vmatprep.subr.bf16.mxu0 %v19679_v8  ;;  %v19754_v7 = vld [vmem:[#allocation2 + $0x710] ss:$8 sps:$4 sm:$0xff]   ;;  %v19759_v8 = vld [vmem:[#allocation2 + $0x604] ss:$8 sps:$4 sm:$0xff]  }
  0xc5   : > { %1864 = vmatprep.subr.bf16.mxu1 %v19682_v9  ;;  %v19762_v9 = vld [vmem:[#allocation2 + $0x704] ss:$8 sps:$4 sm:$0xff]  }
  0xc7   : > { %1660 = vmatpush2.bf16.msra.mxu0 %v19677_v10  ;;  %v19757_v10 = vld [vmem:[#allocation2 + $0x600] ss:$8 sps:$4 sm:$0xff]  }
  0xc8   : > { %1865 = vmatpush2.bf16.msra.mxu1 %v19680_v11  ;;  %1661 = vmatprep.subr.bf16.mxu0 %v19685_v12  ;;  %v19760_v11 = vld [vmem:[#allocation2 + $0x700] ss:$8 sps:$4 sm:$0xff]   ;;  %v19765_v12 = vld [vmem:[#allocation2 + $0x6f4] ss:$8 sps:$4 sm:$0xff]  }
  0xc9   : > { %1866 = vmatprep.subr.bf16.mxu1 %v19688_v13  ;;  %v19768_v13 = vld [vmem:[#allocation2 + $0x7f4] ss:$8 sps:$4 sm:$0xff]  }
  0xcb   : > { %1662 = vmatpush2.bf16.msra.mxu0 %v19683_v14  ;;  %v19763_v14 = vld [vmem:[#allocation2 + $0x6f0] ss:$8 sps:$4 sm:$0xff]  }
  0xcc   : > { %1867 = vmatpush2.bf16.msra.mxu1 %v19686_v15  ;;  %1663 = vmatprep.subr.bf16.mxu0 %v19691_v16  ;;  %v19766_v15 = vld [vmem:[#allocation2 + $0x7f0] ss:$8 sps:$4 sm:$0xff]   ;;  %v19771_v16 = vld [vmem:[#allocation2 + $0x6e4] ss:$8 sps:$4 sm:$0xff]  }
  0xcd   : > { %1868 = vmatprep.subr.bf16.mxu1 %v19694_v17  ;;  %v19774_v17 = vld [vmem:[#allocation2 + $0x7e4] ss:$8 sps:$4 sm:$0xff]  }
  0xcf   : > { %1664 = vmatpush2.bf16.msra.mxu0 %v19689_v18  ;;  %v19769_v18 = vld [vmem:[#allocation2 + $0x6e0] ss:$8 sps:$4 sm:$0xff]  }
  0xd0   : > { %1869 = vmatpush2.bf16.msra.mxu1 %v19692_v19  ;;  %1665 = vmatprep.subr.bf16.mxu0 %v19697_v20  ;;  %v19772_v19 = vld [vmem:[#allocation2 + $0x7e0] ss:$8 sps:$4 sm:$0xff]   ;;  %v19777_v20 = vld [vmem:[#allocation2 + $0x6d4] ss:$8 sps:$4 sm:$0xff]  }
  0xd1   : > { %1870 = vmatprep.subr.bf16.mxu1 %v19700_v21  ;;  %v19780_v21 = vld [vmem:[#allocation2 + $0x7d4] ss:$8 sps:$4 sm:$0xff]  }
  0xd3   : > { %1666 = vmatpush2.bf16.msra.mxu0 %v19695_v22  ;;  %v19775_v22 = vld [vmem:[#allocation2 + $0x6d0] ss:$8 sps:$4 sm:$0xff]  }
  0xd4   : > { %1871 = vmatpush2.bf16.msra.mxu1 %v19698_v23  ;;  %1667 = vmatprep.subr.bf16.mxu0 %v19703_v27  ;;  %v19778_v23 = vld [vmem:[#allocation2 + $0x7d0] ss:$8 sps:$4 sm:$0xff]   ;;  %v19781_v27 = vld [vmem:[#allocation2 + $0x6c0] ss:$8 sps:$4 sm:$0xff]  }
  0xd5   : > { %1872 = vmatprep.subr.bf16.mxu1 %v19706_v28  ;;  %v19784_v28 = vld [vmem:[#allocation2 + $0x7c0] ss:$8 sps:$4 sm:$0xff]  }
  0xd7   : > { %1668 = vmatpush2.bf16.msra.mxu0 %v19701_v30  ;;  %v19792_v30 = vld [vmem:[#allocation2 + $0x7b4] ss:$8 sps:$4 sm:$0xff]  }
  0xd8   : > { %1873 = vmatpush2.bf16.msra.mxu1 %v19704_v32  ;;  %1669 = vmatprep.subr.bf16.mxu0 %v19709_v34  ;;  %v19787_v32 = vld [vmem:[#allocation2 + $0x6b0] ss:$8 sps:$4 sm:$0xff]   ;;  %v19795_v34 = vld [vmem:[#allocation2 + $0x6a4] ss:$8 sps:$4 sm:$0xff]  }
  0xd9   : > { %1874 = vmatprep.subr.bf16.mxu1 %v19712_v31  ;;  %v19798_v31 = vld [vmem:[#allocation2 + $0x7a4] ss:$8 sps:$4 sm:$0xff]  }
  0xdb   : > { %1670 = vmatpush2.bf16.msra.mxu0 %v19707_v35  ;;  %v19793_v35 = vld [vmem:[#allocation2 + $0x6a0] ss:$8 sps:$4 sm:$0xff]  }
  0xdc   : > { %1875 = vmatpush2.bf16.msra.mxu1 %v19710_v37  ;;  %2092 = vmatprep.subr.bf16.mxu0 %v19717_v41  ;;  %v22814_v37 = vld [vmem:[%s22958_s8 + $0x10] sm:$0xff]  ;;  %v19796_v41 = vld [vmem:[#allocation2 + $0x7a0] ss:$8 sps:$4 sm:$0xff]  }
  0xdd   : > { %2348 = vmatprep.subr.bf16.mxu1 %v19720_v38  ;;  %v17297_v39 = vcombine.low %v22814_v37, %v22984_v26  ;;  %v19801_v38 = vld [vmem:[#allocation2 + $0x694] ss:$8 sps:$4 sm:$0xff]   ;;  %v19807_v26 = vld [vmem:[#allocation2 + $0x684] ss:$8 sps:$4 sm:$0xff]   ;;  %v19873_v37 = vld [vmem:[#allocation2 + $0x1d0] ss:$8 sps:$4 sm:$0xff]  }
  0xde   : > { %1672 = vmatmul.mubr.bf16.vlgmr.msra.gmra.mxu0 %v1469_v44  ;;  %v19799_v44 = vld [vmem:[#allocation2 + $0x690] ss:$8 sps:$4 sm:$0xff]  }
  0xdf   : > { %1877 = vmatmul.mubr.bf16.vlgmr.msra.gmra.mxu1 %v17229_v25  ;;  %2093 = vmatpush1.bf16.msra.mxu0 %v19715_v46  ;;  %v19786_v25 = vld [vmem:[#allocation2 + $0x7c4] ss:$8 sps:$4 sm:$0xff]   ;;  %v2175_v46 = vshll.u32 %v17297_v39, 16 }
  0xe0   : > { %2349 = vmatpush1.bf16.msra.mxu1 %v19718_v45  ;;  %2094 = vmatprep.subr.bf16.mxu0 %v19723_v47  ;;  %v19802_v45 = vld [vmem:[#allocation2 + $0x790] ss:$8 sps:$4 sm:$0xff]   ;;  %v19810_v47 = vld [vmem:[#allocation2 + $0x784] ss:$8 sps:$4 sm:$0xff]  }
  0xe1   : > { %2350 = vmatprep.subr.bf16.mxu1 %v19726_v48  ;;  %2124 = vmatprep.mubr.bf16.mxu0 %v17298_v29  ;;  %v19789_v29 = vld [vmem:[#allocation2 + $0x6b4] ss:$8 sps:$4 sm:$0xff]   ;;  %v2511_v48 = vshll.u32 %v17370_v43, 16 }
  0xe2   : > { %2380 = vmatprep.mubr.bf16.mxu1 %v2185_v49  ;;  %v19805_v49 = vld [vmem:[#allocation2 + $0x680] ss:$8 sps:$4 sm:$0xff]  }
  0xe3   : > { %2095 = vmatpush1.bf16.msra.mxu0 %v19721_v50  ;;  %v2173_v50 = vshrl.u32 %v17297_v39, 16 }
  0xe4   : > { %2351 = vmatpush1.bf16.msra.mxu1 %v19724_v51  ;;  %2096 = vmatprep.subr.bf16.mxu0 %v19729_v52  ;;  %v2177_v51 = vrot.slane %v2175_v46, 1  ;;  %v19808_v52 = vld [vmem:[#allocation2 + $0x780] ss:$8 sps:$4 sm:$0xff]   ;;  %v19890_v46 = vld [vmem:[#allocation2 + $0xb4] ss:$8 sps:$4 sm:$0xff]  }
  0xe5   : > { %2352 = vmatprep.subr.bf16.mxu1 %v19732_v53  ;;  %v19815_v53 = vld [vmem:[#allocation2 + $0x174] ss:$8 sps:$4 sm:$0xff]  }
  0xe7   : > { %2097 = vmatpush1.bf16.msra.mxu0 %v19727_v54  ;;  %v19818_v54 = vld [vmem:[#allocation2 + $0x74] ss:$8 sps:$4 sm:$0xff]  }
  0xe8   : > { %2353 = vmatpush1.bf16.msra.mxu1 %v19730_v55  ;;  %2098 = vmatprep.subr.bf16.mxu0 %v19735_v56  ;;  %v2509_v55 = vshrl.u32 %v17370_v43, 16  ;;  %v2513_v56 = vrot.slane %v2511_v48, 1  ;;  %v19896_v48 = vld [vmem:[#allocation2 + $0xa4] ss:$8 sps:$4 sm:$0xff]  }
  0xe9   : > { %2354 = vmatprep.subr.bf16.mxu1 %v19738_v57  ;;  %v2178_v57 = vor.u32 %v2177_v51, %v2173_v50  ;;  %v23002_v50 = vld [vmem:[%s22958_s8 + $0x28] sm:$0x11]  ;;  %v17369_v51 = vcombine.low %v22989_v36, %v22994_v40  ;;  %v1345_v36 = vlaneseq }
  0xeb   : > { %2099 = vmatpush1.bf16.msra.mxu0 %v19733_v58  ;;  %v19813_v58 = vld [vmem:[#allocation2 + $0x170] ss:$8 sps:$4 sm:$0xff]  }
  0xec   : > { %2355 = vmatpush1.bf16.msra.mxu1 %v19736_v59  ;;  %2100 = vmatprep.subr.bf16.mxu0 %v19741_v60  ;;  %v19816_v59 = vld [vmem:[#allocation2 + $0x70] ss:$8 sps:$4 sm:$0xff]   ;;  %v19821_v60 = vld [vmem:[#allocation2 + $0x164] ss:$8 sps:$4 sm:$0xff]  }
  0xed   : > { %2356 = vmatprep.subr.bf16.mxu1 %v19744_v61  ;;  %v19824_v61 = vld [vmem:[#allocation2 + $0x64] ss:$8 sps:$4 sm:$0xff]  }
  0xef   : > { %2101 = vmatpush1.bf16.msra.mxu0 %v19739_v62  ;;  %v2514_v62 = vor.u32 %v2513_v56, %v2509_v55  ;;  %v19899_v56 = vld [vmem:[#allocation2 + $0x194] ss:$8 sps:$4 sm:$0xff]  }
  0xf0   : > { %2357 = vmatpush1.bf16.msra.mxu1 %v19742_v63  ;;  %2102 = vmatprep.subr.bf16.mxu0 %v19747_v0  ;;  %v19819_v63 = vld [vmem:[#allocation2 + $0x160] ss:$8 sps:$4 sm:$0xff]  }
  0xf1   : > { %2358 = vmatprep.subr.bf16.mxu1 %v19750_v1  ;;  %v19822_v0 = vld [vmem:[#allocation2 + $0x60] ss:$8 sps:$4 sm:$0xff]   ;;  %v19827_v1 = vld [vmem:[#allocation2 + $0x154] ss:$8 sps:$4 sm:$0xff]  }
  0xf3   : > { %2103 = vmatpush1.bf16.msra.mxu0 %v19745_v2  ;;  %v19830_v2 = vld [vmem:[#allocation2 + $0x54] ss:$8 sps:$4 sm:$0xff]  }
  0xf4   : > { %2359 = vmatpush1.bf16.msra.mxu1 %v19748_v3  ;;  %2104 = vmatprep.subr.bf16.mxu0 %v19753_v4  ;;  %v19825_v3 = vld [vmem:[#allocation2 + $0x150] ss:$8 sps:$4 sm:$0xff]  }
  0xf5   : > { %2360 = vmatprep.subr.bf16.mxu1 %v19756_v5  ;;  %v19828_v4 = vld [vmem:[#allocation2 + $0x50] ss:$8 sps:$4 sm:$0xff]   ;;  %v19833_v5 = vld [vmem:[#allocation2 + $0x144] ss:$8 sps:$4 sm:$0xff]  }
  0xf7   : > { %2105 = vmatpush1.bf16.msra.mxu0 %v19751_v6  ;;  %v19836_v6 = vld [vmem:[#allocation2 + $0x44] ss:$8 sps:$4 sm:$0xff]  }
  0xf8   : > { %2361 = vmatpush1.bf16.msra.mxu1 %v19754_v7  ;;  %2106 = vmatprep.subr.bf16.mxu0 %v19759_v8  ;;  %v19831_v7 = vld [vmem:[#allocation2 + $0x140] ss:$8 sps:$4 sm:$0xff]  }
  0xf9   : > { %2362 = vmatprep.subr.bf16.mxu1 %v19762_v9  ;;  %v19834_v8 = vld [vmem:[#allocation2 + $0x40] ss:$8 sps:$4 sm:$0xff]   ;;  %v19839_v9 = vld [vmem:[#allocation2 + $0x134] ss:$8 sps:$4 sm:$0xff]  }
  0xfb   : > { %2107 = vmatpush1.bf16.msra.mxu0 %v19757_v10  ;;  %v19842_v10 = vld [vmem:[#allocation2 + $0x34] ss:$8 sps:$4 sm:$0xff]  }
  0xfc   : > { %2363 = vmatpush1.bf16.msra.mxu1 %v19760_v11  ;;  %2108 = vmatprep.subr.bf16.mxu0 %v19765_v12  ;;  %v19837_v11 = vld [vmem:[#allocation2 + $0x130] ss:$8 sps:$4 sm:$0xff]  }
  0xfd   : > { %2364 = vmatprep.subr.bf16.mxu1 %v19768_v13  ;;  %v19840_v12 = vld [vmem:[#allocation2 + $0x30] ss:$8 sps:$4 sm:$0xff]   ;;  %v19845_v13 = vld [vmem:[#allocation2 + $0x124] ss:$8 sps:$4 sm:$0xff]  }
  0xff   : > { %2109 = vmatpush2.bf16.msra.mxu0 %v19763_v14  ;;  %v19848_v14 = vld [vmem:[#allocation2 + $0x24] ss:$8 sps:$4 sm:$0xff]  }
 0x100   : > { %2365 = vmatpush2.bf16.msra.mxu1 %v19766_v15  ;;  %2110 = vmatprep.subr.bf16.mxu0 %v19771_v16  ;;  %v19843_v15 = vld [vmem:[#allocation2 + $0x120] ss:$8 sps:$4 sm:$0xff]  }
 0x101   : > { %2366 = vmatprep.subr.bf16.mxu1 %v19774_v17  ;;  %v19846_v16 = vld [vmem:[#allocation2 + $0x20] ss:$8 sps:$4 sm:$0xff]   ;;  %v19851_v17 = vld [vmem:[#allocation2 + $0x114] ss:$8 sps:$4 sm:$0xff]  }
 0x103   : > { %2111 = vmatpush2.bf16.msra.mxu0 %v19769_v18  ;;  %v19854_v18 = vld [vmem:[#allocation2 + $0x14] ss:$8 sps:$4 sm:$0xff]  }
 0x104   : > { %2367 = vmatpush2.bf16.msra.mxu1 %v19772_v19  ;;  %2112 = vmatprep.subr.bf16.mxu0 %v19777_v20  ;;  %v19849_v19 = vld [vmem:[#allocation2 + $0x110] ss:$8 sps:$4 sm:$0xff]  }
 0x105   : > { %2368 = vmatprep.subr.bf16.mxu1 %v19780_v21  ;;  %v19852_v20 = vld [vmem:[#allocation2 + $0x10] ss:$8 sps:$4 sm:$0xff]   ;;  %v19857_v21 = vld [vmem:[#allocation2 + $0x104] ss:$8 sps:$4 sm:$0xff]  }
 0x107   : > { %2113 = vmatpush2.bf16.msra.mxu0 %v19775_v22  ;;  %v19860_v22 = vld [vmem:[#allocation2 + $0x4] ss:$8 sps:$4 sm:$0xff]  }
 0x108   : > { %2369 = vmatpush2.bf16.msra.mxu1 %v19778_v23  ;;  %2114 = vmatprep.subr.bf16.mxu0 %v19783_v24  ;;  %v19855_v23 = vld [vmem:[#allocation2 + $0x100] ss:$8 sps:$4 sm:$0xff]  }
 0x109   : > { %2370 = vmatprep.subr.bf16.mxu1 %v19786_v25  ;;  %v19858_v24 = vld [vmem:[#allocation2] ss:$8 sps:$4 sm:$0xff]   ;;  %v19863_v25 = vld [vmem:[#allocation2 + $0x1f4] ss:$8 sps:$4 sm:$0xff]  }
 0x10b   : > { %2115 = vmatpush2.bf16.msra.mxu0 %v19781_v27  ;;  %v19866_v27 = vld [vmem:[#allocation2 + $0xf4] ss:$8 sps:$4 sm:$0xff]  }
 0x10c   : > { %2371 = vmatpush2.bf16.msra.mxu1 %v19784_v28  ;;  %2116 = vmatprep.subr.bf16.mxu0 %v19789_v29  ;;  %v19861_v28 = vld [vmem:[#allocation2 + $0x1f0] ss:$8 sps:$4 sm:$0xff]  }
 0x10d   : > { %2372 = vmatprep.subr.bf16.mxu1 %v19792_v30  ;;  %v19864_v29 = vld [vmem:[#allocation2 + $0xf0] ss:$8 sps:$4 sm:$0xff]   ;;  %v19869_v30 = vld [vmem:[#allocation2 + $0x1e4] ss:$8 sps:$4 sm:$0xff]  }
 0x10f   : > { %2117 = vmatpush2.bf16.msra.mxu0 %v19787_v32  ;;  %v19872_v32 = vld [vmem:[#allocation2 + $0xe4] ss:$8 sps:$4 sm:$0xff]  }
 0x110   : > { %2373 = vmatpush2.bf16.msra.mxu1 %v19790_v33  ;;  %2118 = vmatprep.subr.bf16.mxu0 %v19795_v34  ;;  %v19867_v33 = vld [vmem:[#allocation2 + $0x1e0] ss:$8 sps:$4 sm:$0xff]  }
 0x111   : > { %2374 = vmatprep.subr.bf16.mxu1 %v19798_v31  ;;  %v19870_v34 = vld [vmem:[#allocation2 + $0xe0] ss:$8 sps:$4 sm:$0xff]   ;;  %v19875_v31 = vld [vmem:[#allocation2 + $0x1d4] ss:$8 sps:$4 sm:$0xff]  }
 0x113   : > { %2119 = vmatpush2.bf16.msra.mxu0 %v19793_v35  ;;  %v19878_v35 = vld [vmem:[#allocation2 + $0xd4] ss:$8 sps:$4 sm:$0xff]  }
 0x114   : > { %2375 = vmatpush2.bf16.msra.mxu1 %v19796_v41  ;;  %2120 = vmatprep.subr.bf16.mxu0 %v19801_v38  ;;  %v19881_v41 = vld [vmem:[#allocation2 + $0x1c4] ss:$8 sps:$4 sm:$0xff]  }
 0x115   : > { %2376 = vmatprep.subr.bf16.mxu1 %v19804_v42  ;;  %v19884_v38 = vld [vmem:[#allocation2 + $0xc4] ss:$8 sps:$4 sm:$0xff]   ;;  %v19879_v42 = vld [vmem:[#allocation2 + $0x1c0] ss:$8 sps:$4 sm:$0xff]  }
 0x117   : > { %2121 = vmatpush2.bf16.msra.mxu0 %v19799_v44  ;;  %v19887_v44 = vld [vmem:[#allocation2 + $0x1b4] ss:$8 sps:$4 sm:$0xff]  }
 0x118   : > { %2377 = vmatpush2.bf16.msra.mxu1 %v19802_v45  ;;  %2122 = vmatprep.subr.bf16.mxu0 %v19807_v26  ;;  %v19885_v45 = vld [vmem:[#allocation2 + $0x1b0] ss:$8 sps:$4 sm:$0xff]  }
 0x119   : > { %2378 = vmatprep.subr.bf16.mxu1 %v19810_v47  ;;  %v19888_v26 = vld [vmem:[#allocation2 + $0xb0] ss:$8 sps:$4 sm:$0xff]   ;;  %v19893_v47 = vld [vmem:[#allocation2 + $0x1a4] ss:$8 sps:$4 sm:$0xff]  }
 0x11b   : > { %2123 = vmatpush2.bf16.msra.mxu0 %v19805_v49  ;;  %v22999_v49 = vld [vmem:[%s22958_s8 + $0x20] sm:$0xff] }
 0x11c   : > { %2379 = vmatpush2.bf16.msra.mxu1 %v19808_v52  ;;  %2677 = vmatprep.subr.bf16.mxu0 %v19815_v53  ;;  %v19891_v52 = vld [vmem:[#allocation2 + $0x1a0] ss:$8 sps:$4 sm:$0xff]  }
 0x11d   : > { %2882 = vmatprep.subr.bf16.mxu1 %v19818_v54  ;;  %v19894_v53 = vld [vmem:[#allocation2 + $0xa0] ss:$8 sps:$4 sm:$0xff]  }
 0x11e   : > { %2125 = vmatmul.mubr.bf16.vlgmr.msra.gmra.mxu0 %v17297_v39  ;;  %v19876_v39 = vld [vmem:[#allocation2 + $0xd0] ss:$8 sps:$4 sm:$0xff]   ;;  %v621_v54 = vpop.f32.mrf.mxu0 }
 0x11f   : > { %2381 = vmatmul.mubr.bf16.vlgmr.msra.gmra.mxu1 %v2178_v57  ;;  %2678 = vmatpush1.bf16.msra.mxu0 %v19813_v58  ;;  %v826_v55 = vpop.f32.mrf.mxu1  ;;  %v19902_v57 = vld [vmem:[#allocation2 + $0x94] ss:$8 sps:$4 sm:$0xff]   ;;  %v23008_v58 = vcombine.high %v22999_v49, %v23002_v50 }
 0x120   : > { %2883 = vmatpush1.bf16.msra.mxu1 %v19816_v59  ;;  %2679 = vmatprep.subr.bf16.mxu0 %v19821_v60  ;;  %v2504_v59 = vshll.u32 %v17369_v51, 16  ;;  %v19897_v60 = vld [vmem:[#allocation2 + $0x190] ss:$8 sps:$4 sm:$0xff]   ;;  %v623_v40 = vpop.f32.mrf.mxu0 }
 0x121   : > { %2884 = vmatprep.subr.bf16.mxu1 %v19824_v61  ;;  %2709 = vmatprep.mubr.bf16.mxu0 %v2514_v62  ;;  %v19900_v61 = vld [vmem:[#allocation2 + $0x90] ss:$8 sps:$4 sm:$0xff]   ;;  %v828_v62 = vpop.f32.mrf.mxu1 }
 0x122   : > { %2914 = vmatprep.mubr.bf16.mxu1 %v17370_v43  ;;  %v19882_v43 = vld [vmem:[#allocation2 + $0xc0] ss:$8 sps:$4 sm:$0xff]  }
 0x123   : > { %2680 = vmatpush1.bf16.msra.mxu0 %v19819_v63  ;;  %v19905_v63 = vld [vmem:[#allocation2 + $0x184] ss:$8 sps:$4 sm:$0xff]  }
 0x124   : > { %2885 = vmatpush1.bf16.msra.mxu1 %v19822_v0  ;;  %2681 = vmatprep.subr.bf16.mxu0 %v19827_v1  ;;  %v19908_v0 = vld [vmem:[#allocation2 + $0x84] ss:$8 sps:$4 sm:$0xff]   ;;  %v3219_v1 = vshll.u32 %v23008_v58, 16 }
 0x125   : > { %2886 = vmatprep.subr.bf16.mxu1 %v19830_v2  ;;  %v2502_v2 = vshrl.u32 %v17369_v51, 16 }
 0x127   : > { %2682 = vmatpush1.bf16.msra.mxu0 %v19825_v3  ;;  %v2506_v3 = vrot.slane %v2504_v59, 1  ;;  %v19929_v59 = vld [vmem:[#allocation2 + $0x240] ss:$8 sps:$4 sm:$0xff]  }
 0x128   : > { %2887 = vmatpush1.bf16.msra.mxu1 %v19828_v4  ;;  %2683 = vmatprep.subr.bf16.mxu0 %v19833_v5  ;;  %v19903_v4 = vld [vmem:[#allocation2 + $0x180] ss:$8 sps:$4 sm:$0xff]  }
 0x129   : > { %2888 = vmatprep.subr.bf16.mxu1 %v19836_v6  ;;  %v19906_v5 = vld [vmem:[#allocation2 + $0x80] ss:$8 sps:$4 sm:$0xff]   ;;  %v1346_v6 = vshrl.u32 %v1345_v36, 7 }
 0x12b   : > { %2684 = vmatpush1.bf16.msra.mxu0 %v19831_v7  ;;  %v625_v7 = vpop.f32.mrf.mxu0 }
 0x12c   : > { %2889 = vmatpush1.bf16.msra.mxu1 %v19834_v8  ;;  %2685 = vmatprep.subr.bf16.mxu0 %v19839_v9  ;;  %v830_v8 = vpop.f32.mrf.mxu1  ;;  %v19913_v9 = vld [vmem:[#allocation2 + $0x274] ss:$8 sps:$4 sm:$0xff]  }
 0x12d   : > { %2890 = vmatprep.subr.bf16.mxu1 %v19842_v10  ;;  %v19916_v10 = vld [vmem:[#allocation2 + $0x374] ss:$8 sps:$4 sm:$0xff]  }
 0x12f   : > { %2686 = vmatpush1.bf16.msra.mxu0 %v19837_v11  ;;  %v19911_v11 = vld [vmem:[#allocation2 + $0x270] ss:$8 sps:$4 sm:$0xff]  }
 0x130   : > { %2891 = vmatpush1.bf16.msra.mxu1 %v19840_v12  ;;  %2687 = vmatprep.subr.bf16.mxu0 %v19845_v13  ;;  %v19914_v12 = vld [vmem:[#allocation2 + $0x370] ss:$8 sps:$4 sm:$0xff]   ;;  %v3217_v13 = vshrl.u32 %v23008_v58, 16 }
 0x131   : > { %2892 = vmatprep.subr.bf16.mxu1 %v19848_v14  ;;  %v3221_v14 = vrot.slane %v3219_v1, 1 }
 0x133   : > { %2688 = vmatpush1.bf16.msra.mxu0 %v19843_v15  ;;  %v335_v15 = vld [vmem:[%s23416_s3] sm:$0x3] }
 0x134   : > { %2893 = vmatpush1.bf16.msra.mxu1 %v19846_v16  ;;  %2689 = vmatprep.subr.bf16.mxu0 %v19851_v17  ;;  %v2507_v16 = vor.u32 %v2506_v3, %v2502_v2  ;;  %v1347_v17 = vsub.s32 0, %v1346_v6  ;;  %v19935_v3 = vld [vmem:[#allocation2 + $0x230] ss:$8 sps:$4 sm:$0xff]  }
 0x135   : > { %2894 = vmatprep.subr.bf16.mxu1 %v19854_v18  ;;  %v627_v18 = vpop.f32.mrf.mxu0 }
 0x137   : > { %2690 = vmatpush1.bf16.msra.mxu0 %v19849_v19  ;;  %v832_v19 = vpop.f32.mrf.mxu1 }
 0x138   : > { %2895 = vmatpush1.bf16.msra.mxu1 %v19852_v20  ;;  %2691 = vmatprep.subr.bf16.mxu0 %v19857_v21  ;;  %v1351_v20 = vsub.s32 1, %v1346_v6  ;;  %v19919_v21 = vld [vmem:[#allocation2 + $0x264] ss:$8 sps:$4 sm:$0xff]  }
 0x139   : > { %2896 = vmatprep.subr.bf16.mxu1 %v19860_v22  ;;  %v19922_v22 = vld [vmem:[#allocation2 + $0x364] ss:$8 sps:$4 sm:$0xff]  }
 0x13a   : > { %v19943_v6 = vld [vmem:[#allocation2 + $0x224] ss:$8 sps:$4 sm:$0xff]  }
 0x13b   : > { %2692 = vmatpush1.bf16.msra.mxu0 %v19855_v23  ;;  %v827_v23 = vadd.f32 %v826_v55, %v621_v54  ;;  %v19934_v54 = vld [vmem:[#allocation2 + $0x344] ss:$8 sps:$4 sm:$0xff]  }
 0x13c   : > { %2897 = vmatpush1.bf16.msra.mxu1 %v19858_v24  ;;  %2693 = vmatprep.subr.bf16.mxu0 %v19863_v25  ;;  %v19917_v24 = vld [vmem:[#allocation2 + $0x260] ss:$8 sps:$4 sm:$0xff]  }
 0x13d   : > { %2898 = vmatprep.subr.bf16.mxu1 %v19866_v27  ;;  %v19920_v25 = vld [vmem:[#allocation2 + $0x360] ss:$8 sps:$4 sm:$0xff]   ;;  %v3222_v27 = vor.u32 %v3221_v14, %v3217_v13  ;;  %v19950_v13 = vld [vmem:[#allocation2 + $0x310] ss:$8 sps:$4 sm:$0xff]  }
 0x13f   : > { %2694 = vmatpush2.bf16.msra.mxu0 %v19861_v28 }
 0x140   : > { %2899 = vmatpush2.bf16.msra.mxu1 %v19864_v29  ;;  %2695 = vmatprep.subr.bf16.mxu0 %v19869_v30  ;;  %v829_v30 = vadd.f32 %v828_v62, %v623_v40 }
 0x141   : > { %2900 = vmatprep.subr.bf16.mxu1 %v19872_v32 }
 0x143   : > { %2696 = vmatpush2.bf16.msra.mxu0 %v19867_v33  ;;  %v23015_v33 = vrot.slane %v335_v15, %v1347_v17 }
 0x144   : > { %2901 = vmatpush2.bf16.msra.mxu1 %v19870_v34  ;;  %2697 = vmatprep.subr.bf16.mxu0 %v19875_v31 }
 0x145   : > { %2902 = vmatprep.subr.bf16.mxu1 %v19878_v35  ;;  %v23017_v35 = vrot.slane %v335_v15, %v1351_v20  ;;  %v19955_v15 = vld [vmem:[#allocation2 + $0x204] ss:$8 sps:$4 sm:$0xff]  }
 0x147   : > { %2698 = vmatpush2.bf16.msra.mxu0 %v19873_v37  ;;  %v19925_v37 = vld [vmem:[#allocation2 + $0x254] ss:$8 sps:$4 sm:$0xff]  }
 0x148   : > { %2903 = vmatpush2.bf16.msra.mxu1 %v19876_v39  ;;  %2699 = vmatprep.subr.bf16.mxu0 %v19881_v41  ;;  %v19928_v39 = vld [vmem:[#allocation2 + $0x354] ss:$8 sps:$4 sm:$0xff]   ;;  %v831_v41 = vadd.f32 %v830_v8, %v625_v7  ;;  %v19946_v7 = vld [vmem:[#allocation2 + $0x324] ss:$8 sps:$4 sm:$0xff]   ;;  %v19941_v8 = vld [vmem:[#allocation2 + $0x220] ss:$8 sps:$4 sm:$0xff]  }
 0x149   : > { %2904 = vmatprep.subr.bf16.mxu1 %v19884_v38 }
 0x14b   : > { %2700 = vmatpush2.bf16.msra.mxu0 %v19879_v42 }
 0x14c   : > { %2905 = vmatpush2.bf16.msra.mxu1 %v19882_v43  ;;  %2701 = vmatprep.subr.bf16.mxu0 %v19887_v44  ;;  %v19923_v43 = vld [vmem:[#allocation2 + $0x250] ss:$8 sps:$4 sm:$0xff]  }
 0x14d   : > { %2906 = vmatprep.subr.bf16.mxu1 %v19890_v46  ;;  %v19926_v44 = vld [vmem:[#allocation2 + $0x350] ss:$8 sps:$4 sm:$0xff]   ;;  %v833_v46 = vadd.f32 %v832_v19, %v627_v18  ;;  %v19953_v18 = vld [vmem:[#allocation2 + $0x200] ss:$8 sps:$4 sm:$0xff]  }
 0x14e   : > { %v19956_v19 = vld [vmem:[#allocation2 + $0x300] ss:$8 sps:$4 sm:$0xff]  }
 0x14f   : > { %2702 = vmatpush2.bf16.msra.mxu0 %v19885_v45 }
 0x150   : > { %2907 = vmatpush2.bf16.msra.mxu1 %v19888_v26  ;;  %2703 = vmatprep.subr.bf16.mxu0 %v19893_v47 }
 0x151   : > { %2908 = vmatprep.subr.bf16.mxu1 %v19896_v48 }
 0x153   : > { %2704 = vmatpush2.bf16.msra.mxu0 %v19891_v52 }
 0x154   : > { %2909 = vmatpush2.bf16.msra.mxu1 %v19894_v53  ;;  %2705 = vmatprep.subr.bf16.mxu0 %v19899_v56  ;;  %v19931_v53 = vld [vmem:[#allocation2 + $0x244] ss:$8 sps:$4 sm:$0xff]  }
 0x155   : > { %2910 = vmatprep.subr.bf16.mxu1 %v19902_v57 }
 0x157   : > { %2706 = vmatpush2.bf16.msra.mxu0 %v19897_v60  ;;  %v19932_v60 = vld [vmem:[#allocation2 + $0x340] ss:$8 sps:$4 sm:$0xff]  }
 0x158   : > { %2911 = vmatpush2.bf16.msra.mxu1 %v19900_v61  ;;  %2707 = vmatprep.subr.bf16.mxu0 %v19905_v63  ;;  %v19937_v63 = vld [vmem:[#allocation2 + $0x234] ss:$8 sps:$4 sm:$0xff]  }
 0x159   : > { %2912 = vmatprep.subr.bf16.mxu1 %v19908_v0  ;;  %v19940_v0 = vld [vmem:[#allocation2 + $0x334] ss:$8 sps:$4 sm:$0xff]  }
 0x15b   : > { %2708 = vmatpush2.bf16.msra.mxu0 %v19903_v4  ;;  %v19938_v4 = vld [vmem:[#allocation2 + $0x330] ss:$8 sps:$4 sm:$0xff]  }
 0x15c   : > { %2913 = vmatpush2.bf16.msra.mxu1 %v19906_v5  ;;  %3130 = vmatprep.subr.bf16.mxu0 %v19913_v9  ;;  %v19944_v9 = vld [vmem:[#allocation2 + $0x320] ss:$8 sps:$4 sm:$0xff]  }
 0x15d   : > { %3385 = vmatprep.subr.bf16.mxu1 %v19916_v10  ;;  %v19949_v10 = vld [vmem:[#allocation2 + $0x214] ss:$8 sps:$4 sm:$0xff]  }
 0x15e   : > { %v1075_v28 = vpop.f32.mrf.mxu0  ;;  %2710 = vmatmul.mubr.bf16.vlgmr.msra.gmra.mxu0 %v2507_v16  ;;  %v19958_v16 = vld [vmem:[#allocation2 + $0x304] ss:$8 sps:$4 sm:$0xff]  }
 0x15f   : > { %v1331_v29 = vpop.f32.mrf.mxu1  ;;  %2915 = vmatmul.mubr.bf16.vlgmr.msra.gmra.mxu1 %v17369_v51  ;;  %v1084_v32 = vadd.f32 %v1075_v28, %v827_v23  ;;  %3131 = vmatpush1.bf16.msra.mxu0 %v19911_v11  ;;  %v19952_v11 = vld [vmem:[#allocation2 + $0x314] ss:$8 sps:$4 sm:$0xff]   ;;  %v19962_v28 = vld [vmem:[#allocation2 + $0x3f0] ss:$8 sps:$4 sm:$0xff]  }
 0x160   : > { %3386 = vmatpush1.bf16.msra.mxu1 %v19914_v12  ;;  %v1077_v34 = vpop.f32.mrf.mxu0  ;;  %3132 = vmatprep.subr.bf16.mxu0 %v19919_v21  ;;  %v19947_v12 = vld [vmem:[#allocation2 + $0x210] ss:$8 sps:$4 sm:$0xff]   ;;  %v19961_v23 = vld [vmem:[#allocation2 + $0x2f4] ss:$8 sps:$4 sm:$0xff]  }
 0x161   : > { %v1333_v31 = vpop.f32.mrf.mxu1  ;;  %3387 = vmatprep.subr.bf16.mxu1 %v19922_v22  ;;  %v1340_v38 = vadd.f32 %v1331_v29, %v1084_v32  ;;  %v1085_v42 = vadd.f32 %v1077_v34, %v829_v30  ;;  %3162 = vmatprep.mubr.bf16.mxu0 %v23008_v58  ;;  %v19967_v32 = vld [vmem:[#allocation2 + $0x2e4] ss:$8 sps:$4 sm:$0xff]  }
 0x162   : > { %3417 = vmatprep.mubr.bf16.mxu1 %v3222_v27  ;;  %v1079_v45 = vpop.f32.mrf.mxu0  ;;  %v19959_v27 = vld [vmem:[#allocation2 + $0x2f0] ss:$8 sps:$4 sm:$0xff]   ;;  %v19970_v34 = vld [vmem:[#allocation2 + $0x3e4] ss:$8 sps:$4 sm:$0xff]  }
 0x163   : > { %v1335_v26 = vpop.f32.mrf.mxu1  ;;  %v1355_v47 = vadd.f32 %v23015_v33, %v1340_v38  ;;  %v1341_v48 = vadd.f32 %v1333_v31, %v1085_v42  ;;  %v1086_v51 = vadd.f32 %v1079_v45, %v831_v41  ;;  %3133 = vmatpush1.bf16.msra.mxu0 %v19917_v24  ;;  %v19964_v24 = vld [vmem:[#allocation2 + $0x3f4] ss:$8 sps:$4 sm:$0xff]   ;;  %v19965_v31 = vld [vmem:[#allocation2 + $0x2e0] ss:$8 sps:$4 sm:$0xff]   ;;  %v19971_v38 = vld [vmem:[#allocation2 + $0x2d0] ss:$8 sps:$4 sm:$0xff]  }
 0x164   : > { %3388 = vmatpush1.bf16.msra.mxu1 %v19920_v25  ;;  %v1081_v52 = vpop.f32.mrf.mxu0  ;;  %3134 = vmatprep.subr.bf16.mxu0 %v19925_v37  ;;  %v19968_v37 = vld [vmem:[#allocation2 + $0x3e0] ss:$8 sps:$4 sm:$0xff]   ;;  %v19976_v41 = vld [vmem:[#allocation2 + $0x3d4] ss:$8 sps:$4 sm:$0xff]   ;;  %v19974_v42 = vld [vmem:[#allocation2 + $0x3d0] ss:$8 sps:$4 sm:$0xff]  }
 0x165   : > { %3389 = vmatprep.subr.bf16.mxu1 %v19928_v39  ;;  %v17225_v55 = vmul.f32 -1.442695, %v1355_v47  ;;  %v1356_v56 = vadd.f32 %v23017_v35, %v1341_v48  ;;  %v1342_v57 = vadd.f32 %v1335_v26, %v1086_v51  ;;  %v1087_v58 = vadd.f32 %v1081_v52, %v833_v46  ;;  %v1337_v61 = vpop.f32.mrf.mxu1  ;;  %v19973_v39 = vld [vmem:[#allocation2 + $0x2d4] ss:$8 sps:$4 sm:$0xff]   ;;  %v19982_v46 = vld [vmem:[#allocation2 + $0x3c4] ss:$8 sps:$4 sm:$0xff]  }
 0x166   : > { %v19977_v45 = vld [vmem:[#allocation2 + $0x2c0] ss:$8 sps:$4 sm:$0xff]   ;;  %v19985_v51 = vld [vmem:[#allocation2 + $0x2b4] ss:$8 sps:$4 sm:$0xff]  }
 0x167   : > { %22557 = vpow2.f32 %v17225_v55  ;;  %v17226_v36 = vmul.f32 -1.442695, %v1356_v56  ;;  %v1357_v40 = vadd.f32 %v23015_v33, %v1342_v57  ;;  %v1343_v62 = vadd.f32 %v1337_v61, %v1087_v58  ;;  %3135 = vmatpush1.bf16.msra.mxu0 %v19923_v43  ;;  %v19980_v26 = vld [vmem:[#allocation2 + $0x3c0] ss:$8 sps:$4 sm:$0xff]   ;;  %v19988_v52 = vld [vmem:[#allocation2 + $0x3b4] ss:$8 sps:$4 sm:$0xff]  }
 0x168   : > { %3390 = vmatpush1.bf16.msra.mxu1 %v19926_v44  ;;  %3136 = vmatprep.subr.bf16.mxu0 %v19931_v53  ;;  %v19979_v44 = vld [vmem:[#allocation2 + $0x2c4] ss:$8 sps:$4 sm:$0xff]   ;;  %v19983_v53 = vld [vmem:[#allocation2 + $0x2b0] ss:$8 sps:$4 sm:$0xff]   ;;  %v19992_v61 = vld [vmem:[#allocation2 + $0x3a0] ss:$8 sps:$4 sm:$0xff]  }
 0x169   : > { %3391 = vmatprep.subr.bf16.mxu1 %v19934_v54  ;;  %22559 = vpow2.f32 %v17226_v36  ;;  %v17227_v1 = vmul.f32 -1.442695, %v1357_v40  ;;  %v1358_v2 = vadd.f32 %v23017_v35, %v1343_v62  ;;  %v19986_v55 = vld [vmem:[#allocation2 + $0x3b0] ss:$8 sps:$4 sm:$0xff]   ;;  %v19991_v56 = vld [vmem:[#allocation2 + $0x2a4] ss:$8 sps:$4 sm:$0xff]  }
 0x16a   : > { %v19994_v57 = vld [vmem:[#allocation2 + $0x3a4] ss:$8 sps:$4 sm:$0xff]   ;;  %v23038_v58 = vld [vmem:[%s22958_s8 + $0x18] sm:$0x11]  ;;  %v23043_v62 = vld [vmem:[%s22958_s8 + $0x10] sm:$0xff] }
 0x16b   : > { %22561 = vpow2.f32 %v17227_v1  ;;  %v17228_v5 = vmul.f32 -1.442695, %v1358_v2  ;;  %3137 = vmatpush1.bf16.msra.mxu0 %v19929_v59  ;;  %v17437_v59 = vcombine.low %v22999_v49, %v23002_v50  ;;  %v19997_v36 = vld [vmem:[#allocation2 + $0x294] ss:$8 sps:$4 sm:$0xff]   ;;  %v19995_v1 = vld [vmem:[#allocation2 + $0x290] ss:$8 sps:$4 sm:$0xff]  }
 0x16c   : > { %3392 = vmatpush1.bf16.msra.mxu1 %v19932_v60  ;;  %3138 = vmatprep.subr.bf16.mxu0 %v19937_v63  ;;  %v19989_v60 = vld [vmem:[#allocation2 + $0x2a0] ss:$8 sps:$4 sm:$0xff]   ;;  %v20000_v40 = vld [vmem:[#allocation2 + $0x394] ss:$8 sps:$4 sm:$0xff]   ;;  %v17514_v63 = vcombine.high %v23043_v62, %v23038_v58  ;;  %v19998_v2 = vld [vmem:[#allocation2 + $0x390] ss:$8 sps:$4 sm:$0xff]  }
 0x16d   : > { %3393 = vmatprep.subr.bf16.mxu1 %v19940_v0  ;;  %22563 = vpow2.f32 %v17228_v5  ;;  %v3212_v0 = vshll.u32 %v17437_v59, 16  ;;  %v20003_v49 = vld [vmem:[#allocation2 + $0x284] ss:$8 sps:$4 sm:$0xff]  }
 0x16e   : > { %v20006_v50 = vld [vmem:[#allocation2 + $0x384] ss:$8 sps:$4 sm:$0xff]  }
 0x16f   : > { %3139 = vmatpush1.bf16.msra.mxu0 %v19935_v3  ;;  %v3549_v3 = vshll.u32 %v17514_v63, 16  ;;  %v3214_v5 = vrot.slane %v3212_v0, 1  ;;  %v20075_v0 = vld [vmem:[#allocation2 + $0x5c0] ss:$8 sps:$4 sm:$0xff]  }
 0x170   : > { %3394 = vmatpush1.bf16.msra.mxu1 %v19938_v4  ;;  %3140 = vmatprep.subr.bf16.mxu0 %v19943_v6  ;;  %v3210_v4 = vshrl.u32 %v17437_v59, 16  ;;  %v20001_v6 = vld [vmem:[#allocation2 + $0x280] ss:$8 sps:$4 sm:$0xff]  }
 0x171   : > { %3395 = vmatprep.subr.bf16.mxu1 %v19946_v7  ;;  %v20004_v7 = vld [vmem:[#allocation2 + $0x380] ss:$8 sps:$4 sm:$0xff]  }
 0x173   : > { %3141 = vmatpush1.bf16.msra.mxu0 %v19941_v8  ;;  %v20011_v8 = vld [vmem:[#allocation2 + $0x574] ss:$8 sps:$4 sm:$0xff]  }
 0x174   : > { %3396 = vmatpush1.bf16.msra.mxu1 %v19944_v9  ;;  %v22558_v14 = vpop.eup %22557  ;;  %3142 = vmatprep.subr.bf16.mxu0 %v19949_v10  ;;  %v20014_v9 = vld [vmem:[#allocation2 + $0x474] ss:$8 sps:$4 sm:$0xff]   ;;  %v20009_v10 = vld [vmem:[#allocation2 + $0x570] ss:$8 sps:$4 sm:$0xff]  }
 0x175   : > { %3397 = vmatprep.subr.bf16.mxu1 %v19952_v11  ;;  %v1371_v17 = vadd.f32 1.0, %v22558_v14  ;;  %v20012_v11 = vld [vmem:[#allocation2 + $0x470] ss:$8 sps:$4 sm:$0xff]   ;;  %v3215_v14 = vor.u32 %v3214_v5, %v3210_v4  ;;  %v20089_v4 = vld [vmem:[#allocation2 + $0x5a4] ss:$8 sps:$4 sm:$0xff]  }
 0x176   : > { %v22560_v20 = vpop.eup %22559  ;;  %v20092_v5 = vld [vmem:[#allocation2 + $0x4a4] ss:$8 sps:$4 sm:$0xff]  }
 0x177   : > { %22565 = vrcp.f32 %v1371_v17  ;;  %v1372_v21 = vadd.f32 1.0, %v22560_v20  ;;  %3143 = vmatpush1.bf16.msra.mxu0 %v19947_v12  ;;  %v3547_v12 = vshrl.u32 %v17514_v63, 16  ;;  %v20015_v17 = vld [vmem:[#allocation2 + $0x560] ss:$8 sps:$4 sm:$0xff]   ;;  %v20023_v20 = vld [vmem:[#allocation2 + $0x554] ss:$8 sps:$4 sm:$0xff]  }
 0x178   : > { %3398 = vmatpush1.bf16.msra.mxu1 %v19950_v13  ;;  %v22562_v22 = vpop.eup %22561  ;;  %3144 = vmatprep.subr.bf16.mxu0 %v19955_v15  ;;  %v3551_v13 = vrot.slane %v3549_v3, 1  ;;  %v20017_v15 = vld [vmem:[#allocation2 + $0x564] ss:$8 sps:$4 sm:$0xff]   ;;  %v20084_v3 = vld [vmem:[#allocation2 + $0x4b0] ss:$8 sps:$4 sm:$0xff]  }
 0x179   : > { %3399 = vmatprep.subr.bf16.mxu1 %v19958_v16  ;;  %22567 = vrcp.f32 %v1372_v21  ;;  %v1373_v25 = vadd.f32 1.0, %v22562_v22  ;;  %v20020_v16 = vld [vmem:[#allocation2 + $0x464] ss:$8 sps:$4 sm:$0xff]   ;;  %v20026_v21 = vld [vmem:[#allocation2 + $0x454] ss:$8 sps:$4 sm:$0xff]  }
 0x17a   : > { %v22564_v29 = vpop.eup %22563  ;;  %v20021_v22 = vld [vmem:[#allocation2 + $0x550] ss:$8 sps:$4 sm:$0xff]  }
 0x17b   : > { %22569 = vrcp.f32 %v1373_v25  ;;  %v1374_v30 = vadd.f32 1.0, %v22564_v29  ;;  %3145 = vmatpush1.bf16.msra.mxu0 %v19953_v18  ;;  %v20018_v18 = vld [vmem:[#allocation2 + $0x460] ss:$8 sps:$4 sm:$0xff]   ;;  %v20032_v25 = vld [vmem:[#allocation2 + $0x444] ss:$8 sps:$4 sm:$0xff]  }
 0x17c   : > { %3400 = vmatpush1.bf16.msra.mxu1 %v19956_v19  ;;  %3146 = vmatprep.subr.bf16.mxu0 %v19961_v23  ;;  %v3552_v19 = vor.u32 %v3551_v13, %v3547_v12  ;;  %v20024_v23 = vld [vmem:[#allocation2 + $0x450] ss:$8 sps:$4 sm:$0xff]   ;;  %v20035_v29 = vld [vmem:[#allocation2 + $0x534] ss:$8 sps:$4 sm:$0xff]  }
 0x17d   : > { %3401 = vmatprep.subr.bf16.mxu1 %v19964_v24  ;;  %22571 = vrcp.f32 %v1374_v30  ;;  %v20029_v24 = vld [vmem:[#allocation2 + $0x544] ss:$8 sps:$4 sm:$0xff]   ;;  %v20038_v30 = vld [vmem:[#allocation2 + $0x434] ss:$8 sps:$4 sm:$0xff]  }
 0x17e   : > { %v20095_v12 = vld [vmem:[#allocation2 + $0x594] ss:$8 sps:$4 sm:$0xff]  }
 0x17f   : > { %3147 = vmatpush2.bf16.msra.mxu0 %v19959_v27  ;;  %v20027_v27 = vld [vmem:[#allocation2 + $0x540] ss:$8 sps:$4 sm:$0xff]   ;;  %v20098_v13 = vld [vmem:[#allocation2 + $0x494] ss:$8 sps:$4 sm:$0xff]  }
 0x180   : > { %3402 = vmatpush2.bf16.msra.mxu1 %v19962_v28  ;;  %3148 = vmatprep.subr.bf16.mxu0 %v19967_v32  ;;  %v20030_v28 = vld [vmem:[#allocation2 + $0x440] ss:$8 sps:$4 sm:$0xff]   ;;  %v20033_v32 = vld [vmem:[#allocation2 + $0x530] ss:$8 sps:$4 sm:$0xff]  }
 0x181   : > { %3403 = vmatprep.subr.bf16.mxu1 %v19970_v34  ;;  %v20036_v34 = vld [vmem:[#allocation2 + $0x430] ss:$8 sps:$4 sm:$0xff]  }
 0x183   : > { %3149 = vmatpush2.bf16.msra.mxu0 %v19965_v31  ;;  %v20041_v31 = vld [vmem:[#allocation2 + $0x524] ss:$8 sps:$4 sm:$0xff]  }
 0x184   : > { %3404 = vmatpush2.bf16.msra.mxu1 %v19968_v37  ;;  %v22566_v43 = vpop.eup %22565  ;;  %3150 = vmatprep.subr.bf16.mxu0 %v19973_v39  ;;  %v20044_v37 = vld [vmem:[#allocation2 + $0x424] ss:$8 sps:$4 sm:$0xff]   ;;  %v20039_v39 = vld [vmem:[#allocation2 + $0x520] ss:$8 sps:$4 sm:$0xff]  }
 0x185   : > { %3405 = vmatprep.subr.bf16.mxu1 %v19976_v41  ;;  %1383 = vst [vmem:[%s23031_s15] sm:$0xff] %v22566_v43  ;;  %v20042_v41 = vld [vmem:[#allocation2 + $0x420] ss:$8 sps:$4 sm:$0xff]   ;;  %v20045_v43 = vld [vmem:[#allocation2 + $0x510] ss:$8 sps:$4 sm:$0xff]  }
 0x186   : > { %v22568_v47 = vpop.eup %22567 }
 0x187   : > { %1384 = vst [vmem:[%s23031_s15 + $0x8] sm:$0xff] %v22568_v47  ;;  %3151 = vmatpush2.bf16.msra.mxu0 %v19971_v38  ;;  %v20047_v38 = vld [vmem:[#allocation2 + $0x514] ss:$8 sps:$4 sm:$0xff]   ;;  %v20054_v47 = vld [vmem:[#allocation2 + $0x400] ss:$8 sps:$4 sm:$0xff]  }
 0x188   : > { %3406 = vmatpush2.bf16.msra.mxu1 %v19974_v42  ;;  %v22570_v48 = vpop.eup %22569  ;;  %3152 = vmatprep.subr.bf16.mxu0 %v19979_v44  ;;  %v20050_v42 = vld [vmem:[#allocation2 + $0x414] ss:$8 sps:$4 sm:$0xff]   ;;  %v20048_v44 = vld [vmem:[#allocation2 + $0x410] ss:$8 sps:$4 sm:$0xff]  }
 0x189   : > { %3407 = vmatprep.subr.bf16.mxu1 %v19982_v46  ;;  %1385 = vst [vmem:[%s23031_s15 + $0x20] sm:$0x1] %v22570_v48  ;;  %v20053_v46 = vld [vmem:[#allocation2 + $0x504] ss:$8 sps:$4 sm:$0xff]   ;;  %v20059_v48 = vld [vmem:[#allocation2 + $0x5f4] ss:$8 sps:$4 sm:$0xff]  }
 0x18a   : > { %v22572_v54 = vpop.eup %22571 }
 0x18b   : > { %1386 = vst [vmem:[%s23031_s15 + $0x28] sm:$0x1] %v22572_v54  ;;  %3153 = vmatpush2.bf16.msra.mxu0 %v19977_v45  ;;  %v20056_v45 = vld [vmem:[#allocation2 + $0x404] ss:$8 sps:$4 sm:$0xff]  }
 0x18c   : > { %3408 = vmatpush2.bf16.msra.mxu1 %v19980_v26  ;;  %3154 = vmatprep.subr.bf16.mxu0 %v19985_v51  ;;  %v20051_v26 = vld [vmem:[#allocation2 + $0x500] ss:$8 sps:$4 sm:$0xff]   ;;  %v20062_v51 = vld [vmem:[#allocation2 + $0x4f4] ss:$8 sps:$4 sm:$0xff]   ;;  %v20065_v54 = vld [vmem:[#allocation2 + $0x5e4] ss:$8 sps:$4 sm:$0xff]  }
 0x18d   : > { %3409 = vmatprep.subr.bf16.mxu1 %v19988_v52  ;;  %v20057_v52 = vld [vmem:[#allocation2 + $0x5f0] ss:$8 sps:$4 sm:$0xff]  }
 0x18f   : > { %3155 = vmatpush2.bf16.msra.mxu0 %v19983_v53  ;;  %v20060_v53 = vld [vmem:[#allocation2 + $0x4f0] ss:$8 sps:$4 sm:$0xff]  }
 0x190   : > { %3410 = vmatpush2.bf16.msra.mxu1 %v19986_v55  ;;  %3156 = vmatprep.subr.bf16.mxu0 %v19991_v56  ;;  %v20068_v55 = vld [vmem:[#allocation2 + $0x4e4] ss:$8 sps:$4 sm:$0xff]   ;;  %v20063_v56 = vld [vmem:[#allocation2 + $0x5e0] ss:$8 sps:$4 sm:$0xff]  }
 0x191   : > { %3411 = vmatprep.subr.bf16.mxu1 %v19994_v57  ;;  %v20066_v57 = vld [vmem:[#allocation2 + $0x4e0] ss:$8 sps:$4 sm:$0xff]  }
 0x193   : > { %3157 = vmatpush2.bf16.msra.mxu0 %v19989_v60  ;;  %v20074_v60 = vld [vmem:[#allocation2 + $0x4d4] ss:$8 sps:$4 sm:$0xff]  }
 0x194   : > { %3412 = vmatpush2.bf16.msra.mxu1 %v19992_v61  ;;  %3158 = vmatprep.subr.bf16.mxu0 %v19997_v36  ;;  %v20069_v61 = vld [vmem:[#allocation2 + $0x5d0] ss:$8 sps:$4 sm:$0xff]  }
 0x195   : > { %3413 = vmatprep.subr.bf16.mxu1 %v20000_v40  ;;  %v20072_v36 = vld [vmem:[#allocation2 + $0x4d0] ss:$8 sps:$4 sm:$0xff]   ;;  %v20077_v40 = vld [vmem:[#allocation2 + $0x5c4] ss:$8 sps:$4 sm:$0xff]  }
 0x197   : > { %3159 = vmatpush2.bf16.msra.mxu0 %v19995_v1  ;;  %v20078_v1 = vld [vmem:[#allocation2 + $0x4c0] ss:$8 sps:$4 sm:$0xff]  }
 0x198   : > { %3414 = vmatpush2.bf16.msra.mxu1 %v19998_v2  ;;  %3160 = vmatprep.subr.bf16.mxu0 %v20003_v49  ;;  %v20083_v2 = vld [vmem:[#allocation2 + $0x5b4] ss:$8 sps:$4 sm:$0xff]  }
 0x199   : > { %3415 = vmatprep.subr.bf16.mxu1 %v20006_v50  ;;  %v20086_v49 = vld [vmem:[#allocation2 + $0x4b4] ss:$8 sps:$4 sm:$0xff]   ;;  %v20081_v50 = vld [vmem:[#allocation2 + $0x5b0] ss:$8 sps:$4 sm:$0xff]  }
 0x19b   : > { %3161 = vmatpush2.bf16.msra.mxu0 %v20001_v6  ;;  %v23048_v6 = vld [vmem:[%s22958_s8 + $0x28] sm:$0x11] }
 0x19c   : > { %3416 = vmatpush2.bf16.msra.mxu1 %v20004_v7  ;;  %3715 = vmatprep.subr.bf16.mxu0 %v20011_v8  ;;  %v17513_v7 = vcombine.low %v23043_v62, %v23038_v58  ;;  %v20087_v8 = vld [vmem:[#allocation2 + $0x5a0] ss:$8 sps:$4 sm:$0xff]   ;;  %v20096_v58 = vld [vmem:[#allocation2 + $0x490] ss:$8 sps:$4 sm:$0xff]  }
 0x19d   : > { %3920 = vmatprep.subr.bf16.mxu1 %v20014_v9  ;;  %v20090_v9 = vld [vmem:[#allocation2 + $0x4a0] ss:$8 sps:$4 sm:$0xff]  }
 0x19e   : > { %3163 = vmatmul.mubr.bf16.vlgmr.msra.gmra.mxu0 %v17437_v59  ;;  %v20071_v59 = vld [vmem:[#allocation2 + $0x5d4] ss:$8 sps:$4 sm:$0xff]  }
 0x19f   : > { %3418 = vmatmul.mubr.bf16.vlgmr.msra.gmra.mxu1 %v3215_v14  ;;  %3716 = vmatpush1.bf16.msra.mxu0 %v20009_v10  ;;  %v1673_v10 = vpop.f32.mrf.mxu0  ;;  %v23053_v14 = vld [vmem:[%s22958_s8 + $0x20] sm:$0xff] }
 0x1a0   : > { %3921 = vmatpush1.bf16.msra.mxu1 %v20012_v11  ;;  %3717 = vmatprep.subr.bf16.mxu0 %v20017_v15  ;;  %v1878_v11 = vpop.f32.mrf.mxu1  ;;  %v17582_v15 = vcombine.high %v23053_v14, %v23048_v6 }
 0x1a1   : > { %3922 = vmatprep.subr.bf16.mxu1 %v20020_v16  ;;  %3747 = vmatprep.mubr.bf16.mxu0 %v3552_v19  ;;  %v3542_v16 = vshll.u32 %v17513_v7, 16  ;;  %v1675_v62 = vpop.f32.mrf.mxu0  ;;  %v20101_v19 = vld [vmem:[#allocation2 + $0x584] ss:$8 sps:$4 sm:$0xff]  }
 0x1a2   : > { %3952 = vmatprep.mubr.bf16.mxu1 %v17514_v63  ;;  %v20080_v63 = vld [vmem:[#allocation2 + $0x4c4] ss:$8 sps:$4 sm:$0xff]  }
 0x1a3   : > { %3718 = vmatpush1.bf16.msra.mxu0 %v20015_v17  ;;  %v20093_v17 = vld [vmem:[#allocation2 + $0x590] ss:$8 sps:$4 sm:$0xff]  }
 0x1a4   : > { %3923 = vmatpush1.bf16.msra.mxu1 %v20018_v18  ;;  %3719 = vmatprep.subr.bf16.mxu0 %v20023_v20  ;;  %v1880_v18 = vpop.f32.mrf.mxu1  ;;  %v20104_v20 = vld [vmem:[#allocation2 + $0x484] ss:$8 sps:$4 sm:$0xff]  }
 0x1a5   : > { %3924 = vmatprep.subr.bf16.mxu1 %v20026_v21  ;;  %v4256_v21 = vshll.u32 %v17582_v15, 16 }
 0x1a7   : > { %3720 = vmatpush1.bf16.msra.mxu0 %v20021_v22  ;;  %v3540_v22 = vshrl.u32 %v17513_v7, 16 }
 0x1a8   : > { %3925 = vmatpush1.bf16.msra.mxu1 %v20024_v23  ;;  %3721 = vmatprep.subr.bf16.mxu0 %v20029_v24  ;;  %v3544_v23 = vrot.slane %v3542_v16, 1  ;;  %v20099_v24 = vld [vmem:[#allocation2 + $0x580] ss:$8 sps:$4 sm:$0xff]  }
 0x1a9   : > { %3926 = vmatprep.subr.bf16.mxu1 %v20032_v25  ;;  %v20102_v25 = vld [vmem:[#allocation2 + $0x480] ss:$8 sps:$4 sm:$0xff]  }
 0x1ab   : > { %3722 = vmatpush1.bf16.msra.mxu0 %v20027_v27  ;;  %v1677_v27 = vpop.f32.mrf.mxu0 }
 0x1ac   : > { %3927 = vmatpush1.bf16.msra.mxu1 %v20030_v28  ;;  %3723 = vmatprep.subr.bf16.mxu0 %v20035_v29  ;;  %v1882_v28 = vpop.f32.mrf.mxu1  ;;  %v20109_v29 = vld [vmem:[#allocation2 + $0x674] ss:$8 sps:$4 sm:$0xff]  }
 0x1ad   : > { %3928 = vmatprep.subr.bf16.mxu1 %v20038_v30  ;;  %v20112_v30 = vld [vmem:[#allocation2 + $0x774] ss:$8 sps:$4 sm:$0xff]  }
 0x1af   : > { %3724 = vmatpush1.bf16.msra.mxu0 %v20033_v32  ;;  %v20107_v32 = vld [vmem:[#allocation2 + $0x670] ss:$8 sps:$4 sm:$0xff]  }
 0x1b0   : > { %3929 = vmatpush1.bf16.msra.mxu1 %v20036_v34  ;;  %3725 = vmatprep.subr.bf16.mxu0 %v20041_v31  ;;  %v20110_v34 = vld [vmem:[#allocation2 + $0x770] ss:$8 sps:$4 sm:$0xff]   ;;  %v4254_v31 = vshrl.u32 %v17582_v15, 16 }
 0x1b1   : > { %3930 = vmatprep.subr.bf16.mxu1 %v20044_v37  ;;  %v4258_v37 = vrot.slane %v4256_v21, 1 }
 0x1b3   : > { %3726 = vmatpush1.bf16.msra.mxu0 %v20039_v39  ;;  %v3545_v39 = vor.u32 %v3544_v23, %v3540_v22  ;;  %v20139_v22 = vld [vmem:[#allocation2 + $0x624] ss:$8 sps:$4 sm:$0xff]  }
 0x1b4   : > { %3931 = vmatpush1.bf16.msra.mxu1 %v20042_v41  ;;  %3727 = vmatprep.subr.bf16.mxu0 %v20047_v38  ;;  %v1679_v41 = vpop.f32.mrf.mxu0  ;;  %v1884_v38 = vpop.f32.mrf.mxu1  ;;  %v20142_v23 = vld [vmem:[#allocation2 + $0x724] ss:$8 sps:$4 sm:$0xff]  }
 0x1b5   : > { %3932 = vmatprep.subr.bf16.mxu1 %v20050_v42  ;;  %v20115_v42 = vld [vmem:[#allocation2 + $0x664] ss:$8 sps:$4 sm:$0xff]  }
 0x1b7   : > { %3728 = vmatpush1.bf16.msra.mxu0 %v20045_v43  ;;  %v20118_v43 = vld [vmem:[#allocation2 + $0x764] ss:$8 sps:$4 sm:$0xff]  }
 0x1b8   : > { %3933 = vmatpush1.bf16.msra.mxu1 %v20048_v44  ;;  %3729 = vmatprep.subr.bf16.mxu0 %v20053_v46  ;;  %v1879_v44 = vadd.f32 %v1878_v11, %v1673_v10  ;;  %v20113_v46 = vld [vmem:[#allocation2 + $0x660] ss:$8 sps:$4 sm:$0xff]  }
 0x1b9   : > { %3934 = vmatprep.subr.bf16.mxu1 %v20056_v45  ;;  %v20116_v45 = vld [vmem:[#allocation2 + $0x760] ss:$8 sps:$4 sm:$0xff]  }
 0x1ba   : > { %v20125_v10 = vld [vmem:[#allocation2 + $0x640] ss:$8 sps:$4 sm:$0xff]  }
 0x1bb   : > { %3730 = vmatpush1.bf16.msra.mxu0 %v20051_v26  ;;  %v4259_v26 = vor.u32 %v4258_v37, %v4254_v31  ;;  %v20128_v11 = vld [vmem:[#allocation2 + $0x740] ss:$8 sps:$4 sm:$0xff]   ;;  %v20154_v31 = vld [vmem:[#allocation2 + $0x704] ss:$8 sps:$4 sm:$0xff]  }
 0x1bc   : > { %3935 = vmatpush1.bf16.msra.mxu1 %v20054_v47  ;;  %3731 = vmatprep.subr.bf16.mxu0 %v20059_v48 }
 0x1bd   : > { %3936 = vmatprep.subr.bf16.mxu1 %v20062_v51  ;;  %v1881_v51 = vadd.f32 %v1880_v18, %v1675_v62 }
 0x1bf   : > { %3732 = vmatpush2.bf16.msra.mxu0 %v20057_v52 }
 0x1c0   : > { %3937 = vmatpush2.bf16.msra.mxu1 %v20060_v53  ;;  %3733 = vmatprep.subr.bf16.mxu0 %v20065_v54 }
 0x1c1   : > { %3938 = vmatprep.subr.bf16.mxu1 %v20068_v55  ;;  %v20121_v55 = vld [vmem:[#allocation2 + $0x654] ss:$8 sps:$4 sm:$0xff]  }
 0x1c3   : > { %3734 = vmatpush2.bf16.msra.mxu0 %v20063_v56  ;;  %v20124_v56 = vld [vmem:[#allocation2 + $0x754] ss:$8 sps:$4 sm:$0xff]  }
 0x1c4   : > { %3939 = vmatpush2.bf16.msra.mxu1 %v20066_v57  ;;  %3735 = vmatprep.subr.bf16.mxu0 %v20071_v59  ;;  %v1883_v57 = vadd.f32 %v1882_v28, %v1677_v27  ;;  %v20145_v27 = vld [vmem:[#allocation2 + $0x614] ss:$8 sps:$4 sm:$0xff]  }
 0x1c5   : > { %3940 = vmatprep.subr.bf16.mxu1 %v20074_v60  ;;  %v20148_v28 = vld [vmem:[#allocation2 + $0x714] ss:$8 sps:$4 sm:$0xff]  }
 0x1c7   : > { %3736 = vmatpush2.bf16.msra.mxu0 %v20069_v61  ;;  %v20119_v61 = vld [vmem:[#allocation2 + $0x650] ss:$8 sps:$4 sm:$0xff]  }
 0x1c8   : > { %3941 = vmatpush2.bf16.msra.mxu1 %v20072_v36  ;;  %3737 = vmatprep.subr.bf16.mxu0 %v20077_v40  ;;  %v20122_v36 = vld [vmem:[#allocation2 + $0x750] ss:$8 sps:$4 sm:$0xff]   ;;  %v1885_v40 = vadd.f32 %v1884_v38, %v1679_v41  ;;  %v20152_v41 = vld [vmem:[#allocation2 + $0x700] ss:$8 sps:$4 sm:$0xff]  }
 0x1c9   : > { %3942 = vmatprep.subr.bf16.mxu1 %v20080_v63 }
 0x1cb   : > { %3738 = vmatpush2.bf16.msra.mxu0 %v20075_v0 }
 0x1cc   : > { %3943 = vmatpush2.bf16.msra.mxu1 %v20078_v1  ;;  %3739 = vmatprep.subr.bf16.mxu0 %v20083_v2 }
 0x1cd   : > { %3944 = vmatprep.subr.bf16.mxu1 %v20086_v49 }
 0x1cf   : > { %3740 = vmatpush2.bf16.msra.mxu0 %v20081_v50 }
 0x1d0   : > { %3945 = vmatpush2.bf16.msra.mxu1 %v20084_v3  ;;  %3741 = vmatprep.subr.bf16.mxu0 %v20089_v4  ;;  %v20127_v3 = vld [vmem:[#allocation2 + $0x644] ss:$8 sps:$4 sm:$0xff]  }
 0x1d1   : > { %3946 = vmatprep.subr.bf16.mxu1 %v20092_v5  ;;  %v20130_v4 = vld [vmem:[#allocation2 + $0x744] ss:$8 sps:$4 sm:$0xff]  }
 0x1d3   : > { %3742 = vmatpush2.bf16.msra.mxu0 %v20087_v8 }
 0x1d4   : > { %3947 = vmatpush2.bf16.msra.mxu1 %v20090_v9  ;;  %3743 = vmatprep.subr.bf16.mxu0 %v20095_v12 }
 0x1d5   : > { %3948 = vmatprep.subr.bf16.mxu1 %v20098_v13 }
 0x1d7   : > { %3744 = vmatpush2.bf16.msra.mxu0 %v20093_v17  ;;  %v20133_v17 = vld [vmem:[#allocation2 + $0x634] ss:$8 sps:$4 sm:$0xff]  }
 0x1d8   : > { %3949 = vmatpush2.bf16.msra.mxu1 %v20096_v58  ;;  %3745 = vmatprep.subr.bf16.mxu0 %v20101_v19  ;;  %v20136_v58 = vld [vmem:[#allocation2 + $0x734] ss:$8 sps:$4 sm:$0xff]   ;;  %v20131_v19 = vld [vmem:[#allocation2 + $0x630] ss:$8 sps:$4 sm:$0xff]  }
 0x1d9   : > { %3950 = vmatprep.subr.bf16.mxu1 %v20104_v20  ;;  %v20134_v20 = vld [vmem:[#allocation2 + $0x730] ss:$8 sps:$4 sm:$0xff]  }
 0x1db   : > { %3746 = vmatpush2.bf16.msra.mxu0 %v20099_v24  ;;  %v20137_v24 = vld [vmem:[#allocation2 + $0x620] ss:$8 sps:$4 sm:$0xff]  }
 0x1dc   : > { %3951 = vmatpush2.bf16.msra.mxu1 %v20102_v25  ;;  %4167 = vmatprep.subr.bf16.mxu0 %v20109_v29  ;;  %v20140_v25 = vld [vmem:[#allocation2 + $0x720] ss:$8 sps:$4 sm:$0xff]   ;;  %v20143_v29 = vld [vmem:[#allocation2 + $0x610] ss:$8 sps:$4 sm:$0xff]  }
 0x1dd   : > { %4422 = vmatprep.subr.bf16.mxu1 %v20112_v30  ;;  %v20146_v30 = vld [vmem:[#allocation2 + $0x710] ss:$8 sps:$4 sm:$0xff]  }
 0x1de   : > { %v2126_v47 = vpop.f32.mrf.mxu0  ;;  %3748 = vmatmul.mubr.bf16.vlgmr.msra.gmra.mxu0 %v3545_v39  ;;  %v20149_v39 = vld [vmem:[#allocation2 + $0x600] ss:$8 sps:$4 sm:$0xff]  }
 0x1df   : > { %v2382_v48 = vpop.f32.mrf.mxu1  ;;  %3953 = vmatmul.mubr.bf16.vlgmr.msra.gmra.mxu1 %v17513_v7  ;;  %v2135_v52 = vadd.f32 %v2126_v47, %v1879_v44  ;;  %4168 = vmatpush1.bf16.msra.mxu0 %v20107_v32  ;;  %v20157_v44 = vld [vmem:[#allocation2 + $0x6f4] ss:$8 sps:$4 sm:$0xff]   ;;  %v20158_v47 = vld [vmem:[#allocation2 + $0x7f0] ss:$8 sps:$4 sm:$0xff]  }
 0x1e0   : > { %4423 = vmatpush1.bf16.msra.mxu1 %v20110_v34  ;;  %v2128_v53 = vpop.f32.mrf.mxu0  ;;  %4169 = vmatprep.subr.bf16.mxu0 %v20115_v42  ;;  %v20151_v34 = vld [vmem:[#allocation2 + $0x604] ss:$8 sps:$4 sm:$0xff]  }
 0x1e1   : > { %v2384_v54 = vpop.f32.mrf.mxu1  ;;  %4424 = vmatprep.subr.bf16.mxu1 %v20118_v43  ;;  %v2391_v59 = vadd.f32 %v2382_v48, %v2135_v52  ;;  %v2136_v60 = vadd.f32 %v2128_v53, %v1881_v51  ;;  %4199 = vmatprep.mubr.bf16.mxu0 %v17582_v15  ;;  %v20163_v52 = vld [vmem:[#allocation2 + $0x6e4] ss:$8 sps:$4 sm:$0xff]  }
 0x1e2   : > { %4454 = vmatprep.mubr.bf16.mxu1 %v4259_v26  ;;  %v2130_v63 = vpop.f32.mrf.mxu0  ;;  %v20155_v26 = vld [vmem:[#allocation2 + $0x6f0] ss:$8 sps:$4 sm:$0xff]   ;;  %v20166_v53 = vld [vmem:[#allocation2 + $0x7e4] ss:$8 sps:$4 sm:$0xff]  }
 0x1e3   : > { %v2386_v0 = vpop.f32.mrf.mxu1  ;;  %v2395_v1 = vadd.f32 %v2391_v59, %v23015_v33  ;;  %v2392_v2 = vadd.f32 %v2384_v54, %v2136_v60  ;;  %v2137_v49 = vadd.f32 %v2130_v63, %v1883_v57  ;;  %4170 = vmatpush1.bf16.msra.mxu0 %v20113_v46  ;;  %v20160_v46 = vld [vmem:[#allocation2 + $0x7f4] ss:$8 sps:$4 sm:$0xff]   ;;  %v20161_v54 = vld [vmem:[#allocation2 + $0x6e0] ss:$8 sps:$4 sm:$0xff]   ;;  %v20167_v59 = vld [vmem:[#allocation2 + $0x6d0] ss:$8 sps:$4 sm:$0xff]  }
 0x1e4   : > { %4425 = vmatpush1.bf16.msra.mxu1 %v20116_v45  ;;  %v2132_v50 = vpop.f32.mrf.mxu0  ;;  %4171 = vmatprep.subr.bf16.mxu0 %v20121_v55  ;;  %v20164_v55 = vld [vmem:[#allocation2 + $0x7e0] ss:$8 sps:$4 sm:$0xff]   ;;  %v20172_v57 = vld [vmem:[#allocation2 + $0x7d4] ss:$8 sps:$4 sm:$0xff]   ;;  %v20170_v60 = vld [vmem:[#allocation2 + $0x7d0] ss:$8 sps:$4 sm:$0xff]  }
 0x1e5   : > { %4426 = vmatprep.subr.bf16.mxu1 %v20124_v56  ;;  %v17363_v5 = vmul.f32 -1.442695, %v2395_v1  ;;  %v2396_v7 = vadd.f32 %v2392_v2, %v23017_v35  ;;  %v2393_v8 = vadd.f32 %v2386_v0, %v2137_v49  ;;  %v2138_v9 = vadd.f32 %v2132_v50, %v1885_v40  ;;  %v2388_v12 = vpop.f32.mrf.mxu1  ;;  %v20169_v56 = vld [vmem:[#allocation2 + $0x6d4] ss:$8 sps:$4 sm:$0xff]   ;;  %v20178_v40 = vld [vmem:[#allocation2 + $0x7c4] ss:$8 sps:$4 sm:$0xff]  }
 0x1e6   : > { %v20173_v63 = vld [vmem:[#allocation2 + $0x6c0] ss:$8 sps:$4 sm:$0xff]   ;;  %v20181_v49 = vld [vmem:[#allocation2 + $0x6b4] ss:$8 sps:$4 sm:$0xff]  }
 0x1e7   : > { %22573 = vpow2.f32 %v17363_v5  ;;  %v17364_v13 = vmul.f32 -1.442695, %v2396_v7  ;;  %v2397_v15 = vadd.f32 %v2393_v8, %v23015_v33  ;;  %v2394_v16 = vadd.f32 %v2388_v12, %v2138_v9  ;;  %4172 = vmatpush1.bf16.msra.mxu0 %v20119_v61  ;;  %v20176_v0 = vld [vmem:[#allocation2 + $0x7c0] ss:$8 sps:$4 sm:$0xff]   ;;  %v20184_v50 = vld [vmem:[#allocation2 + $0x7b4] ss:$8 sps:$4 sm:$0xff]  }
 0x1e8   : > { %4427 = vmatpush1.bf16.msra.mxu1 %v20122_v36  ;;  %4173 = vmatprep.subr.bf16.mxu0 %v20127_v3  ;;  %v20175_v36 = vld [vmem:[#allocation2 + $0x6c4] ss:$8 sps:$4 sm:$0xff]   ;;  %v20179_v3 = vld [vmem:[#allocation2 + $0x6b0] ss:$8 sps:$4 sm:$0xff]   ;;  %v20185_v12 = vld [vmem:[#allocation2 + $0x6a0] ss:$8 sps:$4 sm:$0xff]  }
 0x1e9   : > { %4428 = vmatprep.subr.bf16.mxu1 %v20130_v4  ;;  %22575 = vpow2.f32 %v17364_v13  ;;  %v17365_v62 = vmul.f32 -1.442695, %v2397_v15  ;;  %v2398_v18 = vadd.f32 %v2394_v16, %v23017_v35  ;;  %v20182_v4 = vld [vmem:[#allocation2 + $0x7b0] ss:$8 sps:$4 sm:$0xff]   ;;  %v20187_v7 = vld [vmem:[#allocation2 + $0x6a4] ss:$8 sps:$4 sm:$0xff]  }
 0x1ea   : > { %v20190_v8 = vld [vmem:[#allocation2 + $0x7a4] ss:$8 sps:$4 sm:$0xff]   ;;  %v20188_v13 = vld [vmem:[#allocation2 + $0x7a0] ss:$8 sps:$4 sm:$0xff]   ;;  %v20193_v15 = vld [vmem:[#allocation2 + $0x694] ss:$8 sps:$4 sm:$0xff]  }
 0x1eb   : > { %22577 = vpow2.f32 %v17365_v62  ;;  %v17366_v21 = vmul.f32 -1.442695, %v2398_v18  ;;  %4174 = vmatpush1.bf16.msra.mxu0 %v20125_v10  ;;  %v23066_v9 = vld [vmem:[%s22958_s8 + $0x20] sm:$0xff]  ;;  %v23069_v10 = vld [vmem:[%s22958_s8 + $0x28] sm:$0x11] }
 0x1ec   : > { %4429 = vmatpush1.bf16.msra.mxu1 %v20128_v11  ;;  %4175 = vmatprep.subr.bf16.mxu0 %v20133_v17  ;;  %v17581_v11 = vcombine.low %v23053_v14, %v23048_v6  ;;  %v20196_v16 = vld [vmem:[#allocation2 + $0x794] ss:$8 sps:$4 sm:$0xff]   ;;  %v17658_v17 = vcombine.high %v23066_v9, %v23069_v10  ;;  %v20191_v62 = vld [vmem:[#allocation2 + $0x690] ss:$8 sps:$4 sm:$0xff]   ;;  %v20202_v6 = vld [vmem:[#allocation2 + $0x784] ss:$8 sps:$4 sm:$0xff]  }
 0x1ed   : > { %4430 = vmatprep.subr.bf16.mxu1 %v20136_v58  ;;  %22579 = vpow2.f32 %v17366_v21  ;;  %v20194_v18 = vld [vmem:[#allocation2 + $0x790] ss:$8 sps:$4 sm:$0xff]  }
 0x1ee   : > { %v4249_v58 = vshll.u32 %v17581_v11, 16  ;;  %v4585_v14 = vshll.u32 %v17658_v17, 16 }
 0x1ef   : > { %4176 = vmatpush1.bf16.msra.mxu0 %v20131_v19  ;;  %v20199_v19 = vld [vmem:[#allocation2 + $0x684] ss:$8 sps:$4 sm:$0xff]  }
 0x1f0   : > { %4431 = vmatpush1.bf16.msra.mxu1 %v20134_v20  ;;  %4177 = vmatprep.subr.bf16.mxu0 %v20139_v22  ;;  %v4247_v20 = vshrl.u32 %v17581_v11, 16  ;;  %v4251_v21 = vrot.slane %v4249_v58, 1  ;;  %v20197_v22 = vld [vmem:[#allocation2 + $0x680] ss:$8 sps:$4 sm:$0xff]  }
 0x1f1   : > { %4432 = vmatprep.subr.bf16.mxu1 %v20142_v23  ;;  %v20200_v23 = vld [vmem:[#allocation2 + $0x780] ss:$8 sps:$4 sm:$0xff]  }
 0x1f2   : > { %v20271_v58 = vld [vmem:[#allocation2 + $0x1c0] ss:$8 sps:$4 sm:$0xff]  }
 0x1f3   : > { %4178 = vmatpush1.bf16.msra.mxu0 %v20137_v24  ;;  %v20207_v24 = vld [vmem:[#allocation2 + $0x174] ss:$8 sps:$4 sm:$0xff]  }
 0x1f4   : > { %4433 = vmatpush1.bf16.msra.mxu1 %v20140_v25  ;;  %v22574_v32 = vpop.eup %22573  ;;  %4179 = vmatprep.subr.bf16.mxu0 %v20145_v27  ;;  %v20210_v25 = vld [vmem:[#allocation2 + $0x74] ss:$8 sps:$4 sm:$0xff]   ;;  %v20205_v27 = vld [vmem:[#allocation2 + $0x170] ss:$8 sps:$4 sm:$0xff]  }
 0x1f5   : > { %4434 = vmatprep.subr.bf16.mxu1 %v20148_v28  ;;  %v2411_v37 = vadd.f32 1.0, %v22574_v32  ;;  %v20208_v28 = vld [vmem:[#allocation2 + $0x70] ss:$8 sps:$4 sm:$0xff]   ;;  %v4252_v32 = vor.u32 %v4251_v21, %v4247_v20  ;;  %v20285_v20 = vld [vmem:[#allocation2 + $0x1a4] ss:$8 sps:$4 sm:$0xff]  }
 0x1f6   : > { %v22576_v38 = vpop.eup %22575  ;;  %v20288_v21 = vld [vmem:[#allocation2 + $0xa4] ss:$8 sps:$4 sm:$0xff]  }
 0x1f7   : > { %22581 = vrcp.f32 %v2411_v37  ;;  %v2412_v42 = vadd.f32 1.0, %v22576_v38  ;;  %4180 = vmatpush1.bf16.msra.mxu0 %v20143_v29  ;;  %v4583_v29 = vshrl.u32 %v17658_v17, 16  ;;  %v20211_v37 = vld [vmem:[#allocation2 + $0x160] ss:$8 sps:$4 sm:$0xff]   ;;  %v20219_v38 = vld [vmem:[#allocation2 + $0x154] ss:$8 sps:$4 sm:$0xff]  }
 0x1f8   : > { %4435 = vmatpush1.bf16.msra.mxu1 %v20146_v30  ;;  %v22578_v43 = vpop.eup %22577  ;;  %4181 = vmatprep.subr.bf16.mxu0 %v20151_v34  ;;  %v4587_v30 = vrot.slane %v4585_v14, 1  ;;  %v20213_v34 = vld [vmem:[#allocation2 + $0x164] ss:$8 sps:$4 sm:$0xff]   ;;  %v20280_v14 = vld [vmem:[#allocation2 + $0xb0] ss:$8 sps:$4 sm:$0xff]  }
 0x1f9   : > { %4436 = vmatprep.subr.bf16.mxu1 %v20154_v31  ;;  %22583 = vrcp.f32 %v2412_v42  ;;  %v2413_v45 = vadd.f32 1.0, %v22578_v43  ;;  %v20216_v31 = vld [vmem:[#allocation2 + $0x64] ss:$8 sps:$4 sm:$0xff]   ;;  %v20222_v42 = vld [vmem:[#allocation2 + $0x54] ss:$8 sps:$4 sm:$0xff]  }
 0x1fa   : > { %v22580_v48 = vpop.eup %22579  ;;  %v20217_v43 = vld [vmem:[#allocation2 + $0x150] ss:$8 sps:$4 sm:$0xff]  }
 0x1fb   : > { %22585 = vrcp.f32 %v2413_v45  ;;  %v2414_v51 = vadd.f32 1.0, %v22580_v48  ;;  %4182 = vmatpush1.bf16.msra.mxu0 %v20149_v39  ;;  %v20214_v39 = vld [vmem:[#allocation2 + $0x60] ss:$8 sps:$4 sm:$0xff]   ;;  %v20228_v45 = vld [vmem:[#allocation2 + $0x44] ss:$8 sps:$4 sm:$0xff]  }
 0x1fc   : > { %4437 = vmatpush1.bf16.msra.mxu1 %v20152_v41  ;;  %4183 = vmatprep.subr.bf16.mxu0 %v20157_v44  ;;  %v4588_v41 = vor.u32 %v4587_v30, %v4583_v29  ;;  %v20220_v44 = vld [vmem:[#allocation2 + $0x50] ss:$8 sps:$4 sm:$0xff]   ;;  %v20231_v48 = vld [vmem:[#allocation2 + $0x134] ss:$8 sps:$4 sm:$0xff]  }
 0x1fd   : > { %4438 = vmatprep.subr.bf16.mxu1 %v20160_v46  ;;  %22587 = vrcp.f32 %v2414_v51  ;;  %v20225_v46 = vld [vmem:[#allocation2 + $0x144] ss:$8 sps:$4 sm:$0xff]   ;;  %v20234_v51 = vld [vmem:[#allocation2 + $0x34] ss:$8 sps:$4 sm:$0xff]  }
 0x1fe   : > { %v20291_v30 = vld [vmem:[#allocation2 + $0x194] ss:$8 sps:$4 sm:$0xff]  }
 0x1ff   : > { %4184 = vmatpush2.bf16.msra.mxu0 %v20155_v26  ;;  %v20223_v26 = vld [vmem:[#allocation2 + $0x140] ss:$8 sps:$4 sm:$0xff]  }
 0x200   : > { %4439 = vmatpush2.bf16.msra.mxu1 %v20158_v47  ;;  %4185 = vmatprep.subr.bf16.mxu0 %v20163_v52  ;;  %v20226_v47 = vld [vmem:[#allocation2 + $0x40] ss:$8 sps:$4 sm:$0xff]   ;;  %v20229_v52 = vld [vmem:[#allocation2 + $0x130] ss:$8 sps:$4 sm:$0xff]  }
 0x201   : > { %4440 = vmatprep.subr.bf16.mxu1 %v20166_v53  ;;  %v20232_v53 = vld [vmem:[#allocation2 + $0x30] ss:$8 sps:$4 sm:$0xff]  }
 0x203   : > { %4186 = vmatpush2.bf16.msra.mxu0 %v20161_v54  ;;  %v20237_v54 = vld [vmem:[#allocation2 + $0x124] ss:$8 sps:$4 sm:$0xff]  }
 0x204   : > { %4441 = vmatpush2.bf16.msra.mxu1 %v20164_v55  ;;  %v22582_v61 = vpop.eup %22581  ;;  %4187 = vmatprep.subr.bf16.mxu0 %v20169_v56  ;;  %v20240_v55 = vld [vmem:[#allocation2 + $0x24] ss:$8 sps:$4 sm:$0xff]   ;;  %v20235_v56 = vld [vmem:[#allocation2 + $0x120] ss:$8 sps:$4 sm:$0xff]  }
 0x205   : > { %4442 = vmatprep.subr.bf16.mxu1 %v20172_v57  ;;  %2423 = vst [vmem:[%s23031_s15 + $0x10] sm:$0xff] %v22582_v61  ;;  %v20238_v57 = vld [vmem:[#allocation2 + $0x20] ss:$8 sps:$4 sm:$0xff]   ;;  %v20241_v61 = vld [vmem:[#allocation2 + $0x110] ss:$8 sps:$4 sm:$0xff]  }
 0x206   : > { %v22584_v1 = vpop.eup %22583 }
 0x207   : > { %2424 = vst [vmem:[%s23031_s15 + $0x18] sm:$0xff] %v22584_v1  ;;  %4188 = vmatpush2.bf16.msra.mxu0 %v20167_v59  ;;  %v20243_v59 = vld [vmem:[#allocation2 + $0x114] ss:$8 sps:$4 sm:$0xff]   ;;  %v20250_v1 = vld [vmem:[#allocation2] ss:$8 sps:$4 sm:$0xff]  }
 0x208   : > { %4443 = vmatpush2.bf16.msra.mxu1 %v20170_v60  ;;  %v22586_v2 = vpop.eup %22585  ;;  %4189 = vmatprep.subr.bf16.mxu0 %v20175_v36  ;;  %v20246_v60 = vld [vmem:[#allocation2 + $0x14] ss:$8 sps:$4 sm:$0xff]   ;;  %v20244_v36 = vld [vmem:[#allocation2 + $0x10] ss:$8 sps:$4 sm:$0xff]  }
 0x209   : > { %4444 = vmatprep.subr.bf16.mxu1 %v20178_v40  ;;  %2425 = vst [vmem:[%s23031_s15 + $0x30] sm:$0x1] %v22586_v2  ;;  %v20249_v40 = vld [vmem:[#allocation2 + $0x104] ss:$8 sps:$4 sm:$0xff]   ;;  %v20255_v2 = vld [vmem:[#allocation2 + $0x1f4] ss:$8 sps:$4 sm:$0xff]  }
 0x20a   : > { %v22588_v5 = vpop.eup %22587 }
 0x20b   : > { %2426 = vst [vmem:[%s23031_s15 + $0x38] sm:$0x1] %v22588_v5  ;;  %4190 = vmatpush2.bf16.msra.mxu0 %v20173_v63  ;;  %v20252_v63 = vld [vmem:[#allocation2 + $0x4] ss:$8 sps:$4 sm:$0xff]  }
 0x20c   : > { %4445 = vmatpush2.bf16.msra.mxu1 %v20176_v0  ;;  %4191 = vmatprep.subr.bf16.mxu0 %v20181_v49  ;;  %v20247_v0 = vld [vmem:[#allocation2 + $0x100] ss:$8 sps:$4 sm:$0xff]   ;;  %v20258_v49 = vld [vmem:[#allocation2 + $0xf4] ss:$8 sps:$4 sm:$0xff]   ;;  %v20264_v5 = vld [vmem:[#allocation2 + $0xe4] ss:$8 sps:$4 sm:$0xff]  }
 0x20d   : > { %4446 = vmatprep.subr.bf16.mxu1 %v20184_v50  ;;  %v20253_v50 = vld [vmem:[#allocation2 + $0x1f0] ss:$8 sps:$4 sm:$0xff]  }
 0x20f   : > { %4192 = vmatpush2.bf16.msra.mxu0 %v20179_v3  ;;  %v20256_v3 = vld [vmem:[#allocation2 + $0xf0] ss:$8 sps:$4 sm:$0xff]  }
 0x210   : > { %4447 = vmatpush2.bf16.msra.mxu1 %v20182_v4  ;;  %4193 = vmatprep.subr.bf16.mxu0 %v20187_v7  ;;  %v20261_v4 = vld [vmem:[#allocation2 + $0x1e4] ss:$8 sps:$4 sm:$0xff]   ;;  %v20259_v7 = vld [vmem:[#allocation2 + $0x1e0] ss:$8 sps:$4 sm:$0xff]  }
 0x211   : > { %4448 = vmatprep.subr.bf16.mxu1 %v20190_v8  ;;  %v20262_v8 = vld [vmem:[#allocation2 + $0xe0] ss:$8 sps:$4 sm:$0xff]  }
 0x213   : > { %4194 = vmatpush2.bf16.msra.mxu0 %v20185_v12  ;;  %v20270_v12 = vld [vmem:[#allocation2 + $0xd4] ss:$8 sps:$4 sm:$0xff]  }
 0x214   : > { %4449 = vmatpush2.bf16.msra.mxu1 %v20188_v13  ;;  %4195 = vmatprep.subr.bf16.mxu0 %v20193_v15  ;;  %v20265_v13 = vld [vmem:[#allocation2 + $0x1d0] ss:$8 sps:$4 sm:$0xff]  }
 0x215   : > { %4450 = vmatprep.subr.bf16.mxu1 %v20196_v16  ;;  %v20268_v15 = vld [vmem:[#allocation2 + $0xd0] ss:$8 sps:$4 sm:$0xff]   ;;  %v20273_v16 = vld [vmem:[#allocation2 + $0x1c4] ss:$8 sps:$4 sm:$0xff]  }
 0x217   : > { %4196 = vmatpush2.bf16.msra.mxu0 %v20191_v62  ;;  %v20274_v62 = vld [vmem:[#allocation2 + $0xc0] ss:$8 sps:$4 sm:$0xff]  }
 0x218   : > { %4451 = vmatpush2.bf16.msra.mxu1 %v20194_v18  ;;  %4197 = vmatprep.subr.bf16.mxu0 %v20199_v19  ;;  %v20279_v18 = vld [vmem:[#allocation2 + $0x1b4] ss:$8 sps:$4 sm:$0xff]  }
 0x219   : > { %4452 = vmatprep.subr.bf16.mxu1 %v20202_v6  ;;  %v20282_v19 = vld [vmem:[#allocation2 + $0xb4] ss:$8 sps:$4 sm:$0xff]   ;;  %v20277_v6 = vld [vmem:[#allocation2 + $0x1b0] ss:$8 sps:$4 sm:$0xff]  }
 0x21b   : > { %4198 = vmatpush2.bf16.msra.mxu0 %v20197_v22  ;;  %v23076_v22 = vld [vmem:[%s22958_s8 + $0x30] sm:$0xff] }
 0x21c   : > { %4453 = vmatpush2.bf16.msra.mxu1 %v20200_v23  ;;  %4751 = vmatprep.subr.bf16.mxu0 %v20207_v24  ;;  %v23079_v23 = vld [vmem:[%s22958_s8 + $0x38] sm:$0x11]  ;;  %v17657_v24 = vcombine.low %v23066_v9, %v23069_v10  ;;  %v20297_v10 = vld [vmem:[#allocation2 + $0x184] ss:$8 sps:$4 sm:$0xff]  }
 0x21d   : > { %4956 = vmatprep.subr.bf16.mxu1 %v20210_v25  ;;  %v20283_v25 = vld [vmem:[#allocation2 + $0x1a0] ss:$8 sps:$4 sm:$0xff]  }
 0x21e   : > { %4200 = vmatmul.mubr.bf16.vlgmr.msra.gmra.mxu0 %v17581_v11  ;;  %v20267_v11 = vld [vmem:[#allocation2 + $0x1d4] ss:$8 sps:$4 sm:$0xff]  }
 0x21f   : > { %4455 = vmatmul.mubr.bf16.vlgmr.msra.gmra.mxu1 %v4252_v32  ;;  %4752 = vmatpush1.bf16.msra.mxu0 %v20205_v27  ;;  %v20286_v27 = vld [vmem:[#allocation2 + $0xa0] ss:$8 sps:$4 sm:$0xff]   ;;  %v2916_v29 = vpop.f32.mrf.mxu1  ;;  %v20294_v32 = vld [vmem:[#allocation2 + $0x94] ss:$8 sps:$4 sm:$0xff]  }
 0x220   : > { %4957 = vmatpush1.bf16.msra.mxu1 %v20208_v28  ;;  %4753 = vmatprep.subr.bf16.mxu0 %v20213_v34  ;;  %v2711_v28 = vpop.f32.mrf.mxu0  ;;  %v17726_v34 = vcombine.high %v23076_v22, %v23079_v23 }
 0x221   : > { %4958 = vmatprep.subr.bf16.mxu1 %v20216_v31  ;;  %4783 = vmatprep.mubr.bf16.mxu0 %v4588_v41  ;;  %v4578_v31 = vshll.u32 %v17657_v24, 16  ;;  %v2918_v9 = vpop.f32.mrf.mxu1 }
 0x222   : > { %4988 = vmatprep.mubr.bf16.mxu1 %v17658_v17  ;;  %v20276_v17 = vld [vmem:[#allocation2 + $0xc4] ss:$8 sps:$4 sm:$0xff]   ;;  %v2713_v41 = vpop.f32.mrf.mxu0 }
 0x223   : > { %4754 = vmatpush1.bf16.msra.mxu0 %v20211_v37  ;;  %v20289_v37 = vld [vmem:[#allocation2 + $0x190] ss:$8 sps:$4 sm:$0xff]  }
 0x224   : > { %4959 = vmatpush1.bf16.msra.mxu1 %v20214_v39  ;;  %4755 = vmatprep.subr.bf16.mxu0 %v20219_v38  ;;  %v20292_v39 = vld [vmem:[#allocation2 + $0x90] ss:$8 sps:$4 sm:$0xff]   ;;  %v20300_v38 = vld [vmem:[#allocation2 + $0x84] ss:$8 sps:$4 sm:$0xff]  }
 0x225   : > { %4960 = vmatprep.subr.bf16.mxu1 %v20222_v42  ;;  %v5293_v42 = vshll.u32 %v17726_v34, 16 }
 0x227   : > { %4756 = vmatpush1.bf16.msra.mxu0 %v20217_v43  ;;  %v4576_v43 = vshrl.u32 %v17657_v24, 16 }
 0x228   : > { %4961 = vmatpush1.bf16.msra.mxu1 %v20220_v44  ;;  %4757 = vmatprep.subr.bf16.mxu0 %v20225_v46  ;;  %v4580_v44 = vrot.slane %v4578_v31, 1  ;;  %v20295_v46 = vld [vmem:[#allocation2 + $0x180] ss:$8 sps:$4 sm:$0xff]  }
 0x229   : > { %4962 = vmatprep.subr.bf16.mxu1 %v20228_v45  ;;  %v20298_v45 = vld [vmem:[#allocation2 + $0x80] ss:$8 sps:$4 sm:$0xff]  }
 0x22b   : > { %4758 = vmatpush1.bf16.msra.mxu0 %v20223_v26  ;;  %v2715_v26 = vpop.f32.mrf.mxu0 }
 0x22c   : > { %4963 = vmatpush1.bf16.msra.mxu1 %v20226_v47  ;;  %4759 = vmatprep.subr.bf16.mxu0 %v20231_v48  ;;  %v2920_v47 = vpop.f32.mrf.mxu1  ;;  %v20305_v48 = vld [vmem:[#allocation2 + $0x274] ss:$8 sps:$4 sm:$0xff]  }
 0x22d   : > { %4964 = vmatprep.subr.bf16.mxu1 %v20234_v51  ;;  %v20308_v51 = vld [vmem:[#allocation2 + $0x374] ss:$8 sps:$4 sm:$0xff]  }
 0x22f   : > { %4760 = vmatpush1.bf16.msra.mxu0 %v20229_v52  ;;  %v20303_v52 = vld [vmem:[#allocation2 + $0x270] ss:$8 sps:$4 sm:$0xff]  }
 0x230   : > { %4965 = vmatpush1.bf16.msra.mxu1 %v20232_v53  ;;  %4761 = vmatprep.subr.bf16.mxu0 %v20237_v54  ;;  %v20306_v53 = vld [vmem:[#allocation2 + $0x370] ss:$8 sps:$4 sm:$0xff]   ;;  %v5291_v54 = vshrl.u32 %v17726_v34, 16 }
 0x231   : > { %4966 = vmatprep.subr.bf16.mxu1 %v20240_v55  ;;  %v5295_v55 = vrot.slane %v5293_v42, 1 }
 0x233   : > { %4762 = vmatpush1.bf16.msra.mxu0 %v20235_v56  ;;  %v4581_v56 = vor.u32 %v4580_v44, %v4576_v43  ;;  %v20335_v43 = vld [vmem:[#allocation2 + $0x224] ss:$8 sps:$4 sm:$0xff]  }
 0x234   : > { %4967 = vmatpush1.bf16.msra.mxu1 %v20238_v57  ;;  %4763 = vmatprep.subr.bf16.mxu0 %v20243_v59  ;;  %v2717_v57 = vpop.f32.mrf.mxu0  ;;  %v2922_v59 = vpop.f32.mrf.mxu1  ;;  %v20338_v44 = vld [vmem:[#allocation2 + $0x324] ss:$8 sps:$4 sm:$0xff]  }
 0x235   : > { %4968 = vmatprep.subr.bf16.mxu1 %v20246_v60  ;;  %v20311_v60 = vld [vmem:[#allocation2 + $0x264] ss:$8 sps:$4 sm:$0xff]  }
 0x237   : > { %4764 = vmatpush1.bf16.msra.mxu0 %v20241_v61  ;;  %v20314_v61 = vld [vmem:[#allocation2 + $0x364] ss:$8 sps:$4 sm:$0xff]  }
 0x238   : > { %4969 = vmatpush1.bf16.msra.mxu1 %v20244_v36  ;;  %4765 = vmatprep.subr.bf16.mxu0 %v20249_v40  ;;  %v2917_v36 = vadd.f32 %v2916_v29, %v2711_v28  ;;  %v20309_v40 = vld [vmem:[#allocation2 + $0x260] ss:$8 sps:$4 sm:$0xff]  }
 0x239   : > { %4970 = vmatprep.subr.bf16.mxu1 %v20252_v63  ;;  %v20312_v63 = vld [vmem:[#allocation2 + $0x360] ss:$8 sps:$4 sm:$0xff]  }
 0x23a   : > { %v20321_v28 = vld [vmem:[#allocation2 + $0x240] ss:$8 sps:$4 sm:$0xff]  }
 0x23b   : > { %4766 = vmatpush1.bf16.msra.mxu0 %v20247_v0  ;;  %v5296_v0 = vor.u32 %v5295_v55, %v5291_v54  ;;  %v20324_v29 = vld [vmem:[#allocation2 + $0x340] ss:$8 sps:$4 sm:$0xff]   ;;  %v20350_v54 = vld [vmem:[#allocation2 + $0x304] ss:$8 sps:$4 sm:$0xff]  }
 0x23c   : > { %4971 = vmatpush1.bf16.msra.mxu1 %v20250_v1  ;;  %4767 = vmatprep.subr.bf16.mxu0 %v20255_v2 }
 0x23d   : > { %4972 = vmatprep.subr.bf16.mxu1 %v20258_v49  ;;  %v2919_v49 = vadd.f32 %v2918_v9, %v2713_v41 }
 0x23f   : > { %4768 = vmatpush2.bf16.msra.mxu0 %v20253_v50 }
 0x240   : > { %4973 = vmatpush2.bf16.msra.mxu1 %v20256_v3  ;;  %4769 = vmatprep.subr.bf16.mxu0 %v20261_v4 }
 0x241   : > { %4974 = vmatprep.subr.bf16.mxu1 %v20264_v5  ;;  %v20317_v5 = vld [vmem:[#allocation2 + $0x254] ss:$8 sps:$4 sm:$0xff]  }
 0x243   : > { %4770 = vmatpush2.bf16.msra.mxu0 %v20259_v7  ;;  %v20320_v7 = vld [vmem:[#allocation2 + $0x354] ss:$8 sps:$4 sm:$0xff]  }
 0x244   : > { %4975 = vmatpush2.bf16.msra.mxu1 %v20262_v8  ;;  %4771 = vmatprep.subr.bf16.mxu0 %v20267_v11  ;;  %v2921_v8 = vadd.f32 %v2920_v47, %v2715_v26  ;;  %v20341_v26 = vld [vmem:[#allocation2 + $0x214] ss:$8 sps:$4 sm:$0xff]  }
 0x245   : > { %4976 = vmatprep.subr.bf16.mxu1 %v20270_v12  ;;  %v20344_v47 = vld [vmem:[#allocation2 + $0x314] ss:$8 sps:$4 sm:$0xff]  }
 0x247   : > { %4772 = vmatpush2.bf16.msra.mxu0 %v20265_v13  ;;  %v20315_v13 = vld [vmem:[#allocation2 + $0x250] ss:$8 sps:$4 sm:$0xff]  }
 0x248   : > { %4977 = vmatpush2.bf16.msra.mxu1 %v20268_v15  ;;  %4773 = vmatprep.subr.bf16.mxu0 %v20273_v16  ;;  %v20318_v15 = vld [vmem:[#allocation2 + $0x350] ss:$8 sps:$4 sm:$0xff]   ;;  %v2923_v16 = vadd.f32 %v2922_v59, %v2717_v57  ;;  %v20348_v57 = vld [vmem:[#allocation2 + $0x300] ss:$8 sps:$4 sm:$0xff]  }
 0x249   : > { %4978 = vmatprep.subr.bf16.mxu1 %v20276_v17 }
 0x24b   : > { %4774 = vmatpush2.bf16.msra.mxu0 %v20271_v58 }
 0x24c   : > { %4979 = vmatpush2.bf16.msra.mxu1 %v20274_v62  ;;  %4775 = vmatprep.subr.bf16.mxu0 %v20279_v18 }
 0x24d   : > { %4980 = vmatprep.subr.bf16.mxu1 %v20282_v19 }
 0x24f   : > { %4776 = vmatpush2.bf16.msra.mxu0 %v20277_v6 }
 0x250   : > { %4981 = vmatpush2.bf16.msra.mxu1 %v20280_v14  ;;  %4777 = vmatprep.subr.bf16.mxu0 %v20285_v20  ;;  %v20323_v14 = vld [vmem:[#allocation2 + $0x244] ss:$8 sps:$4 sm:$0xff]  }
 0x251   : > { %4982 = vmatprep.subr.bf16.mxu1 %v20288_v21  ;;  %v20326_v20 = vld [vmem:[#allocation2 + $0x344] ss:$8 sps:$4 sm:$0xff]  }
 0x253   : > { %4778 = vmatpush2.bf16.msra.mxu0 %v20283_v25 }
 0x254   : > { %4983 = vmatpush2.bf16.msra.mxu1 %v20286_v27  ;;  %4779 = vmatprep.subr.bf16.mxu0 %v20291_v30 }
 0x255   : > { %4984 = vmatprep.subr.bf16.mxu1 %v20294_v32 }
 0x257   : > { %4780 = vmatpush2.bf16.msra.mxu0 %v20289_v37  ;;  %v20329_v37 = vld [vmem:[#allocation2 + $0x234] ss:$8 sps:$4 sm:$0xff]  }
 0x258   : > { %4985 = vmatpush2.bf16.msra.mxu1 %v20292_v39  ;;  %4781 = vmatprep.subr.bf16.mxu0 %v20297_v10  ;;  %v20332_v39 = vld [vmem:[#allocation2 + $0x334] ss:$8 sps:$4 sm:$0xff]   ;;  %v20327_v10 = vld [vmem:[#allocation2 + $0x230] ss:$8 sps:$4 sm:$0xff]  }
 0x259   : > { %4986 = vmatprep.subr.bf16.mxu1 %v20300_v38  ;;  %v20330_v38 = vld [vmem:[#allocation2 + $0x330] ss:$8 sps:$4 sm:$0xff]  }
 0x25b   : > { %4782 = vmatpush2.bf16.msra.mxu0 %v20295_v46  ;;  %v20333_v46 = vld [vmem:[#allocation2 + $0x220] ss:$8 sps:$4 sm:$0xff]  }
 0x25c   : > { %4987 = vmatpush2.bf16.msra.mxu1 %v20298_v45  ;;  %5204 = vmatprep.subr.bf16.mxu0 %v20305_v48  ;;  %v20336_v45 = vld [vmem:[#allocation2 + $0x320] ss:$8 sps:$4 sm:$0xff]   ;;  %v20339_v48 = vld [vmem:[#allocation2 + $0x210] ss:$8 sps:$4 sm:$0xff]  }
 0x25d   : > { %5459 = vmatprep.subr.bf16.mxu1 %v20308_v51  ;;  %v20342_v51 = vld [vmem:[#allocation2 + $0x310] ss:$8 sps:$4 sm:$0xff]  }
 0x25e   : > { %v3164_v1 = vpop.f32.mrf.mxu0  ;;  %4784 = vmatmul.mubr.bf16.vlgmr.msra.gmra.mxu0 %v4581_v56  ;;  %v20345_v56 = vld [vmem:[#allocation2 + $0x200] ss:$8 sps:$4 sm:$0xff]  }
 0x25f   : > { %v3419_v2 = vpop.f32.mrf.mxu1  ;;  %4989 = vmatmul.mubr.bf16.vlgmr.msra.gmra.mxu1 %v17657_v24  ;;  %v3173_v50 = vadd.f32 %v3164_v1, %v2917_v36  ;;  %5205 = vmatpush1.bf16.msra.mxu0 %v20303_v52  ;;  %v20353_v36 = vld [vmem:[#allocation2 + $0x2f4] ss:$8 sps:$4 sm:$0xff]   ;;  %v20354_v1 = vld [vmem:[#allocation2 + $0x3f0] ss:$8 sps:$4 sm:$0xff]  }
 0x260   : > { %5460 = vmatpush1.bf16.msra.mxu1 %v20306_v53  ;;  %v3166_v3 = vpop.f32.mrf.mxu0  ;;  %5206 = vmatprep.subr.bf16.mxu0 %v20311_v60  ;;  %v20347_v53 = vld [vmem:[#allocation2 + $0x204] ss:$8 sps:$4 sm:$0xff]  }
 0x261   : > { %v3421_v4 = vpop.f32.mrf.mxu1  ;;  %5461 = vmatprep.subr.bf16.mxu1 %v20314_v61  ;;  %v3428_v11 = vadd.f32 %v3419_v2, %v3173_v50  ;;  %v3174_v12 = vadd.f32 %v3166_v3, %v2919_v49  ;;  %5236 = vmatprep.mubr.bf16.mxu0 %v17726_v34  ;;  %v20359_v50 = vld [vmem:[#allocation2 + $0x2e4] ss:$8 sps:$4 sm:$0xff]  }
 0x262   : > { %5491 = vmatprep.mubr.bf16.mxu1 %v5296_v0  ;;  %v3168_v17 = vpop.f32.mrf.mxu0  ;;  %v20351_v0 = vld [vmem:[#allocation2 + $0x2f0] ss:$8 sps:$4 sm:$0xff]   ;;  %v20362_v3 = vld [vmem:[#allocation2 + $0x3e4] ss:$8 sps:$4 sm:$0xff]  }
 0x263   : > { %v3423_v58 = vpop.f32.mrf.mxu1  ;;  %v3432_v62 = vadd.f32 %v3428_v11, %v23015_v33  ;;  %v3429_v18 = vadd.f32 %v3421_v4, %v3174_v12  ;;  %v3175_v19 = vadd.f32 %v3168_v17, %v2921_v8  ;;  %5207 = vmatpush1.bf16.msra.mxu0 %v20309_v40  ;;  %v20356_v40 = vld [vmem:[#allocation2 + $0x3f4] ss:$8 sps:$4 sm:$0xff]   ;;  %v20357_v4 = vld [vmem:[#allocation2 + $0x2e0] ss:$8 sps:$4 sm:$0xff]   ;;  %v20363_v11 = vld [vmem:[#allocation2 + $0x2d0] ss:$8 sps:$4 sm:$0xff]  }
 0x264   : > { %5462 = vmatpush1.bf16.msra.mxu1 %v20312_v63  ;;  %v3170_v6 = vpop.f32.mrf.mxu0  ;;  %5208 = vmatprep.subr.bf16.mxu0 %v20317_v5  ;;  %v20360_v5 = vld [vmem:[#allocation2 + $0x3e0] ss:$8 sps:$4 sm:$0xff]   ;;  %v20368_v8 = vld [vmem:[#allocation2 + $0x3d4] ss:$8 sps:$4 sm:$0xff]   ;;  %v20366_v12 = vld [vmem:[#allocation2 + $0x3d0] ss:$8 sps:$4 sm:$0xff]  }
 0x265   : > { %5463 = vmatprep.subr.bf16.mxu1 %v20320_v7  ;;  %v17503_v21 = vmul.f32 -1.442695, %v3432_v62  ;;  %v3433_v24 = vadd.f32 %v3429_v18, %v23017_v35  ;;  %v3430_v25 = vadd.f32 %v3423_v58, %v3175_v19  ;;  %v3176_v27 = vadd.f32 %v3170_v6, %v2923_v16  ;;  %v3425_v30 = vpop.f32.mrf.mxu1  ;;  %v20365_v7 = vld [vmem:[#allocation2 + $0x2d4] ss:$8 sps:$4 sm:$0xff]   ;;  %v20374_v16 = vld [vmem:[#allocation2 + $0x3c4] ss:$8 sps:$4 sm:$0xff]  }
 0x266   : > { %v20369_v17 = vld [vmem:[#allocation2 + $0x2c0] ss:$8 sps:$4 sm:$0xff]   ;;  %v20377_v19 = vld [vmem:[#allocation2 + $0x2b4] ss:$8 sps:$4 sm:$0xff]  }
 0x267   : > { %22589 = vpow2.f32 %v17503_v21  ;;  %v17504_v32 = vmul.f32 -1.442695, %v3433_v24  ;;  %v3434_v34 = vadd.f32 %v3430_v25, %v23015_v33  ;;  %v3431_v31 = vadd.f32 %v3425_v30, %v3176_v27  ;;  %5209 = vmatpush1.bf16.msra.mxu0 %v20315_v13  ;;  %v20372_v58 = vld [vmem:[#allocation2 + $0x3c0] ss:$8 sps:$4 sm:$0xff]   ;;  %v20380_v6 = vld [vmem:[#allocation2 + $0x3b4] ss:$8 sps:$4 sm:$0xff]  }
 0x268   : > { %5464 = vmatpush1.bf16.msra.mxu1 %v20318_v15  ;;  %5210 = vmatprep.subr.bf16.mxu0 %v20323_v14  ;;  %v20371_v15 = vld [vmem:[#allocation2 + $0x2c4] ss:$8 sps:$4 sm:$0xff]   ;;  %v20375_v14 = vld [vmem:[#allocation2 + $0x2b0] ss:$8 sps:$4 sm:$0xff]   ;;  %v20384_v30 = vld [vmem:[#allocation2 + $0x3a0] ss:$8 sps:$4 sm:$0xff]  }
 0x269   : > { %5465 = vmatprep.subr.bf16.mxu1 %v20326_v20  ;;  %22591 = vpow2.f32 %v17504_v32  ;;  %v17505_v41 = vmul.f32 -1.442695, %v3434_v34  ;;  %v3435_v9 = vadd.f32 %v3431_v31, %v23017_v35  ;;  %v20378_v21 = vld [vmem:[#allocation2 + $0x3b0] ss:$8 sps:$4 sm:$0xff]   ;;  %v20383_v24 = vld [vmem:[#allocation2 + $0x2a4] ss:$8 sps:$4 sm:$0xff]  }
 0x26a   : > { %v20386_v25 = vld [vmem:[#allocation2 + $0x3a4] ss:$8 sps:$4 sm:$0xff]   ;;  %v20389_v32 = vld [vmem:[#allocation2 + $0x294] ss:$8 sps:$4 sm:$0xff]  }
 0x26b   : > { %22593 = vpow2.f32 %v17505_v41  ;;  %v17506_v42 = vmul.f32 -1.442695, %v3435_v9  ;;  %5211 = vmatpush1.bf16.msra.mxu0 %v20321_v28  ;;  %v23094_v27 = vld [vmem:[%s22958_s8 + $0x28] sm:$0x11]  ;;  %v17725_v28 = vcombine.low %v23076_v22, %v23079_v23  ;;  %v20392_v34 = vld [vmem:[#allocation2 + $0x394] ss:$8 sps:$4 sm:$0xff]  }
 0x26c   : > { %5466 = vmatpush1.bf16.msra.mxu1 %v20324_v29  ;;  %5212 = vmatprep.subr.bf16.mxu0 %v20329_v37  ;;  %v20381_v29 = vld [vmem:[#allocation2 + $0x2a0] ss:$8 sps:$4 sm:$0xff]   ;;  %v20387_v41 = vld [vmem:[#allocation2 + $0x290] ss:$8 sps:$4 sm:$0xff]   ;;  %v20395_v22 = vld [vmem:[#allocation2 + $0x284] ss:$8 sps:$4 sm:$0xff]  }
 0x26d   : > { %5467 = vmatprep.subr.bf16.mxu1 %v20332_v39  ;;  %22595 = vpow2.f32 %v17506_v42  ;;  %v23099_v31 = vld [vmem:[%s22958_s8 + $0x20] sm:$0xff]  ;;  %v5286_v39 = vshll.u32 %v17725_v28, 16  ;;  %v20390_v9 = vld [vmem:[#allocation2 + $0x390] ss:$8 sps:$4 sm:$0xff]  }
 0x26e   : > { %v17802_v37 = vcombine.high %v23099_v31, %v23094_v27  ;;  %v20398_v23 = vld [vmem:[#allocation2 + $0x384] ss:$8 sps:$4 sm:$0xff]  }
 0x26f   : > { %5213 = vmatpush1.bf16.msra.mxu0 %v20327_v10  ;;  %v5288_v42 = vrot.slane %v5286_v39, 1  ;;  %v20467_v39 = vld [vmem:[#allocation2 + $0x5c0] ss:$8 sps:$4 sm:$0xff]  }
 0x270   : > { %5468 = vmatpush1.bf16.msra.mxu1 %v20330_v38  ;;  %5214 = vmatprep.subr.bf16.mxu0 %v20335_v43  ;;  %v5623_v10 = vshll.u32 %v17802_v37, 16  ;;  %v5284_v38 = vshrl.u32 %v17725_v28, 16  ;;  %v20393_v43 = vld [vmem:[#allocation2 + $0x280] ss:$8 sps:$4 sm:$0xff]  }
 0x271   : > { %5469 = vmatprep.subr.bf16.mxu1 %v20338_v44  ;;  %v20396_v44 = vld [vmem:[#allocation2 + $0x380] ss:$8 sps:$4 sm:$0xff]  }
 0x273   : > { %5215 = vmatpush1.bf16.msra.mxu0 %v20333_v46  ;;  %v20403_v46 = vld [vmem:[#allocation2 + $0x574] ss:$8 sps:$4 sm:$0xff]  }
 0x274   : > { %5470 = vmatpush1.bf16.msra.mxu1 %v20336_v45  ;;  %v22590_v52 = vpop.eup %22589  ;;  %5216 = vmatprep.subr.bf16.mxu0 %v20341_v26  ;;  %v20406_v45 = vld [vmem:[#allocation2 + $0x474] ss:$8 sps:$4 sm:$0xff]   ;;  %v20401_v26 = vld [vmem:[#allocation2 + $0x570] ss:$8 sps:$4 sm:$0xff]  }
 0x275   : > { %5471 = vmatprep.subr.bf16.mxu1 %v20344_v47  ;;  %v3448_v55 = vadd.f32 1.0, %v22590_v52  ;;  %v20404_v47 = vld [vmem:[#allocation2 + $0x470] ss:$8 sps:$4 sm:$0xff]   ;;  %v5289_v52 = vor.u32 %v5288_v42, %v5284_v38  ;;  %v20481_v38 = vld [vmem:[#allocation2 + $0x5a4] ss:$8 sps:$4 sm:$0xff]  }
 0x276   : > { %v22592_v59 = vpop.eup %22591  ;;  %v20484_v42 = vld [vmem:[#allocation2 + $0x4a4] ss:$8 sps:$4 sm:$0xff]  }
 0x277   : > { %22597 = vrcp.f32 %v3448_v55  ;;  %v3449_v60 = vadd.f32 1.0, %v22592_v59  ;;  %5217 = vmatpush1.bf16.msra.mxu0 %v20339_v48  ;;  %v5621_v48 = vshrl.u32 %v17802_v37, 16  ;;  %v20407_v55 = vld [vmem:[#allocation2 + $0x560] ss:$8 sps:$4 sm:$0xff]   ;;  %v20415_v59 = vld [vmem:[#allocation2 + $0x554] ss:$8 sps:$4 sm:$0xff]  }
 0x278   : > { %5472 = vmatpush1.bf16.msra.mxu1 %v20342_v51  ;;  %v22594_v61 = vpop.eup %22593  ;;  %5218 = vmatprep.subr.bf16.mxu0 %v20347_v53  ;;  %v5625_v51 = vrot.slane %v5623_v10, 1  ;;  %v20409_v53 = vld [vmem:[#allocation2 + $0x564] ss:$8 sps:$4 sm:$0xff]   ;;  %v20476_v10 = vld [vmem:[#allocation2 + $0x4b0] ss:$8 sps:$4 sm:$0xff]  }
 0x279   : > { %5473 = vmatprep.subr.bf16.mxu1 %v20350_v54  ;;  %22599 = vrcp.f32 %v3449_v60  ;;  %v3450_v63 = vadd.f32 1.0, %v22594_v61  ;;  %v20412_v54 = vld [vmem:[#allocation2 + $0x464] ss:$8 sps:$4 sm:$0xff]   ;;  %v20418_v60 = vld [vmem:[#allocation2 + $0x454] ss:$8 sps:$4 sm:$0xff]  }
 0x27a   : > { %v22596_v2 = vpop.eup %22595  ;;  %v20413_v61 = vld [vmem:[#allocation2 + $0x550] ss:$8 sps:$4 sm:$0xff]  }
 0x27b   : > { %22601 = vrcp.f32 %v3450_v63  ;;  %v3451_v49 = vadd.f32 1.0, %v22596_v2  ;;  %5219 = vmatpush1.bf16.msra.mxu0 %v20345_v56  ;;  %v20410_v56 = vld [vmem:[#allocation2 + $0x460] ss:$8 sps:$4 sm:$0xff]   ;;  %v20424_v63 = vld [vmem:[#allocation2 + $0x444] ss:$8 sps:$4 sm:$0xff]  }
 0x27c   : > { %5474 = vmatpush1.bf16.msra.mxu1 %v20348_v57  ;;  %5220 = vmatprep.subr.bf16.mxu0 %v20353_v36  ;;  %v5626_v57 = vor.u32 %v5625_v51, %v5621_v48  ;;  %v20416_v36 = vld [vmem:[#allocation2 + $0x450] ss:$8 sps:$4 sm:$0xff]   ;;  %v20427_v2 = vld [vmem:[#allocation2 + $0x534] ss:$8 sps:$4 sm:$0xff]  }
 0x27d   : > { %5475 = vmatprep.subr.bf16.mxu1 %v20356_v40  ;;  %22603 = vrcp.f32 %v3451_v49  ;;  %v20421_v40 = vld [vmem:[#allocation2 + $0x544] ss:$8 sps:$4 sm:$0xff]   ;;  %v20430_v49 = vld [vmem:[#allocation2 + $0x434] ss:$8 sps:$4 sm:$0xff]  }
 0x27e   : > { %v20487_v48 = vld [vmem:[#allocation2 + $0x594] ss:$8 sps:$4 sm:$0xff]  }
 0x27f   : > { %5221 = vmatpush2.bf16.msra.mxu0 %v20351_v0  ;;  %v20419_v0 = vld [vmem:[#allocation2 + $0x540] ss:$8 sps:$4 sm:$0xff]   ;;  %v20490_v51 = vld [vmem:[#allocation2 + $0x494] ss:$8 sps:$4 sm:$0xff]  }
 0x280   : > { %5476 = vmatpush2.bf16.msra.mxu1 %v20354_v1  ;;  %5222 = vmatprep.subr.bf16.mxu0 %v20359_v50  ;;  %v20422_v1 = vld [vmem:[#allocation2 + $0x440] ss:$8 sps:$4 sm:$0xff]   ;;  %v20425_v50 = vld [vmem:[#allocation2 + $0x530] ss:$8 sps:$4 sm:$0xff]  }
 0x281   : > { %5477 = vmatprep.subr.bf16.mxu1 %v20362_v3  ;;  %v20428_v3 = vld [vmem:[#allocation2 + $0x430] ss:$8 sps:$4 sm:$0xff]  }
 0x283   : > { %5223 = vmatpush2.bf16.msra.mxu0 %v20357_v4  ;;  %v20433_v4 = vld [vmem:[#allocation2 + $0x524] ss:$8 sps:$4 sm:$0xff]  }
 0x284   : > { %5478 = vmatpush2.bf16.msra.mxu1 %v20360_v5  ;;  %v22598_v13 = vpop.eup %22597  ;;  %5224 = vmatprep.subr.bf16.mxu0 %v20365_v7  ;;  %v20436_v5 = vld [vmem:[#allocation2 + $0x424] ss:$8 sps:$4 sm:$0xff]   ;;  %v20431_v7 = vld [vmem:[#allocation2 + $0x520] ss:$8 sps:$4 sm:$0xff]  }
 0x285   : > { %5479 = vmatprep.subr.bf16.mxu1 %v20368_v8  ;;  %17507 = vst [vmem:[%s23031_s15 + $0x40] sm:$0xff] %v22598_v13  ;;  %v20434_v8 = vld [vmem:[#allocation2 + $0x420] ss:$8 sps:$4 sm:$0xff]   ;;  %v20437_v13 = vld [vmem:[#allocation2 + $0x510] ss:$8 sps:$4 sm:$0xff]  }
 0x286   : > { %v22600_v62 = vpop.eup %22599 }
 0x287   : > { %17508 = vst [vmem:[%s23031_s15 + $0x48] sm:$0xff] %v22600_v62  ;;  %5225 = vmatpush2.bf16.msra.mxu0 %v20363_v11  ;;  %v20439_v11 = vld [vmem:[#allocation2 + $0x514] ss:$8 sps:$4 sm:$0xff]   ;;  %v20446_v62 = vld [vmem:[#allocation2 + $0x400] ss:$8 sps:$4 sm:$0xff]  }
 0x288   : > { %5480 = vmatpush2.bf16.msra.mxu1 %v20366_v12  ;;  %v22602_v18 = vpop.eup %22601  ;;  %5226 = vmatprep.subr.bf16.mxu0 %v20371_v15  ;;  %v20442_v12 = vld [vmem:[#allocation2 + $0x414] ss:$8 sps:$4 sm:$0xff]   ;;  %v20440_v15 = vld [vmem:[#allocation2 + $0x410] ss:$8 sps:$4 sm:$0xff]  }
 0x289   : > { %5481 = vmatprep.subr.bf16.mxu1 %v20374_v16  ;;  %17509 = vst [vmem:[%s23031_s15 + $0x60] sm:$0x1] %v22602_v18  ;;  %v20445_v16 = vld [vmem:[#allocation2 + $0x504] ss:$8 sps:$4 sm:$0xff]   ;;  %v20451_v18 = vld [vmem:[#allocation2 + $0x5f4] ss:$8 sps:$4 sm:$0xff]  }
 0x28a   : > { %v22604_v20 = vpop.eup %22603 }
 0x28b   : > { %17510 = vst [vmem:[%s23031_s15 + $0x68] sm:$0x1] %v22604_v20  ;;  %5227 = vmatpush2.bf16.msra.mxu0 %v20369_v17  ;;  %v20448_v17 = vld [vmem:[#allocation2 + $0x404] ss:$8 sps:$4 sm:$0xff]  }
 0x28c   : > { %5482 = vmatpush2.bf16.msra.mxu1 %v20372_v58  ;;  %5228 = vmatprep.subr.bf16.mxu0 %v20377_v19  ;;  %v20443_v58 = vld [vmem:[#allocation2 + $0x500] ss:$8 sps:$4 sm:$0xff]   ;;  %v20454_v19 = vld [vmem:[#allocation2 + $0x4f4] ss:$8 sps:$4 sm:$0xff]   ;;  %v20457_v20 = vld [vmem:[#allocation2 + $0x5e4] ss:$8 sps:$4 sm:$0xff]  }
 0x28d   : > { %5483 = vmatprep.subr.bf16.mxu1 %v20380_v6  ;;  %v20449_v6 = vld [vmem:[#allocation2 + $0x5f0] ss:$8 sps:$4 sm:$0xff]  }
 0x28f   : > { %5229 = vmatpush2.bf16.msra.mxu0 %v20375_v14  ;;  %v20452_v14 = vld [vmem:[#allocation2 + $0x4f0] ss:$8 sps:$4 sm:$0xff]  }
 0x290   : > { %5484 = vmatpush2.bf16.msra.mxu1 %v20378_v21  ;;  %5230 = vmatprep.subr.bf16.mxu0 %v20383_v24  ;;  %v20460_v21 = vld [vmem:[#allocation2 + $0x4e4] ss:$8 sps:$4 sm:$0xff]   ;;  %v20455_v24 = vld [vmem:[#allocation2 + $0x5e0] ss:$8 sps:$4 sm:$0xff]  }
 0x291   : > { %5485 = vmatprep.subr.bf16.mxu1 %v20386_v25  ;;  %v20458_v25 = vld [vmem:[#allocation2 + $0x4e0] ss:$8 sps:$4 sm:$0xff]  }
 0x293   : > { %5231 = vmatpush2.bf16.msra.mxu0 %v20381_v29  ;;  %v20466_v29 = vld [vmem:[#allocation2 + $0x4d4] ss:$8 sps:$4 sm:$0xff]  }
 0x294   : > { %5486 = vmatpush2.bf16.msra.mxu1 %v20384_v30  ;;  %5232 = vmatprep.subr.bf16.mxu0 %v20389_v32  ;;  %v20461_v30 = vld [vmem:[#allocation2 + $0x5d0] ss:$8 sps:$4 sm:$0xff]  }
 0x295   : > { %5487 = vmatprep.subr.bf16.mxu1 %v20392_v34  ;;  %v20464_v32 = vld [vmem:[#allocation2 + $0x4d0] ss:$8 sps:$4 sm:$0xff]   ;;  %v20469_v34 = vld [vmem:[#allocation2 + $0x5c4] ss:$8 sps:$4 sm:$0xff]  }
 0x297   : > { %5233 = vmatpush2.bf16.msra.mxu0 %v20387_v41  ;;  %v20470_v41 = vld [vmem:[#allocation2 + $0x4c0] ss:$8 sps:$4 sm:$0xff]  }
 0x298   : > { %5488 = vmatpush2.bf16.msra.mxu1 %v20390_v9  ;;  %5234 = vmatprep.subr.bf16.mxu0 %v20395_v22  ;;  %v20475_v9 = vld [vmem:[#allocation2 + $0x5b4] ss:$8 sps:$4 sm:$0xff]  }
 0x299   : > { %5489 = vmatprep.subr.bf16.mxu1 %v20398_v23  ;;  %v20478_v22 = vld [vmem:[#allocation2 + $0x4b4] ss:$8 sps:$4 sm:$0xff]   ;;  %v20473_v23 = vld [vmem:[#allocation2 + $0x5b0] ss:$8 sps:$4 sm:$0xff]  }
 0x29b   : > { %5235 = vmatpush2.bf16.msra.mxu0 %v20393_v43  ;;  %v23104_v43 = vld [vmem:[%s22958_s8 + $0x38] sm:$0x11] }
 0x29c   : > { %5490 = vmatpush2.bf16.msra.mxu1 %v20396_v44  ;;  %5789 = vmatprep.subr.bf16.mxu0 %v20403_v46  ;;  %v17801_v44 = vcombine.low %v23099_v31, %v23094_v27  ;;  %v20479_v46 = vld [vmem:[#allocation2 + $0x5a0] ss:$8 sps:$4 sm:$0xff]   ;;  %v20488_v27 = vld [vmem:[#allocation2 + $0x490] ss:$8 sps:$4 sm:$0xff]  }
 0x29d   : > { %5994 = vmatprep.subr.bf16.mxu1 %v20406_v45  ;;  %v20482_v45 = vld [vmem:[#allocation2 + $0x4a0] ss:$8 sps:$4 sm:$0xff]  }
 0x29e   : > { %5237 = vmatmul.mubr.bf16.vlgmr.msra.gmra.mxu0 %v17725_v28  ;;  %v20463_v28 = vld [vmem:[#allocation2 + $0x5d4] ss:$8 sps:$4 sm:$0xff]  }
 0x29f   : > { %5492 = vmatmul.mubr.bf16.vlgmr.msra.gmra.mxu1 %v5289_v52  ;;  %5790 = vmatpush1.bf16.msra.mxu0 %v20401_v26  ;;  %v3749_v26 = vpop.f32.mrf.mxu0  ;;  %v23109_v52 = vld [vmem:[%s22958_s8 + $0x30] sm:$0xff] }
 0x2a0   : > { %5995 = vmatpush1.bf16.msra.mxu1 %v20404_v47  ;;  %5791 = vmatprep.subr.bf16.mxu0 %v20409_v53  ;;  %v3954_v47 = vpop.f32.mrf.mxu1  ;;  %v17870_v53 = vcombine.high %v23109_v52, %v23104_v43 }
 0x2a1   : > { %5996 = vmatprep.subr.bf16.mxu1 %v20412_v54  ;;  %5821 = vmatprep.mubr.bf16.mxu0 %v5626_v57  ;;  %v5616_v54 = vshll.u32 %v17801_v44, 16  ;;  %v3751_v31 = vpop.f32.mrf.mxu0  ;;  %v20493_v57 = vld [vmem:[#allocation2 + $0x584] ss:$8 sps:$4 sm:$0xff]  }
 0x2a2   : > { %6026 = vmatprep.mubr.bf16.mxu1 %v17802_v37  ;;  %v20472_v37 = vld [vmem:[#allocation2 + $0x4c4] ss:$8 sps:$4 sm:$0xff]  }
 0x2a3   : > { %5792 = vmatpush1.bf16.msra.mxu0 %v20407_v55  ;;  %v20485_v55 = vld [vmem:[#allocation2 + $0x590] ss:$8 sps:$4 sm:$0xff]  }
 0x2a4   : > { %5997 = vmatpush1.bf16.msra.mxu1 %v20410_v56  ;;  %5793 = vmatprep.subr.bf16.mxu0 %v20415_v59  ;;  %v3956_v56 = vpop.f32.mrf.mxu1  ;;  %v20496_v59 = vld [vmem:[#allocation2 + $0x484] ss:$8 sps:$4 sm:$0xff]  }
 0x2a5   : > { %5998 = vmatprep.subr.bf16.mxu1 %v20418_v60  ;;  %v6330_v60 = vshll.u32 %v17870_v53, 16 }
 0x2a7   : > { %5794 = vmatpush1.bf16.msra.mxu0 %v20413_v61  ;;  %v5614_v61 = vshrl.u32 %v17801_v44, 16 }
 0x2a8   : > { %5999 = vmatpush1.bf16.msra.mxu1 %v20416_v36  ;;  %5795 = vmatprep.subr.bf16.mxu0 %v20421_v40  ;;  %v5618_v36 = vrot.slane %v5616_v54, 1  ;;  %v20491_v40 = vld [vmem:[#allocation2 + $0x580] ss:$8 sps:$4 sm:$0xff]  }
 0x2a9   : > { %6000 = vmatprep.subr.bf16.mxu1 %v20424_v63  ;;  %v20494_v63 = vld [vmem:[#allocation2 + $0x480] ss:$8 sps:$4 sm:$0xff]  }
 0x2ab   : > { %5796 = vmatpush1.bf16.msra.mxu0 %v20419_v0  ;;  %v3753_v0 = vpop.f32.mrf.mxu0 }
 0x2ac   : > { %6001 = vmatpush1.bf16.msra.mxu1 %v20422_v1  ;;  %5797 = vmatprep.subr.bf16.mxu0 %v20427_v2  ;;  %v3958_v1 = vpop.f32.mrf.mxu1  ;;  %v20501_v2 = vld [vmem:[#allocation2 + $0x674] ss:$8 sps:$4 sm:$0xff]  }
 0x2ad   : > { %6002 = vmatprep.subr.bf16.mxu1 %v20430_v49  ;;  %v20504_v49 = vld [vmem:[#allocation2 + $0x774] ss:$8 sps:$4 sm:$0xff]  }
 0x2af   : > { %5798 = vmatpush1.bf16.msra.mxu0 %v20425_v50  ;;  %v20499_v50 = vld [vmem:[#allocation2 + $0x670] ss:$8 sps:$4 sm:$0xff]  }
 0x2b0   : > { %6003 = vmatpush1.bf16.msra.mxu1 %v20428_v3  ;;  %5799 = vmatprep.subr.bf16.mxu0 %v20433_v4  ;;  %v20502_v3 = vld [vmem:[#allocation2 + $0x770] ss:$8 sps:$4 sm:$0xff]   ;;  %v6328_v4 = vshrl.u32 %v17870_v53, 16 }
 0x2b1   : > { %6004 = vmatprep.subr.bf16.mxu1 %v20436_v5  ;;  %v6332_v5 = vrot.slane %v6330_v60, 1 }
 0x2b3   : > { %5800 = vmatpush1.bf16.msra.mxu0 %v20431_v7  ;;  %v5619_v7 = vor.u32 %v5618_v36, %v5614_v61  ;;  %v20531_v61 = vld [vmem:[#allocation2 + $0x624] ss:$8 sps:$4 sm:$0xff]  }
 0x2b4   : > { %6005 = vmatpush1.bf16.msra.mxu1 %v20434_v8  ;;  %5801 = vmatprep.subr.bf16.mxu0 %v20439_v11  ;;  %v3755_v8 = vpop.f32.mrf.mxu0  ;;  %v3960_v11 = vpop.f32.mrf.mxu1  ;;  %v20534_v36 = vld [vmem:[#allocation2 + $0x724] ss:$8 sps:$4 sm:$0xff]  }
 0x2b5   : > { %6006 = vmatprep.subr.bf16.mxu1 %v20442_v12  ;;  %v20507_v12 = vld [vmem:[#allocation2 + $0x664] ss:$8 sps:$4 sm:$0xff]  }
 0x2b7   : > { %5802 = vmatpush1.bf16.msra.mxu0 %v20437_v13  ;;  %v20510_v13 = vld [vmem:[#allocation2 + $0x764] ss:$8 sps:$4 sm:$0xff]  }
 0x2b8   : > { %6007 = vmatpush1.bf16.msra.mxu1 %v20440_v15  ;;  %5803 = vmatprep.subr.bf16.mxu0 %v20445_v16  ;;  %v3955_v15 = vadd.f32 %v3954_v47, %v3749_v26  ;;  %v20505_v16 = vld [vmem:[#allocation2 + $0x660] ss:$8 sps:$4 sm:$0xff]  }
 0x2b9   : > { %6008 = vmatprep.subr.bf16.mxu1 %v20448_v17  ;;  %v20508_v17 = vld [vmem:[#allocation2 + $0x760] ss:$8 sps:$4 sm:$0xff]  }
 0x2ba   : > { %v20517_v26 = vld [vmem:[#allocation2 + $0x640] ss:$8 sps:$4 sm:$0xff]  }
 0x2bb   : > { %5804 = vmatpush1.bf16.msra.mxu0 %v20443_v58  ;;  %v6333_v58 = vor.u32 %v6332_v5, %v6328_v4  ;;  %v20520_v47 = vld [vmem:[#allocation2 + $0x740] ss:$8 sps:$4 sm:$0xff]   ;;  %v20546_v4 = vld [vmem:[#allocation2 + $0x704] ss:$8 sps:$4 sm:$0xff]  }
 0x2bc   : > { %6009 = vmatpush1.bf16.msra.mxu1 %v20446_v62  ;;  %5805 = vmatprep.subr.bf16.mxu0 %v20451_v18 }
 0x2bd   : > { %6010 = vmatprep.subr.bf16.mxu1 %v20454_v19  ;;  %v3957_v19 = vadd.f32 %v3956_v56, %v3751_v31 }
 0x2bf   : > { %5806 = vmatpush2.bf16.msra.mxu0 %v20449_v6 }
 0x2c0   : > { %6011 = vmatpush2.bf16.msra.mxu1 %v20452_v14  ;;  %5807 = vmatprep.subr.bf16.mxu0 %v20457_v20 }
 0x2c1   : > { %6012 = vmatprep.subr.bf16.mxu1 %v20460_v21  ;;  %v20513_v21 = vld [vmem:[#allocation2 + $0x654] ss:$8 sps:$4 sm:$0xff]  }
 0x2c3   : > { %5808 = vmatpush2.bf16.msra.mxu0 %v20455_v24  ;;  %v20516_v24 = vld [vmem:[#allocation2 + $0x754] ss:$8 sps:$4 sm:$0xff]  }
 0x2c4   : > { %6013 = vmatpush2.bf16.msra.mxu1 %v20458_v25  ;;  %5809 = vmatprep.subr.bf16.mxu0 %v20463_v28  ;;  %v3959_v25 = vadd.f32 %v3958_v1, %v3753_v0  ;;  %v20537_v0 = vld [vmem:[#allocation2 + $0x614] ss:$8 sps:$4 sm:$0xff]  }
 0x2c5   : > { %6014 = vmatprep.subr.bf16.mxu1 %v20466_v29  ;;  %v20540_v1 = vld [vmem:[#allocation2 + $0x714] ss:$8 sps:$4 sm:$0xff]  }
 0x2c7   : > { %5810 = vmatpush2.bf16.msra.mxu0 %v20461_v30  ;;  %v20511_v30 = vld [vmem:[#allocation2 + $0x650] ss:$8 sps:$4 sm:$0xff]  }
 0x2c8   : > { %6015 = vmatpush2.bf16.msra.mxu1 %v20464_v32  ;;  %5811 = vmatprep.subr.bf16.mxu0 %v20469_v34  ;;  %v20514_v32 = vld [vmem:[#allocation2 + $0x750] ss:$8 sps:$4 sm:$0xff]   ;;  %v3961_v34 = vadd.f32 %v3960_v11, %v3755_v8  ;;  %v20544_v8 = vld [vmem:[#allocation2 + $0x700] ss:$8 sps:$4 sm:$0xff]  }
 0x2c9   : > { %6016 = vmatprep.subr.bf16.mxu1 %v20472_v37 }
 0x2cb   : > { %5812 = vmatpush2.bf16.msra.mxu0 %v20467_v39 }
 0x2cc   : > { %6017 = vmatpush2.bf16.msra.mxu1 %v20470_v41  ;;  %5813 = vmatprep.subr.bf16.mxu0 %v20475_v9 }
 0x2cd   : > { %6018 = vmatprep.subr.bf16.mxu1 %v20478_v22 }
 0x2cf   : > { %5814 = vmatpush2.bf16.msra.mxu0 %v20473_v23 }
 0x2d0   : > { %6019 = vmatpush2.bf16.msra.mxu1 %v20476_v10  ;;  %5815 = vmatprep.subr.bf16.mxu0 %v20481_v38  ;;  %v20519_v10 = vld [vmem:[#allocation2 + $0x644] ss:$8 sps:$4 sm:$0xff]  }
 0x2d1   : > { %6020 = vmatprep.subr.bf16.mxu1 %v20484_v42  ;;  %v20522_v38 = vld [vmem:[#allocation2 + $0x744] ss:$8 sps:$4 sm:$0xff]  }
 0x2d3   : > { %5816 = vmatpush2.bf16.msra.mxu0 %v20479_v46 }
 0x2d4   : > { %6021 = vmatpush2.bf16.msra.mxu1 %v20482_v45  ;;  %5817 = vmatprep.subr.bf16.mxu0 %v20487_v48 }
 0x2d5   : > { %6022 = vmatprep.subr.bf16.mxu1 %v20490_v51 }
 0x2d7   : > { %5818 = vmatpush2.bf16.msra.mxu0 %v20485_v55  ;;  %v20525_v55 = vld [vmem:[#allocation2 + $0x634] ss:$8 sps:$4 sm:$0xff]  }
 0x2d8   : > { %6023 = vmatpush2.bf16.msra.mxu1 %v20488_v27  ;;  %5819 = vmatprep.subr.bf16.mxu0 %v20493_v57  ;;  %v20528_v27 = vld [vmem:[#allocation2 + $0x734] ss:$8 sps:$4 sm:$0xff]   ;;  %v20523_v57 = vld [vmem:[#allocation2 + $0x630] ss:$8 sps:$4 sm:$0xff]  }
 0x2d9   : > { %6024 = vmatprep.subr.bf16.mxu1 %v20496_v59  ;;  %v20526_v59 = vld [vmem:[#allocation2 + $0x730] ss:$8 sps:$4 sm:$0xff]  }
 0x2db   : > { %5820 = vmatpush2.bf16.msra.mxu0 %v20491_v40  ;;  %v20529_v40 = vld [vmem:[#allocation2 + $0x620] ss:$8 sps:$4 sm:$0xff]  }
 0x2dc   : > { %6025 = vmatpush2.bf16.msra.mxu1 %v20494_v63  ;;  %6241 = vmatprep.subr.bf16.mxu0 %v20501_v2  ;;  %v20532_v63 = vld [vmem:[#allocation2 + $0x720] ss:$8 sps:$4 sm:$0xff]   ;;  %v20535_v2 = vld [vmem:[#allocation2 + $0x610] ss:$8 sps:$4 sm:$0xff]  }
 0x2dd   : > { %6496 = vmatprep.subr.bf16.mxu1 %v20504_v49  ;;  %v20538_v49 = vld [vmem:[#allocation2 + $0x710] ss:$8 sps:$4 sm:$0xff]  }
 0x2de   : > { %v4201_v62 = vpop.f32.mrf.mxu0  ;;  %5822 = vmatmul.mubr.bf16.vlgmr.msra.gmra.mxu0 %v5619_v7  ;;  %v20541_v7 = vld [vmem:[#allocation2 + $0x600] ss:$8 sps:$4 sm:$0xff]  }
 0x2df   : > { %v4456_v18 = vpop.f32.mrf.mxu1  ;;  %6027 = vmatmul.mubr.bf16.vlgmr.msra.gmra.mxu1 %v17801_v44  ;;  %v4210_v6 = vadd.f32 %v4201_v62, %v3955_v15  ;;  %6242 = vmatpush1.bf16.msra.mxu0 %v20499_v50  ;;  %v20549_v15 = vld [vmem:[#allocation2 + $0x6f4] ss:$8 sps:$4 sm:$0xff]   ;;  %v20550_v62 = vld [vmem:[#allocation2 + $0x7f0] ss:$8 sps:$4 sm:$0xff]  }
 0x2e0   : > { %6497 = vmatpush1.bf16.msra.mxu1 %v20502_v3  ;;  %v4203_v14 = vpop.f32.mrf.mxu0  ;;  %6243 = vmatprep.subr.bf16.mxu0 %v20507_v12  ;;  %v20543_v3 = vld [vmem:[#allocation2 + $0x604] ss:$8 sps:$4 sm:$0xff]  }
 0x2e1   : > { %v4458_v20 = vpop.f32.mrf.mxu1  ;;  %6498 = vmatprep.subr.bf16.mxu1 %v20510_v13  ;;  %v4465_v28 = vadd.f32 %v4456_v18, %v4210_v6  ;;  %v4211_v29 = vadd.f32 %v4203_v14, %v3957_v19  ;;  %6273 = vmatprep.mubr.bf16.mxu0 %v17870_v53  ;;  %v20555_v6 = vld [vmem:[#allocation2 + $0x6e4] ss:$8 sps:$4 sm:$0xff]  }
 0x2e2   : > { %6528 = vmatprep.mubr.bf16.mxu1 %v6333_v58  ;;  %v4205_v37 = vpop.f32.mrf.mxu0  ;;  %v20547_v58 = vld [vmem:[#allocation2 + $0x6f0] ss:$8 sps:$4 sm:$0xff]   ;;  %v20558_v14 = vld [vmem:[#allocation2 + $0x7e4] ss:$8 sps:$4 sm:$0xff]  }
 0x2e3   : > { %v4460_v39 = vpop.f32.mrf.mxu1  ;;  %v4469_v41 = vadd.f32 %v4465_v28, %v23015_v33  ;;  %v4466_v9 = vadd.f32 %v4458_v20, %v4211_v29  ;;  %v4212_v22 = vadd.f32 %v4205_v37, %v3959_v25  ;;  %6244 = vmatpush1.bf16.msra.mxu0 %v20505_v16  ;;  %v20552_v16 = vld [vmem:[#allocation2 + $0x7f4] ss:$8 sps:$4 sm:$0xff]   ;;  %v20553_v20 = vld [vmem:[#allocation2 + $0x6e0] ss:$8 sps:$4 sm:$0xff]   ;;  %v20559_v28 = vld [vmem:[#allocation2 + $0x6d0] ss:$8 sps:$4 sm:$0xff]  }
 0x2e4   : > { %6499 = vmatpush1.bf16.msra.mxu1 %v20508_v17  ;;  %v4207_v23 = vpop.f32.mrf.mxu0  ;;  %6245 = vmatprep.subr.bf16.mxu0 %v20513_v21  ;;  %v20556_v21 = vld [vmem:[#allocation2 + $0x7e0] ss:$8 sps:$4 sm:$0xff]   ;;  %v20564_v25 = vld [vmem:[#allocation2 + $0x7d4] ss:$8 sps:$4 sm:$0xff]   ;;  %v20562_v29 = vld [vmem:[#allocation2 + $0x7d0] ss:$8 sps:$4 sm:$0xff]  }
 0x2e5   : > { %6500 = vmatprep.subr.bf16.mxu1 %v20516_v24  ;;  %v17647_v42 = vmul.f32 -1.442695, %v4469_v41  ;;  %v4470_v44 = vadd.f32 %v4466_v9, %v23017_v35  ;;  %v4467_v46 = vadd.f32 %v4460_v39, %v4212_v22  ;;  %v4213_v45 = vadd.f32 %v4207_v23, %v3961_v34  ;;  %v4462_v48 = vpop.f32.mrf.mxu1  ;;  %v20561_v24 = vld [vmem:[#allocation2 + $0x6d4] ss:$8 sps:$4 sm:$0xff]   ;;  %v20570_v34 = vld [vmem:[#allocation2 + $0x7c4] ss:$8 sps:$4 sm:$0xff]  }
 0x2e6   : > { %v20565_v37 = vld [vmem:[#allocation2 + $0x6c0] ss:$8 sps:$4 sm:$0xff]   ;;  %v20573_v22 = vld [vmem:[#allocation2 + $0x6b4] ss:$8 sps:$4 sm:$0xff]  }
 0x2e7   : > { %22605 = vpow2.f32 %v17647_v42  ;;  %v17648_v51 = vmul.f32 -1.442695, %v4470_v44  ;;  %v4471_v53 = vadd.f32 %v4467_v46, %v23015_v33  ;;  %v4468_v54 = vadd.f32 %v4462_v48, %v4213_v45  ;;  %6246 = vmatpush1.bf16.msra.mxu0 %v20511_v30  ;;  %v20568_v39 = vld [vmem:[#allocation2 + $0x7c0] ss:$8 sps:$4 sm:$0xff]   ;;  %v20576_v23 = vld [vmem:[#allocation2 + $0x7b4] ss:$8 sps:$4 sm:$0xff]  }
 0x2e8   : > { %6501 = vmatpush1.bf16.msra.mxu1 %v20514_v32  ;;  %6247 = vmatprep.subr.bf16.mxu0 %v20519_v10  ;;  %v20567_v32 = vld [vmem:[#allocation2 + $0x6c4] ss:$8 sps:$4 sm:$0xff]   ;;  %v20571_v10 = vld [vmem:[#allocation2 + $0x6b0] ss:$8 sps:$4 sm:$0xff]   ;;  %v20577_v48 = vld [vmem:[#allocation2 + $0x6a0] ss:$8 sps:$4 sm:$0xff]  }
 0x2e9   : > { %6502 = vmatprep.subr.bf16.mxu1 %v20522_v38  ;;  %22607 = vpow2.f32 %v17648_v51  ;;  %v17649_v31 = vmul.f32 -1.442695, %v4471_v53  ;;  %v4472_v56 = vadd.f32 %v4468_v54, %v23017_v35  ;;  %v20574_v38 = vld [vmem:[#allocation2 + $0x7b0] ss:$8 sps:$4 sm:$0xff]   ;;  %v20579_v44 = vld [vmem:[#allocation2 + $0x6a4] ss:$8 sps:$4 sm:$0xff]  }
 0x2ea   : > { %v20582_v46 = vld [vmem:[#allocation2 + $0x7a4] ss:$8 sps:$4 sm:$0xff]   ;;  %v23122_v45 = vld [vmem:[%s22958_s8 + $0x30] sm:$0xff]  ;;  %v20580_v51 = vld [vmem:[#allocation2 + $0x7a0] ss:$8 sps:$4 sm:$0xff]  }
 0x2eb   : > { %22609 = vpow2.f32 %v17649_v31  ;;  %v17650_v60 = vmul.f32 -1.442695, %v4472_v56  ;;  %6248 = vmatpush1.bf16.msra.mxu0 %v20517_v26  ;;  %v23125_v26 = vld [vmem:[%s22958_s8 + $0x38] sm:$0x11] }
 0x2ec   : > { %6503 = vmatpush1.bf16.msra.mxu1 %v20520_v47  ;;  %6249 = vmatprep.subr.bf16.mxu0 %v20525_v55  ;;  %v17869_v47 = vcombine.low %v23109_v52, %v23104_v43  ;;  %v20585_v53 = vld [vmem:[#allocation2 + $0x694] ss:$8 sps:$4 sm:$0xff]   ;;  %v17946_v55 = vcombine.high %v23122_v45, %v23125_v26  ;;  %v20583_v31 = vld [vmem:[#allocation2 + $0x690] ss:$8 sps:$4 sm:$0xff]   ;;  %v20594_v43 = vld [vmem:[#allocation2 + $0x784] ss:$8 sps:$4 sm:$0xff]  }
 0x2ed   : > { %6504 = vmatprep.subr.bf16.mxu1 %v20528_v27  ;;  %22611 = vpow2.f32 %v17650_v60  ;;  %v20588_v54 = vld [vmem:[#allocation2 + $0x794] ss:$8 sps:$4 sm:$0xff]   ;;  %v20586_v56 = vld [vmem:[#allocation2 + $0x790] ss:$8 sps:$4 sm:$0xff]  }
 0x2ee   : > { %v6323_v27 = vshll.u32 %v17869_v47, 16  ;;  %v6659_v52 = vshll.u32 %v17946_v55, 16 }
 0x2ef   : > { %6250 = vmatpush1.bf16.msra.mxu0 %v20523_v57  ;;  %v20591_v57 = vld [vmem:[#allocation2 + $0x684] ss:$8 sps:$4 sm:$0xff]  }
 0x2f0   : > { %6505 = vmatpush1.bf16.msra.mxu1 %v20526_v59  ;;  %6251 = vmatprep.subr.bf16.mxu0 %v20531_v61  ;;  %v6321_v59 = vshrl.u32 %v17869_v47, 16  ;;  %v6325_v60 = vrot.slane %v6323_v27, 1  ;;  %v20589_v61 = vld [vmem:[#allocation2 + $0x680] ss:$8 sps:$4 sm:$0xff]  }
 0x2f1   : > { %6506 = vmatprep.subr.bf16.mxu1 %v20534_v36  ;;  %v20592_v36 = vld [vmem:[#allocation2 + $0x780] ss:$8 sps:$4 sm:$0xff]  }
 0x2f2   : > { %v20663_v27 = vld [vmem:[#allocation2 + $0x1c0] ss:$8 sps:$4 sm:$0xff]  }
 0x2f3   : > { %6252 = vmatpush1.bf16.msra.mxu0 %v20529_v40  ;;  %v20599_v40 = vld [vmem:[#allocation2 + $0x174] ss:$8 sps:$4 sm:$0xff]  }
 0x2f4   : > { %6507 = vmatpush1.bf16.msra.mxu1 %v20532_v63  ;;  %v22606_v50 = vpop.eup %22605  ;;  %6253 = vmatprep.subr.bf16.mxu0 %v20537_v0  ;;  %v20602_v63 = vld [vmem:[#allocation2 + $0x74] ss:$8 sps:$4 sm:$0xff]   ;;  %v20597_v0 = vld [vmem:[#allocation2 + $0x170] ss:$8 sps:$4 sm:$0xff]  }
 0x2f5   : > { %6508 = vmatprep.subr.bf16.mxu1 %v20540_v1  ;;  %v4485_v5 = vadd.f32 1.0, %v22606_v50  ;;  %v20600_v1 = vld [vmem:[#allocation2 + $0x70] ss:$8 sps:$4 sm:$0xff]   ;;  %v6326_v50 = vor.u32 %v6325_v60, %v6321_v59  ;;  %v20677_v59 = vld [vmem:[#allocation2 + $0x1a4] ss:$8 sps:$4 sm:$0xff]  }
 0x2f6   : > { %v22608_v11 = vpop.eup %22607  ;;  %v20680_v60 = vld [vmem:[#allocation2 + $0xa4] ss:$8 sps:$4 sm:$0xff]  }
 0x2f7   : > { %22613 = vrcp.f32 %v4485_v5  ;;  %v4486_v12 = vadd.f32 1.0, %v22608_v11  ;;  %6254 = vmatpush1.bf16.msra.mxu0 %v20535_v2  ;;  %v6657_v2 = vshrl.u32 %v17946_v55, 16  ;;  %v20603_v5 = vld [vmem:[#allocation2 + $0x160] ss:$8 sps:$4 sm:$0xff]   ;;  %v20611_v11 = vld [vmem:[#allocation2 + $0x154] ss:$8 sps:$4 sm:$0xff]  }
 0x2f8   : > { %6509 = vmatpush1.bf16.msra.mxu1 %v20538_v49  ;;  %v22610_v13 = vpop.eup %22609  ;;  %6255 = vmatprep.subr.bf16.mxu0 %v20543_v3  ;;  %v6661_v49 = vrot.slane %v6659_v52, 1  ;;  %v20605_v3 = vld [vmem:[#allocation2 + $0x164] ss:$8 sps:$4 sm:$0xff]   ;;  %v20672_v52 = vld [vmem:[#allocation2 + $0xb0] ss:$8 sps:$4 sm:$0xff]  }
 0x2f9   : > { %6510 = vmatprep.subr.bf16.mxu1 %v20546_v4  ;;  %22615 = vrcp.f32 %v4486_v12  ;;  %v4487_v17 = vadd.f32 1.0, %v22610_v13  ;;  %v20608_v4 = vld [vmem:[#allocation2 + $0x64] ss:$8 sps:$4 sm:$0xff]   ;;  %v20614_v12 = vld [vmem:[#allocation2 + $0x54] ss:$8 sps:$4 sm:$0xff]  }
 0x2fa   : > { %v22612_v18 = vpop.eup %22611  ;;  %v20609_v13 = vld [vmem:[#allocation2 + $0x150] ss:$8 sps:$4 sm:$0xff]  }
 0x2fb   : > { %22617 = vrcp.f32 %v4487_v17  ;;  %v4488_v19 = vadd.f32 1.0, %v22612_v18  ;;  %6256 = vmatpush1.bf16.msra.mxu0 %v20541_v7  ;;  %v20606_v7 = vld [vmem:[#allocation2 + $0x60] ss:$8 sps:$4 sm:$0xff]   ;;  %v20620_v17 = vld [vmem:[#allocation2 + $0x44] ss:$8 sps:$4 sm:$0xff]  }
 0x2fc   : > { %6511 = vmatpush1.bf16.msra.mxu1 %v20544_v8  ;;  %6257 = vmatprep.subr.bf16.mxu0 %v20549_v15  ;;  %v6662_v8 = vor.u32 %v6661_v49, %v6657_v2  ;;  %v20612_v15 = vld [vmem:[#allocation2 + $0x50] ss:$8 sps:$4 sm:$0xff]   ;;  %v20623_v18 = vld [vmem:[#allocation2 + $0x134] ss:$8 sps:$4 sm:$0xff]  }
 0x2fd   : > { %6512 = vmatprep.subr.bf16.mxu1 %v20552_v16  ;;  %22619 = vrcp.f32 %v4488_v19  ;;  %v20617_v16 = vld [vmem:[#allocation2 + $0x144] ss:$8 sps:$4 sm:$0xff]   ;;  %v20626_v19 = vld [vmem:[#allocation2 + $0x34] ss:$8 sps:$4 sm:$0xff]  }
 0x2fe   : > { %v20683_v49 = vld [vmem:[#allocation2 + $0x194] ss:$8 sps:$4 sm:$0xff]  }
 0x2ff   : > { %6258 = vmatpush2.bf16.msra.mxu0 %v20547_v58  ;;  %v20615_v58 = vld [vmem:[#allocation2 + $0x140] ss:$8 sps:$4 sm:$0xff]  }
 0x300   : > { %6513 = vmatpush2.bf16.msra.mxu1 %v20550_v62  ;;  %6259 = vmatprep.subr.bf16.mxu0 %v20555_v6  ;;  %v20618_v62 = vld [vmem:[#allocation2 + $0x40] ss:$8 sps:$4 sm:$0xff]   ;;  %v20621_v6 = vld [vmem:[#allocation2 + $0x130] ss:$8 sps:$4 sm:$0xff]  }
 0x301   : > { %6514 = vmatprep.subr.bf16.mxu1 %v20558_v14  ;;  %v20624_v14 = vld [vmem:[#allocation2 + $0x30] ss:$8 sps:$4 sm:$0xff]  }
 0x303   : > { %6260 = vmatpush2.bf16.msra.mxu0 %v20553_v20  ;;  %v20629_v20 = vld [vmem:[#allocation2 + $0x124] ss:$8 sps:$4 sm:$0xff]  }
 0x304   : > { %6515 = vmatpush2.bf16.msra.mxu1 %v20556_v21  ;;  %v22614_v30 = vpop.eup %22613  ;;  %6261 = vmatprep.subr.bf16.mxu0 %v20561_v24  ;;  %v20632_v21 = vld [vmem:[#allocation2 + $0x24] ss:$8 sps:$4 sm:$0xff]   ;;  %v20627_v24 = vld [vmem:[#allocation2 + $0x120] ss:$8 sps:$4 sm:$0xff]  }
 0x305   : > { %6516 = vmatprep.subr.bf16.mxu1 %v20564_v25  ;;  %17651 = vst [vmem:[%s23031_s15 + $0x50] sm:$0xff] %v22614_v30  ;;  %v20630_v25 = vld [vmem:[#allocation2 + $0x20] ss:$8 sps:$4 sm:$0xff]   ;;  %v20633_v30 = vld [vmem:[#allocation2 + $0x110] ss:$8 sps:$4 sm:$0xff]  }
 0x306   : > { %v22616_v41 = vpop.eup %22615 }
 0x307   : > { %17652 = vst [vmem:[%s23031_s15 + $0x58] sm:$0xff] %v22616_v41  ;;  %6262 = vmatpush2.bf16.msra.mxu0 %v20559_v28  ;;  %v20635_v28 = vld [vmem:[#allocation2 + $0x114] ss:$8 sps:$4 sm:$0xff]   ;;  %v20642_v41 = vld [vmem:[#allocation2] ss:$8 sps:$4 sm:$0xff]  }
 0x308   : > { %6517 = vmatpush2.bf16.msra.mxu1 %v20562_v29  ;;  %v22618_v9 = vpop.eup %22617  ;;  %6263 = vmatprep.subr.bf16.mxu0 %v20567_v32  ;;  %v20638_v29 = vld [vmem:[#allocation2 + $0x14] ss:$8 sps:$4 sm:$0xff]   ;;  %v20636_v32 = vld [vmem:[#allocation2 + $0x10] ss:$8 sps:$4 sm:$0xff]  }
 0x309   : > { %6518 = vmatprep.subr.bf16.mxu1 %v20570_v34  ;;  %17653 = vst [vmem:[%s23031_s15 + $0x70] sm:$0x1] %v22618_v9  ;;  %v20641_v34 = vld [vmem:[#allocation2 + $0x104] ss:$8 sps:$4 sm:$0xff]   ;;  %v20647_v9 = vld [vmem:[#allocation2 + $0x1f4] ss:$8 sps:$4 sm:$0xff]  }
 0x30a   : > { %v22620_v42 = vpop.eup %22619 }
 0x30b   : > { %17654 = vst [vmem:[%s23031_s15 + $0x78] sm:$0x1] %v22620_v42  ;;  %6264 = vmatpush2.bf16.msra.mxu0 %v20565_v37  ;;  %v20644_v37 = vld [vmem:[#allocation2 + $0x4] ss:$8 sps:$4 sm:$0xff]  }
 0x30c   : > { %6519 = vmatpush2.bf16.msra.mxu1 %v20568_v39  ;;  %6265 = vmatprep.subr.bf16.mxu0 %v20573_v22  ;;  %v20639_v39 = vld [vmem:[#allocation2 + $0x100] ss:$8 sps:$4 sm:$0xff]   ;;  %v20650_v22 = vld [vmem:[#allocation2 + $0xf4] ss:$8 sps:$4 sm:$0xff]   ;;  %v20656_v42 = vld [vmem:[#allocation2 + $0xe4] ss:$8 sps:$4 sm:$0xff]  }
 0x30d   : > { %6520 = vmatprep.subr.bf16.mxu1 %v20576_v23  ;;  %v20645_v23 = vld [vmem:[#allocation2 + $0x1f0] ss:$8 sps:$4 sm:$0xff]  }
 0x30f   : > { %6266 = vmatpush2.bf16.msra.mxu0 %v20571_v10  ;;  %v20648_v10 = vld [vmem:[#allocation2 + $0xf0] ss:$8 sps:$4 sm:$0xff]  }
 0x310   : > { %6521 = vmatpush2.bf16.msra.mxu1 %v20574_v38  ;;  %6267 = vmatprep.subr.bf16.mxu0 %v20579_v44  ;;  %v20653_v38 = vld [vmem:[#allocation2 + $0x1e4] ss:$8 sps:$4 sm:$0xff]   ;;  %v20651_v44 = vld [vmem:[#allocation2 + $0x1e0] ss:$8 sps:$4 sm:$0xff]  }
 0x311   : > { %6522 = vmatprep.subr.bf16.mxu1 %v20582_v46  ;;  %v20654_v46 = vld [vmem:[#allocation2 + $0xe0] ss:$8 sps:$4 sm:$0xff]  }
 0x313   : > { %6268 = vmatpush2.bf16.msra.mxu0 %v20577_v48  ;;  %v20662_v48 = vld [vmem:[#allocation2 + $0xd4] ss:$8 sps:$4 sm:$0xff]  }
 0x314   : > { %6523 = vmatpush2.bf16.msra.mxu1 %v20580_v51  ;;  %6269 = vmatprep.subr.bf16.mxu0 %v20585_v53  ;;  %v20657_v51 = vld [vmem:[#allocation2 + $0x1d0] ss:$8 sps:$4 sm:$0xff]  }
 0x315   : > { %6524 = vmatprep.subr.bf16.mxu1 %v20588_v54  ;;  %v20660_v53 = vld [vmem:[#allocation2 + $0xd0] ss:$8 sps:$4 sm:$0xff]   ;;  %v20665_v54 = vld [vmem:[#allocation2 + $0x1c4] ss:$8 sps:$4 sm:$0xff]  }
 0x317   : > { %6270 = vmatpush2.bf16.msra.mxu0 %v20583_v31  ;;  %v20666_v31 = vld [vmem:[#allocation2 + $0xc0] ss:$8 sps:$4 sm:$0xff]  }
 0x318   : > { %6525 = vmatpush2.bf16.msra.mxu1 %v20586_v56  ;;  %6271 = vmatprep.subr.bf16.mxu0 %v20591_v57  ;;  %v20671_v56 = vld [vmem:[#allocation2 + $0x1b4] ss:$8 sps:$4 sm:$0xff]  }
 0x319   : > { %6526 = vmatprep.subr.bf16.mxu1 %v20594_v43  ;;  %v20674_v57 = vld [vmem:[#allocation2 + $0xb4] ss:$8 sps:$4 sm:$0xff]   ;;  %v20669_v43 = vld [vmem:[#allocation2 + $0x1b0] ss:$8 sps:$4 sm:$0xff]  }
 0x31b   : > { %6272 = vmatpush2.bf16.msra.mxu0 %v20589_v61  ;;  %v23132_v61 = vld [vmem:[%s22958_s8 + $0x40] sm:$0xff] }
 0x31c   : > { %6527 = vmatpush2.bf16.msra.mxu1 %v20592_v36  ;;  %6825 = vmatprep.subr.bf16.mxu0 %v20599_v40  ;;  %v23135_v36 = vld [vmem:[%s22958_s8 + $0x48] sm:$0x11]  ;;  %v17945_v40 = vcombine.low %v23122_v45, %v23125_v26 }
 0x31d   : > { %7030 = vmatprep.subr.bf16.mxu1 %v20602_v63  ;;  %v20675_v63 = vld [vmem:[#allocation2 + $0x1a0] ss:$8 sps:$4 sm:$0xff]   ;;  %v20689_v26 = vld [vmem:[#allocation2 + $0x184] ss:$8 sps:$4 sm:$0xff]  }
 0x31e   : > { %6274 = vmatmul.mubr.bf16.vlgmr.msra.gmra.mxu0 %v17869_v47  ;;  %v20659_v47 = vld [vmem:[#allocation2 + $0x1d4] ss:$8 sps:$4 sm:$0xff]  }
 0x31f   : > { %6529 = vmatmul.mubr.bf16.vlgmr.msra.gmra.mxu1 %v6326_v50  ;;  %6826 = vmatpush1.bf16.msra.mxu0 %v20597_v0  ;;  %v20678_v0 = vld [vmem:[#allocation2 + $0xa0] ss:$8 sps:$4 sm:$0xff]   ;;  %v4990_v2 = vpop.f32.mrf.mxu1  ;;  %v20686_v50 = vld [vmem:[#allocation2 + $0x94] ss:$8 sps:$4 sm:$0xff]  }
 0x320   : > { %7031 = vmatpush1.bf16.msra.mxu1 %v20600_v1  ;;  %6827 = vmatprep.subr.bf16.mxu0 %v20605_v3  ;;  %v4785_v1 = vpop.f32.mrf.mxu0  ;;  %v18014_v3 = vcombine.high %v23132_v61, %v23135_v36 }
 0x321   : > { %7032 = vmatprep.subr.bf16.mxu1 %v20608_v4  ;;  %6857 = vmatprep.mubr.bf16.mxu0 %v6662_v8  ;;  %v6652_v4 = vshll.u32 %v17945_v40, 16  ;;  %v4992_v45 = vpop.f32.mrf.mxu1 }
 0x322   : > { %7062 = vmatprep.mubr.bf16.mxu1 %v17946_v55  ;;  %v20668_v55 = vld [vmem:[#allocation2 + $0xc4] ss:$8 sps:$4 sm:$0xff]   ;;  %v4787_v8 = vpop.f32.mrf.mxu0 }
 0x323   : > { %6828 = vmatpush1.bf16.msra.mxu0 %v20603_v5  ;;  %v20681_v5 = vld [vmem:[#allocation2 + $0x190] ss:$8 sps:$4 sm:$0xff]  }
 0x324   : > { %7033 = vmatpush1.bf16.msra.mxu1 %v20606_v7  ;;  %6829 = vmatprep.subr.bf16.mxu0 %v20611_v11  ;;  %v20684_v7 = vld [vmem:[#allocation2 + $0x90] ss:$8 sps:$4 sm:$0xff]   ;;  %v20692_v11 = vld [vmem:[#allocation2 + $0x84] ss:$8 sps:$4 sm:$0xff]  }
 0x325   : > { %7034 = vmatprep.subr.bf16.mxu1 %v20614_v12  ;;  %v7367_v12 = vshll.u32 %v18014_v3, 16 }
 0x327   : > { %6830 = vmatpush1.bf16.msra.mxu0 %v20609_v13  ;;  %v6650_v13 = vshrl.u32 %v17945_v40, 16 }
 0x328   : > { %7035 = vmatpush1.bf16.msra.mxu1 %v20612_v15  ;;  %6831 = vmatprep.subr.bf16.mxu0 %v20617_v16  ;;  %v6654_v15 = vrot.slane %v6652_v4, 1  ;;  %v20687_v16 = vld [vmem:[#allocation2 + $0x180] ss:$8 sps:$4 sm:$0xff]  }
 0x329   : > { %7036 = vmatprep.subr.bf16.mxu1 %v20620_v17  ;;  %v20690_v17 = vld [vmem:[#allocation2 + $0x80] ss:$8 sps:$4 sm:$0xff]  }
 0x32b   : > { %6832 = vmatpush1.bf16.msra.mxu0 %v20615_v58  ;;  %v4789_v58 = vpop.f32.mrf.mxu0 }
 0x32c   : > { %7037 = vmatpush1.bf16.msra.mxu1 %v20618_v62  ;;  %6833 = vmatprep.subr.bf16.mxu0 %v20623_v18  ;;  %v4994_v62 = vpop.f32.mrf.mxu1  ;;  %v20697_v18 = vld [vmem:[#allocation2 + $0x274] ss:$8 sps:$4 sm:$0xff]  }
 0x32d   : > { %7038 = vmatprep.subr.bf16.mxu1 %v20626_v19  ;;  %v20700_v19 = vld [vmem:[#allocation2 + $0x374] ss:$8 sps:$4 sm:$0xff]  }
 0x32f   : > { %6834 = vmatpush1.bf16.msra.mxu0 %v20621_v6  ;;  %v20695_v6 = vld [vmem:[#allocation2 + $0x270] ss:$8 sps:$4 sm:$0xff]  }
 0x330   : > { %7039 = vmatpush1.bf16.msra.mxu1 %v20624_v14  ;;  %6835 = vmatprep.subr.bf16.mxu0 %v20629_v20  ;;  %v20698_v14 = vld [vmem:[#allocation2 + $0x370] ss:$8 sps:$4 sm:$0xff]   ;;  %v7365_v20 = vshrl.u32 %v18014_v3, 16 }
 0x331   : > { %7040 = vmatprep.subr.bf16.mxu1 %v20632_v21  ;;  %v7369_v21 = vrot.slane %v7367_v12, 1 }
 0x333   : > { %6836 = vmatpush1.bf16.msra.mxu0 %v20627_v24  ;;  %v6655_v24 = vor.u32 %v6654_v15, %v6650_v13  ;;  %v20727_v13 = vld [vmem:[#allocation2 + $0x224] ss:$8 sps:$4 sm:$0xff]  }
 0x334   : > { %7041 = vmatpush1.bf16.msra.mxu1 %v20630_v25  ;;  %6837 = vmatprep.subr.bf16.mxu0 %v20635_v28  ;;  %v4791_v25 = vpop.f32.mrf.mxu0  ;;  %v4996_v28 = vpop.f32.mrf.mxu1  ;;  %v20730_v15 = vld [vmem:[#allocation2 + $0x324] ss:$8 sps:$4 sm:$0xff]  }
 0x335   : > { %7042 = vmatprep.subr.bf16.mxu1 %v20638_v29  ;;  %v20703_v29 = vld [vmem:[#allocation2 + $0x264] ss:$8 sps:$4 sm:$0xff]  }
 0x337   : > { %6838 = vmatpush1.bf16.msra.mxu0 %v20633_v30  ;;  %v20706_v30 = vld [vmem:[#allocation2 + $0x364] ss:$8 sps:$4 sm:$0xff]  }
 0x338   : > { %7043 = vmatpush1.bf16.msra.mxu1 %v20636_v32  ;;  %6839 = vmatprep.subr.bf16.mxu0 %v20641_v34  ;;  %v4991_v32 = vadd.f32 %v4990_v2, %v4785_v1  ;;  %v20701_v34 = vld [vmem:[#allocation2 + $0x260] ss:$8 sps:$4 sm:$0xff]  }
 0x339   : > { %7044 = vmatprep.subr.bf16.mxu1 %v20644_v37  ;;  %v20704_v37 = vld [vmem:[#allocation2 + $0x360] ss:$8 sps:$4 sm:$0xff]  }
 0x33a   : > { %v20713_v1 = vld [vmem:[#allocation2 + $0x240] ss:$8 sps:$4 sm:$0xff]  }
 0x33b   : > { %6840 = vmatpush1.bf16.msra.mxu0 %v20639_v39  ;;  %v7370_v39 = vor.u32 %v7369_v21, %v7365_v20  ;;  %v20716_v2 = vld [vmem:[#allocation2 + $0x340] ss:$8 sps:$4 sm:$0xff]   ;;  %v20742_v20 = vld [vmem:[#allocation2 + $0x304] ss:$8 sps:$4 sm:$0xff]  }
 0x33c   : > { %7045 = vmatpush1.bf16.msra.mxu1 %v20642_v41  ;;  %6841 = vmatprep.subr.bf16.mxu0 %v20647_v9 }
 0x33d   : > { %7046 = vmatprep.subr.bf16.mxu1 %v20650_v22  ;;  %v4993_v22 = vadd.f32 %v4992_v45, %v4787_v8 }
 0x33f   : > { %6842 = vmatpush2.bf16.msra.mxu0 %v20645_v23 }
 0x340   : > { %7047 = vmatpush2.bf16.msra.mxu1 %v20648_v10  ;;  %6843 = vmatprep.subr.bf16.mxu0 %v20653_v38 }
 0x341   : > { %7048 = vmatprep.subr.bf16.mxu1 %v20656_v42  ;;  %v20709_v42 = vld [vmem:[#allocation2 + $0x254] ss:$8 sps:$4 sm:$0xff]  }
 0x343   : > { %6844 = vmatpush2.bf16.msra.mxu0 %v20651_v44  ;;  %v20712_v44 = vld [vmem:[#allocation2 + $0x354] ss:$8 sps:$4 sm:$0xff]  }
 0x344   : > { %7049 = vmatpush2.bf16.msra.mxu1 %v20654_v46  ;;  %6845 = vmatprep.subr.bf16.mxu0 %v20659_v47  ;;  %v4995_v46 = vadd.f32 %v4994_v62, %v4789_v58  ;;  %v20733_v58 = vld [vmem:[#allocation2 + $0x214] ss:$8 sps:$4 sm:$0xff]  }
 0x345   : > { %7050 = vmatprep.subr.bf16.mxu1 %v20662_v48  ;;  %v20736_v62 = vld [vmem:[#allocation2 + $0x314] ss:$8 sps:$4 sm:$0xff]  }
 0x347   : > { %6846 = vmatpush2.bf16.msra.mxu0 %v20657_v51  ;;  %v20707_v51 = vld [vmem:[#allocation2 + $0x250] ss:$8 sps:$4 sm:$0xff]  }
 0x348   : > { %7051 = vmatpush2.bf16.msra.mxu1 %v20660_v53  ;;  %6847 = vmatprep.subr.bf16.mxu0 %v20665_v54  ;;  %v20710_v53 = vld [vmem:[#allocation2 + $0x350] ss:$8 sps:$4 sm:$0xff]   ;;  %v4997_v54 = vadd.f32 %v4996_v28, %v4791_v25  ;;  %v20740_v25 = vld [vmem:[#allocation2 + $0x300] ss:$8 sps:$4 sm:$0xff]  }
 0x349   : > { %7052 = vmatprep.subr.bf16.mxu1 %v20668_v55 }
 0x34b   : > { %6848 = vmatpush2.bf16.msra.mxu0 %v20663_v27 }
 0x34c   : > { %7053 = vmatpush2.bf16.msra.mxu1 %v20666_v31  ;;  %6849 = vmatprep.subr.bf16.mxu0 %v20671_v56 }
 0x34d   : > { %7054 = vmatprep.subr.bf16.mxu1 %v20674_v57 }
 0x34f   : > { %6850 = vmatpush2.bf16.msra.mxu0 %v20669_v43 }
 0x350   : > { %7055 = vmatpush2.bf16.msra.mxu1 %v20672_v52  ;;  %6851 = vmatprep.subr.bf16.mxu0 %v20677_v59  ;;  %v20715_v52 = vld [vmem:[#allocation2 + $0x244] ss:$8 sps:$4 sm:$0xff]  }
 0x351   : > { %7056 = vmatprep.subr.bf16.mxu1 %v20680_v60  ;;  %v20718_v59 = vld [vmem:[#allocation2 + $0x344] ss:$8 sps:$4 sm:$0xff]  }
 0x353   : > { %6852 = vmatpush2.bf16.msra.mxu0 %v20675_v63 }
 0x354   : > { %7057 = vmatpush2.bf16.msra.mxu1 %v20678_v0  ;;  %6853 = vmatprep.subr.bf16.mxu0 %v20683_v49 }
 0x355   : > { %7058 = vmatprep.subr.bf16.mxu1 %v20686_v50 }
 0x357   : > { %6854 = vmatpush2.bf16.msra.mxu0 %v20681_v5  ;;  %v20721_v5 = vld [vmem:[#allocation2 + $0x234] ss:$8 sps:$4 sm:$0xff]  }
 0x358   : > { %7059 = vmatpush2.bf16.msra.mxu1 %v20684_v7  ;;  %6855 = vmatprep.subr.bf16.mxu0 %v20689_v26  ;;  %v20724_v7 = vld [vmem:[#allocation2 + $0x334] ss:$8 sps:$4 sm:$0xff]   ;;  %v20719_v26 = vld [vmem:[#allocation2 + $0x230] ss:$8 sps:$4 sm:$0xff]  }
 0x359   : > { %7060 = vmatprep.subr.bf16.mxu1 %v20692_v11  ;;  %v20722_v11 = vld [vmem:[#allocation2 + $0x330] ss:$8 sps:$4 sm:$0xff]  }
 0x35b   : > { %6856 = vmatpush2.bf16.msra.mxu0 %v20687_v16  ;;  %v20725_v16 = vld [vmem:[#allocation2 + $0x220] ss:$8 sps:$4 sm:$0xff]  }
 0x35c   : > { %7061 = vmatpush2.bf16.msra.mxu1 %v20690_v17  ;;  %7278 = vmatprep.subr.bf16.mxu0 %v20697_v18  ;;  %v20728_v17 = vld [vmem:[#allocation2 + $0x320] ss:$8 sps:$4 sm:$0xff]   ;;  %v20731_v18 = vld [vmem:[#allocation2 + $0x210] ss:$8 sps:$4 sm:$0xff]  }
 0x35d   : > { %7533 = vmatprep.subr.bf16.mxu1 %v20700_v19  ;;  %v20734_v19 = vld [vmem:[#allocation2 + $0x310] ss:$8 sps:$4 sm:$0xff]  }
 0x35e   : > { %v5238_v41 = vpop.f32.mrf.mxu0  ;;  %6858 = vmatmul.mubr.bf16.vlgmr.msra.gmra.mxu0 %v6655_v24  ;;  %v20737_v24 = vld [vmem:[#allocation2 + $0x200] ss:$8 sps:$4 sm:$0xff]  }
 0x35f   : > { %v5493_v9 = vpop.f32.mrf.mxu1  ;;  %7063 = vmatmul.mubr.bf16.vlgmr.msra.gmra.mxu1 %v17945_v40  ;;  %v5247_v23 = vadd.f32 %v5238_v41, %v4991_v32  ;;  %7279 = vmatpush1.bf16.msra.mxu0 %v20695_v6  ;;  %v20745_v32 = vld [vmem:[#allocation2 + $0x2f4] ss:$8 sps:$4 sm:$0xff]   ;;  %v20746_v41 = vld [vmem:[#allocation2 + $0x3f0] ss:$8 sps:$4 sm:$0xff]  }
 0x360   : > { %7534 = vmatpush1.bf16.msra.mxu1 %v20698_v14  ;;  %v5240_v10 = vpop.f32.mrf.mxu0  ;;  %7280 = vmatprep.subr.bf16.mxu0 %v20703_v29  ;;  %v20739_v14 = vld [vmem:[#allocation2 + $0x204] ss:$8 sps:$4 sm:$0xff]  }
 0x361   : > { %v5495_v38 = vpop.f32.mrf.mxu1  ;;  %7535 = vmatprep.subr.bf16.mxu1 %v20706_v30  ;;  %v5502_v47 = vadd.f32 %v5493_v9, %v5247_v23  ;;  %v5248_v48 = vadd.f32 %v5240_v10, %v4993_v22  ;;  %7310 = vmatprep.mubr.bf16.mxu0 %v18014_v3  ;;  %v20751_v23 = vld [vmem:[#allocation2 + $0x2e4] ss:$8 sps:$4 sm:$0xff]  }
 0x362   : > { %7565 = vmatprep.mubr.bf16.mxu1 %v7370_v39  ;;  %v5242_v55 = vpop.f32.mrf.mxu0  ;;  %v20743_v39 = vld [vmem:[#allocation2 + $0x2f0] ss:$8 sps:$4 sm:$0xff]   ;;  %v20754_v10 = vld [vmem:[#allocation2 + $0x3e4] ss:$8 sps:$4 sm:$0xff]  }
 0x363   : > { %v5497_v27 = vpop.f32.mrf.mxu1  ;;  %v5506_v31 = vadd.f32 %v5502_v47, %v23015_v33  ;;  %v5503_v56 = vadd.f32 %v5495_v38, %v5248_v48  ;;  %v5249_v57 = vadd.f32 %v5242_v55, %v4995_v46  ;;  %7281 = vmatpush1.bf16.msra.mxu0 %v20701_v34  ;;  %v20748_v34 = vld [vmem:[#allocation2 + $0x3f4] ss:$8 sps:$4 sm:$0xff]   ;;  %v20749_v38 = vld [vmem:[#allocation2 + $0x2e0] ss:$8 sps:$4 sm:$0xff]   ;;  %v20755_v47 = vld [vmem:[#allocation2 + $0x2d0] ss:$8 sps:$4 sm:$0xff]  }
 0x364   : > { %7536 = vmatpush1.bf16.msra.mxu1 %v20704_v37  ;;  %v5244_v43 = vpop.f32.mrf.mxu0  ;;  %7282 = vmatprep.subr.bf16.mxu0 %v20709_v42  ;;  %v20752_v42 = vld [vmem:[#allocation2 + $0x3e0] ss:$8 sps:$4 sm:$0xff]   ;;  %v20760_v46 = vld [vmem:[#allocation2 + $0x3d4] ss:$8 sps:$4 sm:$0xff]   ;;  %v20758_v48 = vld [vmem:[#allocation2 + $0x3d0] ss:$8 sps:$4 sm:$0xff]  }
 0x365   : > { %7537 = vmatprep.subr.bf16.mxu1 %v20712_v44  ;;  %v17791_v60 = vmul.f32 -1.442695, %v5506_v31  ;;  %v5507_v40 = vadd.f32 %v5503_v56, %v23017_v35  ;;  %v5504_v63 = vadd.f32 %v5497_v27, %v5249_v57  ;;  %v5250_v0 = vadd.f32 %v5244_v43, %v4997_v54  ;;  %v5499_v49 = vpop.f32.mrf.mxu1  ;;  %v20757_v44 = vld [vmem:[#allocation2 + $0x2d4] ss:$8 sps:$4 sm:$0xff]   ;;  %v20766_v54 = vld [vmem:[#allocation2 + $0x3c4] ss:$8 sps:$4 sm:$0xff]  }
 0x366   : > { %v20761_v55 = vld [vmem:[#allocation2 + $0x2c0] ss:$8 sps:$4 sm:$0xff]   ;;  %v20769_v57 = vld [vmem:[#allocation2 + $0x2b4] ss:$8 sps:$4 sm:$0xff]  }
 0x367   : > { %22621 = vpow2.f32 %v17791_v60  ;;  %v17792_v50 = vmul.f32 -1.442695, %v5507_v40  ;;  %v5508_v3 = vadd.f32 %v5504_v63, %v23015_v33  ;;  %v5505_v4 = vadd.f32 %v5499_v49, %v5250_v0  ;;  %7283 = vmatpush1.bf16.msra.mxu0 %v20707_v51  ;;  %v20764_v27 = vld [vmem:[#allocation2 + $0x3c0] ss:$8 sps:$4 sm:$0xff]   ;;  %v20772_v43 = vld [vmem:[#allocation2 + $0x3b4] ss:$8 sps:$4 sm:$0xff]  }
 0x368   : > { %7538 = vmatpush1.bf16.msra.mxu1 %v20710_v53  ;;  %7284 = vmatprep.subr.bf16.mxu0 %v20715_v52  ;;  %v20763_v53 = vld [vmem:[#allocation2 + $0x2c4] ss:$8 sps:$4 sm:$0xff]   ;;  %v20767_v52 = vld [vmem:[#allocation2 + $0x2b0] ss:$8 sps:$4 sm:$0xff]   ;;  %v20776_v49 = vld [vmem:[#allocation2 + $0x3a0] ss:$8 sps:$4 sm:$0xff]  }
 0x369   : > { %7539 = vmatprep.subr.bf16.mxu1 %v20718_v59  ;;  %22623 = vpow2.f32 %v17792_v50  ;;  %v17793_v8 = vmul.f32 -1.442695, %v5508_v3  ;;  %v5509_v45 = vadd.f32 %v5505_v4, %v23017_v35  ;;  %v20770_v60 = vld [vmem:[#allocation2 + $0x3b0] ss:$8 sps:$4 sm:$0xff]   ;;  %v20775_v40 = vld [vmem:[#allocation2 + $0x2a4] ss:$8 sps:$4 sm:$0xff]  }
 0x36a   : > { %v20778_v63 = vld [vmem:[#allocation2 + $0x3a4] ss:$8 sps:$4 sm:$0xff]   ;;  %v23150_v0 = vld [vmem:[%s22958_s8 + $0x38] sm:$0x11]  ;;  %v23155_v4 = vld [vmem:[%s22958_s8 + $0x30] sm:$0xff] }
 0x36b   : > { %22625 = vpow2.f32 %v17793_v8  ;;  %v17794_v12 = vmul.f32 -1.442695, %v5509_v45  ;;  %7285 = vmatpush1.bf16.msra.mxu0 %v20713_v1  ;;  %v18013_v1 = vcombine.low %v23132_v61, %v23135_v36  ;;  %v20781_v50 = vld [vmem:[#allocation2 + $0x294] ss:$8 sps:$4 sm:$0xff]   ;;  %v20779_v8 = vld [vmem:[#allocation2 + $0x290] ss:$8 sps:$4 sm:$0xff]  }
 0x36c   : > { %7540 = vmatpush1.bf16.msra.mxu1 %v20716_v2  ;;  %7286 = vmatprep.subr.bf16.mxu0 %v20721_v5  ;;  %v20773_v2 = vld [vmem:[#allocation2 + $0x2a0] ss:$8 sps:$4 sm:$0xff]   ;;  %v20784_v3 = vld [vmem:[#allocation2 + $0x394] ss:$8 sps:$4 sm:$0xff]   ;;  %v18090_v5 = vcombine.high %v23155_v4, %v23150_v0  ;;  %v20782_v45 = vld [vmem:[#allocation2 + $0x390] ss:$8 sps:$4 sm:$0xff]  }
 0x36d   : > { %7541 = vmatprep.subr.bf16.mxu1 %v20724_v7  ;;  %22627 = vpow2.f32 %v17794_v12  ;;  %v7360_v7 = vshll.u32 %v18013_v1, 16  ;;  %v20787_v61 = vld [vmem:[#allocation2 + $0x284] ss:$8 sps:$4 sm:$0xff]  }
 0x36e   : > { %v20790_v36 = vld [vmem:[#allocation2 + $0x384] ss:$8 sps:$4 sm:$0xff]  }
 0x36f   : > { %7287 = vmatpush1.bf16.msra.mxu0 %v20719_v26  ;;  %v7697_v26 = vshll.u32 %v18090_v5, 16  ;;  %v7362_v12 = vrot.slane %v7360_v7, 1  ;;  %v20859_v7 = vld [vmem:[#allocation2 + $0x5c0] ss:$8 sps:$4 sm:$0xff]  }
 0x370   : > { %7542 = vmatpush1.bf16.msra.mxu1 %v20722_v11  ;;  %7288 = vmatprep.subr.bf16.mxu0 %v20727_v13  ;;  %v7358_v11 = vshrl.u32 %v18013_v1, 16  ;;  %v20785_v13 = vld [vmem:[#allocation2 + $0x280] ss:$8 sps:$4 sm:$0xff]  }
 0x371   : > { %7543 = vmatprep.subr.bf16.mxu1 %v20730_v15  ;;  %v20788_v15 = vld [vmem:[#allocation2 + $0x380] ss:$8 sps:$4 sm:$0xff]  }
 0x373   : > { %7289 = vmatpush1.bf16.msra.mxu0 %v20725_v16  ;;  %v20795_v16 = vld [vmem:[#allocation2 + $0x574] ss:$8 sps:$4 sm:$0xff]  }
 0x374   : > { %7544 = vmatpush1.bf16.msra.mxu1 %v20728_v17  ;;  %v22622_v6 = vpop.eup %22621  ;;  %7290 = vmatprep.subr.bf16.mxu0 %v20733_v58  ;;  %v20798_v17 = vld [vmem:[#allocation2 + $0x474] ss:$8 sps:$4 sm:$0xff]   ;;  %v20793_v58 = vld [vmem:[#allocation2 + $0x570] ss:$8 sps:$4 sm:$0xff]  }
 0x375   : > { %7545 = vmatprep.subr.bf16.mxu1 %v20736_v62  ;;  %v5522_v21 = vadd.f32 1.0, %v22622_v6  ;;  %v20796_v62 = vld [vmem:[#allocation2 + $0x470] ss:$8 sps:$4 sm:$0xff]   ;;  %v7363_v6 = vor.u32 %v7362_v12, %v7358_v11  ;;  %v20873_v11 = vld [vmem:[#allocation2 + $0x5a4] ss:$8 sps:$4 sm:$0xff]  }
 0x376   : > { %v22624_v28 = vpop.eup %22623  ;;  %v20876_v12 = vld [vmem:[#allocation2 + $0x4a4] ss:$8 sps:$4 sm:$0xff]  }
 0x377   : > { %22629 = vrcp.f32 %v5522_v21  ;;  %v5523_v29 = vadd.f32 1.0, %v22624_v28  ;;  %7291 = vmatpush1.bf16.msra.mxu0 %v20731_v18  ;;  %v7695_v18 = vshrl.u32 %v18090_v5, 16  ;;  %v20799_v21 = vld [vmem:[#allocation2 + $0x560] ss:$8 sps:$4 sm:$0xff]   ;;  %v20807_v28 = vld [vmem:[#allocation2 + $0x554] ss:$8 sps:$4 sm:$0xff]  }
 0x378   : > { %7546 = vmatpush1.bf16.msra.mxu1 %v20734_v19  ;;  %v22626_v30 = vpop.eup %22625  ;;  %7292 = vmatprep.subr.bf16.mxu0 %v20739_v14  ;;  %v7699_v19 = vrot.slane %v7697_v26, 1  ;;  %v20801_v14 = vld [vmem:[#allocation2 + $0x564] ss:$8 sps:$4 sm:$0xff]   ;;  %v20868_v26 = vld [vmem:[#allocation2 + $0x4b0] ss:$8 sps:$4 sm:$0xff]  }
 0x379   : > { %7547 = vmatprep.subr.bf16.mxu1 %v20742_v20  ;;  %22631 = vrcp.f32 %v5523_v29  ;;  %v5524_v37 = vadd.f32 1.0, %v22626_v30  ;;  %v20804_v20 = vld [vmem:[#allocation2 + $0x464] ss:$8 sps:$4 sm:$0xff]   ;;  %v20810_v29 = vld [vmem:[#allocation2 + $0x454] ss:$8 sps:$4 sm:$0xff]  }
 0x37a   : > { %v22628_v9 = vpop.eup %22627  ;;  %v20805_v30 = vld [vmem:[#allocation2 + $0x550] ss:$8 sps:$4 sm:$0xff]  }
 0x37b   : > { %22633 = vrcp.f32 %v5524_v37  ;;  %v5525_v22 = vadd.f32 1.0, %v22628_v9  ;;  %7293 = vmatpush1.bf16.msra.mxu0 %v20737_v24  ;;  %v20802_v24 = vld [vmem:[#allocation2 + $0x460] ss:$8 sps:$4 sm:$0xff]   ;;  %v20816_v37 = vld [vmem:[#allocation2 + $0x444] ss:$8 sps:$4 sm:$0xff]  }
 0x37c   : > { %7548 = vmatpush1.bf16.msra.mxu1 %v20740_v25  ;;  %7294 = vmatprep.subr.bf16.mxu0 %v20745_v32  ;;  %v7700_v25 = vor.u32 %v7699_v19, %v7695_v18  ;;  %v20808_v32 = vld [vmem:[#allocation2 + $0x450] ss:$8 sps:$4 sm:$0xff]   ;;  %v20819_v9 = vld [vmem:[#allocation2 + $0x534] ss:$8 sps:$4 sm:$0xff]  }
 0x37d   : > { %7549 = vmatprep.subr.bf16.mxu1 %v20748_v34  ;;  %22635 = vrcp.f32 %v5525_v22  ;;  %v20813_v34 = vld [vmem:[#allocation2 + $0x544] ss:$8 sps:$4 sm:$0xff]   ;;  %v20822_v22 = vld [vmem:[#allocation2 + $0x434] ss:$8 sps:$4 sm:$0xff]  }
 0x37e   : > { %v20879_v18 = vld [vmem:[#allocation2 + $0x594] ss:$8 sps:$4 sm:$0xff]  }
 0x37f   : > { %7295 = vmatpush2.bf16.msra.mxu0 %v20743_v39  ;;  %v20811_v39 = vld [vmem:[#allocation2 + $0x540] ss:$8 sps:$4 sm:$0xff]   ;;  %v20882_v19 = vld [vmem:[#allocation2 + $0x494] ss:$8 sps:$4 sm:$0xff]  }
 0x380   : > { %7550 = vmatpush2.bf16.msra.mxu1 %v20746_v41  ;;  %7296 = vmatprep.subr.bf16.mxu0 %v20751_v23  ;;  %v20814_v41 = vld [vmem:[#allocation2 + $0x440] ss:$8 sps:$4 sm:$0xff]   ;;  %v20817_v23 = vld [vmem:[#allocation2 + $0x530] ss:$8 sps:$4 sm:$0xff]  }
 0x381   : > { %7551 = vmatprep.subr.bf16.mxu1 %v20754_v10  ;;  %v20820_v10 = vld [vmem:[#allocation2 + $0x430] ss:$8 sps:$4 sm:$0xff]  }
 0x383   : > { %7297 = vmatpush2.bf16.msra.mxu0 %v20749_v38  ;;  %v20825_v38 = vld [vmem:[#allocation2 + $0x524] ss:$8 sps:$4 sm:$0xff]  }
 0x384   : > { %7552 = vmatpush2.bf16.msra.mxu1 %v20752_v42  ;;  %v22630_v51 = vpop.eup %22629  ;;  %7298 = vmatprep.subr.bf16.mxu0 %v20757_v44  ;;  %v20828_v42 = vld [vmem:[#allocation2 + $0x424] ss:$8 sps:$4 sm:$0xff]   ;;  %v20823_v44 = vld [vmem:[#allocation2 + $0x520] ss:$8 sps:$4 sm:$0xff]  }
 0x385   : > { %7553 = vmatprep.subr.bf16.mxu1 %v20760_v46  ;;  %17795 = vst [vmem:[%s23031_s15 + $0x80] sm:$0xff] %v22630_v51  ;;  %v20826_v46 = vld [vmem:[#allocation2 + $0x420] ss:$8 sps:$4 sm:$0xff]   ;;  %v20829_v51 = vld [vmem:[#allocation2 + $0x510] ss:$8 sps:$4 sm:$0xff]  }
 0x386   : > { %v22632_v31 = vpop.eup %22631 }
 0x387   : > { %17796 = vst [vmem:[%s23031_s15 + $0x88] sm:$0xff] %v22632_v31  ;;  %7299 = vmatpush2.bf16.msra.mxu0 %v20755_v47  ;;  %v20831_v47 = vld [vmem:[#allocation2 + $0x514] ss:$8 sps:$4 sm:$0xff]   ;;  %v20838_v31 = vld [vmem:[#allocation2 + $0x400] ss:$8 sps:$4 sm:$0xff]  }
 0x388   : > { %7554 = vmatpush2.bf16.msra.mxu1 %v20758_v48  ;;  %v22634_v56 = vpop.eup %22633  ;;  %7300 = vmatprep.subr.bf16.mxu0 %v20763_v53  ;;  %v20834_v48 = vld [vmem:[#allocation2 + $0x414] ss:$8 sps:$4 sm:$0xff]   ;;  %v20832_v53 = vld [vmem:[#allocation2 + $0x410] ss:$8 sps:$4 sm:$0xff]  }
 0x389   : > { %7555 = vmatprep.subr.bf16.mxu1 %v20766_v54  ;;  %17797 = vst [vmem:[%s23031_s15 + $0xa0] sm:$0x1] %v22634_v56  ;;  %v20837_v54 = vld [vmem:[#allocation2 + $0x504] ss:$8 sps:$4 sm:$0xff]   ;;  %v20843_v56 = vld [vmem:[#allocation2 + $0x5f4] ss:$8 sps:$4 sm:$0xff]  }
 0x38a   : > { %v22636_v59 = vpop.eup %22635 }
 0x38b   : > { %17798 = vst [vmem:[%s23031_s15 + $0xa8] sm:$0x1] %v22636_v59  ;;  %7301 = vmatpush2.bf16.msra.mxu0 %v20761_v55  ;;  %v20840_v55 = vld [vmem:[#allocation2 + $0x404] ss:$8 sps:$4 sm:$0xff]  }
 0x38c   : > { %7556 = vmatpush2.bf16.msra.mxu1 %v20764_v27  ;;  %7302 = vmatprep.subr.bf16.mxu0 %v20769_v57  ;;  %v20835_v27 = vld [vmem:[#allocation2 + $0x500] ss:$8 sps:$4 sm:$0xff]   ;;  %v20846_v57 = vld [vmem:[#allocation2 + $0x4f4] ss:$8 sps:$4 sm:$0xff]   ;;  %v20849_v59 = vld [vmem:[#allocation2 + $0x5e4] ss:$8 sps:$4 sm:$0xff]  }
 0x38d   : > { %7557 = vmatprep.subr.bf16.mxu1 %v20772_v43  ;;  %v20841_v43 = vld [vmem:[#allocation2 + $0x5f0] ss:$8 sps:$4 sm:$0xff]  }
 0x38f   : > { %7303 = vmatpush2.bf16.msra.mxu0 %v20767_v52  ;;  %v20844_v52 = vld [vmem:[#allocation2 + $0x4f0] ss:$8 sps:$4 sm:$0xff]  }
 0x390   : > { %7558 = vmatpush2.bf16.msra.mxu1 %v20770_v60  ;;  %7304 = vmatprep.subr.bf16.mxu0 %v20775_v40  ;;  %v20852_v60 = vld [vmem:[#allocation2 + $0x4e4] ss:$8 sps:$4 sm:$0xff]   ;;  %v20847_v40 = vld [vmem:[#allocation2 + $0x5e0] ss:$8 sps:$4 sm:$0xff]  }
 0x391   : > { %7559 = vmatprep.subr.bf16.mxu1 %v20778_v63  ;;  %v20850_v63 = vld [vmem:[#allocation2 + $0x4e0] ss:$8 sps:$4 sm:$0xff]  }
 0x393   : > { %7305 = vmatpush2.bf16.msra.mxu0 %v20773_v2  ;;  %v20858_v2 = vld [vmem:[#allocation2 + $0x4d4] ss:$8 sps:$4 sm:$0xff]  }
 0x394   : > { %7560 = vmatpush2.bf16.msra.mxu1 %v20776_v49  ;;  %7306 = vmatprep.subr.bf16.mxu0 %v20781_v50  ;;  %v20853_v49 = vld [vmem:[#allocation2 + $0x5d0] ss:$8 sps:$4 sm:$0xff]  }
 0x395   : > { %7561 = vmatprep.subr.bf16.mxu1 %v20784_v3  ;;  %v20856_v50 = vld [vmem:[#allocation2 + $0x4d0] ss:$8 sps:$4 sm:$0xff]   ;;  %v20861_v3 = vld [vmem:[#allocation2 + $0x5c4] ss:$8 sps:$4 sm:$0xff]  }
 0x397   : > { %7307 = vmatpush2.bf16.msra.mxu0 %v20779_v8  ;;  %v20862_v8 = vld [vmem:[#allocation2 + $0x4c0] ss:$8 sps:$4 sm:$0xff]  }
 0x398   : > { %7562 = vmatpush2.bf16.msra.mxu1 %v20782_v45  ;;  %7308 = vmatprep.subr.bf16.mxu0 %v20787_v61  ;;  %v20867_v45 = vld [vmem:[#allocation2 + $0x5b4] ss:$8 sps:$4 sm:$0xff]  }
 0x399   : > { %7563 = vmatprep.subr.bf16.mxu1 %v20790_v36  ;;  %v20870_v61 = vld [vmem:[#allocation2 + $0x4b4] ss:$8 sps:$4 sm:$0xff]   ;;  %v20865_v36 = vld [vmem:[#allocation2 + $0x5b0] ss:$8 sps:$4 sm:$0xff]  }
 0x39b   : > { %7309 = vmatpush2.bf16.msra.mxu0 %v20785_v13  ;;  %v23160_v13 = vld [vmem:[%s22958_s8 + $0x48] sm:$0x11] }
 0x39c   : > { %7564 = vmatpush2.bf16.msra.mxu1 %v20788_v15  ;;  %7863 = vmatprep.subr.bf16.mxu0 %v20795_v16  ;;  %v18089_v15 = vcombine.low %v23155_v4, %v23150_v0  ;;  %v20871_v16 = vld [vmem:[#allocation2 + $0x5a0] ss:$8 sps:$4 sm:$0xff]   ;;  %v20880_v0 = vld [vmem:[#allocation2 + $0x490] ss:$8 sps:$4 sm:$0xff]  }
 0x39d   : > { %8068 = vmatprep.subr.bf16.mxu1 %v20798_v17  ;;  %v20874_v17 = vld [vmem:[#allocation2 + $0x4a0] ss:$8 sps:$4 sm:$0xff]  }
 0x39e   : > { %7311 = vmatmul.mubr.bf16.vlgmr.msra.gmra.mxu0 %v18013_v1  ;;  %v20855_v1 = vld [vmem:[#allocation2 + $0x5d4] ss:$8 sps:$4 sm:$0xff]  }
 0x39f   : > { %7566 = vmatmul.mubr.bf16.vlgmr.msra.gmra.mxu1 %v7363_v6  ;;  %7864 = vmatpush1.bf16.msra.mxu0 %v20793_v58  ;;  %v5823_v58 = vpop.f32.mrf.mxu0  ;;  %v23165_v6 = vld [vmem:[%s22958_s8 + $0x40] sm:$0xff] }
 0x3a0   : > { %8069 = vmatpush1.bf16.msra.mxu1 %v20796_v62  ;;  %7865 = vmatprep.subr.bf16.mxu0 %v20801_v14  ;;  %v6028_v62 = vpop.f32.mrf.mxu1  ;;  %v18158_v14 = vcombine.high %v23165_v6, %v23160_v13 }
 0x3a1   : > { %8070 = vmatprep.subr.bf16.mxu1 %v20804_v20  ;;  %7895 = vmatprep.mubr.bf16.mxu0 %v7700_v25  ;;  %v7690_v20 = vshll.u32 %v18089_v15, 16  ;;  %v5825_v4 = vpop.f32.mrf.mxu0  ;;  %v20885_v25 = vld [vmem:[#allocation2 + $0x584] ss:$8 sps:$4 sm:$0xff]  }
 0x3a2   : > { %8100 = vmatprep.mubr.bf16.mxu1 %v18090_v5  ;;  %v20864_v5 = vld [vmem:[#allocation2 + $0x4c4] ss:$8 sps:$4 sm:$0xff]  }
 0x3a3   : > { %7866 = vmatpush1.bf16.msra.mxu0 %v20799_v21  ;;  %v20877_v21 = vld [vmem:[#allocation2 + $0x590] ss:$8 sps:$4 sm:$0xff]  }
 0x3a4   : > { %8071 = vmatpush1.bf16.msra.mxu1 %v20802_v24  ;;  %7867 = vmatprep.subr.bf16.mxu0 %v20807_v28  ;;  %v6030_v24 = vpop.f32.mrf.mxu1  ;;  %v20888_v28 = vld [vmem:[#allocation2 + $0x484] ss:$8 sps:$4 sm:$0xff]  }
 0x3a5   : > { %8072 = vmatprep.subr.bf16.mxu1 %v20810_v29  ;;  %v8404_v29 = vshll.u32 %v18158_v14, 16 }
 0x3a7   : > { %7868 = vmatpush1.bf16.msra.mxu0 %v20805_v30  ;;  %v7688_v30 = vshrl.u32 %v18089_v15, 16 }
 0x3a8   : > { %8073 = vmatpush1.bf16.msra.mxu1 %v20808_v32  ;;  %7869 = vmatprep.subr.bf16.mxu0 %v20813_v34  ;;  %v7692_v32 = vrot.slane %v7690_v20, 1  ;;  %v20883_v34 = vld [vmem:[#allocation2 + $0x580] ss:$8 sps:$4 sm:$0xff]  }
 0x3a9   : > { %8074 = vmatprep.subr.bf16.mxu1 %v20816_v37  ;;  %v20886_v37 = vld [vmem:[#allocation2 + $0x480] ss:$8 sps:$4 sm:$0xff]  }
 0x3ab   : > { %7870 = vmatpush1.bf16.msra.mxu0 %v20811_v39  ;;  %v5827_v39 = vpop.f32.mrf.mxu0 }
 0x3ac   : > { %8075 = vmatpush1.bf16.msra.mxu1 %v20814_v41  ;;  %7871 = vmatprep.subr.bf16.mxu0 %v20819_v9  ;;  %v6032_v41 = vpop.f32.mrf.mxu1  ;;  %v20893_v9 = vld [vmem:[#allocation2 + $0x674] ss:$8 sps:$4 sm:$0xff]  }
 0x3ad   : > { %8076 = vmatprep.subr.bf16.mxu1 %v20822_v22  ;;  %v20896_v22 = vld [vmem:[#allocation2 + $0x774] ss:$8 sps:$4 sm:$0xff]  }
 0x3af   : > { %7872 = vmatpush1.bf16.msra.mxu0 %v20817_v23  ;;  %v20891_v23 = vld [vmem:[#allocation2 + $0x670] ss:$8 sps:$4 sm:$0xff]  }
 0x3b0   : > { %8077 = vmatpush1.bf16.msra.mxu1 %v20820_v10  ;;  %7873 = vmatprep.subr.bf16.mxu0 %v20825_v38  ;;  %v20894_v10 = vld [vmem:[#allocation2 + $0x770] ss:$8 sps:$4 sm:$0xff]   ;;  %v8402_v38 = vshrl.u32 %v18158_v14, 16 }
 0x3b1   : > { %8078 = vmatprep.subr.bf16.mxu1 %v20828_v42  ;;  %v8406_v42 = vrot.slane %v8404_v29, 1 }
 0x3b3   : > { %7874 = vmatpush1.bf16.msra.mxu0 %v20823_v44  ;;  %v7693_v44 = vor.u32 %v7692_v32, %v7688_v30  ;;  %v20923_v30 = vld [vmem:[#allocation2 + $0x624] ss:$8 sps:$4 sm:$0xff]  }
 0x3b4   : > { %8079 = vmatpush1.bf16.msra.mxu1 %v20826_v46  ;;  %7875 = vmatprep.subr.bf16.mxu0 %v20831_v47  ;;  %v5829_v46 = vpop.f32.mrf.mxu0  ;;  %v6034_v47 = vpop.f32.mrf.mxu1  ;;  %v20926_v32 = vld [vmem:[#allocation2 + $0x724] ss:$8 sps:$4 sm:$0xff]  }
 0x3b5   : > { %8080 = vmatprep.subr.bf16.mxu1 %v20834_v48  ;;  %v20899_v48 = vld [vmem:[#allocation2 + $0x664] ss:$8 sps:$4 sm:$0xff]  }
 0x3b7   : > { %7876 = vmatpush1.bf16.msra.mxu0 %v20829_v51  ;;  %v20902_v51 = vld [vmem:[#allocation2 + $0x764] ss:$8 sps:$4 sm:$0xff]  }
 0x3b8   : > { %8081 = vmatpush1.bf16.msra.mxu1 %v20832_v53  ;;  %7877 = vmatprep.subr.bf16.mxu0 %v20837_v54  ;;  %v6029_v53 = vadd.f32 %v6028_v62, %v5823_v58  ;;  %v20897_v54 = vld [vmem:[#allocation2 + $0x660] ss:$8 sps:$4 sm:$0xff]  }
 0x3b9   : > { %8082 = vmatprep.subr.bf16.mxu1 %v20840_v55  ;;  %v20900_v55 = vld [vmem:[#allocation2 + $0x760] ss:$8 sps:$4 sm:$0xff]  }
 0x3ba   : > { %v20909_v58 = vld [vmem:[#allocation2 + $0x640] ss:$8 sps:$4 sm:$0xff]  }
 0x3bb   : > { %7878 = vmatpush1.bf16.msra.mxu0 %v20835_v27  ;;  %v8407_v27 = vor.u32 %v8406_v42, %v8402_v38  ;;  %v20912_v62 = vld [vmem:[#allocation2 + $0x740] ss:$8 sps:$4 sm:$0xff]   ;;  %v20938_v38 = vld [vmem:[#allocation2 + $0x704] ss:$8 sps:$4 sm:$0xff]  }
 0x3bc   : > { %8083 = vmatpush1.bf16.msra.mxu1 %v20838_v31  ;;  %7879 = vmatprep.subr.bf16.mxu0 %v20843_v56 }
 0x3bd   : > { %8084 = vmatprep.subr.bf16.mxu1 %v20846_v57  ;;  %v6031_v57 = vadd.f32 %v6030_v24, %v5825_v4 }
 0x3bf   : > { %7880 = vmatpush2.bf16.msra.mxu0 %v20841_v43 }
 0x3c0   : > { %8085 = vmatpush2.bf16.msra.mxu1 %v20844_v52  ;;  %7881 = vmatprep.subr.bf16.mxu0 %v20849_v59 }
 0x3c1   : > { %8086 = vmatprep.subr.bf16.mxu1 %v20852_v60  ;;  %v20905_v60 = vld [vmem:[#allocation2 + $0x654] ss:$8 sps:$4 sm:$0xff]  }
 0x3c3   : > { %7882 = vmatpush2.bf16.msra.mxu0 %v20847_v40  ;;  %v20908_v40 = vld [vmem:[#allocation2 + $0x754] ss:$8 sps:$4 sm:$0xff]  }
 0x3c4   : > { %8087 = vmatpush2.bf16.msra.mxu1 %v20850_v63  ;;  %7883 = vmatprep.subr.bf16.mxu0 %v20855_v1  ;;  %v6033_v63 = vadd.f32 %v6032_v41, %v5827_v39  ;;  %v20929_v39 = vld [vmem:[#allocation2 + $0x614] ss:$8 sps:$4 sm:$0xff]  }
 0x3c5   : > { %8088 = vmatprep.subr.bf16.mxu1 %v20858_v2  ;;  %v20932_v41 = vld [vmem:[#allocation2 + $0x714] ss:$8 sps:$4 sm:$0xff]  }
 0x3c7   : > { %7884 = vmatpush2.bf16.msra.mxu0 %v20853_v49  ;;  %v20903_v49 = vld [vmem:[#allocation2 + $0x650] ss:$8 sps:$4 sm:$0xff]  }
 0x3c8   : > { %8089 = vmatpush2.bf16.msra.mxu1 %v20856_v50  ;;  %7885 = vmatprep.subr.bf16.mxu0 %v20861_v3  ;;  %v20906_v50 = vld [vmem:[#allocation2 + $0x750] ss:$8 sps:$4 sm:$0xff]   ;;  %v6035_v3 = vadd.f32 %v6034_v47, %v5829_v46  ;;  %v20936_v46 = vld [vmem:[#allocation2 + $0x700] ss:$8 sps:$4 sm:$0xff]  }
 0x3c9   : > { %8090 = vmatprep.subr.bf16.mxu1 %v20864_v5 }
 0x3cb   : > { %7886 = vmatpush2.bf16.msra.mxu0 %v20859_v7 }
 0x3cc   : > { %8091 = vmatpush2.bf16.msra.mxu1 %v20862_v8  ;;  %7887 = vmatprep.subr.bf16.mxu0 %v20867_v45 }
 0x3cd   : > { %8092 = vmatprep.subr.bf16.mxu1 %v20870_v61 }
 0x3cf   : > { %7888 = vmatpush2.bf16.msra.mxu0 %v20865_v36 }
 0x3d0   : > { %8093 = vmatpush2.bf16.msra.mxu1 %v20868_v26  ;;  %7889 = vmatprep.subr.bf16.mxu0 %v20873_v11  ;;  %v20911_v26 = vld [vmem:[#allocation2 + $0x644] ss:$8 sps:$4 sm:$0xff]  }
 0x3d1   : > { %8094 = vmatprep.subr.bf16.mxu1 %v20876_v12  ;;  %v20914_v11 = vld [vmem:[#allocation2 + $0x744] ss:$8 sps:$4 sm:$0xff]  }
 0x3d3   : > { %7890 = vmatpush2.bf16.msra.mxu0 %v20871_v16 }
 0x3d4   : > { %8095 = vmatpush2.bf16.msra.mxu1 %v20874_v17  ;;  %7891 = vmatprep.subr.bf16.mxu0 %v20879_v18 }
 0x3d5   : > { %8096 = vmatprep.subr.bf16.mxu1 %v20882_v19 }
 0x3d7   : > { %7892 = vmatpush2.bf16.msra.mxu0 %v20877_v21  ;;  %v20917_v21 = vld [vmem:[#allocation2 + $0x634] ss:$8 sps:$4 sm:$0xff]  }
 0x3d8   : > { %8097 = vmatpush2.bf16.msra.mxu1 %v20880_v0  ;;  %7893 = vmatprep.subr.bf16.mxu0 %v20885_v25  ;;  %v20920_v0 = vld [vmem:[#allocation2 + $0x734] ss:$8 sps:$4 sm:$0xff]   ;;  %v20915_v25 = vld [vmem:[#allocation2 + $0x630] ss:$8 sps:$4 sm:$0xff]  }
 0x3d9   : > { %8098 = vmatprep.subr.bf16.mxu1 %v20888_v28  ;;  %v20918_v28 = vld [vmem:[#allocation2 + $0x730] ss:$8 sps:$4 sm:$0xff]  }
 0x3db   : > { %7894 = vmatpush2.bf16.msra.mxu0 %v20883_v34  ;;  %v20921_v34 = vld [vmem:[#allocation2 + $0x620] ss:$8 sps:$4 sm:$0xff]  }
 0x3dc   : > { %8099 = vmatpush2.bf16.msra.mxu1 %v20886_v37  ;;  %8315 = vmatprep.subr.bf16.mxu0 %v20893_v9  ;;  %v20924_v37 = vld [vmem:[#allocation2 + $0x720] ss:$8 sps:$4 sm:$0xff]   ;;  %v20927_v9 = vld [vmem:[#allocation2 + $0x610] ss:$8 sps:$4 sm:$0xff]  }
 0x3dd   : > { %8570 = vmatprep.subr.bf16.mxu1 %v20896_v22  ;;  %v20930_v22 = vld [vmem:[#allocation2 + $0x710] ss:$8 sps:$4 sm:$0xff]  }
 0x3de   : > { %v6275_v31 = vpop.f32.mrf.mxu0  ;;  %7896 = vmatmul.mubr.bf16.vlgmr.msra.gmra.mxu0 %v7693_v44  ;;  %v20933_v44 = vld [vmem:[#allocation2 + $0x600] ss:$8 sps:$4 sm:$0xff]  }
 0x3df   : > { %v6530_v56 = vpop.f32.mrf.mxu1  ;;  %8101 = vmatmul.mubr.bf16.vlgmr.msra.gmra.mxu1 %v18089_v15  ;;  %v6284_v43 = vadd.f32 %v6275_v31, %v6029_v53  ;;  %8316 = vmatpush1.bf16.msra.mxu0 %v20891_v23  ;;  %v20941_v53 = vld [vmem:[#allocation2 + $0x6f4] ss:$8 sps:$4 sm:$0xff]   ;;  %v20942_v31 = vld [vmem:[#allocation2 + $0x7f0] ss:$8 sps:$4 sm:$0xff]  }
 0x3e0   : > { %8571 = vmatpush1.bf16.msra.mxu1 %v20894_v10  ;;  %v6277_v52 = vpop.f32.mrf.mxu0  ;;  %8317 = vmatprep.subr.bf16.mxu0 %v20899_v48  ;;  %v20935_v10 = vld [vmem:[#allocation2 + $0x604] ss:$8 sps:$4 sm:$0xff]  }
 0x3e1   : > { %v6532_v59 = vpop.f32.mrf.mxu1  ;;  %8572 = vmatprep.subr.bf16.mxu1 %v20902_v51  ;;  %v6539_v1 = vadd.f32 %v6530_v56, %v6284_v43  ;;  %v6285_v2 = vadd.f32 %v6277_v52, %v6031_v57  ;;  %8347 = vmatprep.mubr.bf16.mxu0 %v18158_v14  ;;  %v20947_v43 = vld [vmem:[#allocation2 + $0x6e4] ss:$8 sps:$4 sm:$0xff]  }
 0x3e2   : > { %8602 = vmatprep.mubr.bf16.mxu1 %v8407_v27  ;;  %v6279_v5 = vpop.f32.mrf.mxu0  ;;  %v20939_v27 = vld [vmem:[#allocation2 + $0x6f0] ss:$8 sps:$4 sm:$0xff]   ;;  %v20950_v52 = vld [vmem:[#allocation2 + $0x7e4] ss:$8 sps:$4 sm:$0xff]  }
 0x3e3   : > { %v6534_v7 = vpop.f32.mrf.mxu1  ;;  %v6543_v8 = vadd.f32 %v6539_v1, %v23015_v33  ;;  %v6540_v45 = vadd.f32 %v6532_v59, %v6285_v2  ;;  %v6286_v61 = vadd.f32 %v6279_v5, %v6033_v63  ;;  %8318 = vmatpush1.bf16.msra.mxu0 %v20897_v54  ;;  %v20944_v54 = vld [vmem:[#allocation2 + $0x7f4] ss:$8 sps:$4 sm:$0xff]   ;;  %v20945_v59 = vld [vmem:[#allocation2 + $0x6e0] ss:$8 sps:$4 sm:$0xff]   ;;  %v20951_v1 = vld [vmem:[#allocation2 + $0x6d0] ss:$8 sps:$4 sm:$0xff]  }
 0x3e4   : > { %8573 = vmatpush1.bf16.msra.mxu1 %v20900_v55  ;;  %v6281_v36 = vpop.f32.mrf.mxu0  ;;  %8319 = vmatprep.subr.bf16.mxu0 %v20905_v60  ;;  %v20948_v60 = vld [vmem:[#allocation2 + $0x7e0] ss:$8 sps:$4 sm:$0xff]   ;;  %v20956_v63 = vld [vmem:[#allocation2 + $0x7d4] ss:$8 sps:$4 sm:$0xff]   ;;  %v20954_v2 = vld [vmem:[#allocation2 + $0x7d0] ss:$8 sps:$4 sm:$0xff]  }
 0x3e5   : > { %8574 = vmatprep.subr.bf16.mxu1 %v20908_v40  ;;  %v17935_v12 = vmul.f32 -1.442695, %v6543_v8  ;;  %v6544_v15 = vadd.f32 %v6540_v45, %v23017_v35  ;;  %v6541_v16 = vadd.f32 %v6534_v7, %v6286_v61  ;;  %v6287_v17 = vadd.f32 %v6281_v36, %v6035_v3  ;;  %v6536_v18 = vpop.f32.mrf.mxu1  ;;  %v20953_v40 = vld [vmem:[#allocation2 + $0x6d4] ss:$8 sps:$4 sm:$0xff]   ;;  %v20962_v3 = vld [vmem:[#allocation2 + $0x7c4] ss:$8 sps:$4 sm:$0xff]  }
 0x3e6   : > { %v20957_v5 = vld [vmem:[#allocation2 + $0x6c0] ss:$8 sps:$4 sm:$0xff]   ;;  %v20965_v61 = vld [vmem:[#allocation2 + $0x6b4] ss:$8 sps:$4 sm:$0xff]  }
 0x3e7   : > { %22637 = vpow2.f32 %v17935_v12  ;;  %v17936_v19 = vmul.f32 -1.442695, %v6544_v15  ;;  %v6545_v14 = vadd.f32 %v6541_v16, %v23015_v33  ;;  %v6542_v20 = vadd.f32 %v6536_v18, %v6287_v17  ;;  %8320 = vmatpush1.bf16.msra.mxu0 %v20903_v49  ;;  %v20960_v7 = vld [vmem:[#allocation2 + $0x7c0] ss:$8 sps:$4 sm:$0xff]   ;;  %v20968_v36 = vld [vmem:[#allocation2 + $0x7b4] ss:$8 sps:$4 sm:$0xff]  }
 0x3e8   : > { %8575 = vmatpush1.bf16.msra.mxu1 %v20906_v50  ;;  %8321 = vmatprep.subr.bf16.mxu0 %v20911_v26  ;;  %v20959_v50 = vld [vmem:[#allocation2 + $0x6c4] ss:$8 sps:$4 sm:$0xff]   ;;  %v20963_v26 = vld [vmem:[#allocation2 + $0x6b0] ss:$8 sps:$4 sm:$0xff]   ;;  %v20969_v18 = vld [vmem:[#allocation2 + $0x6a0] ss:$8 sps:$4 sm:$0xff]  }
 0x3e9   : > { %8576 = vmatprep.subr.bf16.mxu1 %v20914_v11  ;;  %22639 = vpow2.f32 %v17936_v19  ;;  %v17937_v4 = vmul.f32 -1.442695, %v6545_v14  ;;  %v6546_v24 = vadd.f32 %v6542_v20, %v23017_v35  ;;  %v20966_v11 = vld [vmem:[#allocation2 + $0x7b0] ss:$8 sps:$4 sm:$0xff]   ;;  %v20971_v15 = vld [vmem:[#allocation2 + $0x6a4] ss:$8 sps:$4 sm:$0xff]  }
 0x3ea   : > { %v20974_v16 = vld [vmem:[#allocation2 + $0x7a4] ss:$8 sps:$4 sm:$0xff]   ;;  %v20972_v19 = vld [vmem:[#allocation2 + $0x7a0] ss:$8 sps:$4 sm:$0xff]   ;;  %v20977_v14 = vld [vmem:[#allocation2 + $0x694] ss:$8 sps:$4 sm:$0xff]  }
 0x3eb   : > { %22641 = vpow2.f32 %v17937_v4  ;;  %v17938_v29 = vmul.f32 -1.442695, %v6546_v24  ;;  %8322 = vmatpush1.bf16.msra.mxu0 %v20909_v58  ;;  %v23178_v17 = vld [vmem:[%s22958_s8 + $0x40] sm:$0xff]  ;;  %v23181_v58 = vld [vmem:[%s22958_s8 + $0x48] sm:$0x11] }
 0x3ec   : > { %8577 = vmatpush1.bf16.msra.mxu1 %v20912_v62  ;;  %8323 = vmatprep.subr.bf16.mxu0 %v20917_v21  ;;  %v18157_v62 = vcombine.low %v23165_v6, %v23160_v13  ;;  %v20980_v20 = vld [vmem:[#allocation2 + $0x794] ss:$8 sps:$4 sm:$0xff]   ;;  %v18234_v21 = vcombine.high %v23178_v17, %v23181_v58  ;;  %v20975_v4 = vld [vmem:[#allocation2 + $0x690] ss:$8 sps:$4 sm:$0xff]   ;;  %v20986_v13 = vld [vmem:[#allocation2 + $0x784] ss:$8 sps:$4 sm:$0xff]  }
 0x3ed   : > { %8578 = vmatprep.subr.bf16.mxu1 %v20920_v0  ;;  %22643 = vpow2.f32 %v17938_v29  ;;  %v20978_v24 = vld [vmem:[#allocation2 + $0x790] ss:$8 sps:$4 sm:$0xff]  }
 0x3ee   : > { %v8397_v0 = vshll.u32 %v18157_v62, 16  ;;  %v8733_v6 = vshll.u32 %v18234_v21, 16 }
 0x3ef   : > { %8324 = vmatpush1.bf16.msra.mxu0 %v20915_v25  ;;  %v20983_v25 = vld [vmem:[#allocation2 + $0x684] ss:$8 sps:$4 sm:$0xff]  }
 0x3f0   : > { %8579 = vmatpush1.bf16.msra.mxu1 %v20918_v28  ;;  %8325 = vmatprep.subr.bf16.mxu0 %v20923_v30  ;;  %v8395_v28 = vshrl.u32 %v18157_v62, 16  ;;  %v8399_v29 = vrot.slane %v8397_v0, 1  ;;  %v20981_v30 = vld [vmem:[#allocation2 + $0x680] ss:$8 sps:$4 sm:$0xff]  }
 0x3f1   : > { %8580 = vmatprep.subr.bf16.mxu1 %v20926_v32  ;;  %v20984_v32 = vld [vmem:[#allocation2 + $0x780] ss:$8 sps:$4 sm:$0xff]  }
 0x3f2   : > { %v21055_v0 = vld [vmem:[#allocation2 + $0x1c0] ss:$8 sps:$4 sm:$0xff]  }
 0x3f3   : > { %8326 = vmatpush1.bf16.msra.mxu0 %v20921_v34  ;;  %v20991_v34 = vld [vmem:[#allocation2 + $0x174] ss:$8 sps:$4 sm:$0xff]  }
 0x3f4   : > { %8581 = vmatpush1.bf16.msra.mxu1 %v20924_v37  ;;  %v22638_v23 = vpop.eup %22637  ;;  %8327 = vmatprep.subr.bf16.mxu0 %v20929_v39  ;;  %v20994_v37 = vld [vmem:[#allocation2 + $0x74] ss:$8 sps:$4 sm:$0xff]   ;;  %v20989_v39 = vld [vmem:[#allocation2 + $0x170] ss:$8 sps:$4 sm:$0xff]  }
 0x3f5   : > { %8582 = vmatprep.subr.bf16.mxu1 %v20932_v41  ;;  %v6559_v42 = vadd.f32 1.0, %v22638_v23  ;;  %v20992_v41 = vld [vmem:[#allocation2 + $0x70] ss:$8 sps:$4 sm:$0xff]   ;;  %v8400_v23 = vor.u32 %v8399_v29, %v8395_v28  ;;  %v21069_v28 = vld [vmem:[#allocation2 + $0x1a4] ss:$8 sps:$4 sm:$0xff]  }
 0x3f6   : > { %v22640_v47 = vpop.eup %22639  ;;  %v21072_v29 = vld [vmem:[#allocation2 + $0xa4] ss:$8 sps:$4 sm:$0xff]  }
 0x3f7   : > { %22645 = vrcp.f32 %v6559_v42  ;;  %v6560_v48 = vadd.f32 1.0, %v22640_v47  ;;  %8328 = vmatpush1.bf16.msra.mxu0 %v20927_v9  ;;  %v8731_v9 = vshrl.u32 %v18234_v21, 16  ;;  %v20995_v42 = vld [vmem:[#allocation2 + $0x160] ss:$8 sps:$4 sm:$0xff]   ;;  %v21003_v47 = vld [vmem:[#allocation2 + $0x154] ss:$8 sps:$4 sm:$0xff]  }
 0x3f8   : > { %8583 = vmatpush1.bf16.msra.mxu1 %v20930_v22  ;;  %v22642_v51 = vpop.eup %22641  ;;  %8329 = vmatprep.subr.bf16.mxu0 %v20935_v10  ;;  %v8735_v22 = vrot.slane %v8733_v6, 1  ;;  %v20997_v10 = vld [vmem:[#allocation2 + $0x164] ss:$8 sps:$4 sm:$0xff]   ;;  %v21064_v6 = vld [vmem:[#allocation2 + $0xb0] ss:$8 sps:$4 sm:$0xff]  }
 0x3f9   : > { %8584 = vmatprep.subr.bf16.mxu1 %v20938_v38  ;;  %22647 = vrcp.f32 %v6560_v48  ;;  %v6561_v55 = vadd.f32 1.0, %v22642_v51  ;;  %v21000_v38 = vld [vmem:[#allocation2 + $0x64] ss:$8 sps:$4 sm:$0xff]   ;;  %v21006_v48 = vld [vmem:[#allocation2 + $0x54] ss:$8 sps:$4 sm:$0xff]  }
 0x3fa   : > { %v22644_v56 = vpop.eup %22643  ;;  %v21001_v51 = vld [vmem:[#allocation2 + $0x150] ss:$8 sps:$4 sm:$0xff]  }
 0x3fb   : > { %22649 = vrcp.f32 %v6561_v55  ;;  %v6562_v57 = vadd.f32 1.0, %v22644_v56  ;;  %8330 = vmatpush1.bf16.msra.mxu0 %v20933_v44  ;;  %v20998_v44 = vld [vmem:[#allocation2 + $0x60] ss:$8 sps:$4 sm:$0xff]   ;;  %v21012_v55 = vld [vmem:[#allocation2 + $0x44] ss:$8 sps:$4 sm:$0xff]  }
 0x3fc   : > { %8585 = vmatpush1.bf16.msra.mxu1 %v20936_v46  ;;  %8331 = vmatprep.subr.bf16.mxu0 %v20941_v53  ;;  %v8736_v46 = vor.u32 %v8735_v22, %v8731_v9  ;;  %v21004_v53 = vld [vmem:[#allocation2 + $0x50] ss:$8 sps:$4 sm:$0xff]   ;;  %v21015_v56 = vld [vmem:[#allocation2 + $0x134] ss:$8 sps:$4 sm:$0xff]  }
 0x3fd   : > { %8586 = vmatprep.subr.bf16.mxu1 %v20944_v54  ;;  %22651 = vrcp.f32 %v6562_v57  ;;  %v21009_v54 = vld [vmem:[#allocation2 + $0x144] ss:$8 sps:$4 sm:$0xff]   ;;  %v21018_v57 = vld [vmem:[#allocation2 + $0x34] ss:$8 sps:$4 sm:$0xff]  }
 0x3fe   : > { %v21075_v22 = vld [vmem:[#allocation2 + $0x194] ss:$8 sps:$4 sm:$0xff]  }
 0x3ff   : > { %8332 = vmatpush2.bf16.msra.mxu0 %v20939_v27  ;;  %v21007_v27 = vld [vmem:[#allocation2 + $0x140] ss:$8 sps:$4 sm:$0xff]  }
 0x400   : > { %8587 = vmatpush2.bf16.msra.mxu1 %v20942_v31  ;;  %8333 = vmatprep.subr.bf16.mxu0 %v20947_v43  ;;  %v21010_v31 = vld [vmem:[#allocation2 + $0x40] ss:$8 sps:$4 sm:$0xff]   ;;  %v21013_v43 = vld [vmem:[#allocation2 + $0x130] ss:$8 sps:$4 sm:$0xff]  }
 0x401   : > { %8588 = vmatprep.subr.bf16.mxu1 %v20950_v52  ;;  %v21016_v52 = vld [vmem:[#allocation2 + $0x30] ss:$8 sps:$4 sm:$0xff]  }
 0x403   : > { %8334 = vmatpush2.bf16.msra.mxu0 %v20945_v59  ;;  %v21021_v59 = vld [vmem:[#allocation2 + $0x124] ss:$8 sps:$4 sm:$0xff]  }
 0x404   : > { %8589 = vmatpush2.bf16.msra.mxu1 %v20948_v60  ;;  %v22646_v49 = vpop.eup %22645  ;;  %8335 = vmatprep.subr.bf16.mxu0 %v20953_v40  ;;  %v21024_v60 = vld [vmem:[#allocation2 + $0x24] ss:$8 sps:$4 sm:$0xff]   ;;  %v21019_v40 = vld [vmem:[#allocation2 + $0x120] ss:$8 sps:$4 sm:$0xff]  }
 0x405   : > { %8590 = vmatprep.subr.bf16.mxu1 %v20956_v63  ;;  %17939 = vst [vmem:[%s23031_s15 + $0x90] sm:$0xff] %v22646_v49  ;;  %v21022_v63 = vld [vmem:[#allocation2 + $0x20] ss:$8 sps:$4 sm:$0xff]   ;;  %v21025_v49 = vld [vmem:[#allocation2 + $0x110] ss:$8 sps:$4 sm:$0xff]  }
 0x406   : > { %v22648_v8 = vpop.eup %22647 }
 0x407   : > { %17940 = vst [vmem:[%s23031_s15 + $0x98] sm:$0xff] %v22648_v8  ;;  %8336 = vmatpush2.bf16.msra.mxu0 %v20951_v1  ;;  %v21027_v1 = vld [vmem:[#allocation2 + $0x114] ss:$8 sps:$4 sm:$0xff]   ;;  %v21034_v8 = vld [vmem:[#allocation2] ss:$8 sps:$4 sm:$0xff]  }
 0x408   : > { %8591 = vmatpush2.bf16.msra.mxu1 %v20954_v2  ;;  %v22650_v45 = vpop.eup %22649  ;;  %8337 = vmatprep.subr.bf16.mxu0 %v20959_v50  ;;  %v21030_v2 = vld [vmem:[#allocation2 + $0x14] ss:$8 sps:$4 sm:$0xff]   ;;  %v21028_v50 = vld [vmem:[#allocation2 + $0x10] ss:$8 sps:$4 sm:$0xff]  }
 0x409   : > { %8592 = vmatprep.subr.bf16.mxu1 %v20962_v3  ;;  %17941 = vst [vmem:[%s23031_s15 + $0xb0] sm:$0x1] %v22650_v45  ;;  %v21033_v3 = vld [vmem:[#allocation2 + $0x104] ss:$8 sps:$4 sm:$0xff]   ;;  %v21039_v45 = vld [vmem:[#allocation2 + $0x1f4] ss:$8 sps:$4 sm:$0xff]  }
 0x40a   : > { %v22652_v12 = vpop.eup %22651 }
 0x40b   : > { %17942 = vst [vmem:[%s23031_s15 + $0xb8] sm:$0x1] %v22652_v12  ;;  %8338 = vmatpush2.bf16.msra.mxu0 %v20957_v5  ;;  %v21036_v5 = vld [vmem:[#allocation2 + $0x4] ss:$8 sps:$4 sm:$0xff]  }
 0x40c   : > { %8593 = vmatpush2.bf16.msra.mxu1 %v20960_v7  ;;  %8339 = vmatprep.subr.bf16.mxu0 %v20965_v61  ;;  %v21031_v7 = vld [vmem:[#allocation2 + $0x100] ss:$8 sps:$4 sm:$0xff]   ;;  %v21042_v61 = vld [vmem:[#allocation2 + $0xf4] ss:$8 sps:$4 sm:$0xff]   ;;  %v21048_v12 = vld [vmem:[#allocation2 + $0xe4] ss:$8 sps:$4 sm:$0xff]  }
 0x40d   : > { %8594 = vmatprep.subr.bf16.mxu1 %v20968_v36  ;;  %v21037_v36 = vld [vmem:[#allocation2 + $0x1f0] ss:$8 sps:$4 sm:$0xff]  }
 0x40f   : > { %8340 = vmatpush2.bf16.msra.mxu0 %v20963_v26  ;;  %v21040_v26 = vld [vmem:[#allocation2 + $0xf0] ss:$8 sps:$4 sm:$0xff]  }
 0x410   : > { %8595 = vmatpush2.bf16.msra.mxu1 %v20966_v11  ;;  %8341 = vmatprep.subr.bf16.mxu0 %v20971_v15  ;;  %v21045_v11 = vld [vmem:[#allocation2 + $0x1e4] ss:$8 sps:$4 sm:$0xff]   ;;  %v21043_v15 = vld [vmem:[#allocation2 + $0x1e0] ss:$8 sps:$4 sm:$0xff]  }
 0x411   : > { %8596 = vmatprep.subr.bf16.mxu1 %v20974_v16  ;;  %v21046_v16 = vld [vmem:[#allocation2 + $0xe0] ss:$8 sps:$4 sm:$0xff]  }
 0x413   : > { %8342 = vmatpush2.bf16.msra.mxu0 %v20969_v18  ;;  %v21054_v18 = vld [vmem:[#allocation2 + $0xd4] ss:$8 sps:$4 sm:$0xff]  }
 0x414   : > { %8597 = vmatpush2.bf16.msra.mxu1 %v20972_v19  ;;  %8343 = vmatprep.subr.bf16.mxu0 %v20977_v14  ;;  %v21049_v19 = vld [vmem:[#allocation2 + $0x1d0] ss:$8 sps:$4 sm:$0xff]  }
 0x415   : > { %8598 = vmatprep.subr.bf16.mxu1 %v20980_v20  ;;  %v21052_v14 = vld [vmem:[#allocation2 + $0xd0] ss:$8 sps:$4 sm:$0xff]   ;;  %v21057_v20 = vld [vmem:[#allocation2 + $0x1c4] ss:$8 sps:$4 sm:$0xff]  }
 0x417   : > { %8344 = vmatpush2.bf16.msra.mxu0 %v20975_v4  ;;  %v21058_v4 = vld [vmem:[#allocation2 + $0xc0] ss:$8 sps:$4 sm:$0xff]  }
 0x418   : > { %8599 = vmatpush2.bf16.msra.mxu1 %v20978_v24  ;;  %8345 = vmatprep.subr.bf16.mxu0 %v20983_v25  ;;  %v21063_v24 = vld [vmem:[#allocation2 + $0x1b4] ss:$8 sps:$4 sm:$0xff]  }
 0x419   : > { %8600 = vmatprep.subr.bf16.mxu1 %v20986_v13  ;;  %v21066_v25 = vld [vmem:[#allocation2 + $0xb4] ss:$8 sps:$4 sm:$0xff]   ;;  %v21061_v13 = vld [vmem:[#allocation2 + $0x1b0] ss:$8 sps:$4 sm:$0xff]  }
 0x41b   : > { %8346 = vmatpush2.bf16.msra.mxu0 %v20981_v30  ;;  %v23188_v30 = vld [vmem:[%s22958_s8 + $0x50] sm:$0xff] }
 0x41c   : > { %8601 = vmatpush2.bf16.msra.mxu1 %v20984_v32  ;;  %8899 = vmatprep.subr.bf16.mxu0 %v20991_v34  ;;  %v23191_v32 = vld [vmem:[%s22958_s8 + $0x58] sm:$0x11]  ;;  %v18233_v34 = vcombine.low %v23178_v17, %v23181_v58  ;;  %v21081_v58 = vld [vmem:[#allocation2 + $0x184] ss:$8 sps:$4 sm:$0xff]  }
 0x41d   : > { %9104 = vmatprep.subr.bf16.mxu1 %v20994_v37  ;;  %v21067_v37 = vld [vmem:[#allocation2 + $0x1a0] ss:$8 sps:$4 sm:$0xff]  }
 0x41e   : > { %8348 = vmatmul.mubr.bf16.vlgmr.msra.gmra.mxu0 %v18157_v62  ;;  %v21051_v62 = vld [vmem:[#allocation2 + $0x1d4] ss:$8 sps:$4 sm:$0xff]  }
 0x41f   : > { %8603 = vmatmul.mubr.bf16.vlgmr.msra.gmra.mxu1 %v8400_v23  ;;  %8900 = vmatpush1.bf16.msra.mxu0 %v20989_v39  ;;  %v21070_v39 = vld [vmem:[#allocation2 + $0xa0] ss:$8 sps:$4 sm:$0xff]   ;;  %v7064_v9 = vpop.f32.mrf.mxu1  ;;  %v21078_v23 = vld [vmem:[#allocation2 + $0x94] ss:$8 sps:$4 sm:$0xff]  }
 0x420   : > { %9105 = vmatpush1.bf16.msra.mxu1 %v20992_v41  ;;  %8901 = vmatprep.subr.bf16.mxu0 %v20997_v10  ;;  %v6859_v41 = vpop.f32.mrf.mxu0  ;;  %v18302_v10 = vcombine.high %v23188_v30, %v23191_v32 }
 0x421   : > { %9106 = vmatprep.subr.bf16.mxu1 %v21000_v38  ;;  %8931 = vmatprep.mubr.bf16.mxu0 %v8736_v46  ;;  %v8726_v38 = vshll.u32 %v18233_v34, 16  ;;  %v7066_v17 = vpop.f32.mrf.mxu1 }
 0x422   : > { %9136 = vmatprep.mubr.bf16.mxu1 %v18234_v21  ;;  %v21060_v21 = vld [vmem:[#allocation2 + $0xc4] ss:$8 sps:$4 sm:$0xff]   ;;  %v6861_v46 = vpop.f32.mrf.mxu0 }
 0x423   : > { %8902 = vmatpush1.bf16.msra.mxu0 %v20995_v42  ;;  %v21073_v42 = vld [vmem:[#allocation2 + $0x190] ss:$8 sps:$4 sm:$0xff]  }
 0x424   : > { %9107 = vmatpush1.bf16.msra.mxu1 %v20998_v44  ;;  %8903 = vmatprep.subr.bf16.mxu0 %v21003_v47  ;;  %v21076_v44 = vld [vmem:[#allocation2 + $0x90] ss:$8 sps:$4 sm:$0xff]   ;;  %v21084_v47 = vld [vmem:[#allocation2 + $0x84] ss:$8 sps:$4 sm:$0xff]  }
 0x425   : > { %9108 = vmatprep.subr.bf16.mxu1 %v21006_v48  ;;  %v9441_v48 = vshll.u32 %v18302_v10, 16 }
 0x427   : > { %8904 = vmatpush1.bf16.msra.mxu0 %v21001_v51  ;;  %v8724_v51 = vshrl.u32 %v18233_v34, 16 }
 0x428   : > { %9109 = vmatpush1.bf16.msra.mxu1 %v21004_v53  ;;  %8905 = vmatprep.subr.bf16.mxu0 %v21009_v54  ;;  %v8728_v53 = vrot.slane %v8726_v38, 1  ;;  %v21079_v54 = vld [vmem:[#allocation2 + $0x180] ss:$8 sps:$4 sm:$0xff]  }
 0x429   : > { %9110 = vmatprep.subr.bf16.mxu1 %v21012_v55  ;;  %v21082_v55 = vld [vmem:[#allocation2 + $0x80] ss:$8 sps:$4 sm:$0xff]  }
 0x42b   : > { %8906 = vmatpush1.bf16.msra.mxu0 %v21007_v27  ;;  %v6863_v27 = vpop.f32.mrf.mxu0 }
 0x42c   : > { %9111 = vmatpush1.bf16.msra.mxu1 %v21010_v31  ;;  %8907 = vmatprep.subr.bf16.mxu0 %v21015_v56  ;;  %v7068_v31 = vpop.f32.mrf.mxu1  ;;  %v21089_v56 = vld [vmem:[#allocation2 + $0x274] ss:$8 sps:$4 sm:$0xff]  }
 0x42d   : > { %9112 = vmatprep.subr.bf16.mxu1 %v21018_v57  ;;  %v21092_v57 = vld [vmem:[#allocation2 + $0x374] ss:$8 sps:$4 sm:$0xff]  }
 0x42f   : > { %8908 = vmatpush1.bf16.msra.mxu0 %v21013_v43  ;;  %v21087_v43 = vld [vmem:[#allocation2 + $0x270] ss:$8 sps:$4 sm:$0xff]  }
 0x430   : > { %9113 = vmatpush1.bf16.msra.mxu1 %v21016_v52  ;;  %8909 = vmatprep.subr.bf16.mxu0 %v21021_v59  ;;  %v21090_v52 = vld [vmem:[#allocation2 + $0x370] ss:$8 sps:$4 sm:$0xff]   ;;  %v9439_v59 = vshrl.u32 %v18302_v10, 16 }
 0x431   : > { %9114 = vmatprep.subr.bf16.mxu1 %v21024_v60  ;;  %v9443_v60 = vrot.slane %v9441_v48, 1 }
 0x433   : > { %8910 = vmatpush1.bf16.msra.mxu0 %v21019_v40  ;;  %v8729_v40 = vor.u32 %v8728_v53, %v8724_v51  ;;  %v21119_v51 = vld [vmem:[#allocation2 + $0x224] ss:$8 sps:$4 sm:$0xff]  }
 0x434   : > { %9115 = vmatpush1.bf16.msra.mxu1 %v21022_v63  ;;  %8911 = vmatprep.subr.bf16.mxu0 %v21027_v1  ;;  %v6865_v63 = vpop.f32.mrf.mxu0  ;;  %v7070_v1 = vpop.f32.mrf.mxu1  ;;  %v21122_v53 = vld [vmem:[#allocation2 + $0x324] ss:$8 sps:$4 sm:$0xff]  }
 0x435   : > { %9116 = vmatprep.subr.bf16.mxu1 %v21030_v2  ;;  %v21095_v2 = vld [vmem:[#allocation2 + $0x264] ss:$8 sps:$4 sm:$0xff]  }
 0x437   : > { %8912 = vmatpush1.bf16.msra.mxu0 %v21025_v49  ;;  %v21098_v49 = vld [vmem:[#allocation2 + $0x364] ss:$8 sps:$4 sm:$0xff]  }
 0x438   : > { %9117 = vmatpush1.bf16.msra.mxu1 %v21028_v50  ;;  %8913 = vmatprep.subr.bf16.mxu0 %v21033_v3  ;;  %v7065_v50 = vadd.f32 %v7064_v9, %v6859_v41  ;;  %v21093_v3 = vld [vmem:[#allocation2 + $0x260] ss:$8 sps:$4 sm:$0xff]  }
 0x439   : > { %9118 = vmatprep.subr.bf16.mxu1 %v21036_v5  ;;  %v21096_v5 = vld [vmem:[#allocation2 + $0x360] ss:$8 sps:$4 sm:$0xff]  }
 0x43a   : > { %v21105_v41 = vld [vmem:[#allocation2 + $0x240] ss:$8 sps:$4 sm:$0xff]  }
 0x43b   : > { %8914 = vmatpush1.bf16.msra.mxu0 %v21031_v7  ;;  %v9444_v7 = vor.u32 %v9443_v60, %v9439_v59  ;;  %v21108_v9 = vld [vmem:[#allocation2 + $0x340] ss:$8 sps:$4 sm:$0xff]   ;;  %v21134_v59 = vld [vmem:[#allocation2 + $0x304] ss:$8 sps:$4 sm:$0xff]  }
 0x43c   : > { %9119 = vmatpush1.bf16.msra.mxu1 %v21034_v8  ;;  %8915 = vmatprep.subr.bf16.mxu0 %v21039_v45 }
 0x43d   : > { %9120 = vmatprep.subr.bf16.mxu1 %v21042_v61  ;;  %v7067_v61 = vadd.f32 %v7066_v17, %v6861_v46 }
 0x43f   : > { %8916 = vmatpush2.bf16.msra.mxu0 %v21037_v36 }
 0x440   : > { %9121 = vmatpush2.bf16.msra.mxu1 %v21040_v26  ;;  %8917 = vmatprep.subr.bf16.mxu0 %v21045_v11 }
 0x441   : > { %9122 = vmatprep.subr.bf16.mxu1 %v21048_v12  ;;  %v21101_v12 = vld [vmem:[#allocation2 + $0x254] ss:$8 sps:$4 sm:$0xff]  }
 0x443   : > { %8918 = vmatpush2.bf16.msra.mxu0 %v21043_v15  ;;  %v21104_v15 = vld [vmem:[#allocation2 + $0x354] ss:$8 sps:$4 sm:$0xff]  }
 0x444   : > { %9123 = vmatpush2.bf16.msra.mxu1 %v21046_v16  ;;  %8919 = vmatprep.subr.bf16.mxu0 %v21051_v62  ;;  %v7069_v16 = vadd.f32 %v7068_v31, %v6863_v27  ;;  %v21125_v27 = vld [vmem:[#allocation2 + $0x214] ss:$8 sps:$4 sm:$0xff]  }
 0x445   : > { %9124 = vmatprep.subr.bf16.mxu1 %v21054_v18  ;;  %v21128_v31 = vld [vmem:[#allocation2 + $0x314] ss:$8 sps:$4 sm:$0xff]  }
 0x447   : > { %8920 = vmatpush2.bf16.msra.mxu0 %v21049_v19  ;;  %v21099_v19 = vld [vmem:[#allocation2 + $0x250] ss:$8 sps:$4 sm:$0xff]  }
 0x448   : > { %9125 = vmatpush2.bf16.msra.mxu1 %v21052_v14  ;;  %8921 = vmatprep.subr.bf16.mxu0 %v21057_v20  ;;  %v21102_v14 = vld [vmem:[#allocation2 + $0x350] ss:$8 sps:$4 sm:$0xff]   ;;  %v7071_v20 = vadd.f32 %v7070_v1, %v6865_v63  ;;  %v21132_v63 = vld [vmem:[#allocation2 + $0x300] ss:$8 sps:$4 sm:$0xff]  }
 0x449   : > { %9126 = vmatprep.subr.bf16.mxu1 %v21060_v21 }
 0x44b   : > { %8922 = vmatpush2.bf16.msra.mxu0 %v21055_v0 }
 0x44c   : > { %9127 = vmatpush2.bf16.msra.mxu1 %v21058_v4  ;;  %8923 = vmatprep.subr.bf16.mxu0 %v21063_v24 }
 0x44d   : > { %9128 = vmatprep.subr.bf16.mxu1 %v21066_v25 }
 0x44f   : > { %8924 = vmatpush2.bf16.msra.mxu0 %v21061_v13 }
 0x450   : > { %9129 = vmatpush2.bf16.msra.mxu1 %v21064_v6  ;;  %8925 = vmatprep.subr.bf16.mxu0 %v21069_v28  ;;  %v21107_v6 = vld [vmem:[#allocation2 + $0x244] ss:$8 sps:$4 sm:$0xff]  }
 0x451   : > { %9130 = vmatprep.subr.bf16.mxu1 %v21072_v29  ;;  %v21110_v28 = vld [vmem:[#allocation2 + $0x344] ss:$8 sps:$4 sm:$0xff]  }
 0x453   : > { %8926 = vmatpush2.bf16.msra.mxu0 %v21067_v37 }
 0x454   : > { %9131 = vmatpush2.bf16.msra.mxu1 %v21070_v39  ;;  %8927 = vmatprep.subr.bf16.mxu0 %v21075_v22 }
 0x455   : > { %9132 = vmatprep.subr.bf16.mxu1 %v21078_v23 }
 0x457   : > { %8928 = vmatpush2.bf16.msra.mxu0 %v21073_v42  ;;  %v21113_v42 = vld [vmem:[#allocation2 + $0x234] ss:$8 sps:$4 sm:$0xff]  }
 0x458   : > { %9133 = vmatpush2.bf16.msra.mxu1 %v21076_v44  ;;  %8929 = vmatprep.subr.bf16.mxu0 %v21081_v58  ;;  %v21116_v44 = vld [vmem:[#allocation2 + $0x334] ss:$8 sps:$4 sm:$0xff]   ;;  %v21111_v58 = vld [vmem:[#allocation2 + $0x230] ss:$8 sps:$4 sm:$0xff]  }
 0x459   : > { %9134 = vmatprep.subr.bf16.mxu1 %v21084_v47  ;;  %v21114_v47 = vld [vmem:[#allocation2 + $0x330] ss:$8 sps:$4 sm:$0xff]  }
 0x45b   : > { %8930 = vmatpush2.bf16.msra.mxu0 %v21079_v54  ;;  %v21117_v54 = vld [vmem:[#allocation2 + $0x220] ss:$8 sps:$4 sm:$0xff]  }
 0x45c   : > { %9135 = vmatpush2.bf16.msra.mxu1 %v21082_v55  ;;  %9352 = vmatprep.subr.bf16.mxu0 %v21089_v56  ;;  %v21120_v55 = vld [vmem:[#allocation2 + $0x320] ss:$8 sps:$4 sm:$0xff]   ;;  %v21123_v56 = vld [vmem:[#allocation2 + $0x210] ss:$8 sps:$4 sm:$0xff]  }
 0x45d   : > { %9607 = vmatprep.subr.bf16.mxu1 %v21092_v57  ;;  %v21126_v57 = vld [vmem:[#allocation2 + $0x310] ss:$8 sps:$4 sm:$0xff]  }
 0x45e   : > { %v7312_v8 = vpop.f32.mrf.mxu0  ;;  %8932 = vmatmul.mubr.bf16.vlgmr.msra.gmra.mxu0 %v8729_v40  ;;  %v21129_v40 = vld [vmem:[#allocation2 + $0x200] ss:$8 sps:$4 sm:$0xff]  }
 0x45f   : > { %v7567_v45 = vpop.f32.mrf.mxu1  ;;  %9137 = vmatmul.mubr.bf16.vlgmr.msra.gmra.mxu1 %v18233_v34  ;;  %v7321_v36 = vadd.f32 %v7312_v8, %v7065_v50  ;;  %9353 = vmatpush1.bf16.msra.mxu0 %v21087_v43  ;;  %v21137_v50 = vld [vmem:[#allocation2 + $0x2f4] ss:$8 sps:$4 sm:$0xff]  }
 0x460   : > { %9608 = vmatpush1.bf16.msra.mxu1 %v21090_v52  ;;  %v7314_v26 = vpop.f32.mrf.mxu0  ;;  %9354 = vmatprep.subr.bf16.mxu0 %v21095_v2  ;;  %v21131_v52 = vld [vmem:[#allocation2 + $0x204] ss:$8 sps:$4 sm:$0xff]  }
 0x461   : > { %v7569_v11 = vpop.f32.mrf.mxu1  ;;  %9609 = vmatprep.subr.bf16.mxu1 %v21098_v49  ;;  %v7576_v62 = vadd.f32 %v7567_v45, %v7321_v36  ;;  %v7322_v18 = vadd.f32 %v7314_v26, %v7067_v61  ;;  %9384 = vmatprep.mubr.bf16.mxu0 %v18302_v10  ;;  %v21135_v45 = vld [vmem:[#allocation2 + $0x2f0] ss:$8 sps:$4 sm:$0xff]   ;;  %v21143_v36 = vld [vmem:[#allocation2 + $0x2e4] ss:$8 sps:$4 sm:$0xff]  }
 0x462   : > { %9639 = vmatprep.mubr.bf16.mxu1 %v9444_v7  ;;  %v7316_v21 = vpop.f32.mrf.mxu0  ;;  %v21138_v61 = vld [vmem:[#allocation2 + $0x3f0] ss:$8 sps:$4 sm:$0xff]   ;;  %v21146_v26 = vld [vmem:[#allocation2 + $0x3e4] ss:$8 sps:$4 sm:$0xff]  }
 0x463   : > { %v7571_v0 = vpop.f32.mrf.mxu1  ;;  %v7580_v4 = vadd.f32 %v7576_v62, %v23015_v33  ;;  %v7577_v24 = vadd.f32 %v7569_v11, %v7322_v18  ;;  %v7323_v25 = vadd.f32 %v7316_v21, %v7069_v16  ;;  %9355 = vmatpush1.bf16.msra.mxu0 %v21093_v3  ;;  %v21140_v3 = vld [vmem:[#allocation2 + $0x3f4] ss:$8 sps:$4 sm:$0xff]   ;;  %v21141_v11 = vld [vmem:[#allocation2 + $0x2e0] ss:$8 sps:$4 sm:$0xff]   ;;  %v21147_v62 = vld [vmem:[#allocation2 + $0x2d0] ss:$8 sps:$4 sm:$0xff]  }
 0x464   : > { %9610 = vmatpush1.bf16.msra.mxu1 %v21096_v5  ;;  %v7318_v13 = vpop.f32.mrf.mxu0  ;;  %9356 = vmatprep.subr.bf16.mxu0 %v21101_v12  ;;  %v21144_v12 = vld [vmem:[#allocation2 + $0x3e0] ss:$8 sps:$4 sm:$0xff]   ;;  %v21152_v16 = vld [vmem:[#allocation2 + $0x3d4] ss:$8 sps:$4 sm:$0xff]   ;;  %v21150_v18 = vld [vmem:[#allocation2 + $0x3d0] ss:$8 sps:$4 sm:$0xff]  }
 0x465   : > { %9611 = vmatprep.subr.bf16.mxu1 %v21104_v15  ;;  %v18079_v29 = vmul.f32 -1.442695, %v7580_v4  ;;  %v7581_v34 = vadd.f32 %v7577_v24, %v23017_v35  ;;  %v7578_v37 = vadd.f32 %v7571_v0, %v7323_v25  ;;  %v7324_v39 = vadd.f32 %v7318_v13, %v7071_v20  ;;  %v7573_v22 = vpop.f32.mrf.mxu1  ;;  %v21149_v15 = vld [vmem:[#allocation2 + $0x2d4] ss:$8 sps:$4 sm:$0xff]   ;;  %v21158_v20 = vld [vmem:[#allocation2 + $0x3c4] ss:$8 sps:$4 sm:$0xff]  }
 0x466   : > { %v21153_v0 = vld [vmem:[#allocation2 + $0x2c0] ss:$8 sps:$4 sm:$0xff]   ;;  %v21161_v25 = vld [vmem:[#allocation2 + $0x2b4] ss:$8 sps:$4 sm:$0xff]  }
 0x467   : > { %22653 = vpow2.f32 %v18079_v29  ;;  %v18080_v23 = vmul.f32 -1.442695, %v7581_v34  ;;  %v7582_v10 = vadd.f32 %v7578_v37, %v23015_v33  ;;  %v7579_v38 = vadd.f32 %v7573_v22, %v7324_v39  ;;  %9357 = vmatpush1.bf16.msra.mxu0 %v21099_v19  ;;  %v21156_v4 = vld [vmem:[#allocation2 + $0x3c0] ss:$8 sps:$4 sm:$0xff]   ;;  %v21164_v13 = vld [vmem:[#allocation2 + $0x3b4] ss:$8 sps:$4 sm:$0xff]  }
 0x468   : > { %9612 = vmatpush1.bf16.msra.mxu1 %v21102_v14  ;;  %9358 = vmatprep.subr.bf16.mxu0 %v21107_v6  ;;  %v21155_v14 = vld [vmem:[#allocation2 + $0x2c4] ss:$8 sps:$4 sm:$0xff]   ;;  %v21162_v29 = vld [vmem:[#allocation2 + $0x3b0] ss:$8 sps:$4 sm:$0xff]   ;;  %v18301_v39 = vcombine.low %v23188_v30, %v23191_v32  ;;  %v21168_v22 = vld [vmem:[#allocation2 + $0x3a0] ss:$8 sps:$4 sm:$0xff]  }
 0x469   : > { %9613 = vmatprep.subr.bf16.mxu1 %v21110_v28  ;;  %22655 = vpow2.f32 %v18080_v23  ;;  %v18081_v46 = vmul.f32 -1.442695, %v7582_v10  ;;  %v7583_v17 = vadd.f32 %v7579_v38, %v23017_v35  ;;  %v21159_v28 = vld [vmem:[#allocation2 + $0x2b0] ss:$8 sps:$4 sm:$0xff]   ;;  %v21167_v34 = vld [vmem:[#allocation2 + $0x2a4] ss:$8 sps:$4 sm:$0xff]  }
 0x46a   : > { %v21170_v37 = vld [vmem:[#allocation2 + $0x3a4] ss:$8 sps:$4 sm:$0xff]   ;;  %v21173_v23 = vld [vmem:[#allocation2 + $0x294] ss:$8 sps:$4 sm:$0xff]   ;;  %v21174_v32 = vld [vmem:[#allocation2 + $0x390] ss:$8 sps:$4 sm:$0xff]  }
 0x46b   : > { %22657 = vpow2.f32 %v18081_v46  ;;  %v18082_v48 = vmul.f32 -1.442695, %v7583_v17  ;;  %9359 = vmatpush1.bf16.msra.mxu0 %v21105_v41  ;;  %v23208_v41 = vld [vmem:[%s22958_s8 + $0x48] sm:$0x11]  ;;  %v21176_v10 = vld [vmem:[#allocation2 + $0x394] ss:$8 sps:$4 sm:$0xff]  }
 0x46c   : > { %9614 = vmatpush1.bf16.msra.mxu1 %v21108_v9  ;;  %9360 = vmatprep.subr.bf16.mxu0 %v21113_v42  ;;  %v21165_v9 = vld [vmem:[#allocation2 + $0x2a0] ss:$8 sps:$4 sm:$0xff]   ;;  %v21171_v46 = vld [vmem:[#allocation2 + $0x290] ss:$8 sps:$4 sm:$0xff]   ;;  %v21179_v17 = vld [vmem:[#allocation2 + $0x284] ss:$8 sps:$4 sm:$0xff]  }
 0x46d   : > { %9615 = vmatprep.subr.bf16.mxu1 %v21116_v44  ;;  %22659 = vpow2.f32 %v18082_v48  ;;  %v23211_v38 = vld [vmem:[%s22958_s8 + $0x40] sm:$0xff]  ;;  %v9434_v44 = vshll.u32 %v18301_v39, 16  ;;  %v9432_v48 = vshrl.u32 %v18301_v39, 16 }
 0x46e   : > { %v18378_v42 = vcombine.high %v23211_v38, %v23208_v41 }
 0x46f   : > { %9361 = vmatpush1.bf16.msra.mxu0 %v21111_v58  ;;  %v21182_v58 = vld [vmem:[#allocation2 + $0x384] ss:$8 sps:$4 sm:$0xff]  }
 0x470   : > { %9616 = vmatpush1.bf16.msra.mxu1 %v21114_v47  ;;  %9362 = vmatprep.subr.bf16.mxu0 %v21119_v51  ;;  %v9771_v47 = vshll.u32 %v18378_v42, 16  ;;  %v9436_v51 = vrot.slane %v9434_v44, 1  ;;  %v21256_v44 = vld [vmem:[#allocation2 + $0x4c4] ss:$8 sps:$4 sm:$0xff]  }
 0x471   : > { %9617 = vmatprep.subr.bf16.mxu1 %v21122_v53  ;;  %v21177_v53 = vld [vmem:[#allocation2 + $0x280] ss:$8 sps:$4 sm:$0xff]  }
 0x473   : > { %9363 = vmatpush1.bf16.msra.mxu0 %v21117_v54  ;;  %v21180_v54 = vld [vmem:[#allocation2 + $0x380] ss:$8 sps:$4 sm:$0xff]  }
 0x474   : > { %9618 = vmatpush1.bf16.msra.mxu1 %v21120_v55  ;;  %v22654_v43 = vpop.eup %22653  ;;  %9364 = vmatprep.subr.bf16.mxu0 %v21125_v27  ;;  %v21187_v55 = vld [vmem:[#allocation2 + $0x574] ss:$8 sps:$4 sm:$0xff]  }
 0x475   : > { %9619 = vmatprep.subr.bf16.mxu1 %v21128_v31  ;;  %v7596_v60 = vadd.f32 1.0, %v22654_v43  ;;  %v21190_v27 = vld [vmem:[#allocation2 + $0x474] ss:$8 sps:$4 sm:$0xff]   ;;  %v9769_v31 = vshrl.u32 %v18378_v42, 16  ;;  %v21185_v43 = vld [vmem:[#allocation2 + $0x570] ss:$8 sps:$4 sm:$0xff]  }
 0x476   : > { %v22656_v1 = vpop.eup %22655 }
 0x477   : > { %22661 = vrcp.f32 %v7596_v60  ;;  %v7597_v2 = vadd.f32 1.0, %v22656_v1  ;;  %9365 = vmatpush1.bf16.msra.mxu0 %v21123_v56  ;;  %v9773_v56 = vrot.slane %v9771_v47, 1  ;;  %v21196_v60 = vld [vmem:[#allocation2 + $0x464] ss:$8 sps:$4 sm:$0xff]   ;;  %v21194_v1 = vld [vmem:[#allocation2 + $0x460] ss:$8 sps:$4 sm:$0xff]  }
 0x478   : > { %9620 = vmatpush1.bf16.msra.mxu1 %v21126_v57  ;;  %v22658_v49 = vpop.eup %22657  ;;  %9366 = vmatprep.subr.bf16.mxu0 %v21131_v52  ;;  %v9437_v57 = vor.u32 %v9436_v51, %v9432_v48  ;;  %v21188_v52 = vld [vmem:[#allocation2 + $0x470] ss:$8 sps:$4 sm:$0xff]   ;;  %v21265_v51 = vld [vmem:[#allocation2 + $0x5a4] ss:$8 sps:$4 sm:$0xff]  }
 0x479   : > { %9621 = vmatprep.subr.bf16.mxu1 %v21134_v59  ;;  %22663 = vrcp.f32 %v7597_v2  ;;  %v7598_v5 = vadd.f32 1.0, %v22658_v49  ;;  %v21193_v59 = vld [vmem:[#allocation2 + $0x564] ss:$8 sps:$4 sm:$0xff]   ;;  %v21199_v2 = vld [vmem:[#allocation2 + $0x554] ss:$8 sps:$4 sm:$0xff]  }
 0x47a   : > { %v22660_v7 = vpop.eup %22659  ;;  %v21202_v49 = vld [vmem:[#allocation2 + $0x454] ss:$8 sps:$4 sm:$0xff]   ;;  %v21257_v47 = vld [vmem:[#allocation2 + $0x5b0] ss:$8 sps:$4 sm:$0xff]  }
 0x47b   : > { %22665 = vrcp.f32 %v7598_v5  ;;  %v7599_v8 = vadd.f32 1.0, %v22660_v7  ;;  %9367 = vmatpush1.bf16.msra.mxu0 %v21129_v40  ;;  %v9774_v40 = vor.u32 %v9773_v56, %v9769_v31  ;;  %v21205_v5 = vld [vmem:[#allocation2 + $0x544] ss:$8 sps:$4 sm:$0xff]   ;;  %v21260_v48 = vld [vmem:[#allocation2 + $0x4b0] ss:$8 sps:$4 sm:$0xff]  }
 0x47c   : > { %9622 = vmatpush1.bf16.msra.mxu1 %v21132_v63  ;;  %9368 = vmatprep.subr.bf16.mxu0 %v21137_v50  ;;  %v21191_v63 = vld [vmem:[#allocation2 + $0x560] ss:$8 sps:$4 sm:$0xff]   ;;  %v21197_v50 = vld [vmem:[#allocation2 + $0x550] ss:$8 sps:$4 sm:$0xff]   ;;  %v21208_v7 = vld [vmem:[#allocation2 + $0x444] ss:$8 sps:$4 sm:$0xff]  }
 0x47d   : > { %9623 = vmatprep.subr.bf16.mxu1 %v21140_v3  ;;  %22667 = vrcp.f32 %v7599_v8  ;;  %v21200_v3 = vld [vmem:[#allocation2 + $0x450] ss:$8 sps:$4 sm:$0xff]   ;;  %v21203_v8 = vld [vmem:[#allocation2 + $0x540] ss:$8 sps:$4 sm:$0xff]  }
 0x47e   : > { %v21266_v31 = vld [vmem:[#allocation2 + $0x4a0] ss:$8 sps:$4 sm:$0xff]  }
 0x47f   : > { %9369 = vmatpush2.bf16.msra.mxu0 %v21135_v45  ;;  %v21206_v45 = vld [vmem:[#allocation2 + $0x440] ss:$8 sps:$4 sm:$0xff]  }
 0x480   : > { %9624 = vmatpush2.bf16.msra.mxu1 %v21138_v61  ;;  %9370 = vmatprep.subr.bf16.mxu0 %v21143_v36  ;;  %v21211_v61 = vld [vmem:[#allocation2 + $0x534] ss:$8 sps:$4 sm:$0xff]  }
 0x481   : > { %9625 = vmatprep.subr.bf16.mxu1 %v21146_v26  ;;  %v21214_v36 = vld [vmem:[#allocation2 + $0x434] ss:$8 sps:$4 sm:$0xff]   ;;  %v21209_v26 = vld [vmem:[#allocation2 + $0x530] ss:$8 sps:$4 sm:$0xff]  }
 0x483   : > { %9371 = vmatpush2.bf16.msra.mxu0 %v21141_v11  ;;  %v21212_v11 = vld [vmem:[#allocation2 + $0x430] ss:$8 sps:$4 sm:$0xff]  }
 0x484   : > { %9626 = vmatpush2.bf16.msra.mxu1 %v21144_v12  ;;  %v22662_v19 = vpop.eup %22661  ;;  %9372 = vmatprep.subr.bf16.mxu0 %v21149_v15  ;;  %v21217_v12 = vld [vmem:[#allocation2 + $0x524] ss:$8 sps:$4 sm:$0xff]  }
 0x485   : > { %9627 = vmatprep.subr.bf16.mxu1 %v21152_v16  ;;  %18083 = vst [vmem:[%s23031_s15 + $0xc0] sm:$0xff] %v22662_v19  ;;  %v21220_v15 = vld [vmem:[#allocation2 + $0x424] ss:$8 sps:$4 sm:$0xff]   ;;  %v21215_v16 = vld [vmem:[#allocation2 + $0x520] ss:$8 sps:$4 sm:$0xff]  }
 0x486   : > { %v22664_v21 = vpop.eup %22663  ;;  %v21226_v19 = vld [vmem:[#allocation2 + $0x414] ss:$8 sps:$4 sm:$0xff]  }
 0x487   : > { %18084 = vst [vmem:[%s23031_s15 + $0xc8] sm:$0xff] %v22664_v21  ;;  %9373 = vmatpush2.bf16.msra.mxu0 %v21147_v62  ;;  %v21218_v62 = vld [vmem:[#allocation2 + $0x420] ss:$8 sps:$4 sm:$0xff]   ;;  %v21229_v21 = vld [vmem:[#allocation2 + $0x504] ss:$8 sps:$4 sm:$0xff]  }
 0x488   : > { %9628 = vmatpush2.bf16.msra.mxu1 %v21150_v18  ;;  %v22666_v24 = vpop.eup %22665  ;;  %9374 = vmatprep.subr.bf16.mxu0 %v21155_v14  ;;  %v21223_v18 = vld [vmem:[#allocation2 + $0x514] ss:$8 sps:$4 sm:$0xff]   ;;  %v21221_v14 = vld [vmem:[#allocation2 + $0x510] ss:$8 sps:$4 sm:$0xff]  }
 0x489   : > { %9629 = vmatprep.subr.bf16.mxu1 %v21158_v20  ;;  %18085 = vst [vmem:[%s23031_s15 + $0xe0] sm:$0x1] %v22666_v24  ;;  %v21224_v20 = vld [vmem:[#allocation2 + $0x410] ss:$8 sps:$4 sm:$0xff]   ;;  %v21230_v24 = vld [vmem:[#allocation2 + $0x400] ss:$8 sps:$4 sm:$0xff]  }
 0x48a   : > { %v22668_v6 = vpop.eup %22667 }
 0x48b   : > { %18086 = vst [vmem:[%s23031_s15 + $0xe8] sm:$0x1] %v22668_v6  ;;  %9375 = vmatpush2.bf16.msra.mxu0 %v21153_v0  ;;  %v21232_v0 = vld [vmem:[#allocation2 + $0x404] ss:$8 sps:$4 sm:$0xff]   ;;  %v21233_v6 = vld [vmem:[#allocation2 + $0x5f0] ss:$8 sps:$4 sm:$0xff]  }
 0x48c   : > { %9630 = vmatpush2.bf16.msra.mxu1 %v21156_v4  ;;  %9376 = vmatprep.subr.bf16.mxu0 %v21161_v25  ;;  %v21227_v4 = vld [vmem:[#allocation2 + $0x500] ss:$8 sps:$4 sm:$0xff]   ;;  %v21235_v25 = vld [vmem:[#allocation2 + $0x5f4] ss:$8 sps:$4 sm:$0xff]  }
 0x48d   : > { %9631 = vmatprep.subr.bf16.mxu1 %v21164_v13  ;;  %v21238_v13 = vld [vmem:[#allocation2 + $0x4f4] ss:$8 sps:$4 sm:$0xff]  }
 0x48f   : > { %9377 = vmatpush2.bf16.msra.mxu0 %v21159_v28  ;;  %v21236_v28 = vld [vmem:[#allocation2 + $0x4f0] ss:$8 sps:$4 sm:$0xff]  }
 0x490   : > { %9632 = vmatpush2.bf16.msra.mxu1 %v21162_v29  ;;  %9378 = vmatprep.subr.bf16.mxu0 %v21167_v34  ;;  %v21241_v29 = vld [vmem:[#allocation2 + $0x5e4] ss:$8 sps:$4 sm:$0xff]  }
 0x491   : > { %9633 = vmatprep.subr.bf16.mxu1 %v21170_v37  ;;  %v21244_v34 = vld [vmem:[#allocation2 + $0x4e4] ss:$8 sps:$4 sm:$0xff]   ;;  %v21239_v37 = vld [vmem:[#allocation2 + $0x5e0] ss:$8 sps:$4 sm:$0xff]  }
 0x493   : > { %9379 = vmatpush2.bf16.msra.mxu0 %v21165_v9  ;;  %v21247_v9 = vld [vmem:[#allocation2 + $0x5d4] ss:$8 sps:$4 sm:$0xff]  }
 0x494   : > { %9634 = vmatpush2.bf16.msra.mxu1 %v21168_v22  ;;  %9380 = vmatprep.subr.bf16.mxu0 %v21173_v23  ;;  %v21250_v22 = vld [vmem:[#allocation2 + $0x4d4] ss:$8 sps:$4 sm:$0xff]   ;;  %v21245_v23 = vld [vmem:[#allocation2 + $0x5d0] ss:$8 sps:$4 sm:$0xff]  }
 0x495   : > { %9635 = vmatprep.subr.bf16.mxu1 %v21176_v10  ;;  %v21248_v10 = vld [vmem:[#allocation2 + $0x4d0] ss:$8 sps:$4 sm:$0xff]  }
 0x497   : > { %9381 = vmatpush2.bf16.msra.mxu0 %v21171_v46  ;;  %v21251_v46 = vld [vmem:[#allocation2 + $0x5c0] ss:$8 sps:$4 sm:$0xff]  }
 0x498   : > { %9636 = vmatpush2.bf16.msra.mxu1 %v21174_v32  ;;  %9382 = vmatprep.subr.bf16.mxu0 %v21179_v17  ;;  %v21254_v32 = vld [vmem:[#allocation2 + $0x4c0] ss:$8 sps:$4 sm:$0xff]   ;;  %v21259_v17 = vld [vmem:[#allocation2 + $0x5b4] ss:$8 sps:$4 sm:$0xff]  }
 0x499   : > { %9637 = vmatprep.subr.bf16.mxu1 %v21182_v58  ;;  %v21262_v58 = vld [vmem:[#allocation2 + $0x4b4] ss:$8 sps:$4 sm:$0xff]  }
 0x49b   : > { %9383 = vmatpush2.bf16.msra.mxu0 %v21177_v53  ;;  %v21268_v53 = vld [vmem:[#allocation2 + $0x4a4] ss:$8 sps:$4 sm:$0xff]  }
 0x49c   : > { %9638 = vmatpush2.bf16.msra.mxu1 %v21180_v54  ;;  %9937 = vmatprep.subr.bf16.mxu0 %v21187_v55  ;;  %v18377_v54 = vcombine.low %v23211_v38, %v23208_v41  ;;  %v23218_v55 = vld [vmem:[%s22958_s8 + $0x58] sm:$0x11] }
 0x49d   : > { %10142 = vmatprep.subr.bf16.mxu1 %v21190_v27  ;;  %v21263_v27 = vld [vmem:[#allocation2 + $0x5a0] ss:$8 sps:$4 sm:$0xff]   ;;  %v21272_v41 = vld [vmem:[#allocation2 + $0x490] ss:$8 sps:$4 sm:$0xff]  }
 0x49e   : > { %9385 = vmatmul.mubr.bf16.vlgmr.msra.gmra.mxu0 %v18301_v39  ;;  %v21242_v39 = vld [vmem:[#allocation2 + $0x4e0] ss:$8 sps:$4 sm:$0xff]   ;;  %v7897_v56 = vpop.f32.mrf.mxu0 }
 0x49f   : > { %9640 = vmatmul.mubr.bf16.vlgmr.msra.gmra.mxu1 %v9437_v57  ;;  %9938 = vmatpush1.bf16.msra.mxu0 %v21185_v43  ;;  %v8102_v57 = vpop.f32.mrf.mxu1  ;;  %v21271_v43 = vld [vmem:[#allocation2 + $0x594] ss:$8 sps:$4 sm:$0xff]  }
 0x4a0   : > { %10143 = vmatpush1.bf16.msra.mxu1 %v21188_v52  ;;  %9939 = vmatprep.subr.bf16.mxu0 %v21193_v59  ;;  %v21274_v52 = vld [vmem:[#allocation2 + $0x494] ss:$8 sps:$4 sm:$0xff]   ;;  %v18446_v59 = vcombine.high %v23188_v30, %v23218_v55  ;;  %v7899_v38 = vpop.f32.mrf.mxu0 }
 0x4a1   : > { %10144 = vmatprep.subr.bf16.mxu1 %v21196_v60  ;;  %9969 = vmatprep.mubr.bf16.mxu0 %v9774_v40  ;;  %v9764_v60 = vshll.u32 %v18377_v54, 16  ;;  %v21269_v40 = vld [vmem:[#allocation2 + $0x590] ss:$8 sps:$4 sm:$0xff]  }
 0x4a2   : > { %10174 = vmatprep.mubr.bf16.mxu1 %v18378_v42  ;;  %v21253_v42 = vld [vmem:[#allocation2 + $0x5c4] ss:$8 sps:$4 sm:$0xff]  }
 0x4a3   : > { %9940 = vmatpush1.bf16.msra.mxu0 %v21191_v63  ;;  %v8104_v63 = vpop.f32.mrf.mxu1 }
 0x4a4   : > { %10145 = vmatpush1.bf16.msra.mxu1 %v21194_v1  ;;  %9941 = vmatprep.subr.bf16.mxu0 %v21199_v2  ;;  %v21277_v1 = vld [vmem:[#allocation2 + $0x584] ss:$8 sps:$4 sm:$0xff]  }
 0x4a5   : > { %10146 = vmatprep.subr.bf16.mxu1 %v21202_v49  ;;  %v21280_v2 = vld [vmem:[#allocation2 + $0x484] ss:$8 sps:$4 sm:$0xff]   ;;  %v10478_v49 = vshll.u32 %v18446_v59, 16  ;;  %v8106_v30 = vpop.f32.mrf.mxu1 }
 0x4a7   : > { %9942 = vmatpush1.bf16.msra.mxu0 %v21197_v50  ;;  %v9762_v50 = vshrl.u32 %v18377_v54, 16 }
 0x4a8   : > { %10147 = vmatpush1.bf16.msra.mxu1 %v21200_v3  ;;  %9943 = vmatprep.subr.bf16.mxu0 %v21205_v5  ;;  %v9766_v3 = vrot.slane %v9764_v60, 1  ;;  %v21275_v5 = vld [vmem:[#allocation2 + $0x580] ss:$8 sps:$4 sm:$0xff]   ;;  %v21309_v60 = vld [vmem:[#allocation2 + $0x634] ss:$8 sps:$4 sm:$0xff]  }
 0x4a9   : > { %10148 = vmatprep.subr.bf16.mxu1 %v21208_v7  ;;  %v21278_v7 = vld [vmem:[#allocation2 + $0x480] ss:$8 sps:$4 sm:$0xff]  }
 0x4ab   : > { %9944 = vmatpush1.bf16.msra.mxu0 %v21203_v8  ;;  %v7901_v8 = vpop.f32.mrf.mxu0 }
 0x4ac   : > { %10149 = vmatpush1.bf16.msra.mxu1 %v21206_v45  ;;  %9945 = vmatprep.subr.bf16.mxu0 %v21211_v61  ;;  %v21285_v45 = vld [vmem:[#allocation2 + $0x674] ss:$8 sps:$4 sm:$0xff]  }
 0x4ad   : > { %10150 = vmatprep.subr.bf16.mxu1 %v21214_v36  ;;  %v21288_v61 = vld [vmem:[#allocation2 + $0x774] ss:$8 sps:$4 sm:$0xff]   ;;  %v10476_v36 = vshrl.u32 %v18446_v59, 16 }
 0x4af   : > { %9946 = vmatpush1.bf16.msra.mxu0 %v21209_v26  ;;  %v10480_v26 = vrot.slane %v10478_v49, 1  ;;  %v21315_v49 = vld [vmem:[#allocation2 + $0x624] ss:$8 sps:$4 sm:$0xff]  }
 0x4b0   : > { %10151 = vmatpush1.bf16.msra.mxu1 %v21212_v11  ;;  %9947 = vmatprep.subr.bf16.mxu0 %v21217_v12  ;;  %v9767_v11 = vor.u32 %v9766_v3, %v9762_v50  ;;  %v21283_v12 = vld [vmem:[#allocation2 + $0x670] ss:$8 sps:$4 sm:$0xff]   ;;  %v21318_v50 = vld [vmem:[#allocation2 + $0x724] ss:$8 sps:$4 sm:$0xff]   ;;  %v21313_v3 = vld [vmem:[#allocation2 + $0x620] ss:$8 sps:$4 sm:$0xff]  }
 0x4b1   : > { %10152 = vmatprep.subr.bf16.mxu1 %v21220_v15  ;;  %v21286_v15 = vld [vmem:[#allocation2 + $0x770] ss:$8 sps:$4 sm:$0xff]  }
 0x4b3   : > { %9948 = vmatpush1.bf16.msra.mxu0 %v21215_v16  ;;  %v7903_v16 = vpop.f32.mrf.mxu0 }
 0x4b4   : > { %10153 = vmatpush1.bf16.msra.mxu1 %v21218_v62  ;;  %9949 = vmatprep.subr.bf16.mxu0 %v21223_v18  ;;  %v8108_v62 = vpop.f32.mrf.mxu1  ;;  %v21291_v18 = vld [vmem:[#allocation2 + $0x664] ss:$8 sps:$4 sm:$0xff]  }
 0x4b5   : > { %10154 = vmatprep.subr.bf16.mxu1 %v21226_v19  ;;  %v21294_v19 = vld [vmem:[#allocation2 + $0x764] ss:$8 sps:$4 sm:$0xff]  }
 0x4b7   : > { %9950 = vmatpush1.bf16.msra.mxu0 %v21221_v14  ;;  %v8103_v14 = vadd.f32 %v8102_v57, %v7897_v56 }
 0x4b8   : > { %10155 = vmatpush1.bf16.msra.mxu1 %v21224_v20  ;;  %9951 = vmatprep.subr.bf16.mxu0 %v21229_v21  ;;  %v10481_v20 = vor.u32 %v10480_v26, %v10476_v36  ;;  %v21327_v36 = vld [vmem:[#allocation2 + $0x604] ss:$8 sps:$4 sm:$0xff]  }
 0x4b9   : > { %10156 = vmatprep.subr.bf16.mxu1 %v21232_v0  ;;  %v21330_v26 = vld [vmem:[#allocation2 + $0x704] ss:$8 sps:$4 sm:$0xff]  }
 0x4bb   : > { %9952 = vmatpush1.bf16.msra.mxu0 %v21227_v4  ;;  %v8105_v4 = vadd.f32 %v8104_v63, %v7899_v38 }
 0x4bc   : > { %10157 = vmatpush1.bf16.msra.mxu1 %v21230_v24  ;;  %9953 = vmatprep.subr.bf16.mxu0 %v21235_v25  ;;  %v21289_v25 = vld [vmem:[#allocation2 + $0x660] ss:$8 sps:$4 sm:$0xff]  }
 0x4bd   : > { %10158 = vmatprep.subr.bf16.mxu1 %v21238_v13  ;;  %v21292_v13 = vld [vmem:[#allocation2 + $0x760] ss:$8 sps:$4 sm:$0xff]  }
 0x4bf   : > { %9954 = vmatpush2.bf16.msra.mxu0 %v21233_v6 }
 0x4c0   : > { %10159 = vmatpush2.bf16.msra.mxu1 %v21236_v28  ;;  %9955 = vmatprep.subr.bf16.mxu0 %v21241_v29  ;;  %v21297_v29 = vld [vmem:[#allocation2 + $0x654] ss:$8 sps:$4 sm:$0xff]  }
 0x4c1   : > { %10160 = vmatprep.subr.bf16.mxu1 %v21244_v34  ;;  %v21300_v34 = vld [vmem:[#allocation2 + $0x754] ss:$8 sps:$4 sm:$0xff]  }
 0x4c3   : > { %9956 = vmatpush2.bf16.msra.mxu0 %v21239_v37  ;;  %v8107_v37 = vadd.f32 %v8106_v30, %v7901_v8  ;;  %v21324_v8 = vld [vmem:[#allocation2 + $0x714] ss:$8 sps:$4 sm:$0xff]   ;;  %v21319_v30 = vld [vmem:[#allocation2 + $0x610] ss:$8 sps:$4 sm:$0xff]  }
 0x4c4   : > { %10161 = vmatpush2.bf16.msra.mxu1 %v21242_v39  ;;  %9957 = vmatprep.subr.bf16.mxu0 %v21247_v9 }
 0x4c5   : > { %10162 = vmatprep.subr.bf16.mxu1 %v21250_v22  ;;  %v8109_v22 = vadd.f32 %v8108_v62, %v7903_v16  ;;  %v21325_v16 = vld [vmem:[#allocation2 + $0x600] ss:$8 sps:$4 sm:$0xff]  }
 0x4c6   : > { %v21328_v62 = vld [vmem:[#allocation2 + $0x700] ss:$8 sps:$4 sm:$0xff]  }
 0x4c7   : > { %9958 = vmatpush2.bf16.msra.mxu0 %v21245_v23 }
 0x4c8   : > { %10163 = vmatpush2.bf16.msra.mxu1 %v21248_v10  ;;  %9959 = vmatprep.subr.bf16.mxu0 %v21253_v42 }
 0x4c9   : > { %10164 = vmatprep.subr.bf16.mxu1 %v21256_v44 }
 0x4cb   : > { %9960 = vmatpush2.bf16.msra.mxu0 %v21251_v46 }
 0x4cc   : > { %10165 = vmatpush2.bf16.msra.mxu1 %v21254_v32  ;;  %9961 = vmatprep.subr.bf16.mxu0 %v21259_v17  ;;  %v21295_v32 = vld [vmem:[#allocation2 + $0x650] ss:$8 sps:$4 sm:$0xff]  }
 0x4cd   : > { %10166 = vmatprep.subr.bf16.mxu1 %v21262_v58  ;;  %v21298_v17 = vld [vmem:[#allocation2 + $0x750] ss:$8 sps:$4 sm:$0xff]  }
 0x4cf   : > { %9962 = vmatpush2.bf16.msra.mxu0 %v21257_v47  ;;  %v21303_v47 = vld [vmem:[#allocation2 + $0x644] ss:$8 sps:$4 sm:$0xff]  }
 0x4d0   : > { %10167 = vmatpush2.bf16.msra.mxu1 %v21260_v48  ;;  %9963 = vmatprep.subr.bf16.mxu0 %v21265_v51  ;;  %v21306_v48 = vld [vmem:[#allocation2 + $0x744] ss:$8 sps:$4 sm:$0xff]  }
 0x4d1   : > { %10168 = vmatprep.subr.bf16.mxu1 %v21268_v53 }
 0x4d3   : > { %9964 = vmatpush2.bf16.msra.mxu0 %v21263_v27 }
 0x4d4   : > { %10169 = vmatpush2.bf16.msra.mxu1 %v21266_v31  ;;  %9965 = vmatprep.subr.bf16.mxu0 %v21271_v43 }
 0x4d5   : > { %10170 = vmatprep.subr.bf16.mxu1 %v21274_v52  ;;  %v21301_v52 = vld [vmem:[#allocation2 + $0x640] ss:$8 sps:$4 sm:$0xff]  }
 0x4d7   : > { %9966 = vmatpush2.bf16.msra.mxu0 %v21269_v40  ;;  %v21312_v40 = vld [vmem:[#allocation2 + $0x734] ss:$8 sps:$4 sm:$0xff]  }
 0x4d8   : > { %10171 = vmatpush2.bf16.msra.mxu1 %v21272_v41  ;;  %9967 = vmatprep.subr.bf16.mxu0 %v21277_v1  ;;  %v21307_v1 = vld [vmem:[#allocation2 + $0x630] ss:$8 sps:$4 sm:$0xff]  }
 0x4d9   : > { %10172 = vmatprep.subr.bf16.mxu1 %v21280_v2  ;;  %v21310_v2 = vld [vmem:[#allocation2 + $0x730] ss:$8 sps:$4 sm:$0xff]  }
 0x4db   : > { %9968 = vmatpush2.bf16.msra.mxu0 %v21275_v5  ;;  %v21316_v5 = vld [vmem:[#allocation2 + $0x720] ss:$8 sps:$4 sm:$0xff]  }
 0x4dc   : > { %10173 = vmatpush2.bf16.msra.mxu1 %v21278_v7  ;;  %10389 = vmatprep.subr.bf16.mxu0 %v21285_v45  ;;  %v21321_v7 = vld [vmem:[#allocation2 + $0x614] ss:$8 sps:$4 sm:$0xff]   ;;  %v21322_v45 = vld [vmem:[#allocation2 + $0x710] ss:$8 sps:$4 sm:$0xff]  }
 0x4dd   : > { %10644 = vmatprep.subr.bf16.mxu1 %v21288_v61 }
 0x4de   : > { %v8349_v21 = vpop.f32.mrf.mxu0  ;;  %9970 = vmatmul.mubr.bf16.vlgmr.msra.gmra.mxu0 %v9767_v11 }
 0x4df   : > { %v8604_v0 = vpop.f32.mrf.mxu1  ;;  %10175 = vmatmul.mubr.bf16.vlgmr.msra.gmra.mxu1 %v18377_v54  ;;  %v8358_v24 = vadd.f32 %v8349_v21, %v8103_v14  ;;  %10390 = vmatpush1.bf16.msra.mxu0 %v21283_v12  ;;  %v21336_v14 = vld [vmem:[#allocation2 + $0x7f4] ss:$8 sps:$4 sm:$0xff]  }
 0x4e0   : > { %10645 = vmatpush1.bf16.msra.mxu1 %v21286_v15  ;;  %v8351_v6 = vpop.f32.mrf.mxu0  ;;  %10391 = vmatprep.subr.bf16.mxu0 %v21291_v18 }
 0x4e1   : > { %v8606_v28 = vpop.f32.mrf.mxu1  ;;  %10646 = vmatprep.subr.bf16.mxu1 %v21294_v19  ;;  %v8613_v39 = vadd.f32 %v8604_v0, %v8358_v24  ;;  %v8359_v9 = vadd.f32 %v8351_v6, %v8105_v4  ;;  %10421 = vmatprep.mubr.bf16.mxu0 %v18446_v59  ;;  %v21304_v59 = vld [vmem:[#allocation2 + $0x740] ss:$8 sps:$4 sm:$0xff]   ;;  %v21333_v19 = vld [vmem:[#allocation2 + $0x6f4] ss:$8 sps:$4 sm:$0xff]   ;;  %v21331_v4 = vld [vmem:[#allocation2 + $0x6f0] ss:$8 sps:$4 sm:$0xff]  }
 0x4e2   : > { %10676 = vmatprep.mubr.bf16.mxu1 %v10481_v20  ;;  %v8353_v23 = vpop.f32.mrf.mxu0  ;;  %v21334_v24 = vld [vmem:[#allocation2 + $0x7f0] ss:$8 sps:$4 sm:$0xff]   ;;  %v21337_v6 = vld [vmem:[#allocation2 + $0x6e0] ss:$8 sps:$4 sm:$0xff]  }
 0x4e3   : > { %v8608_v10 = vpop.f32.mrf.mxu1  ;;  %v8617_v42 = vadd.f32 %v8613_v39, %v23015_v33  ;;  %v8614_v44 = vadd.f32 %v8606_v28, %v8359_v9  ;;  %v8360_v46 = vadd.f32 %v8353_v23, %v8107_v37  ;;  %10392 = vmatpush1.bf16.msra.mxu0 %v21289_v25  ;;  %v21339_v25 = vld [vmem:[#allocation2 + $0x6e4] ss:$8 sps:$4 sm:$0xff]   ;;  %v21340_v28 = vld [vmem:[#allocation2 + $0x7e0] ss:$8 sps:$4 sm:$0xff]   ;;  %v21343_v37 = vld [vmem:[#allocation2 + $0x6d0] ss:$8 sps:$4 sm:$0xff]  }
 0x4e4   : > { %10647 = vmatpush1.bf16.msra.mxu1 %v21292_v13  ;;  %v8355_v58 = vpop.f32.mrf.mxu0  ;;  %10393 = vmatprep.subr.bf16.mxu0 %v21297_v29  ;;  %v21342_v13 = vld [vmem:[#allocation2 + $0x7e4] ss:$8 sps:$4 sm:$0xff]   ;;  %v21345_v29 = vld [vmem:[#allocation2 + $0x6d4] ss:$8 sps:$4 sm:$0xff]   ;;  %v21346_v39 = vld [vmem:[#allocation2 + $0x7d0] ss:$8 sps:$4 sm:$0xff]  }
 0x4e5   : > { %10648 = vmatprep.subr.bf16.mxu1 %v21300_v34  ;;  %v18223_v51 = vmul.f32 -1.442695, %v8617_v42  ;;  %v8618_v53 = vadd.f32 %v8614_v44, %v23017_v35  ;;  %v8615_v54 = vadd.f32 %v8608_v10, %v8360_v46  ;;  %v8361_v27 = vadd.f32 %v8355_v58, %v8109_v22  ;;  %v8610_v31 = vpop.f32.mrf.mxu1  ;;  %v21348_v34 = vld [vmem:[#allocation2 + $0x7d4] ss:$8 sps:$4 sm:$0xff]   ;;  %v21351_v22 = vld [vmem:[#allocation2 + $0x6c4] ss:$8 sps:$4 sm:$0xff]  }
 0x4e6   : > { %v21354_v23 = vld [vmem:[#allocation2 + $0x7c4] ss:$8 sps:$4 sm:$0xff]   ;;  %v21349_v42 = vld [vmem:[#allocation2 + $0x6c0] ss:$8 sps:$4 sm:$0xff]  }
 0x4e7   : > { %22669 = vpow2.f32 %v18223_v51  ;;  %v18224_v56 = vmul.f32 -1.442695, %v8618_v53  ;;  %v8619_v57 = vadd.f32 %v8615_v54, %v23015_v33  ;;  %v8616_v43 = vadd.f32 %v8610_v31, %v8361_v27  ;;  %10394 = vmatpush1.bf16.msra.mxu0 %v21295_v32  ;;  %v21352_v44 = vld [vmem:[#allocation2 + $0x7c0] ss:$8 sps:$4 sm:$0xff]   ;;  %v21357_v32 = vld [vmem:[#allocation2 + $0x6b4] ss:$8 sps:$4 sm:$0xff]  }
 0x4e8   : > { %10649 = vmatpush1.bf16.msra.mxu1 %v21298_v17  ;;  %10395 = vmatprep.subr.bf16.mxu0 %v21303_v47  ;;  %v21360_v17 = vld [vmem:[#allocation2 + $0x7b4] ss:$8 sps:$4 sm:$0xff]   ;;  %v21355_v47 = vld [vmem:[#allocation2 + $0x6b0] ss:$8 sps:$4 sm:$0xff]   ;;  %v21363_v51 = vld [vmem:[#allocation2 + $0x6a4] ss:$8 sps:$4 sm:$0xff]  }
 0x4e9   : > { %10650 = vmatprep.subr.bf16.mxu1 %v21306_v48  ;;  %22671 = vpow2.f32 %v18224_v56  ;;  %v18225_v41 = vmul.f32 -1.442695, %v8619_v57  ;;  %v8620_v38 = vadd.f32 %v8616_v43, %v23017_v35  ;;  %v21358_v48 = vld [vmem:[#allocation2 + $0x7b0] ss:$8 sps:$4 sm:$0xff]   ;;  %v21366_v53 = vld [vmem:[#allocation2 + $0x7a4] ss:$8 sps:$4 sm:$0xff]  }
 0x4ea   : > { %v22822_v54 = vld [vmem:[%s22958_s8 + $0x50] sm:$0xff]  ;;  %v23236_v56 = vld [vmem:[%s22958_s8 + $0x58] sm:$0x11]  ;;  %v21361_v57 = vld [vmem:[#allocation2 + $0x6a0] ss:$8 sps:$4 sm:$0xff]  }
 0x4eb   : > { %22673 = vpow2.f32 %v18225_v41  ;;  %v18226_v63 = vmul.f32 -1.442695, %v8620_v38  ;;  %10396 = vmatpush1.bf16.msra.mxu0 %v21301_v52  ;;  %v18445_v27 = vcombine.low %v22822_v54, %v23218_v55  ;;  %v23233_v31 = vld [vmem:[%s22958_s8 + $0x50] sm:$0xff]  ;;  %v21364_v43 = vld [vmem:[#allocation2 + $0x7a0] ss:$8 sps:$4 sm:$0xff]  }
 0x4ec   : > { %10651 = vmatpush1.bf16.msra.mxu1 %v21304_v59  ;;  %10397 = vmatprep.subr.bf16.mxu0 %v21309_v60  ;;  %v21369_v52 = vld [vmem:[#allocation2 + $0x694] ss:$8 sps:$4 sm:$0xff]   ;;  %v18522_v60 = vcombine.high %v23233_v31, %v23236_v56  ;;  %v21367_v41 = vld [vmem:[#allocation2 + $0x690] ss:$8 sps:$4 sm:$0xff]   ;;  %v21375_v38 = vld [vmem:[#allocation2 + $0x684] ss:$8 sps:$4 sm:$0xff]  }
 0x4ed   : > { %10652 = vmatprep.subr.bf16.mxu1 %v21312_v40  ;;  %22675 = vpow2.f32 %v18226_v63  ;;  %v21372_v59 = vld [vmem:[#allocation2 + $0x794] ss:$8 sps:$4 sm:$0xff]   ;;  %v10471_v40 = vshll.u32 %v18445_v27, 16  ;;  %v21370_v55 = vld [vmem:[#allocation2 + $0x790] ss:$8 sps:$4 sm:$0xff]  }
 0x4ee   : > { %v21378_v63 = vld [vmem:[#allocation2 + $0x784] ss:$8 sps:$4 sm:$0xff]   ;;  %v21438_v54 = vld [vmem:[#allocation2 + $0xe0] ss:$8 sps:$4 sm:$0xff]  }
 0x4ef   : > { %10398 = vmatpush1.bf16.msra.mxu0 %v21307_v1  ;;  %v10807_v1 = vshll.u32 %v18522_v60, 16 }
 0x4f0   : > { %10653 = vmatpush1.bf16.msra.mxu1 %v21310_v2  ;;  %10399 = vmatprep.subr.bf16.mxu0 %v21315_v49  ;;  %v10469_v2 = vshrl.u32 %v18445_v27, 16  ;;  %v10473_v49 = vrot.slane %v10471_v40, 1  ;;  %v21447_v40 = vld [vmem:[#allocation2 + $0x1c0] ss:$8 sps:$4 sm:$0xff]  }
 0x4f1   : > { %10654 = vmatprep.subr.bf16.mxu1 %v21318_v50  ;;  %v21373_v50 = vld [vmem:[#allocation2 + $0x680] ss:$8 sps:$4 sm:$0xff]  }
 0x4f3   : > { %10400 = vmatpush1.bf16.msra.mxu0 %v21313_v3  ;;  %v21376_v3 = vld [vmem:[#allocation2 + $0x780] ss:$8 sps:$4 sm:$0xff]  }
 0x4f4   : > { %10655 = vmatpush1.bf16.msra.mxu1 %v21316_v5  ;;  %v22670_v61 = vpop.eup %22669  ;;  %10401 = vmatprep.subr.bf16.mxu0 %v21321_v7  ;;  %v21383_v5 = vld [vmem:[#allocation2 + $0x174] ss:$8 sps:$4 sm:$0xff]  }
 0x4f5   : > { %10656 = vmatprep.subr.bf16.mxu1 %v21324_v8  ;;  %v8633_v11 = vadd.f32 1.0, %v22670_v61  ;;  %v21386_v7 = vld [vmem:[#allocation2 + $0x74] ss:$8 sps:$4 sm:$0xff]   ;;  %v10805_v8 = vshrl.u32 %v18522_v60, 16  ;;  %v21381_v61 = vld [vmem:[#allocation2 + $0x170] ss:$8 sps:$4 sm:$0xff]  }
 0x4f6   : > { %v22672_v12 = vpop.eup %22671 }
 0x4f7   : > { %22677 = vrcp.f32 %v8633_v11  ;;  %v8634_v15 = vadd.f32 1.0, %v22672_v12  ;;  %10402 = vmatpush1.bf16.msra.mxu0 %v21319_v30  ;;  %v10809_v30 = vrot.slane %v10807_v1, 1  ;;  %v21392_v11 = vld [vmem:[#allocation2 + $0x64] ss:$8 sps:$4 sm:$0xff]   ;;  %v21456_v1 = vld [vmem:[#allocation2 + $0xb0] ss:$8 sps:$4 sm:$0xff]  }
 0x4f8   : > { %10657 = vmatpush1.bf16.msra.mxu1 %v21322_v45  ;;  %v22674_v18 = vpop.eup %22673  ;;  %10403 = vmatprep.subr.bf16.mxu0 %v21327_v36  ;;  %v10474_v45 = vor.u32 %v10473_v49, %v10469_v2  ;;  %v21384_v36 = vld [vmem:[#allocation2 + $0x70] ss:$8 sps:$4 sm:$0xff]   ;;  %v21461_v2 = vld [vmem:[#allocation2 + $0x1a4] ss:$8 sps:$4 sm:$0xff]  }
 0x4f9   : > { %10658 = vmatprep.subr.bf16.mxu1 %v21330_v26  ;;  %22679 = vrcp.f32 %v8634_v15  ;;  %v8635_v20 = vadd.f32 1.0, %v22674_v18  ;;  %v21389_v26 = vld [vmem:[#allocation2 + $0x164] ss:$8 sps:$4 sm:$0xff]   ;;  %v10810_v12 = vor.u32 %v10809_v30, %v10805_v8  ;;  %v21387_v15 = vld [vmem:[#allocation2 + $0x160] ss:$8 sps:$4 sm:$0xff]  }
 0x4fa   : > { %v22676_v21 = vpop.eup %22675  ;;  %v21398_v18 = vld [vmem:[#allocation2 + $0x54] ss:$8 sps:$4 sm:$0xff]   ;;  %v21464_v49 = vld [vmem:[#allocation2 + $0xa4] ss:$8 sps:$4 sm:$0xff]   ;;  %v21462_v8 = vld [vmem:[#allocation2 + $0xa0] ss:$8 sps:$4 sm:$0xff]  }
 0x4fb   : > { %22681 = vrcp.f32 %v8635_v20  ;;  %v8636_v0 = vadd.f32 1.0, %v22676_v21  ;;  %10404 = vmatpush1.bf16.msra.mxu0 %v21325_v16  ;;  %v21390_v16 = vld [vmem:[#allocation2 + $0x60] ss:$8 sps:$4 sm:$0xff]   ;;  %v21401_v20 = vld [vmem:[#allocation2 + $0x144] ss:$8 sps:$4 sm:$0xff]  }
 0x4fc   : > { %10659 = vmatpush1.bf16.msra.mxu1 %v21328_v62  ;;  %10405 = vmatprep.subr.bf16.mxu0 %v21333_v19  ;;  %v21395_v62 = vld [vmem:[#allocation2 + $0x154] ss:$8 sps:$4 sm:$0xff]   ;;  %v21393_v19 = vld [vmem:[#allocation2 + $0x150] ss:$8 sps:$4 sm:$0xff]   ;;  %v21404_v21 = vld [vmem:[#allocation2 + $0x44] ss:$8 sps:$4 sm:$0xff]  }
 0x4fd   : > { %10660 = vmatprep.subr.bf16.mxu1 %v21336_v14  ;;  %22683 = vrcp.f32 %v8636_v0  ;;  %v21396_v14 = vld [vmem:[#allocation2 + $0x50] ss:$8 sps:$4 sm:$0xff]   ;;  %v21399_v0 = vld [vmem:[#allocation2 + $0x140] ss:$8 sps:$4 sm:$0xff]  }
 0x4ff   : > { %10406 = vmatpush2.bf16.msra.mxu0 %v21331_v4  ;;  %v21402_v4 = vld [vmem:[#allocation2 + $0x40] ss:$8 sps:$4 sm:$0xff]  }
 0x500   : > { %10661 = vmatpush2.bf16.msra.mxu1 %v21334_v24  ;;  %10407 = vmatprep.subr.bf16.mxu0 %v21339_v25  ;;  %v21407_v24 = vld [vmem:[#allocation2 + $0x134] ss:$8 sps:$4 sm:$0xff]  }
 0x501   : > { %10662 = vmatprep.subr.bf16.mxu1 %v21342_v13  ;;  %v21410_v25 = vld [vmem:[#allocation2 + $0x34] ss:$8 sps:$4 sm:$0xff]   ;;  %v21405_v13 = vld [vmem:[#allocation2 + $0x130] ss:$8 sps:$4 sm:$0xff]  }
 0x503   : > { %10408 = vmatpush2.bf16.msra.mxu0 %v21337_v6  ;;  %v21408_v6 = vld [vmem:[#allocation2 + $0x30] ss:$8 sps:$4 sm:$0xff]  }
 0x504   : > { %10663 = vmatpush2.bf16.msra.mxu1 %v21340_v28  ;;  %v22678_v9 = vpop.eup %22677  ;;  %10409 = vmatprep.subr.bf16.mxu0 %v21345_v29  ;;  %v21413_v28 = vld [vmem:[#allocation2 + $0x124] ss:$8 sps:$4 sm:$0xff]  }
 0x505   : > { %10664 = vmatprep.subr.bf16.mxu1 %v21348_v34  ;;  %18227 = vst [vmem:[%s23031_s15 + $0xd0] sm:$0xff] %v22678_v9  ;;  %v21416_v29 = vld [vmem:[#allocation2 + $0x24] ss:$8 sps:$4 sm:$0xff]   ;;  %v21411_v34 = vld [vmem:[#allocation2 + $0x120] ss:$8 sps:$4 sm:$0xff]  }
 0x506   : > { %v22680_v10 = vpop.eup %22679  ;;  %v21422_v9 = vld [vmem:[#allocation2 + $0x14] ss:$8 sps:$4 sm:$0xff]  }
 0x507   : > { %18228 = vst [vmem:[%s23031_s15 + $0xd8] sm:$0xff] %v22680_v10  ;;  %10410 = vmatpush2.bf16.msra.mxu0 %v21343_v37  ;;  %v21414_v37 = vld [vmem:[#allocation2 + $0x20] ss:$8 sps:$4 sm:$0xff]   ;;  %v21425_v10 = vld [vmem:[#allocation2 + $0x104] ss:$8 sps:$4 sm:$0xff]  }
 0x508   : > { %10665 = vmatpush2.bf16.msra.mxu1 %v21346_v39  ;;  %v22682_v46 = vpop.eup %22681  ;;  %10411 = vmatprep.subr.bf16.mxu0 %v21351_v22  ;;  %v21419_v39 = vld [vmem:[#allocation2 + $0x114] ss:$8 sps:$4 sm:$0xff]   ;;  %v21417_v22 = vld [vmem:[#allocation2 + $0x110] ss:$8 sps:$4 sm:$0xff]  }
 0x509   : > { %10666 = vmatprep.subr.bf16.mxu1 %v21354_v23  ;;  %18229 = vst [vmem:[%s23031_s15 + $0xf0] sm:$0x1] %v22682_v46  ;;  %v21420_v23 = vld [vmem:[#allocation2 + $0x10] ss:$8 sps:$4 sm:$0xff]   ;;  %v21426_v46 = vld [vmem:[#allocation2] ss:$8 sps:$4 sm:$0xff]  }
 0x50a   : > { %v22684_v58 = vpop.eup %22683 }
 0x50b   : > { %18230 = vst [vmem:[%s23031_s15 + $0xf8] sm:$0x1] %v22684_v58  ;;  %10412 = vmatpush2.bf16.msra.mxu0 %v21349_v42  ;;  %v21428_v42 = vld [vmem:[#allocation2 + $0x4] ss:$8 sps:$4 sm:$0xff]   ;;  %v21429_v58 = vld [vmem:[#allocation2 + $0x1f0] ss:$8 sps:$4 sm:$0xff]  }
 0x50c   : > { %10667 = vmatpush2.bf16.msra.mxu1 %v21352_v44  ;;  %10413 = vmatprep.subr.bf16.mxu0 %v21357_v32  ;;  %v21423_v44 = vld [vmem:[#allocation2 + $0x100] ss:$8 sps:$4 sm:$0xff]   ;;  %v21431_v32 = vld [vmem:[#allocation2 + $0x1f4] ss:$8 sps:$4 sm:$0xff]  }
 0x50d   : > { %10668 = vmatprep.subr.bf16.mxu1 %v21360_v17  ;;  %v21434_v17 = vld [vmem:[#allocation2 + $0xf4] ss:$8 sps:$4 sm:$0xff]  }
 0x50f   : > { %10414 = vmatpush2.bf16.msra.mxu0 %v21355_v47  ;;  %v21432_v47 = vld [vmem:[#allocation2 + $0xf0] ss:$8 sps:$4 sm:$0xff]  }
 0x510   : > { %10669 = vmatpush2.bf16.msra.mxu1 %v21358_v48  ;;  %10415 = vmatprep.subr.bf16.mxu0 %v21363_v51  ;;  %v21437_v48 = vld [vmem:[#allocation2 + $0x1e4] ss:$8 sps:$4 sm:$0xff]  }
 0x511   : > { %10670 = vmatprep.subr.bf16.mxu1 %v21366_v53  ;;  %v21440_v51 = vld [vmem:[#allocation2 + $0xe4] ss:$8 sps:$4 sm:$0xff]   ;;  %v21435_v53 = vld [vmem:[#allocation2 + $0x1e0] ss:$8 sps:$4 sm:$0xff]  }
 0x513   : > { %10416 = vmatpush2.bf16.msra.mxu0 %v21361_v57  ;;  %v21446_v57 = vld [vmem:[#allocation2 + $0xd4] ss:$8 sps:$4 sm:$0xff]  }
 0x514   : > { %10671 = vmatpush2.bf16.msra.mxu1 %v21364_v43  ;;  %10417 = vmatprep.subr.bf16.mxu0 %v21369_v52  ;;  %v21441_v43 = vld [vmem:[#allocation2 + $0x1d0] ss:$8 sps:$4 sm:$0xff]  }
 0x515   : > { %10672 = vmatprep.subr.bf16.mxu1 %v21372_v59  ;;  %v21444_v52 = vld [vmem:[#allocation2 + $0xd0] ss:$8 sps:$4 sm:$0xff]   ;;  %v21449_v59 = vld [vmem:[#allocation2 + $0x1c4] ss:$8 sps:$4 sm:$0xff]  }
 0x517   : > { %10418 = vmatpush2.bf16.msra.mxu0 %v21367_v41  ;;  %v21450_v41 = vld [vmem:[#allocation2 + $0xc0] ss:$8 sps:$4 sm:$0xff]  }
 0x518   : > { %10673 = vmatpush2.bf16.msra.mxu1 %v21370_v55  ;;  %10419 = vmatprep.subr.bf16.mxu0 %v21375_v38  ;;  %v21455_v55 = vld [vmem:[#allocation2 + $0x1b4] ss:$8 sps:$4 sm:$0xff]  }
 0x519   : > { %10674 = vmatprep.subr.bf16.mxu1 %v21378_v63  ;;  %v21458_v38 = vld [vmem:[#allocation2 + $0xb4] ss:$8 sps:$4 sm:$0xff]   ;;  %v21453_v63 = vld [vmem:[#allocation2 + $0x1b0] ss:$8 sps:$4 sm:$0xff]  }
 0x51b   : > { %10420 = vmatpush2.bf16.msra.mxu0 %v21373_v50  ;;  %v18521_v50 = vcombine.low %v23233_v31, %v23236_v56  ;;  %v21465_v56 = vld [vmem:[#allocation2 + $0x190] ss:$8 sps:$4 sm:$0xff]  }
 0x51c   : > { %10675 = vmatpush2.bf16.msra.mxu1 %v21376_v3  ;;  %10973 = vmatprep.subr.bf16.mxu0 %v21383_v5  ;;  %v23243_v3 = vld [vmem:[%s22958_s8 + $0x60] sm:$0xff]  ;;  %v23246_v5 = vld [vmem:[%s22958_s8 + $0x68] sm:$0x11] }
 0x51d   : > { %11178 = vmatprep.subr.bf16.mxu1 %v21386_v7  ;;  %v21459_v7 = vld [vmem:[#allocation2 + $0x1a0] ss:$8 sps:$4 sm:$0xff]  }
 0x51e   : > { %10422 = vmatmul.mubr.bf16.vlgmr.msra.gmra.mxu0 %v18445_v27  ;;  %v21443_v27 = vld [vmem:[#allocation2 + $0x1d4] ss:$8 sps:$4 sm:$0xff]   ;;  %v8933_v30 = vpop.f32.mrf.mxu0 }
 0x51f   : > { %10677 = vmatmul.mubr.bf16.vlgmr.msra.gmra.mxu1 %v10474_v45  ;;  %10974 = vmatpush1.bf16.msra.mxu0 %v21381_v61  ;;  %v9138_v45 = vpop.f32.mrf.mxu1  ;;  %v21467_v61 = vld [vmem:[#allocation2 + $0x194] ss:$8 sps:$4 sm:$0xff]  }
 0x520   : > { %11179 = vmatpush1.bf16.msra.mxu1 %v21384_v36  ;;  %10975 = vmatprep.subr.bf16.mxu0 %v21389_v26  ;;  %v21470_v36 = vld [vmem:[#allocation2 + $0x94] ss:$8 sps:$4 sm:$0xff]   ;;  %v18590_v26 = vcombine.high %v23243_v3, %v23246_v5 }
 0x521   : > { %11180 = vmatprep.subr.bf16.mxu1 %v21392_v11  ;;  %11005 = vmatprep.mubr.bf16.mxu0 %v10810_v12  ;;  %v10800_v11 = vshll.u32 %v18521_v50, 16  ;;  %v21468_v12 = vld [vmem:[#allocation2 + $0x90] ss:$8 sps:$4 sm:$0xff]  }
 0x522   : > { %11210 = vmatprep.mubr.bf16.mxu1 %v18522_v60  ;;  %v21452_v60 = vld [vmem:[#allocation2 + $0xc4] ss:$8 sps:$4 sm:$0xff]  }
 0x523   : > { %10976 = vmatpush1.bf16.msra.mxu0 %v21387_v15  ;;  %v8935_v15 = vpop.f32.mrf.mxu0 }
 0x524   : > { %11181 = vmatpush1.bf16.msra.mxu1 %v21390_v16  ;;  %10977 = vmatprep.subr.bf16.mxu0 %v21395_v62  ;;  %v9140_v16 = vpop.f32.mrf.mxu1  ;;  %v21473_v62 = vld [vmem:[#allocation2 + $0x184] ss:$8 sps:$4 sm:$0xff]  }
 0x525   : > { %11182 = vmatprep.subr.bf16.mxu1 %v21398_v18  ;;  %v21476_v18 = vld [vmem:[#allocation2 + $0x84] ss:$8 sps:$4 sm:$0xff]  }
 0x527   : > { %10978 = vmatpush1.bf16.msra.mxu0 %v21393_v19  ;;  %v11515_v19 = vshll.u32 %v18590_v26, 16 }
 0x528   : > { %11183 = vmatpush1.bf16.msra.mxu1 %v21396_v14  ;;  %10979 = vmatprep.subr.bf16.mxu0 %v21401_v20  ;;  %v10798_v14 = vshrl.u32 %v18521_v50, 16  ;;  %v10802_v20 = vrot.slane %v10800_v11, 1  ;;  %v21497_v11 = vld [vmem:[#allocation2 + $0x240] ss:$8 sps:$4 sm:$0xff]  }
 0x529   : > { %11184 = vmatprep.subr.bf16.mxu1 %v21404_v21  ;;  %v21471_v21 = vld [vmem:[#allocation2 + $0x180] ss:$8 sps:$4 sm:$0xff]  }
 0x52b   : > { %10980 = vmatpush1.bf16.msra.mxu0 %v21399_v0  ;;  %v21474_v0 = vld [vmem:[#allocation2 + $0x80] ss:$8 sps:$4 sm:$0xff]  }
 0x52c   : > { %11185 = vmatpush1.bf16.msra.mxu1 %v21402_v4  ;;  %10981 = vmatprep.subr.bf16.mxu0 %v21407_v24  ;;  %v8937_v4 = vpop.f32.mrf.mxu0  ;;  %v9142_v24 = vpop.f32.mrf.mxu1 }
 0x52d   : > { %11186 = vmatprep.subr.bf16.mxu1 %v21410_v25  ;;  %v21481_v25 = vld [vmem:[#allocation2 + $0x274] ss:$8 sps:$4 sm:$0xff]  }
 0x52f   : > { %10982 = vmatpush1.bf16.msra.mxu0 %v21405_v13  ;;  %v21484_v13 = vld [vmem:[#allocation2 + $0x374] ss:$8 sps:$4 sm:$0xff]  }
 0x530   : > { %11187 = vmatpush1.bf16.msra.mxu1 %v21408_v6  ;;  %10983 = vmatprep.subr.bf16.mxu0 %v21413_v28  ;;  %v11513_v6 = vshrl.u32 %v18590_v26, 16  ;;  %v11517_v28 = vrot.slane %v11515_v19, 1  ;;  %v21503_v19 = vld [vmem:[#allocation2 + $0x230] ss:$8 sps:$4 sm:$0xff]  }
 0x531   : > { %11188 = vmatprep.subr.bf16.mxu1 %v21416_v29  ;;  %v10803_v29 = vor.u32 %v10802_v20, %v10798_v14  ;;  %v21506_v14 = vld [vmem:[#allocation2 + $0x330] ss:$8 sps:$4 sm:$0xff]   ;;  %v21511_v20 = vld [vmem:[#allocation2 + $0x224] ss:$8 sps:$4 sm:$0xff]  }
 0x533   : > { %10984 = vmatpush1.bf16.msra.mxu0 %v21411_v34  ;;  %v21479_v34 = vld [vmem:[#allocation2 + $0x270] ss:$8 sps:$4 sm:$0xff]  }
 0x534   : > { %11189 = vmatpush1.bf16.msra.mxu1 %v21414_v37  ;;  %10985 = vmatprep.subr.bf16.mxu0 %v21419_v39  ;;  %v21482_v37 = vld [vmem:[#allocation2 + $0x370] ss:$8 sps:$4 sm:$0xff]   ;;  %v8939_v39 = vpop.f32.mrf.mxu0 }
 0x535   : > { %11190 = vmatprep.subr.bf16.mxu1 %v21422_v9  ;;  %v9144_v9 = vpop.f32.mrf.mxu1 }
 0x537   : > { %10986 = vmatpush1.bf16.msra.mxu0 %v21417_v22  ;;  %v21487_v22 = vld [vmem:[#allocation2 + $0x264] ss:$8 sps:$4 sm:$0xff]  }
 0x538   : > { %11191 = vmatpush1.bf16.msra.mxu1 %v21420_v23  ;;  %10987 = vmatprep.subr.bf16.mxu0 %v21425_v10  ;;  %v21490_v23 = vld [vmem:[#allocation2 + $0x364] ss:$8 sps:$4 sm:$0xff]   ;;  %v9139_v10 = vadd.f32 %v9138_v45, %v8933_v30 }
 0x539   : > { %11192 = vmatprep.subr.bf16.mxu1 %v21428_v42  ;;  %v11518_v42 = vor.u32 %v11517_v28, %v11513_v6  ;;  %v21518_v6 = vld [vmem:[#allocation2 + $0x310] ss:$8 sps:$4 sm:$0xff]  }
 0x53b   : > { %10988 = vmatpush1.bf16.msra.mxu0 %v21423_v44 }
 0x53c   : > { %11193 = vmatpush1.bf16.msra.mxu1 %v21426_v46  ;;  %10989 = vmatprep.subr.bf16.mxu0 %v21431_v32  ;;  %v9141_v32 = vadd.f32 %v9140_v16, %v8935_v15  ;;  %v21508_v15 = vld [vmem:[#allocation2 + $0x334] ss:$8 sps:$4 sm:$0xff]  }
 0x53d   : > { %11194 = vmatprep.subr.bf16.mxu1 %v21434_v17 }
 0x53f   : > { %10990 = vmatpush2.bf16.msra.mxu0 %v21429_v58  ;;  %v21485_v58 = vld [vmem:[#allocation2 + $0x260] ss:$8 sps:$4 sm:$0xff]  }
 0x540   : > { %11195 = vmatpush2.bf16.msra.mxu1 %v21432_v47  ;;  %10991 = vmatprep.subr.bf16.mxu0 %v21437_v48  ;;  %v21488_v47 = vld [vmem:[#allocation2 + $0x360] ss:$8 sps:$4 sm:$0xff]  }
 0x541   : > { %11196 = vmatprep.subr.bf16.mxu1 %v21440_v51 }
 0x543   : > { %10992 = vmatpush2.bf16.msra.mxu0 %v21435_v53  ;;  %v21493_v53 = vld [vmem:[#allocation2 + $0x254] ss:$8 sps:$4 sm:$0xff]  }
 0x544   : > { %11197 = vmatpush2.bf16.msra.mxu1 %v21438_v54  ;;  %10993 = vmatprep.subr.bf16.mxu0 %v21443_v27  ;;  %v21496_v54 = vld [vmem:[#allocation2 + $0x354] ss:$8 sps:$4 sm:$0xff]   ;;  %v9143_v27 = vadd.f32 %v9142_v24, %v8937_v4  ;;  %v21512_v4 = vld [vmem:[#allocation2 + $0x320] ss:$8 sps:$4 sm:$0xff]  }
 0x545   : > { %11198 = vmatprep.subr.bf16.mxu1 %v21446_v57  ;;  %v21517_v24 = vld [vmem:[#allocation2 + $0x214] ss:$8 sps:$4 sm:$0xff]  }
 0x547   : > { %10994 = vmatpush2.bf16.msra.mxu0 %v21441_v43 }
 0x548   : > { %11199 = vmatpush2.bf16.msra.mxu1 %v21444_v52  ;;  %10995 = vmatprep.subr.bf16.mxu0 %v21449_v59  ;;  %v9145_v52 = vadd.f32 %v9144_v9, %v8939_v39 }
 0x549   : > { %11200 = vmatprep.subr.bf16.mxu1 %v21452_v60 }
 0x54b   : > { %10996 = vmatpush2.bf16.msra.mxu0 %v21447_v40 }
 0x54c   : > { %11201 = vmatpush2.bf16.msra.mxu1 %v21450_v41  ;;  %10997 = vmatprep.subr.bf16.mxu0 %v21455_v55 }
 0x54d   : > { %11202 = vmatprep.subr.bf16.mxu1 %v21458_v38  ;;  %v21491_v38 = vld [vmem:[#allocation2 + $0x250] ss:$8 sps:$4 sm:$0xff]  }
 0x54f   : > { %10998 = vmatpush2.bf16.msra.mxu0 %v21453_v63  ;;  %v21494_v63 = vld [vmem:[#allocation2 + $0x350] ss:$8 sps:$4 sm:$0xff]  }
 0x550   : > { %11203 = vmatpush2.bf16.msra.mxu1 %v21456_v1  ;;  %10999 = vmatprep.subr.bf16.mxu0 %v21461_v2  ;;  %v21499_v2 = vld [vmem:[#allocation2 + $0x244] ss:$8 sps:$4 sm:$0xff]  }
 0x551   : > { %11204 = vmatprep.subr.bf16.mxu1 %v21464_v49  ;;  %v21502_v49 = vld [vmem:[#allocation2 + $0x344] ss:$8 sps:$4 sm:$0xff]  }
 0x553   : > { %11000 = vmatpush2.bf16.msra.mxu0 %v21459_v7 }
 0x554   : > { %11205 = vmatpush2.bf16.msra.mxu1 %v21462_v8  ;;  %11001 = vmatprep.subr.bf16.mxu0 %v21467_v61 }
 0x555   : > { %11206 = vmatprep.subr.bf16.mxu1 %v21470_v36 }
 0x557   : > { %11002 = vmatpush2.bf16.msra.mxu0 %v21465_v56  ;;  %v21500_v56 = vld [vmem:[#allocation2 + $0x340] ss:$8 sps:$4 sm:$0xff]  }
 0x558   : > { %11207 = vmatpush2.bf16.msra.mxu1 %v21468_v12  ;;  %11003 = vmatprep.subr.bf16.mxu0 %v21473_v62  ;;  %v21505_v12 = vld [vmem:[#allocation2 + $0x234] ss:$8 sps:$4 sm:$0xff]  }
 0x559   : > { %11208 = vmatprep.subr.bf16.mxu1 %v21476_v18 }
 0x55b   : > { %11004 = vmatpush2.bf16.msra.mxu0 %v21471_v21  ;;  %v21514_v21 = vld [vmem:[#allocation2 + $0x324] ss:$8 sps:$4 sm:$0xff]  }
 0x55c   : > { %11209 = vmatpush2.bf16.msra.mxu1 %v21474_v0  ;;  %11426 = vmatprep.subr.bf16.mxu0 %v21481_v25  ;;  %v21509_v0 = vld [vmem:[#allocation2 + $0x220] ss:$8 sps:$4 sm:$0xff]   ;;  %v21520_v25 = vld [vmem:[#allocation2 + $0x314] ss:$8 sps:$4 sm:$0xff]  }
 0x55d   : > { %11681 = vmatprep.subr.bf16.mxu1 %v21484_v13  ;;  %v21515_v13 = vld [vmem:[#allocation2 + $0x210] ss:$8 sps:$4 sm:$0xff]  }
 0x55e   : > { %v9386_v44 = vpop.f32.mrf.mxu0  ;;  %11006 = vmatmul.mubr.bf16.vlgmr.msra.gmra.mxu0 %v10803_v29  ;;  %v21523_v29 = vld [vmem:[#allocation2 + $0x204] ss:$8 sps:$4 sm:$0xff]  }
 0x55f   : > { %v9641_v46 = vpop.f32.mrf.mxu1  ;;  %11211 = vmatmul.mubr.bf16.vlgmr.msra.gmra.mxu1 %v18521_v50  ;;  %v9395_v17 = vadd.f32 %v9386_v44, %v9139_v10  ;;  %11427 = vmatpush1.bf16.msra.mxu0 %v21479_v34  ;;  %v21526_v34 = vld [vmem:[#allocation2 + $0x304] ss:$8 sps:$4 sm:$0xff]   ;;  %v21532_v44 = vld [vmem:[#allocation2 + $0x3f4] ss:$8 sps:$4 sm:$0xff]  }
 0x560   : > { %11682 = vmatpush1.bf16.msra.mxu1 %v21482_v37  ;;  %v9388_v48 = vpop.f32.mrf.mxu0  ;;  %11428 = vmatprep.subr.bf16.mxu0 %v21487_v22  ;;  %v21521_v22 = vld [vmem:[#allocation2 + $0x200] ss:$8 sps:$4 sm:$0xff]  }
 0x561   : > { %v9643_v51 = vpop.f32.mrf.mxu1  ;;  %11683 = vmatprep.subr.bf16.mxu1 %v21490_v23  ;;  %v9650_v57 = vadd.f32 %v9641_v46, %v9395_v17  ;;  %v9396_v43 = vadd.f32 %v9388_v48, %v9141_v32  ;;  %11458 = vmatprep.mubr.bf16.mxu0 %v18590_v26  ;;  %v21524_v23 = vld [vmem:[#allocation2 + $0x300] ss:$8 sps:$4 sm:$0xff]   ;;  %v21535_v48 = vld [vmem:[#allocation2 + $0x2e4] ss:$8 sps:$4 sm:$0xff]  }
 0x562   : > { %11713 = vmatprep.mubr.bf16.mxu1 %v11518_v42  ;;  %v9390_v59 = vpop.f32.mrf.mxu0  ;;  %v21529_v42 = vld [vmem:[#allocation2 + $0x2f4] ss:$8 sps:$4 sm:$0xff]  }
 0x563   : > { %v9645_v60 = vpop.f32.mrf.mxu1  ;;  %v9654_v40 = vadd.f32 %v9650_v57, %v23015_v33  ;;  %v9651_v41 = vadd.f32 %v9643_v51, %v9396_v43  ;;  %v9397_v55 = vadd.f32 %v9390_v59, %v9143_v27  ;;  %11429 = vmatpush1.bf16.msra.mxu0 %v21485_v58  ;;  %v21527_v58 = vld [vmem:[#allocation2 + $0x2f0] ss:$8 sps:$4 sm:$0xff]   ;;  %v21538_v51 = vld [vmem:[#allocation2 + $0x3e4] ss:$8 sps:$4 sm:$0xff]   ;;  %v21541_v27 = vld [vmem:[#allocation2 + $0x2d4] ss:$8 sps:$4 sm:$0xff]  }
 0x564   : > { %11684 = vmatpush1.bf16.msra.mxu1 %v21488_v47  ;;  %v9392_v1 = vpop.f32.mrf.mxu0  ;;  %11430 = vmatprep.subr.bf16.mxu0 %v21493_v53  ;;  %v21530_v47 = vld [vmem:[#allocation2 + $0x3f0] ss:$8 sps:$4 sm:$0xff]   ;;  %v21533_v53 = vld [vmem:[#allocation2 + $0x2e0] ss:$8 sps:$4 sm:$0xff]   ;;  %v21544_v57 = vld [vmem:[#allocation2 + $0x3d4] ss:$8 sps:$4 sm:$0xff]  }
 0x565   : > { %11685 = vmatprep.subr.bf16.mxu1 %v21496_v54  ;;  %v18367_v50 = vmul.f32 -1.442695, %v9654_v40  ;;  %v9655_v7 = vadd.f32 %v9651_v41, %v23017_v35  ;;  %v9652_v8 = vadd.f32 %v9645_v60, %v9397_v55  ;;  %v9398_v30 = vadd.f32 %v9392_v1, %v9145_v52  ;;  %v9647_v45 = vpop.f32.mrf.mxu1  ;;  %v21536_v54 = vld [vmem:[#allocation2 + $0x3e0] ss:$8 sps:$4 sm:$0xff]   ;;  %v21539_v43 = vld [vmem:[#allocation2 + $0x2d0] ss:$8 sps:$4 sm:$0xff]  }
 0x566   : > { %v21542_v52 = vld [vmem:[#allocation2 + $0x3d0] ss:$8 sps:$4 sm:$0xff]   ;;  %v21547_v60 = vld [vmem:[#allocation2 + $0x2c4] ss:$8 sps:$4 sm:$0xff]   ;;  %v21545_v55 = vld [vmem:[#allocation2 + $0x2c0] ss:$8 sps:$4 sm:$0xff]  }
 0x567   : > { %22685 = vpow2.f32 %v18367_v50  ;;  %v18368_v61 = vmul.f32 -1.442695, %v9655_v7  ;;  %v9656_v36 = vadd.f32 %v9652_v8, %v23015_v33  ;;  %v9653_v26 = vadd.f32 %v9647_v45, %v9398_v30  ;;  %11431 = vmatpush1.bf16.msra.mxu0 %v21491_v38  ;;  %v21550_v40 = vld [vmem:[#allocation2 + $0x3c4] ss:$8 sps:$4 sm:$0xff]   ;;  %v21548_v38 = vld [vmem:[#allocation2 + $0x3c0] ss:$8 sps:$4 sm:$0xff]  }
 0x568   : > { %11686 = vmatpush1.bf16.msra.mxu1 %v21494_v63  ;;  %11432 = vmatprep.subr.bf16.mxu0 %v21499_v2  ;;  %v21553_v1 = vld [vmem:[#allocation2 + $0x2b4] ss:$8 sps:$4 sm:$0xff]   ;;  %v21551_v50 = vld [vmem:[#allocation2 + $0x2b0] ss:$8 sps:$4 sm:$0xff]   ;;  %v21559_v8 = vld [vmem:[#allocation2 + $0x2a4] ss:$8 sps:$4 sm:$0xff]   ;;  %v18589_v45 = vcombine.low %v23243_v3, %v23246_v5 }
 0x569   : > { %11687 = vmatprep.subr.bf16.mxu1 %v21502_v49  ;;  %22687 = vpow2.f32 %v18368_v61  ;;  %v18369_v16 = vmul.f32 -1.442695, %v9656_v36  ;;  %v9657_v62 = vadd.f32 %v9653_v26, %v23017_v35  ;;  %v21556_v2 = vld [vmem:[#allocation2 + $0x3b4] ss:$8 sps:$4 sm:$0xff]   ;;  %v21554_v7 = vld [vmem:[#allocation2 + $0x3b0] ss:$8 sps:$4 sm:$0xff]  }
 0x56a   : > { %v21562_v30 = vld [vmem:[#allocation2 + $0x3a4] ss:$8 sps:$4 sm:$0xff]   ;;  %v23261_v61 = vld [vmem:[%s22958_s8 + $0x58] sm:$0x11]  ;;  %v21557_v36 = vld [vmem:[#allocation2 + $0x2a0] ss:$8 sps:$4 sm:$0xff]  }
 0x56b   : > { %22689 = vpow2.f32 %v18369_v16  ;;  %v18370_v18 = vmul.f32 -1.442695, %v9657_v62  ;;  %11433 = vmatpush1.bf16.msra.mxu0 %v21497_v11  ;;  %v21560_v26 = vld [vmem:[#allocation2 + $0x3a0] ss:$8 sps:$4 sm:$0xff]   ;;  %v21565_v11 = vld [vmem:[#allocation2 + $0x294] ss:$8 sps:$4 sm:$0xff]  }
 0x56c   : > { %11688 = vmatpush1.bf16.msra.mxu1 %v21500_v56  ;;  %11434 = vmatprep.subr.bf16.mxu0 %v21505_v12  ;;  %v21568_v56 = vld [vmem:[#allocation2 + $0x394] ss:$8 sps:$4 sm:$0xff]   ;;  %v18666_v12 = vcombine.high %v23233_v31, %v23261_v61  ;;  %v21563_v16 = vld [vmem:[#allocation2 + $0x290] ss:$8 sps:$4 sm:$0xff]   ;;  %v21571_v5 = vld [vmem:[#allocation2 + $0x284] ss:$8 sps:$4 sm:$0xff]  }
 0x56d   : > { %11689 = vmatprep.subr.bf16.mxu1 %v21508_v15  ;;  %22691 = vpow2.f32 %v18370_v18  ;;  %v11508_v15 = vshll.u32 %v18589_v45, 16  ;;  %v21566_v62 = vld [vmem:[#allocation2 + $0x390] ss:$8 sps:$4 sm:$0xff]   ;;  %v21574_v18 = vld [vmem:[#allocation2 + $0x384] ss:$8 sps:$4 sm:$0xff]  }
 0x56f   : > { %11435 = vmatpush1.bf16.msra.mxu0 %v21503_v19  ;;  %v11845_v19 = vshll.u32 %v18666_v12, 16 }
 0x570   : > { %11690 = vmatpush1.bf16.msra.mxu1 %v21506_v14  ;;  %11436 = vmatprep.subr.bf16.mxu0 %v21511_v20  ;;  %v11506_v14 = vshrl.u32 %v18589_v45, 16  ;;  %v11510_v20 = vrot.slane %v11508_v15, 1  ;;  %v21648_v15 = vld [vmem:[#allocation2 + $0x4c4] ss:$8 sps:$4 sm:$0xff]  }
 0x571   : > { %11691 = vmatprep.subr.bf16.mxu1 %v21514_v21  ;;  %v21569_v21 = vld [vmem:[#allocation2 + $0x280] ss:$8 sps:$4 sm:$0xff]  }
 0x573   : > { %11437 = vmatpush1.bf16.msra.mxu0 %v21509_v0  ;;  %v21572_v0 = vld [vmem:[#allocation2 + $0x380] ss:$8 sps:$4 sm:$0xff]  }
 0x574   : > { %11692 = vmatpush1.bf16.msra.mxu1 %v21512_v4  ;;  %v22686_v28 = vpop.eup %22685  ;;  %11438 = vmatprep.subr.bf16.mxu0 %v21517_v24  ;;  %v21579_v4 = vld [vmem:[#allocation2 + $0x574] ss:$8 sps:$4 sm:$0xff]  }
 0x575   : > { %11693 = vmatprep.subr.bf16.mxu1 %v21520_v25  ;;  %v9670_v37 = vadd.f32 1.0, %v22686_v28  ;;  %v21582_v24 = vld [vmem:[#allocation2 + $0x474] ss:$8 sps:$4 sm:$0xff]   ;;  %v11843_v25 = vshrl.u32 %v18666_v12, 16  ;;  %v21577_v28 = vld [vmem:[#allocation2 + $0x570] ss:$8 sps:$4 sm:$0xff]  }
 0x576   : > { %v22688_v39 = vpop.eup %22687 }
 0x577   : > { %22693 = vrcp.f32 %v9670_v37  ;;  %v9671_v9 = vadd.f32 1.0, %v22688_v39  ;;  %11439 = vmatpush1.bf16.msra.mxu0 %v21515_v13  ;;  %v11847_v13 = vrot.slane %v11845_v19, 1  ;;  %v21588_v37 = vld [vmem:[#allocation2 + $0x464] ss:$8 sps:$4 sm:$0xff]   ;;  %v21649_v19 = vld [vmem:[#allocation2 + $0x5b0] ss:$8 sps:$4 sm:$0xff]  }
 0x578   : > { %11694 = vmatpush1.bf16.msra.mxu1 %v21518_v6  ;;  %v22690_v10 = vpop.eup %22689  ;;  %11440 = vmatprep.subr.bf16.mxu0 %v21523_v29  ;;  %v11511_v6 = vor.u32 %v11510_v20, %v11506_v14  ;;  %v21580_v29 = vld [vmem:[#allocation2 + $0x470] ss:$8 sps:$4 sm:$0xff]   ;;  %v21657_v20 = vld [vmem:[#allocation2 + $0x5a4] ss:$8 sps:$4 sm:$0xff]  }
 0x579   : > { %11695 = vmatprep.subr.bf16.mxu1 %v21526_v34  ;;  %22695 = vrcp.f32 %v9671_v9  ;;  %v9672_v46 = vadd.f32 1.0, %v22690_v10  ;;  %v21585_v34 = vld [vmem:[#allocation2 + $0x564] ss:$8 sps:$4 sm:$0xff]   ;;  %v11848_v39 = vor.u32 %v11847_v13, %v11843_v25  ;;  %v21583_v9 = vld [vmem:[#allocation2 + $0x560] ss:$8 sps:$4 sm:$0xff]  }
 0x57a   : > { %v22692_v32 = vpop.eup %22691  ;;  %v21594_v10 = vld [vmem:[#allocation2 + $0x454] ss:$8 sps:$4 sm:$0xff]   ;;  %v21652_v14 = vld [vmem:[#allocation2 + $0x4b0] ss:$8 sps:$4 sm:$0xff]   ;;  %v21658_v25 = vld [vmem:[#allocation2 + $0x4a0] ss:$8 sps:$4 sm:$0xff]  }
 0x57b   : > { %22697 = vrcp.f32 %v9672_v46  ;;  %v9673_v17 = vadd.f32 1.0, %v22692_v32  ;;  %11441 = vmatpush1.bf16.msra.mxu0 %v21521_v22  ;;  %v21586_v22 = vld [vmem:[#allocation2 + $0x460] ss:$8 sps:$4 sm:$0xff]   ;;  %v21597_v46 = vld [vmem:[#allocation2 + $0x544] ss:$8 sps:$4 sm:$0xff]  }
 0x57c   : > { %11696 = vmatpush1.bf16.msra.mxu1 %v21524_v23  ;;  %11442 = vmatprep.subr.bf16.mxu0 %v21529_v42  ;;  %v21591_v23 = vld [vmem:[#allocation2 + $0x554] ss:$8 sps:$4 sm:$0xff]   ;;  %v21589_v42 = vld [vmem:[#allocation2 + $0x550] ss:$8 sps:$4 sm:$0xff]   ;;  %v21600_v32 = vld [vmem:[#allocation2 + $0x444] ss:$8 sps:$4 sm:$0xff]  }
 0x57d   : > { %11697 = vmatprep.subr.bf16.mxu1 %v21532_v44  ;;  %22699 = vrcp.f32 %v9673_v17  ;;  %v21592_v44 = vld [vmem:[#allocation2 + $0x450] ss:$8 sps:$4 sm:$0xff]   ;;  %v21595_v17 = vld [vmem:[#allocation2 + $0x540] ss:$8 sps:$4 sm:$0xff]  }
 0x57f   : > { %11443 = vmatpush2.bf16.msra.mxu0 %v21527_v58  ;;  %v21598_v58 = vld [vmem:[#allocation2 + $0x440] ss:$8 sps:$4 sm:$0xff]  }
 0x580   : > { %11698 = vmatpush2.bf16.msra.mxu1 %v21530_v47  ;;  %11444 = vmatprep.subr.bf16.mxu0 %v21535_v48  ;;  %v21603_v47 = vld [vmem:[#allocation2 + $0x534] ss:$8 sps:$4 sm:$0xff]  }
 0x581   : > { %11699 = vmatprep.subr.bf16.mxu1 %v21538_v51  ;;  %v21606_v48 = vld [vmem:[#allocation2 + $0x434] ss:$8 sps:$4 sm:$0xff]   ;;  %v21601_v51 = vld [vmem:[#allocation2 + $0x530] ss:$8 sps:$4 sm:$0xff]  }
 0x583   : > { %11445 = vmatpush2.bf16.msra.mxu0 %v21533_v53  ;;  %v21604_v53 = vld [vmem:[#allocation2 + $0x430] ss:$8 sps:$4 sm:$0xff]  }
 0x584   : > { %11700 = vmatpush2.bf16.msra.mxu1 %v21536_v54  ;;  %v22694_v59 = vpop.eup %22693  ;;  %11446 = vmatprep.subr.bf16.mxu0 %v21541_v27  ;;  %v21609_v54 = vld [vmem:[#allocation2 + $0x524] ss:$8 sps:$4 sm:$0xff]  }
 0x585   : > { %11701 = vmatprep.subr.bf16.mxu1 %v21544_v57  ;;  %18371 = vst [vmem:[%s23031_s15 + $0x100] sm:$0xff] %v22694_v59  ;;  %v21612_v27 = vld [vmem:[#allocation2 + $0x424] ss:$8 sps:$4 sm:$0xff]   ;;  %v21607_v57 = vld [vmem:[#allocation2 + $0x520] ss:$8 sps:$4 sm:$0xff]  }
 0x586   : > { %v22696_v41 = vpop.eup %22695  ;;  %v21618_v59 = vld [vmem:[#allocation2 + $0x414] ss:$8 sps:$4 sm:$0xff]  }
 0x587   : > { %18372 = vst [vmem:[%s23031_s15 + $0x108] sm:$0xff] %v22696_v41  ;;  %11447 = vmatpush2.bf16.msra.mxu0 %v21539_v43  ;;  %v21610_v43 = vld [vmem:[#allocation2 + $0x420] ss:$8 sps:$4 sm:$0xff]   ;;  %v21621_v41 = vld [vmem:[#allocation2 + $0x504] ss:$8 sps:$4 sm:$0xff]  }
 0x588   : > { %11702 = vmatpush2.bf16.msra.mxu1 %v21542_v52  ;;  %v22698_v63 = vpop.eup %22697  ;;  %11448 = vmatprep.subr.bf16.mxu0 %v21547_v60  ;;  %v21615_v52 = vld [vmem:[#allocation2 + $0x514] ss:$8 sps:$4 sm:$0xff]   ;;  %v21613_v60 = vld [vmem:[#allocation2 + $0x510] ss:$8 sps:$4 sm:$0xff]  }
 0x589   : > { %11703 = vmatprep.subr.bf16.mxu1 %v21550_v40  ;;  %18373 = vst [vmem:[%s23031_s15 + $0x120] sm:$0x1] %v22698_v63  ;;  %v21616_v40 = vld [vmem:[#allocation2 + $0x410] ss:$8 sps:$4 sm:$0xff]   ;;  %v21622_v63 = vld [vmem:[#allocation2 + $0x400] ss:$8 sps:$4 sm:$0xff]  }
 0x58a   : > { %v22700_v49 = vpop.eup %22699 }
 0x58b   : > { %18374 = vst [vmem:[%s23031_s15 + $0x128] sm:$0x1] %v22700_v49  ;;  %11449 = vmatpush2.bf16.msra.mxu0 %v21545_v55  ;;  %v21624_v55 = vld [vmem:[#allocation2 + $0x404] ss:$8 sps:$4 sm:$0xff]   ;;  %v21625_v49 = vld [vmem:[#allocation2 + $0x5f0] ss:$8 sps:$4 sm:$0xff]  }
 0x58c   : > { %11704 = vmatpush2.bf16.msra.mxu1 %v21548_v38  ;;  %11450 = vmatprep.subr.bf16.mxu0 %v21553_v1  ;;  %v21619_v38 = vld [vmem:[#allocation2 + $0x500] ss:$8 sps:$4 sm:$0xff]   ;;  %v21627_v1 = vld [vmem:[#allocation2 + $0x5f4] ss:$8 sps:$4 sm:$0xff]  }
 0x58d   : > { %11705 = vmatprep.subr.bf16.mxu1 %v21556_v2  ;;  %v21630_v2 = vld [vmem:[#allocation2 + $0x4f4] ss:$8 sps:$4 sm:$0xff]  }
 0x58f   : > { %11451 = vmatpush2.bf16.msra.mxu0 %v21551_v50  ;;  %v21628_v50 = vld [vmem:[#allocation2 + $0x4f0] ss:$8 sps:$4 sm:$0xff]  }
 0x590   : > { %11706 = vmatpush2.bf16.msra.mxu1 %v21554_v7  ;;  %11452 = vmatprep.subr.bf16.mxu0 %v21559_v8  ;;  %v21633_v7 = vld [vmem:[#allocation2 + $0x5e4] ss:$8 sps:$4 sm:$0xff]  }
 0x591   : > { %11707 = vmatprep.subr.bf16.mxu1 %v21562_v30  ;;  %v21636_v8 = vld [vmem:[#allocation2 + $0x4e4] ss:$8 sps:$4 sm:$0xff]   ;;  %v21631_v30 = vld [vmem:[#allocation2 + $0x5e0] ss:$8 sps:$4 sm:$0xff]  }
 0x593   : > { %11453 = vmatpush2.bf16.msra.mxu0 %v21557_v36  ;;  %v21639_v36 = vld [vmem:[#allocation2 + $0x5d4] ss:$8 sps:$4 sm:$0xff]  }
 0x594   : > { %11708 = vmatpush2.bf16.msra.mxu1 %v21560_v26  ;;  %11454 = vmatprep.subr.bf16.mxu0 %v21565_v11  ;;  %v21642_v26 = vld [vmem:[#allocation2 + $0x4d4] ss:$8 sps:$4 sm:$0xff]   ;;  %v21637_v11 = vld [vmem:[#allocation2 + $0x5d0] ss:$8 sps:$4 sm:$0xff]  }
 0x595   : > { %11709 = vmatprep.subr.bf16.mxu1 %v21568_v56  ;;  %v21640_v56 = vld [vmem:[#allocation2 + $0x4d0] ss:$8 sps:$4 sm:$0xff]  }
 0x597   : > { %11455 = vmatpush2.bf16.msra.mxu0 %v21563_v16  ;;  %v21643_v16 = vld [vmem:[#allocation2 + $0x5c0] ss:$8 sps:$4 sm:$0xff]  }
 0x598   : > { %11710 = vmatpush2.bf16.msra.mxu1 %v21566_v62  ;;  %11456 = vmatprep.subr.bf16.mxu0 %v21571_v5  ;;  %v21646_v62 = vld [vmem:[#allocation2 + $0x4c0] ss:$8 sps:$4 sm:$0xff]   ;;  %v21651_v5 = vld [vmem:[#allocation2 + $0x5b4] ss:$8 sps:$4 sm:$0xff]  }
 0x599   : > { %11711 = vmatprep.subr.bf16.mxu1 %v21574_v18  ;;  %v21654_v18 = vld [vmem:[#allocation2 + $0x4b4] ss:$8 sps:$4 sm:$0xff]  }
 0x59b   : > { %11457 = vmatpush2.bf16.msra.mxu0 %v21569_v21  ;;  %v21660_v21 = vld [vmem:[#allocation2 + $0x4a4] ss:$8 sps:$4 sm:$0xff]  }
 0x59c   : > { %11712 = vmatpush2.bf16.msra.mxu1 %v21572_v0  ;;  %12011 = vmatprep.subr.bf16.mxu0 %v21579_v4  ;;  %v18665_v0 = vcombine.low %v23233_v31, %v23261_v61  ;;  %v23268_v4 = vld [vmem:[%s22958_s8 + $0x68] sm:$0x11]  ;;  %v21664_v31 = vld [vmem:[#allocation2 + $0x490] ss:$8 sps:$4 sm:$0xff]  }
 0x59d   : > { %12216 = vmatprep.subr.bf16.mxu1 %v21582_v24  ;;  %v21655_v24 = vld [vmem:[#allocation2 + $0x5a0] ss:$8 sps:$4 sm:$0xff]  }
 0x59e   : > { %11459 = vmatmul.mubr.bf16.vlgmr.msra.gmra.mxu0 %v18589_v45  ;;  %v21634_v45 = vld [vmem:[#allocation2 + $0x4e0] ss:$8 sps:$4 sm:$0xff]   ;;  %v9971_v13 = vpop.f32.mrf.mxu0 }
 0x59f   : > { %11714 = vmatmul.mubr.bf16.vlgmr.msra.gmra.mxu1 %v11511_v6  ;;  %12012 = vmatpush1.bf16.msra.mxu0 %v21577_v28  ;;  %v10176_v6 = vpop.f32.mrf.mxu1  ;;  %v21663_v28 = vld [vmem:[#allocation2 + $0x594] ss:$8 sps:$4 sm:$0xff]  }
 0x5a0   : > { %12217 = vmatpush1.bf16.msra.mxu1 %v21580_v29  ;;  %12013 = vmatprep.subr.bf16.mxu0 %v21585_v34  ;;  %v21666_v29 = vld [vmem:[#allocation2 + $0x494] ss:$8 sps:$4 sm:$0xff]   ;;  %v18734_v34 = vcombine.high %v23243_v3, %v23268_v4  ;;  %v9973_v61 = vpop.f32.mrf.mxu0 }
 0x5a1   : > { %12218 = vmatprep.subr.bf16.mxu1 %v21588_v37  ;;  %12043 = vmatprep.mubr.bf16.mxu0 %v11848_v39  ;;  %v11838_v37 = vshll.u32 %v18665_v0, 16  ;;  %v21661_v39 = vld [vmem:[#allocation2 + $0x590] ss:$8 sps:$4 sm:$0xff]  }
 0x5a2   : > { %12248 = vmatprep.mubr.bf16.mxu1 %v18666_v12  ;;  %v21645_v12 = vld [vmem:[#allocation2 + $0x5c4] ss:$8 sps:$4 sm:$0xff]  }
 0x5a3   : > { %12014 = vmatpush1.bf16.msra.mxu0 %v21583_v9  ;;  %v10178_v9 = vpop.f32.mrf.mxu1 }
 0x5a4   : > { %12219 = vmatpush1.bf16.msra.mxu1 %v21586_v22  ;;  %12015 = vmatprep.subr.bf16.mxu0 %v21591_v23  ;;  %v21669_v22 = vld [vmem:[#allocation2 + $0x584] ss:$8 sps:$4 sm:$0xff]  }
 0x5a5   : > { %12220 = vmatprep.subr.bf16.mxu1 %v21594_v10  ;;  %v21672_v23 = vld [vmem:[#allocation2 + $0x484] ss:$8 sps:$4 sm:$0xff]   ;;  %v12552_v10 = vshll.u32 %v18734_v34, 16  ;;  %v10180_v3 = vpop.f32.mrf.mxu1 }
 0x5a7   : > { %12016 = vmatpush1.bf16.msra.mxu0 %v21589_v42  ;;  %v11836_v42 = vshrl.u32 %v18665_v0, 16 }
 0x5a8   : > { %12221 = vmatpush1.bf16.msra.mxu1 %v21592_v44  ;;  %12017 = vmatprep.subr.bf16.mxu0 %v21597_v46  ;;  %v11840_v44 = vrot.slane %v11838_v37, 1  ;;  %v21667_v46 = vld [vmem:[#allocation2 + $0x580] ss:$8 sps:$4 sm:$0xff]   ;;  %v21701_v37 = vld [vmem:[#allocation2 + $0x634] ss:$8 sps:$4 sm:$0xff]  }
 0x5a9   : > { %12222 = vmatprep.subr.bf16.mxu1 %v21600_v32  ;;  %v21670_v32 = vld [vmem:[#allocation2 + $0x480] ss:$8 sps:$4 sm:$0xff]  }
 0x5ab   : > { %12018 = vmatpush1.bf16.msra.mxu0 %v21595_v17  ;;  %v9975_v17 = vpop.f32.mrf.mxu0 }
 0x5ac   : > { %12223 = vmatpush1.bf16.msra.mxu1 %v21598_v58  ;;  %12019 = vmatprep.subr.bf16.mxu0 %v21603_v47  ;;  %v21677_v58 = vld [vmem:[#allocation2 + $0x674] ss:$8 sps:$4 sm:$0xff]  }
 0x5ad   : > { %12224 = vmatprep.subr.bf16.mxu1 %v21606_v48  ;;  %v21680_v47 = vld [vmem:[#allocation2 + $0x774] ss:$8 sps:$4 sm:$0xff]   ;;  %v12550_v48 = vshrl.u32 %v18734_v34, 16 }
 0x5af   : > { %12020 = vmatpush1.bf16.msra.mxu0 %v21601_v51  ;;  %v12554_v51 = vrot.slane %v12552_v10, 1  ;;  %v21707_v10 = vld [vmem:[#allocation2 + $0x624] ss:$8 sps:$4 sm:$0xff]  }
 0x5b0   : > { %12225 = vmatpush1.bf16.msra.mxu1 %v21604_v53  ;;  %12021 = vmatprep.subr.bf16.mxu0 %v21609_v54  ;;  %v11841_v53 = vor.u32 %v11840_v44, %v11836_v42  ;;  %v21675_v54 = vld [vmem:[#allocation2 + $0x670] ss:$8 sps:$4 sm:$0xff]   ;;  %v21710_v42 = vld [vmem:[#allocation2 + $0x724] ss:$8 sps:$4 sm:$0xff]   ;;  %v21705_v44 = vld [vmem:[#allocation2 + $0x620] ss:$8 sps:$4 sm:$0xff]  }
 0x5b1   : > { %12226 = vmatprep.subr.bf16.mxu1 %v21612_v27  ;;  %v21678_v27 = vld [vmem:[#allocation2 + $0x770] ss:$8 sps:$4 sm:$0xff]  }
 0x5b3   : > { %12022 = vmatpush1.bf16.msra.mxu0 %v21607_v57  ;;  %v9977_v57 = vpop.f32.mrf.mxu0 }
 0x5b4   : > { %12227 = vmatpush1.bf16.msra.mxu1 %v21610_v43  ;;  %12023 = vmatprep.subr.bf16.mxu0 %v21615_v52  ;;  %v10182_v43 = vpop.f32.mrf.mxu1  ;;  %v21683_v52 = vld [vmem:[#allocation2 + $0x664] ss:$8 sps:$4 sm:$0xff]  }
 0x5b5   : > { %12228 = vmatprep.subr.bf16.mxu1 %v21618_v59  ;;  %v21686_v59 = vld [vmem:[#allocation2 + $0x764] ss:$8 sps:$4 sm:$0xff]  }
 0x5b7   : > { %12024 = vmatpush1.bf16.msra.mxu0 %v21613_v60  ;;  %v10177_v60 = vadd.f32 %v10176_v6, %v9971_v13 }
 0x5b8   : > { %12229 = vmatpush1.bf16.msra.mxu1 %v21616_v40  ;;  %12025 = vmatprep.subr.bf16.mxu0 %v21621_v41  ;;  %v12555_v40 = vor.u32 %v12554_v51, %v12550_v48  ;;  %v21719_v48 = vld [vmem:[#allocation2 + $0x604] ss:$8 sps:$4 sm:$0xff]  }
 0x5b9   : > { %12230 = vmatprep.subr.bf16.mxu1 %v21624_v55  ;;  %v21722_v51 = vld [vmem:[#allocation2 + $0x704] ss:$8 sps:$4 sm:$0xff]  }
 0x5bb   : > { %12026 = vmatpush1.bf16.msra.mxu0 %v21619_v38  ;;  %v10179_v38 = vadd.f32 %v10178_v9, %v9973_v61 }
 0x5bc   : > { %12231 = vmatpush1.bf16.msra.mxu1 %v21622_v63  ;;  %12027 = vmatprep.subr.bf16.mxu0 %v21627_v1  ;;  %v21681_v1 = vld [vmem:[#allocation2 + $0x660] ss:$8 sps:$4 sm:$0xff]  }
 0x5bd   : > { %12232 = vmatprep.subr.bf16.mxu1 %v21630_v2  ;;  %v21684_v2 = vld [vmem:[#allocation2 + $0x760] ss:$8 sps:$4 sm:$0xff]  }
 0x5bf   : > { %12028 = vmatpush2.bf16.msra.mxu0 %v21625_v49 }
 0x5c0   : > { %12233 = vmatpush2.bf16.msra.mxu1 %v21628_v50  ;;  %12029 = vmatprep.subr.bf16.mxu0 %v21633_v7  ;;  %v21689_v7 = vld [vmem:[#allocation2 + $0x654] ss:$8 sps:$4 sm:$0xff]  }
 0x5c1   : > { %12234 = vmatprep.subr.bf16.mxu1 %v21636_v8  ;;  %v21692_v8 = vld [vmem:[#allocation2 + $0x754] ss:$8 sps:$4 sm:$0xff]  }
 0x5c3   : > { %12030 = vmatpush2.bf16.msra.mxu0 %v21631_v30  ;;  %v10181_v30 = vadd.f32 %v10180_v3, %v9975_v17  ;;  %v21716_v17 = vld [vmem:[#allocation2 + $0x714] ss:$8 sps:$4 sm:$0xff]   ;;  %v21711_v3 = vld [vmem:[#allocation2 + $0x610] ss:$8 sps:$4 sm:$0xff]  }
 0x5c4   : > { %12235 = vmatpush2.bf16.msra.mxu1 %v21634_v45  ;;  %12031 = vmatprep.subr.bf16.mxu0 %v21639_v36 }
 0x5c5   : > { %12236 = vmatprep.subr.bf16.mxu1 %v21642_v26  ;;  %v10183_v26 = vadd.f32 %v10182_v43, %v9977_v57  ;;  %v21717_v57 = vld [vmem:[#allocation2 + $0x600] ss:$8 sps:$4 sm:$0xff]  }
 0x5c6   : > { %v21720_v43 = vld [vmem:[#allocation2 + $0x700] ss:$8 sps:$4 sm:$0xff]  }
 0x5c7   : > { %12032 = vmatpush2.bf16.msra.mxu0 %v21637_v11 }
 0x5c8   : > { %12237 = vmatpush2.bf16.msra.mxu1 %v21640_v56  ;;  %12033 = vmatprep.subr.bf16.mxu0 %v21645_v12 }
 0x5c9   : > { %12238 = vmatprep.subr.bf16.mxu1 %v21648_v15 }
 0x5cb   : > { %12034 = vmatpush2.bf16.msra.mxu0 %v21643_v16 }
 0x5cc   : > { %12239 = vmatpush2.bf16.msra.mxu1 %v21646_v62  ;;  %12035 = vmatprep.subr.bf16.mxu0 %v21651_v5  ;;  %v21687_v62 = vld [vmem:[#allocation2 + $0x650] ss:$8 sps:$4 sm:$0xff]  }
 0x5cd   : > { %12240 = vmatprep.subr.bf16.mxu1 %v21654_v18  ;;  %v21690_v5 = vld [vmem:[#allocation2 + $0x750] ss:$8 sps:$4 sm:$0xff]  }
 0x5cf   : > { %12036 = vmatpush2.bf16.msra.mxu0 %v21649_v19  ;;  %v21695_v19 = vld [vmem:[#allocation2 + $0x644] ss:$8 sps:$4 sm:$0xff]  }
 0x5d0   : > { %12241 = vmatpush2.bf16.msra.mxu1 %v21652_v14  ;;  %12037 = vmatprep.subr.bf16.mxu0 %v21657_v20  ;;  %v21698_v14 = vld [vmem:[#allocation2 + $0x744] ss:$8 sps:$4 sm:$0xff]  }
 0x5d1   : > { %12242 = vmatprep.subr.bf16.mxu1 %v21660_v21 }
 0x5d3   : > { %12038 = vmatpush2.bf16.msra.mxu0 %v21655_v24 }
 0x5d4   : > { %12243 = vmatpush2.bf16.msra.mxu1 %v21658_v25  ;;  %12039 = vmatprep.subr.bf16.mxu0 %v21663_v28 }
 0x5d5   : > { %12244 = vmatprep.subr.bf16.mxu1 %v21666_v29  ;;  %v21693_v29 = vld [vmem:[#allocation2 + $0x640] ss:$8 sps:$4 sm:$0xff]  }
 0x5d7   : > { %12040 = vmatpush2.bf16.msra.mxu0 %v21661_v39  ;;  %v21704_v39 = vld [vmem:[#allocation2 + $0x734] ss:$8 sps:$4 sm:$0xff]  }
 0x5d8   : > { %12245 = vmatpush2.bf16.msra.mxu1 %v21664_v31  ;;  %12041 = vmatprep.subr.bf16.mxu0 %v21669_v22  ;;  %v21699_v22 = vld [vmem:[#allocation2 + $0x630] ss:$8 sps:$4 sm:$0xff]  }
 0x5d9   : > { %12246 = vmatprep.subr.bf16.mxu1 %v21672_v23  ;;  %v21702_v23 = vld [vmem:[#allocation2 + $0x730] ss:$8 sps:$4 sm:$0xff]  }
 0x5db   : > { %12042 = vmatpush2.bf16.msra.mxu0 %v21667_v46  ;;  %v21708_v46 = vld [vmem:[#allocation2 + $0x720] ss:$8 sps:$4 sm:$0xff]  }
 0x5dc   : > { %12247 = vmatpush2.bf16.msra.mxu1 %v21670_v32  ;;  %12463 = vmatprep.subr.bf16.mxu0 %v21677_v58  ;;  %v21713_v32 = vld [vmem:[#allocation2 + $0x614] ss:$8 sps:$4 sm:$0xff]   ;;  %v21714_v58 = vld [vmem:[#allocation2 + $0x710] ss:$8 sps:$4 sm:$0xff]  }
 0x5dd   : > { %12718 = vmatprep.subr.bf16.mxu1 %v21680_v47 }
 0x5de   : > { %v10423_v41 = vpop.f32.mrf.mxu0  ;;  %12044 = vmatmul.mubr.bf16.vlgmr.msra.gmra.mxu0 %v11841_v53 }
 0x5df   : > { %v10678_v55 = vpop.f32.mrf.mxu1  ;;  %12249 = vmatmul.mubr.bf16.vlgmr.msra.gmra.mxu1 %v18665_v0  ;;  %v10432_v63 = vadd.f32 %v10423_v41, %v10177_v60  ;;  %12464 = vmatpush1.bf16.msra.mxu0 %v21675_v54  ;;  %v21728_v60 = vld [vmem:[#allocation2 + $0x7f4] ss:$8 sps:$4 sm:$0xff]  }
 0x5e0   : > { %12719 = vmatpush1.bf16.msra.mxu1 %v21678_v27  ;;  %v10425_v49 = vpop.f32.mrf.mxu0  ;;  %12465 = vmatprep.subr.bf16.mxu0 %v21683_v52 }
 0x5e1   : > { %v10680_v50 = vpop.f32.mrf.mxu1  ;;  %12720 = vmatprep.subr.bf16.mxu1 %v21686_v59  ;;  %v10687_v45 = vadd.f32 %v10678_v55, %v10432_v63  ;;  %v10433_v36 = vadd.f32 %v10425_v49, %v10179_v38  ;;  %12495 = vmatprep.mubr.bf16.mxu0 %v18734_v34  ;;  %v21696_v34 = vld [vmem:[#allocation2 + $0x740] ss:$8 sps:$4 sm:$0xff]   ;;  %v21725_v59 = vld [vmem:[#allocation2 + $0x6f4] ss:$8 sps:$4 sm:$0xff]   ;;  %v21723_v38 = vld [vmem:[#allocation2 + $0x6f0] ss:$8 sps:$4 sm:$0xff]  }
 0x5e2   : > { %12750 = vmatprep.mubr.bf16.mxu1 %v12555_v40  ;;  %v10427_v11 = vpop.f32.mrf.mxu0  ;;  %v21726_v63 = vld [vmem:[#allocation2 + $0x7f0] ss:$8 sps:$4 sm:$0xff]   ;;  %v21729_v49 = vld [vmem:[#allocation2 + $0x6e0] ss:$8 sps:$4 sm:$0xff]  }
 0x5e3   : > { %v10682_v56 = vpop.f32.mrf.mxu1  ;;  %v10691_v12 = vadd.f32 %v10687_v45, %v23015_v33  ;;  %v10688_v15 = vadd.f32 %v10680_v50, %v10433_v36  ;;  %v10434_v16 = vadd.f32 %v10427_v11, %v10181_v30  ;;  %12466 = vmatpush1.bf16.msra.mxu0 %v21681_v1  ;;  %v21731_v1 = vld [vmem:[#allocation2 + $0x6e4] ss:$8 sps:$4 sm:$0xff]   ;;  %v21732_v50 = vld [vmem:[#allocation2 + $0x7e0] ss:$8 sps:$4 sm:$0xff]   ;;  %v21735_v30 = vld [vmem:[#allocation2 + $0x6d0] ss:$8 sps:$4 sm:$0xff]  }
 0x5e4   : > { %12721 = vmatpush1.bf16.msra.mxu1 %v21684_v2  ;;  %v10429_v18 = vpop.f32.mrf.mxu0  ;;  %12467 = vmatprep.subr.bf16.mxu0 %v21689_v7  ;;  %v21734_v2 = vld [vmem:[#allocation2 + $0x7e4] ss:$8 sps:$4 sm:$0xff]   ;;  %v21737_v7 = vld [vmem:[#allocation2 + $0x6d4] ss:$8 sps:$4 sm:$0xff]   ;;  %v21738_v45 = vld [vmem:[#allocation2 + $0x7d0] ss:$8 sps:$4 sm:$0xff]  }
 0x5e5   : > { %12722 = vmatprep.subr.bf16.mxu1 %v21692_v8  ;;  %v18511_v20 = vmul.f32 -1.442695, %v10691_v12  ;;  %v10692_v21 = vadd.f32 %v10688_v15, %v23017_v35  ;;  %v10689_v0 = vadd.f32 %v10682_v56, %v10434_v16  ;;  %v10435_v24 = vadd.f32 %v10429_v18, %v10183_v26  ;;  %v10684_v25 = vpop.f32.mrf.mxu1  ;;  %v21740_v8 = vld [vmem:[#allocation2 + $0x7d4] ss:$8 sps:$4 sm:$0xff]   ;;  %v21743_v26 = vld [vmem:[#allocation2 + $0x6c4] ss:$8 sps:$4 sm:$0xff]  }
 0x5e6   : > { %v21746_v11 = vld [vmem:[#allocation2 + $0x7c4] ss:$8 sps:$4 sm:$0xff]   ;;  %v21741_v12 = vld [vmem:[#allocation2 + $0x6c0] ss:$8 sps:$4 sm:$0xff]  }
 0x5e7   : > { %22701 = vpow2.f32 %v18511_v20  ;;  %v18512_v13 = vmul.f32 -1.442695, %v10692_v21  ;;  %v10693_v6 = vadd.f32 %v10689_v0, %v23015_v33  ;;  %v10690_v28 = vadd.f32 %v10684_v25, %v10435_v24  ;;  %12468 = vmatpush1.bf16.msra.mxu0 %v21687_v62  ;;  %v21744_v15 = vld [vmem:[#allocation2 + $0x7c0] ss:$8 sps:$4 sm:$0xff]   ;;  %v21749_v62 = vld [vmem:[#allocation2 + $0x6b4] ss:$8 sps:$4 sm:$0xff]  }
 0x5e8   : > { %12723 = vmatpush1.bf16.msra.mxu1 %v21690_v5  ;;  %12469 = vmatprep.subr.bf16.mxu0 %v21695_v19  ;;  %v21752_v5 = vld [vmem:[#allocation2 + $0x7b4] ss:$8 sps:$4 sm:$0xff]   ;;  %v21747_v19 = vld [vmem:[#allocation2 + $0x6b0] ss:$8 sps:$4 sm:$0xff]   ;;  %v21755_v20 = vld [vmem:[#allocation2 + $0x6a4] ss:$8 sps:$4 sm:$0xff]  }
 0x5e9   : > { %12724 = vmatprep.subr.bf16.mxu1 %v21698_v14  ;;  %22703 = vpow2.f32 %v18512_v13  ;;  %v18513_v31 = vmul.f32 -1.442695, %v10693_v6  ;;  %v10694_v61 = vadd.f32 %v10690_v28, %v23017_v35  ;;  %v21750_v14 = vld [vmem:[#allocation2 + $0x7b0] ss:$8 sps:$4 sm:$0xff]   ;;  %v21758_v21 = vld [vmem:[#allocation2 + $0x7a4] ss:$8 sps:$4 sm:$0xff]  }
 0x5ea   : > { %v22823_v0 = vld [vmem:[%s22958_s8 + $0x60] sm:$0xff]  ;;  %v23286_v13 = vld [vmem:[%s22958_s8 + $0x68] sm:$0x11] }
 0x5eb   : > { %22705 = vpow2.f32 %v18513_v31  ;;  %v18514_v9 = vmul.f32 -1.442695, %v10694_v61  ;;  %12470 = vmatpush1.bf16.msra.mxu0 %v21693_v29  ;;  %v18733_v24 = vcombine.low %v22823_v0, %v23268_v4  ;;  %v23283_v25 = vld [vmem:[%s22958_s8 + $0x60] sm:$0xff]  ;;  %v21761_v29 = vld [vmem:[#allocation2 + $0x694] ss:$8 sps:$4 sm:$0xff]  }
 0x5ec   : > { %12725 = vmatpush1.bf16.msra.mxu1 %v21696_v34  ;;  %12471 = vmatprep.subr.bf16.mxu0 %v21701_v37  ;;  %v21753_v6 = vld [vmem:[#allocation2 + $0x6a0] ss:$8 sps:$4 sm:$0xff]   ;;  %v21764_v34 = vld [vmem:[#allocation2 + $0x794] ss:$8 sps:$4 sm:$0xff]   ;;  %v18810_v37 = vcombine.high %v23283_v25, %v23286_v13  ;;  %v21759_v31 = vld [vmem:[#allocation2 + $0x690] ss:$8 sps:$4 sm:$0xff]  }
 0x5ed   : > { %12726 = vmatprep.subr.bf16.mxu1 %v21704_v39  ;;  %22707 = vpow2.f32 %v18514_v9  ;;  %v21756_v28 = vld [vmem:[#allocation2 + $0x7a0] ss:$8 sps:$4 sm:$0xff]   ;;  %v12545_v39 = vshll.u32 %v18733_v24, 16  ;;  %v21762_v4 = vld [vmem:[#allocation2 + $0x790] ss:$8 sps:$4 sm:$0xff]  }
 0x5ee   : > { %v21767_v61 = vld [vmem:[#allocation2 + $0x684] ss:$8 sps:$4 sm:$0xff]   ;;  %v21830_v0 = vld [vmem:[#allocation2 + $0xe0] ss:$8 sps:$4 sm:$0xff]  }
 0x5ef   : > { %12472 = vmatpush1.bf16.msra.mxu0 %v21699_v22  ;;  %v21770_v9 = vld [vmem:[#allocation2 + $0x784] ss:$8 sps:$4 sm:$0xff]   ;;  %v12881_v22 = vshll.u32 %v18810_v37, 16 }
 0x5f0   : > { %12727 = vmatpush1.bf16.msra.mxu1 %v21702_v23  ;;  %12473 = vmatprep.subr.bf16.mxu0 %v21707_v10  ;;  %v12543_v23 = vshrl.u32 %v18733_v24, 16  ;;  %v12547_v10 = vrot.slane %v12545_v39, 1  ;;  %v21839_v39 = vld [vmem:[#allocation2 + $0x1c0] ss:$8 sps:$4 sm:$0xff]  }
 0x5f1   : > { %12728 = vmatprep.subr.bf16.mxu1 %v21710_v42  ;;  %v21765_v42 = vld [vmem:[#allocation2 + $0x680] ss:$8 sps:$4 sm:$0xff]  }
 0x5f3   : > { %12474 = vmatpush1.bf16.msra.mxu0 %v21705_v44  ;;  %v21768_v44 = vld [vmem:[#allocation2 + $0x780] ss:$8 sps:$4 sm:$0xff]  }
 0x5f4   : > { %12729 = vmatpush1.bf16.msra.mxu1 %v21708_v46  ;;  %v22702_v47 = vpop.eup %22701  ;;  %12475 = vmatprep.subr.bf16.mxu0 %v21713_v32  ;;  %v21775_v46 = vld [vmem:[#allocation2 + $0x174] ss:$8 sps:$4 sm:$0xff]  }
 0x5f5   : > { %12730 = vmatprep.subr.bf16.mxu1 %v21716_v17  ;;  %v10707_v53 = vadd.f32 1.0, %v22702_v47  ;;  %v21778_v32 = vld [vmem:[#allocation2 + $0x74] ss:$8 sps:$4 sm:$0xff]   ;;  %v12879_v17 = vshrl.u32 %v18810_v37, 16  ;;  %v21773_v47 = vld [vmem:[#allocation2 + $0x170] ss:$8 sps:$4 sm:$0xff]  }
 0x5f6   : > { %v22704_v54 = vpop.eup %22703 }
 0x5f7   : > { %22709 = vrcp.f32 %v10707_v53  ;;  %v10708_v27 = vadd.f32 1.0, %v22704_v54  ;;  %12476 = vmatpush1.bf16.msra.mxu0 %v21711_v3  ;;  %v12883_v3 = vrot.slane %v12881_v22, 1  ;;  %v21784_v53 = vld [vmem:[#allocation2 + $0x64] ss:$8 sps:$4 sm:$0xff]   ;;  %v21848_v22 = vld [vmem:[#allocation2 + $0xb0] ss:$8 sps:$4 sm:$0xff]  }
 0x5f8   : > { %12731 = vmatpush1.bf16.msra.mxu1 %v21714_v58  ;;  %v22706_v52 = vpop.eup %22705  ;;  %12477 = vmatprep.subr.bf16.mxu0 %v21719_v48  ;;  %v12548_v58 = vor.u32 %v12547_v10, %v12543_v23  ;;  %v21776_v48 = vld [vmem:[#allocation2 + $0x70] ss:$8 sps:$4 sm:$0xff]   ;;  %v21853_v23 = vld [vmem:[#allocation2 + $0x1a4] ss:$8 sps:$4 sm:$0xff]  }
 0x5f9   : > { %12732 = vmatprep.subr.bf16.mxu1 %v21722_v51  ;;  %22711 = vrcp.f32 %v10708_v27  ;;  %v10709_v40 = vadd.f32 1.0, %v22706_v52  ;;  %v21781_v51 = vld [vmem:[#allocation2 + $0x164] ss:$8 sps:$4 sm:$0xff]   ;;  %v12884_v54 = vor.u32 %v12883_v3, %v12879_v17  ;;  %v21779_v27 = vld [vmem:[#allocation2 + $0x160] ss:$8 sps:$4 sm:$0xff]  }
 0x5fa   : > { %v22708_v41 = vpop.eup %22707  ;;  %v21790_v52 = vld [vmem:[#allocation2 + $0x54] ss:$8 sps:$4 sm:$0xff]   ;;  %v21856_v10 = vld [vmem:[#allocation2 + $0xa4] ss:$8 sps:$4 sm:$0xff]   ;;  %v21854_v17 = vld [vmem:[#allocation2 + $0xa0] ss:$8 sps:$4 sm:$0xff]  }
 0x5fb   : > { %22713 = vrcp.f32 %v10709_v40  ;;  %v10710_v55 = vadd.f32 1.0, %v22708_v41  ;;  %12478 = vmatpush1.bf16.msra.mxu0 %v21717_v57  ;;  %v21782_v57 = vld [vmem:[#allocation2 + $0x60] ss:$8 sps:$4 sm:$0xff]   ;;  %v21793_v40 = vld [vmem:[#allocation2 + $0x144] ss:$8 sps:$4 sm:$0xff]  }
 0x5fc   : > { %12733 = vmatpush1.bf16.msra.mxu1 %v21720_v43  ;;  %12479 = vmatprep.subr.bf16.mxu0 %v21725_v59  ;;  %v21787_v43 = vld [vmem:[#allocation2 + $0x154] ss:$8 sps:$4 sm:$0xff]   ;;  %v21785_v59 = vld [vmem:[#allocation2 + $0x150] ss:$8 sps:$4 sm:$0xff]   ;;  %v21796_v41 = vld [vmem:[#allocation2 + $0x44] ss:$8 sps:$4 sm:$0xff]  }
 0x5fd   : > { %12734 = vmatprep.subr.bf16.mxu1 %v21728_v60  ;;  %22715 = vrcp.f32 %v10710_v55  ;;  %v21788_v60 = vld [vmem:[#allocation2 + $0x50] ss:$8 sps:$4 sm:$0xff]   ;;  %v21791_v55 = vld [vmem:[#allocation2 + $0x140] ss:$8 sps:$4 sm:$0xff]  }
 0x5ff   : > { %12480 = vmatpush2.bf16.msra.mxu0 %v21723_v38  ;;  %v21794_v38 = vld [vmem:[#allocation2 + $0x40] ss:$8 sps:$4 sm:$0xff]  }
 0x600   : > { %12735 = vmatpush2.bf16.msra.mxu1 %v21726_v63  ;;  %12481 = vmatprep.subr.bf16.mxu0 %v21731_v1  ;;  %v21799_v63 = vld [vmem:[#allocation2 + $0x134] ss:$8 sps:$4 sm:$0xff]  }
 0x601   : > { %12736 = vmatprep.subr.bf16.mxu1 %v21734_v2  ;;  %v21802_v1 = vld [vmem:[#allocation2 + $0x34] ss:$8 sps:$4 sm:$0xff]   ;;  %v21797_v2 = vld [vmem:[#allocation2 + $0x130] ss:$8 sps:$4 sm:$0xff]  }
 0x603   : > { %12482 = vmatpush2.bf16.msra.mxu0 %v21729_v49  ;;  %v21800_v49 = vld [vmem:[#allocation2 + $0x30] ss:$8 sps:$4 sm:$0xff]  }
 0x604   : > { %12737 = vmatpush2.bf16.msra.mxu1 %v21732_v50  ;;  %v22710_v36 = vpop.eup %22709  ;;  %12483 = vmatprep.subr.bf16.mxu0 %v21737_v7  ;;  %v21805_v50 = vld [vmem:[#allocation2 + $0x124] ss:$8 sps:$4 sm:$0xff]  }
 0x605   : > { %12738 = vmatprep.subr.bf16.mxu1 %v21740_v8  ;;  %18515 = vst [vmem:[%s23031_s15 + $0x110] sm:$0xff] %v22710_v36  ;;  %v21808_v7 = vld [vmem:[#allocation2 + $0x24] ss:$8 sps:$4 sm:$0xff]   ;;  %v21803_v8 = vld [vmem:[#allocation2 + $0x120] ss:$8 sps:$4 sm:$0xff]  }
 0x606   : > { %v22712_v56 = vpop.eup %22711  ;;  %v21814_v36 = vld [vmem:[#allocation2 + $0x14] ss:$8 sps:$4 sm:$0xff]  }
 0x607   : > { %18516 = vst [vmem:[%s23031_s15 + $0x118] sm:$0xff] %v22712_v56  ;;  %12484 = vmatpush2.bf16.msra.mxu0 %v21735_v30  ;;  %v21806_v30 = vld [vmem:[#allocation2 + $0x20] ss:$8 sps:$4 sm:$0xff]   ;;  %v21817_v56 = vld [vmem:[#allocation2 + $0x104] ss:$8 sps:$4 sm:$0xff]  }
 0x608   : > { %12739 = vmatpush2.bf16.msra.mxu1 %v21738_v45  ;;  %v22714_v16 = vpop.eup %22713  ;;  %12485 = vmatprep.subr.bf16.mxu0 %v21743_v26  ;;  %v21811_v45 = vld [vmem:[#allocation2 + $0x114] ss:$8 sps:$4 sm:$0xff]   ;;  %v21809_v26 = vld [vmem:[#allocation2 + $0x110] ss:$8 sps:$4 sm:$0xff]  }
 0x609   : > { %12740 = vmatprep.subr.bf16.mxu1 %v21746_v11  ;;  %18517 = vst [vmem:[%s23031_s15 + $0x130] sm:$0x1] %v22714_v16  ;;  %v21812_v11 = vld [vmem:[#allocation2 + $0x10] ss:$8 sps:$4 sm:$0xff]   ;;  %v21818_v16 = vld [vmem:[#allocation2] ss:$8 sps:$4 sm:$0xff]  }
 0x60a   : > { %v22716_v18 = vpop.eup %22715 }
 0x60b   : > { %18518 = vst [vmem:[%s23031_s15 + $0x138] sm:$0x1] %v22716_v18  ;;  %12486 = vmatpush2.bf16.msra.mxu0 %v21741_v12  ;;  %v21820_v12 = vld [vmem:[#allocation2 + $0x4] ss:$8 sps:$4 sm:$0xff]   ;;  %v21821_v18 = vld [vmem:[#allocation2 + $0x1f0] ss:$8 sps:$4 sm:$0xff]  }
 0x60c   : > { %12741 = vmatpush2.bf16.msra.mxu1 %v21744_v15  ;;  %12487 = vmatprep.subr.bf16.mxu0 %v21749_v62  ;;  %v21815_v15 = vld [vmem:[#allocation2 + $0x100] ss:$8 sps:$4 sm:$0xff]   ;;  %v21823_v62 = vld [vmem:[#allocation2 + $0x1f4] ss:$8 sps:$4 sm:$0xff]  }
 0x60d   : > { %12742 = vmatprep.subr.bf16.mxu1 %v21752_v5  ;;  %v21826_v5 = vld [vmem:[#allocation2 + $0xf4] ss:$8 sps:$4 sm:$0xff]  }
 0x60f   : > { %12488 = vmatpush2.bf16.msra.mxu0 %v21747_v19  ;;  %v21824_v19 = vld [vmem:[#allocation2 + $0xf0] ss:$8 sps:$4 sm:$0xff]  }
 0x610   : > { %12743 = vmatpush2.bf16.msra.mxu1 %v21750_v14  ;;  %12489 = vmatprep.subr.bf16.mxu0 %v21755_v20  ;;  %v21829_v14 = vld [vmem:[#allocation2 + $0x1e4] ss:$8 sps:$4 sm:$0xff]  }
 0x611   : > { %12744 = vmatprep.subr.bf16.mxu1 %v21758_v21  ;;  %v21832_v20 = vld [vmem:[#allocation2 + $0xe4] ss:$8 sps:$4 sm:$0xff]   ;;  %v21827_v21 = vld [vmem:[#allocation2 + $0x1e0] ss:$8 sps:$4 sm:$0xff]  }
 0x613   : > { %12490 = vmatpush2.bf16.msra.mxu0 %v21753_v6  ;;  %v21838_v6 = vld [vmem:[#allocation2 + $0xd4] ss:$8 sps:$4 sm:$0xff]  }
 0x614   : > { %12745 = vmatpush2.bf16.msra.mxu1 %v21756_v28  ;;  %12491 = vmatprep.subr.bf16.mxu0 %v21761_v29  ;;  %v21833_v28 = vld [vmem:[#allocation2 + $0x1d0] ss:$8 sps:$4 sm:$0xff]  }
 0x615   : > { %12746 = vmatprep.subr.bf16.mxu1 %v21764_v34  ;;  %v21836_v29 = vld [vmem:[#allocation2 + $0xd0] ss:$8 sps:$4 sm:$0xff]   ;;  %v21841_v34 = vld [vmem:[#allocation2 + $0x1c4] ss:$8 sps:$4 sm:$0xff]  }
 0x617   : > { %12492 = vmatpush2.bf16.msra.mxu0 %v21759_v31  ;;  %v21842_v31 = vld [vmem:[#allocation2 + $0xc0] ss:$8 sps:$4 sm:$0xff]  }
 0x618   : > { %12747 = vmatpush2.bf16.msra.mxu1 %v21762_v4  ;;  %12493 = vmatprep.subr.bf16.mxu0 %v21767_v61  ;;  %v21847_v4 = vld [vmem:[#allocation2 + $0x1b4] ss:$8 sps:$4 sm:$0xff]  }
 0x619   : > { %12748 = vmatprep.subr.bf16.mxu1 %v21770_v9  ;;  %v21850_v61 = vld [vmem:[#allocation2 + $0xb4] ss:$8 sps:$4 sm:$0xff]   ;;  %v21845_v9 = vld [vmem:[#allocation2 + $0x1b0] ss:$8 sps:$4 sm:$0xff]  }
 0x61b   : > { %12494 = vmatpush2.bf16.msra.mxu0 %v21765_v42  ;;  %v18809_v42 = vcombine.low %v23283_v25, %v23286_v13  ;;  %v21857_v13 = vld [vmem:[#allocation2 + $0x190] ss:$8 sps:$4 sm:$0xff]  }
 0x61c   : > { %12749 = vmatpush2.bf16.msra.mxu1 %v21768_v44  ;;  %13047 = vmatprep.subr.bf16.mxu0 %v21775_v46  ;;  %v23293_v44 = vld [vmem:[%s22958_s8 + $0x70] sm:$0xff]  ;;  %v23296_v46 = vld [vmem:[%s22958_s8 + $0x78] sm:$0x11] }
 0x61d   : > { %13252 = vmatprep.subr.bf16.mxu1 %v21778_v32  ;;  %v21851_v32 = vld [vmem:[#allocation2 + $0x1a0] ss:$8 sps:$4 sm:$0xff]  }
 0x61e   : > { %12496 = vmatmul.mubr.bf16.vlgmr.msra.gmra.mxu0 %v18733_v24  ;;  %v21835_v24 = vld [vmem:[#allocation2 + $0x1d4] ss:$8 sps:$4 sm:$0xff]   ;;  %v11007_v3 = vpop.f32.mrf.mxu0 }
 0x61f   : > { %12751 = vmatmul.mubr.bf16.vlgmr.msra.gmra.mxu1 %v12548_v58  ;;  %13048 = vmatpush1.bf16.msra.mxu0 %v21773_v47  ;;  %v11212_v58 = vpop.f32.mrf.mxu1  ;;  %v21859_v47 = vld [vmem:[#allocation2 + $0x194] ss:$8 sps:$4 sm:$0xff]  }
 0x620   : > { %13253 = vmatpush1.bf16.msra.mxu1 %v21776_v48  ;;  %13049 = vmatprep.subr.bf16.mxu0 %v21781_v51  ;;  %v21862_v48 = vld [vmem:[#allocation2 + $0x94] ss:$8 sps:$4 sm:$0xff]   ;;  %v18878_v51 = vcombine.high %v23293_v44, %v23296_v46 }
 0x621   : > { %13254 = vmatprep.subr.bf16.mxu1 %v21784_v53  ;;  %13079 = vmatprep.mubr.bf16.mxu0 %v12884_v54  ;;  %v12874_v53 = vshll.u32 %v18809_v42, 16  ;;  %v21860_v54 = vld [vmem:[#allocation2 + $0x90] ss:$8 sps:$4 sm:$0xff]  }
 0x622   : > { %13284 = vmatprep.mubr.bf16.mxu1 %v18810_v37  ;;  %v21844_v37 = vld [vmem:[#allocation2 + $0xc4] ss:$8 sps:$4 sm:$0xff]  }
 0x623   : > { %13050 = vmatpush1.bf16.msra.mxu0 %v21779_v27  ;;  %v11009_v27 = vpop.f32.mrf.mxu0 }
 0x624   : > { %13255 = vmatpush1.bf16.msra.mxu1 %v21782_v57  ;;  %13051 = vmatprep.subr.bf16.mxu0 %v21787_v43  ;;  %v11214_v57 = vpop.f32.mrf.mxu1  ;;  %v21865_v43 = vld [vmem:[#allocation2 + $0x184] ss:$8 sps:$4 sm:$0xff]  }
 0x625   : > { %13256 = vmatprep.subr.bf16.mxu1 %v21790_v52  ;;  %v21868_v52 = vld [vmem:[#allocation2 + $0x84] ss:$8 sps:$4 sm:$0xff]  }
 0x627   : > { %13052 = vmatpush1.bf16.msra.mxu0 %v21785_v59  ;;  %v13589_v59 = vshll.u32 %v18878_v51, 16 }
 0x628   : > { %13257 = vmatpush1.bf16.msra.mxu1 %v21788_v60  ;;  %13053 = vmatprep.subr.bf16.mxu0 %v21793_v40  ;;  %v12872_v60 = vshrl.u32 %v18809_v42, 16  ;;  %v12876_v40 = vrot.slane %v12874_v53, 1  ;;  %v21889_v53 = vld [vmem:[#allocation2 + $0x240] ss:$8 sps:$4 sm:$0xff]  }
 0x629   : > { %13258 = vmatprep.subr.bf16.mxu1 %v21796_v41  ;;  %v21863_v41 = vld [vmem:[#allocation2 + $0x180] ss:$8 sps:$4 sm:$0xff]  }
 0x62b   : > { %13054 = vmatpush1.bf16.msra.mxu0 %v21791_v55  ;;  %v21866_v55 = vld [vmem:[#allocation2 + $0x80] ss:$8 sps:$4 sm:$0xff]  }
 0x62c   : > { %13259 = vmatpush1.bf16.msra.mxu1 %v21794_v38  ;;  %13055 = vmatprep.subr.bf16.mxu0 %v21799_v63  ;;  %v11011_v38 = vpop.f32.mrf.mxu0  ;;  %v11216_v63 = vpop.f32.mrf.mxu1 }
 0x62d   : > { %13260 = vmatprep.subr.bf16.mxu1 %v21802_v1  ;;  %v21873_v1 = vld [vmem:[#allocation2 + $0x274] ss:$8 sps:$4 sm:$0xff]  }
 0x62f   : > { %13056 = vmatpush1.bf16.msra.mxu0 %v21797_v2  ;;  %v21876_v2 = vld [vmem:[#allocation2 + $0x374] ss:$8 sps:$4 sm:$0xff]  }
 0x630   : > { %13261 = vmatpush1.bf16.msra.mxu1 %v21800_v49  ;;  %13057 = vmatprep.subr.bf16.mxu0 %v21805_v50  ;;  %v13587_v49 = vshrl.u32 %v18878_v51, 16  ;;  %v13591_v50 = vrot.slane %v13589_v59, 1  ;;  %v21895_v59 = vld [vmem:[#allocation2 + $0x230] ss:$8 sps:$4 sm:$0xff]  }
 0x631   : > { %13262 = vmatprep.subr.bf16.mxu1 %v21808_v7  ;;  %v12877_v7 = vor.u32 %v12876_v40, %v12872_v60  ;;  %v21898_v60 = vld [vmem:[#allocation2 + $0x330] ss:$8 sps:$4 sm:$0xff]   ;;  %v21903_v40 = vld [vmem:[#allocation2 + $0x224] ss:$8 sps:$4 sm:$0xff]  }
 0x633   : > { %13058 = vmatpush1.bf16.msra.mxu0 %v21803_v8  ;;  %v21871_v8 = vld [vmem:[#allocation2 + $0x270] ss:$8 sps:$4 sm:$0xff]  }
 0x634   : > { %13263 = vmatpush1.bf16.msra.mxu1 %v21806_v30  ;;  %13059 = vmatprep.subr.bf16.mxu0 %v21811_v45  ;;  %v21874_v30 = vld [vmem:[#allocation2 + $0x370] ss:$8 sps:$4 sm:$0xff]   ;;  %v11013_v45 = vpop.f32.mrf.mxu0 }
 0x635   : > { %13264 = vmatprep.subr.bf16.mxu1 %v21814_v36  ;;  %v11218_v36 = vpop.f32.mrf.mxu1 }
 0x637   : > { %13060 = vmatpush1.bf16.msra.mxu0 %v21809_v26  ;;  %v21879_v26 = vld [vmem:[#allocation2 + $0x264] ss:$8 sps:$4 sm:$0xff]  }
 0x638   : > { %13265 = vmatpush1.bf16.msra.mxu1 %v21812_v11  ;;  %13061 = vmatprep.subr.bf16.mxu0 %v21817_v56  ;;  %v21882_v11 = vld [vmem:[#allocation2 + $0x364] ss:$8 sps:$4 sm:$0xff]   ;;  %v11213_v56 = vadd.f32 %v11212_v58, %v11007_v3 }
 0x639   : > { %13266 = vmatprep.subr.bf16.mxu1 %v21820_v12  ;;  %v13592_v12 = vor.u32 %v13591_v50, %v13587_v49  ;;  %v21910_v49 = vld [vmem:[#allocation2 + $0x310] ss:$8 sps:$4 sm:$0xff]  }
 0x63b   : > { %13062 = vmatpush1.bf16.msra.mxu0 %v21815_v15 }
 0x63c   : > { %13267 = vmatpush1.bf16.msra.mxu1 %v21818_v16  ;;  %13063 = vmatprep.subr.bf16.mxu0 %v21823_v62  ;;  %v11215_v62 = vadd.f32 %v11214_v57, %v11009_v27  ;;  %v21900_v27 = vld [vmem:[#allocation2 + $0x334] ss:$8 sps:$4 sm:$0xff]  }
 0x63d   : > { %13268 = vmatprep.subr.bf16.mxu1 %v21826_v5 }
 0x63f   : > { %13064 = vmatpush2.bf16.msra.mxu0 %v21821_v18  ;;  %v21877_v18 = vld [vmem:[#allocation2 + $0x260] ss:$8 sps:$4 sm:$0xff]  }
 0x640   : > { %13269 = vmatpush2.bf16.msra.mxu1 %v21824_v19  ;;  %13065 = vmatprep.subr.bf16.mxu0 %v21829_v14  ;;  %v21880_v19 = vld [vmem:[#allocation2 + $0x360] ss:$8 sps:$4 sm:$0xff]  }
 0x641   : > { %13270 = vmatprep.subr.bf16.mxu1 %v21832_v20 }
 0x643   : > { %13066 = vmatpush2.bf16.msra.mxu0 %v21827_v21  ;;  %v21885_v21 = vld [vmem:[#allocation2 + $0x254] ss:$8 sps:$4 sm:$0xff]  }
 0x644   : > { %13271 = vmatpush2.bf16.msra.mxu1 %v21830_v0  ;;  %13067 = vmatprep.subr.bf16.mxu0 %v21835_v24  ;;  %v21888_v0 = vld [vmem:[#allocation2 + $0x354] ss:$8 sps:$4 sm:$0xff]   ;;  %v11217_v24 = vadd.f32 %v11216_v63, %v11011_v38  ;;  %v21904_v38 = vld [vmem:[#allocation2 + $0x320] ss:$8 sps:$4 sm:$0xff]  }
 0x645   : > { %13272 = vmatprep.subr.bf16.mxu1 %v21838_v6  ;;  %v21909_v63 = vld [vmem:[#allocation2 + $0x214] ss:$8 sps:$4 sm:$0xff]  }
 0x647   : > { %13068 = vmatpush2.bf16.msra.mxu0 %v21833_v28 }
 0x648   : > { %13273 = vmatpush2.bf16.msra.mxu1 %v21836_v29  ;;  %13069 = vmatprep.subr.bf16.mxu0 %v21841_v34  ;;  %v11219_v29 = vadd.f32 %v11218_v36, %v11013_v45 }
 0x649   : > { %13274 = vmatprep.subr.bf16.mxu1 %v21844_v37 }
 0x64b   : > { %13070 = vmatpush2.bf16.msra.mxu0 %v21839_v39 }
 0x64c   : > { %13275 = vmatpush2.bf16.msra.mxu1 %v21842_v31  ;;  %13071 = vmatprep.subr.bf16.mxu0 %v21847_v4 }
 0x64d   : > { %13276 = vmatprep.subr.bf16.mxu1 %v21850_v61  ;;  %v21883_v61 = vld [vmem:[#allocation2 + $0x250] ss:$8 sps:$4 sm:$0xff]  }
 0x64f   : > { %13072 = vmatpush2.bf16.msra.mxu0 %v21845_v9  ;;  %v21886_v9 = vld [vmem:[#allocation2 + $0x350] ss:$8 sps:$4 sm:$0xff]  }
 0x650   : > { %13277 = vmatpush2.bf16.msra.mxu1 %v21848_v22  ;;  %13073 = vmatprep.subr.bf16.mxu0 %v21853_v23  ;;  %v21891_v23 = vld [vmem:[#allocation2 + $0x244] ss:$8 sps:$4 sm:$0xff]  }
 0x651   : > { %13278 = vmatprep.subr.bf16.mxu1 %v21856_v10  ;;  %v21894_v10 = vld [vmem:[#allocation2 + $0x344] ss:$8 sps:$4 sm:$0xff]  }
 0x653   : > { %13074 = vmatpush2.bf16.msra.mxu0 %v21851_v32 }
 0x654   : > { %13279 = vmatpush2.bf16.msra.mxu1 %v21854_v17  ;;  %13075 = vmatprep.subr.bf16.mxu0 %v21859_v47 }
 0x655   : > { %13280 = vmatprep.subr.bf16.mxu1 %v21862_v48 }
 0x657   : > { %13076 = vmatpush2.bf16.msra.mxu0 %v21857_v13  ;;  %v21892_v13 = vld [vmem:[#allocation2 + $0x340] ss:$8 sps:$4 sm:$0xff]  }
 0x658   : > { %13281 = vmatpush2.bf16.msra.mxu1 %v21860_v54  ;;  %13077 = vmatprep.subr.bf16.mxu0 %v21865_v43  ;;  %v21897_v54 = vld [vmem:[#allocation2 + $0x234] ss:$8 sps:$4 sm:$0xff]  }
 0x659   : > { %13282 = vmatprep.subr.bf16.mxu1 %v21868_v52 }
 0x65b   : > { %13078 = vmatpush2.bf16.msra.mxu0 %v21863_v41  ;;  %v21906_v41 = vld [vmem:[#allocation2 + $0x324] ss:$8 sps:$4 sm:$0xff]  }
 0x65c   : > { %13283 = vmatpush2.bf16.msra.mxu1 %v21866_v55  ;;  %13500 = vmatprep.subr.bf16.mxu0 %v21873_v1  ;;  %v21901_v55 = vld [vmem:[#allocation2 + $0x220] ss:$8 sps:$4 sm:$0xff]   ;;  %v21912_v1 = vld [vmem:[#allocation2 + $0x314] ss:$8 sps:$4 sm:$0xff]  }
 0x65d   : > { %13755 = vmatprep.subr.bf16.mxu1 %v21876_v2  ;;  %v21907_v2 = vld [vmem:[#allocation2 + $0x210] ss:$8 sps:$4 sm:$0xff]  }
 0x65e   : > { %v11460_v15 = vpop.f32.mrf.mxu0  ;;  %13080 = vmatmul.mubr.bf16.vlgmr.msra.gmra.mxu0 %v12877_v7  ;;  %v21915_v7 = vld [vmem:[#allocation2 + $0x204] ss:$8 sps:$4 sm:$0xff]  }
 0x65f   : > { %v11715_v16 = vpop.f32.mrf.mxu1  ;;  %13285 = vmatmul.mubr.bf16.vlgmr.msra.gmra.mxu1 %v18809_v42  ;;  %v11469_v5 = vadd.f32 %v11460_v15, %v11213_v56  ;;  %13501 = vmatpush1.bf16.msra.mxu0 %v21871_v8  ;;  %v21918_v8 = vld [vmem:[#allocation2 + $0x304] ss:$8 sps:$4 sm:$0xff]   ;;  %v21924_v15 = vld [vmem:[#allocation2 + $0x3f4] ss:$8 sps:$4 sm:$0xff]  }
 0x660   : > { %13756 = vmatpush1.bf16.msra.mxu1 %v21874_v30  ;;  %v11462_v14 = vpop.f32.mrf.mxu0  ;;  %13502 = vmatprep.subr.bf16.mxu0 %v21879_v26  ;;  %v21913_v26 = vld [vmem:[#allocation2 + $0x200] ss:$8 sps:$4 sm:$0xff]  }
 0x661   : > { %v11717_v20 = vpop.f32.mrf.mxu1  ;;  %13757 = vmatprep.subr.bf16.mxu1 %v21882_v11  ;;  %v11724_v6 = vadd.f32 %v11715_v16, %v11469_v5  ;;  %v11470_v28 = vadd.f32 %v11462_v14, %v11215_v62  ;;  %13532 = vmatprep.mubr.bf16.mxu0 %v18878_v51  ;;  %v21916_v11 = vld [vmem:[#allocation2 + $0x300] ss:$8 sps:$4 sm:$0xff]   ;;  %v21927_v14 = vld [vmem:[#allocation2 + $0x2e4] ss:$8 sps:$4 sm:$0xff]  }
 0x662   : > { %13787 = vmatprep.mubr.bf16.mxu1 %v13592_v12  ;;  %v11464_v34 = vpop.f32.mrf.mxu0  ;;  %v21921_v12 = vld [vmem:[#allocation2 + $0x2f4] ss:$8 sps:$4 sm:$0xff]  }
 0x663   : > { %v11719_v37 = vpop.f32.mrf.mxu1  ;;  %v11728_v39 = vadd.f32 %v11724_v6, %v23015_v33  ;;  %v11725_v31 = vadd.f32 %v11717_v20, %v11470_v28  ;;  %v11471_v4 = vadd.f32 %v11464_v34, %v11217_v24  ;;  %13503 = vmatpush1.bf16.msra.mxu0 %v21877_v18  ;;  %v21919_v18 = vld [vmem:[#allocation2 + $0x2f0] ss:$8 sps:$4 sm:$0xff]   ;;  %v21930_v20 = vld [vmem:[#allocation2 + $0x3e4] ss:$8 sps:$4 sm:$0xff]   ;;  %v21933_v24 = vld [vmem:[#allocation2 + $0x2d4] ss:$8 sps:$4 sm:$0xff]  }
 0x664   : > { %13758 = vmatpush1.bf16.msra.mxu1 %v21880_v19  ;;  %v11466_v22 = vpop.f32.mrf.mxu0  ;;  %13504 = vmatprep.subr.bf16.mxu0 %v21885_v21  ;;  %v21922_v19 = vld [vmem:[#allocation2 + $0x3f0] ss:$8 sps:$4 sm:$0xff]   ;;  %v21925_v21 = vld [vmem:[#allocation2 + $0x2e0] ss:$8 sps:$4 sm:$0xff]   ;;  %v21936_v6 = vld [vmem:[#allocation2 + $0x3d4] ss:$8 sps:$4 sm:$0xff]  }
 0x665   : > { %13759 = vmatprep.subr.bf16.mxu1 %v21888_v0  ;;  %v18655_v42 = vmul.f32 -1.442695, %v11728_v39  ;;  %v11729_v32 = vadd.f32 %v11725_v31, %v23017_v35  ;;  %v11726_v17 = vadd.f32 %v11719_v37, %v11471_v4  ;;  %v11472_v3 = vadd.f32 %v11466_v22, %v11219_v29  ;;  %v11721_v58 = vpop.f32.mrf.mxu1  ;;  %v21928_v0 = vld [vmem:[#allocation2 + $0x3e0] ss:$8 sps:$4 sm:$0xff]   ;;  %v21931_v28 = vld [vmem:[#allocation2 + $0x2d0] ss:$8 sps:$4 sm:$0xff]  }
 0x666   : > { %v21934_v29 = vld [vmem:[#allocation2 + $0x3d0] ss:$8 sps:$4 sm:$0xff]   ;;  %v21939_v37 = vld [vmem:[#allocation2 + $0x2c4] ss:$8 sps:$4 sm:$0xff]   ;;  %v21937_v4 = vld [vmem:[#allocation2 + $0x2c0] ss:$8 sps:$4 sm:$0xff]  }
 0x667   : > { %22717 = vpow2.f32 %v18655_v42  ;;  %v18656_v47 = vmul.f32 -1.442695, %v11729_v32  ;;  %v11730_v48 = vadd.f32 %v11726_v17, %v23015_v33  ;;  %v11727_v51 = vadd.f32 %v11721_v58, %v11472_v3  ;;  %13505 = vmatpush1.bf16.msra.mxu0 %v21883_v61  ;;  %v21942_v39 = vld [vmem:[#allocation2 + $0x3c4] ss:$8 sps:$4 sm:$0xff]   ;;  %v21940_v61 = vld [vmem:[#allocation2 + $0x3c0] ss:$8 sps:$4 sm:$0xff]  }
 0x668   : > { %13760 = vmatpush1.bf16.msra.mxu1 %v21886_v9  ;;  %13506 = vmatprep.subr.bf16.mxu0 %v21891_v23  ;;  %v21945_v22 = vld [vmem:[#allocation2 + $0x2b4] ss:$8 sps:$4 sm:$0xff]   ;;  %v21943_v42 = vld [vmem:[#allocation2 + $0x2b0] ss:$8 sps:$4 sm:$0xff]   ;;  %v21951_v17 = vld [vmem:[#allocation2 + $0x2a4] ss:$8 sps:$4 sm:$0xff]   ;;  %v18877_v58 = vcombine.low %v23293_v44, %v23296_v46 }
 0x669   : > { %13761 = vmatprep.subr.bf16.mxu1 %v21894_v10  ;;  %22719 = vpow2.f32 %v18656_v47  ;;  %v18657_v57 = vmul.f32 -1.442695, %v11730_v48  ;;  %v11731_v43 = vadd.f32 %v11727_v51, %v23017_v35  ;;  %v21948_v23 = vld [vmem:[#allocation2 + $0x3b4] ss:$8 sps:$4 sm:$0xff]   ;;  %v21946_v32 = vld [vmem:[#allocation2 + $0x3b0] ss:$8 sps:$4 sm:$0xff]  }
 0x66a   : > { %v21954_v3 = vld [vmem:[#allocation2 + $0x3a4] ss:$8 sps:$4 sm:$0xff]   ;;  %v21949_v48 = vld [vmem:[#allocation2 + $0x2a0] ss:$8 sps:$4 sm:$0xff]  }
 0x66b   : > { %22721 = vpow2.f32 %v18657_v57  ;;  %v18658_v52 = vmul.f32 -1.442695, %v11731_v43  ;;  %13507 = vmatpush1.bf16.msra.mxu0 %v21889_v53  ;;  %v23311_v47 = vld [vmem:[%s22958_s8 + $0x68] sm:$0x11]  ;;  %v21957_v53 = vld [vmem:[#allocation2 + $0x294] ss:$8 sps:$4 sm:$0xff]  }
 0x66c   : > { %13762 = vmatpush1.bf16.msra.mxu1 %v21892_v13  ;;  %13508 = vmatprep.subr.bf16.mxu0 %v21897_v54  ;;  %v21952_v51 = vld [vmem:[#allocation2 + $0x3a0] ss:$8 sps:$4 sm:$0xff]   ;;  %v21960_v13 = vld [vmem:[#allocation2 + $0x394] ss:$8 sps:$4 sm:$0xff]   ;;  %v18954_v54 = vcombine.high %v23283_v25, %v23311_v47  ;;  %v21955_v57 = vld [vmem:[#allocation2 + $0x290] ss:$8 sps:$4 sm:$0xff]  }
 0x66d   : > { %13763 = vmatprep.subr.bf16.mxu1 %v21900_v27  ;;  %22723 = vpow2.f32 %v18658_v52  ;;  %v13582_v27 = vshll.u32 %v18877_v58, 16  ;;  %v21958_v43 = vld [vmem:[#allocation2 + $0x390] ss:$8 sps:$4 sm:$0xff]   ;;  %v21963_v46 = vld [vmem:[#allocation2 + $0x284] ss:$8 sps:$4 sm:$0xff]  }
 0x66e   : > { %v21966_v52 = vld [vmem:[#allocation2 + $0x384] ss:$8 sps:$4 sm:$0xff]  }
 0x66f   : > { %13509 = vmatpush1.bf16.msra.mxu0 %v21895_v59  ;;  %v13919_v59 = vshll.u32 %v18954_v54, 16 }
 0x670   : > { %13764 = vmatpush1.bf16.msra.mxu1 %v21898_v60  ;;  %13510 = vmatprep.subr.bf16.mxu0 %v21903_v40  ;;  %v13580_v60 = vshrl.u32 %v18877_v58, 16  ;;  %v13584_v40 = vrot.slane %v13582_v27, 1  ;;  %v22040_v27 = vld [vmem:[#allocation2 + $0x4c4] ss:$8 sps:$4 sm:$0xff]  }
 0x671   : > { %13765 = vmatprep.subr.bf16.mxu1 %v21906_v41  ;;  %v21961_v41 = vld [vmem:[#allocation2 + $0x280] ss:$8 sps:$4 sm:$0xff]  }
 0x673   : > { %13511 = vmatpush1.bf16.msra.mxu0 %v21901_v55  ;;  %v21964_v55 = vld [vmem:[#allocation2 + $0x380] ss:$8 sps:$4 sm:$0xff]  }
 0x674   : > { %13766 = vmatpush1.bf16.msra.mxu1 %v21904_v38  ;;  %v22718_v50 = vpop.eup %22717  ;;  %13512 = vmatprep.subr.bf16.mxu0 %v21909_v63  ;;  %v21971_v38 = vld [vmem:[#allocation2 + $0x574] ss:$8 sps:$4 sm:$0xff]  }
 0x675   : > { %13767 = vmatprep.subr.bf16.mxu1 %v21912_v1  ;;  %v11744_v30 = vadd.f32 1.0, %v22718_v50  ;;  %v21974_v63 = vld [vmem:[#allocation2 + $0x474] ss:$8 sps:$4 sm:$0xff]   ;;  %v13917_v1 = vshrl.u32 %v18954_v54, 16  ;;  %v21969_v50 = vld [vmem:[#allocation2 + $0x570] ss:$8 sps:$4 sm:$0xff]  }
 0x676   : > { %v22720_v45 = vpop.eup %22719 }
 0x677   : > { %22725 = vrcp.f32 %v11744_v30  ;;  %v11745_v36 = vadd.f32 1.0, %v22720_v45  ;;  %13513 = vmatpush1.bf16.msra.mxu0 %v21907_v2  ;;  %v13921_v2 = vrot.slane %v13919_v59, 1  ;;  %v21980_v30 = vld [vmem:[#allocation2 + $0x464] ss:$8 sps:$4 sm:$0xff]   ;;  %v22041_v59 = vld [vmem:[#allocation2 + $0x5b0] ss:$8 sps:$4 sm:$0xff]  }
 0x678   : > { %13768 = vmatpush1.bf16.msra.mxu1 %v21910_v49  ;;  %v22722_v56 = vpop.eup %22721  ;;  %13514 = vmatprep.subr.bf16.mxu0 %v21915_v7  ;;  %v13585_v49 = vor.u32 %v13584_v40, %v13580_v60  ;;  %v21972_v7 = vld [vmem:[#allocation2 + $0x470] ss:$8 sps:$4 sm:$0xff]   ;;  %v22049_v40 = vld [vmem:[#allocation2 + $0x5a4] ss:$8 sps:$4 sm:$0xff]  }
 0x679   : > { %13769 = vmatprep.subr.bf16.mxu1 %v21918_v8  ;;  %22727 = vrcp.f32 %v11745_v36  ;;  %v11746_v16 = vadd.f32 1.0, %v22722_v56  ;;  %v21977_v8 = vld [vmem:[#allocation2 + $0x564] ss:$8 sps:$4 sm:$0xff]   ;;  %v13922_v45 = vor.u32 %v13921_v2, %v13917_v1  ;;  %v21975_v36 = vld [vmem:[#allocation2 + $0x560] ss:$8 sps:$4 sm:$0xff]  }
 0x67a   : > { %v22724_v62 = vpop.eup %22723  ;;  %v21986_v56 = vld [vmem:[#allocation2 + $0x454] ss:$8 sps:$4 sm:$0xff]   ;;  %v22044_v60 = vld [vmem:[#allocation2 + $0x4b0] ss:$8 sps:$4 sm:$0xff]   ;;  %v22050_v1 = vld [vmem:[#allocation2 + $0x4a0] ss:$8 sps:$4 sm:$0xff]  }
 0x67b   : > { %22729 = vrcp.f32 %v11746_v16  ;;  %v11747_v5 = vadd.f32 1.0, %v22724_v62  ;;  %13515 = vmatpush1.bf16.msra.mxu0 %v21913_v26  ;;  %v21978_v26 = vld [vmem:[#allocation2 + $0x460] ss:$8 sps:$4 sm:$0xff]   ;;  %v21989_v16 = vld [vmem:[#allocation2 + $0x544] ss:$8 sps:$4 sm:$0xff]  }
 0x67c   : > { %13770 = vmatpush1.bf16.msra.mxu1 %v21916_v11  ;;  %13516 = vmatprep.subr.bf16.mxu0 %v21921_v12  ;;  %v21983_v11 = vld [vmem:[#allocation2 + $0x554] ss:$8 sps:$4 sm:$0xff]   ;;  %v21981_v12 = vld [vmem:[#allocation2 + $0x550] ss:$8 sps:$4 sm:$0xff]   ;;  %v21992_v62 = vld [vmem:[#allocation2 + $0x444] ss:$8 sps:$4 sm:$0xff]  }
 0x67d   : > { %13771 = vmatprep.subr.bf16.mxu1 %v21924_v15  ;;  %22731 = vrcp.f32 %v11747_v5  ;;  %v21984_v15 = vld [vmem:[#allocation2 + $0x450] ss:$8 sps:$4 sm:$0xff]   ;;  %v21987_v5 = vld [vmem:[#allocation2 + $0x540] ss:$8 sps:$4 sm:$0xff]  }
 0x67f   : > { %13517 = vmatpush2.bf16.msra.mxu0 %v21919_v18  ;;  %v21990_v18 = vld [vmem:[#allocation2 + $0x440] ss:$8 sps:$4 sm:$0xff]  }
 0x680   : > { %13772 = vmatpush2.bf16.msra.mxu1 %v21922_v19  ;;  %13518 = vmatprep.subr.bf16.mxu0 %v21927_v14  ;;  %v21995_v19 = vld [vmem:[#allocation2 + $0x534] ss:$8 sps:$4 sm:$0xff]  }
 0x681   : > { %13773 = vmatprep.subr.bf16.mxu1 %v21930_v20  ;;  %v21998_v14 = vld [vmem:[#allocation2 + $0x434] ss:$8 sps:$4 sm:$0xff]   ;;  %v21993_v20 = vld [vmem:[#allocation2 + $0x530] ss:$8 sps:$4 sm:$0xff]  }
 0x683   : > { %13519 = vmatpush2.bf16.msra.mxu0 %v21925_v21  ;;  %v21996_v21 = vld [vmem:[#allocation2 + $0x430] ss:$8 sps:$4 sm:$0xff]  }
 0x684   : > { %13774 = vmatpush2.bf16.msra.mxu1 %v21928_v0  ;;  %v22726_v34 = vpop.eup %22725  ;;  %13520 = vmatprep.subr.bf16.mxu0 %v21933_v24  ;;  %v22001_v0 = vld [vmem:[#allocation2 + $0x524] ss:$8 sps:$4 sm:$0xff]  }
 0x685   : > { %13775 = vmatprep.subr.bf16.mxu1 %v21936_v6  ;;  %18659 = vst [vmem:[%s23031_s15 + $0x140] sm:$0xff] %v22726_v34  ;;  %v22004_v24 = vld [vmem:[#allocation2 + $0x424] ss:$8 sps:$4 sm:$0xff]   ;;  %v21999_v6 = vld [vmem:[#allocation2 + $0x520] ss:$8 sps:$4 sm:$0xff]  }
 0x686   : > { %v22728_v31 = vpop.eup %22727  ;;  %v22010_v34 = vld [vmem:[#allocation2 + $0x414] ss:$8 sps:$4 sm:$0xff]  }
 0x687   : > { %18660 = vst [vmem:[%s23031_s15 + $0x148] sm:$0xff] %v22728_v31  ;;  %13521 = vmatpush2.bf16.msra.mxu0 %v21931_v28  ;;  %v22002_v28 = vld [vmem:[#allocation2 + $0x420] ss:$8 sps:$4 sm:$0xff]   ;;  %v22013_v31 = vld [vmem:[#allocation2 + $0x504] ss:$8 sps:$4 sm:$0xff]  }
 0x688   : > { %13776 = vmatpush2.bf16.msra.mxu1 %v21934_v29  ;;  %v22730_v9 = vpop.eup %22729  ;;  %13522 = vmatprep.subr.bf16.mxu0 %v21939_v37  ;;  %v22007_v29 = vld [vmem:[#allocation2 + $0x514] ss:$8 sps:$4 sm:$0xff]   ;;  %v22005_v37 = vld [vmem:[#allocation2 + $0x510] ss:$8 sps:$4 sm:$0xff]  }
 0x689   : > { %13777 = vmatprep.subr.bf16.mxu1 %v21942_v39  ;;  %18661 = vst [vmem:[%s23031_s15 + $0x160] sm:$0x1] %v22730_v9  ;;  %v22008_v39 = vld [vmem:[#allocation2 + $0x410] ss:$8 sps:$4 sm:$0xff]   ;;  %v22014_v9 = vld [vmem:[#allocation2 + $0x400] ss:$8 sps:$4 sm:$0xff]  }
 0x68a   : > { %v22732_v10 = vpop.eup %22731 }
 0x68b   : > { %18662 = vst [vmem:[%s23031_s15 + $0x168] sm:$0x1] %v22732_v10  ;;  %13523 = vmatpush2.bf16.msra.mxu0 %v21937_v4  ;;  %v22016_v4 = vld [vmem:[#allocation2 + $0x404] ss:$8 sps:$4 sm:$0xff]   ;;  %v22017_v10 = vld [vmem:[#allocation2 + $0x5f0] ss:$8 sps:$4 sm:$0xff]  }
 0x68c   : > { %13778 = vmatpush2.bf16.msra.mxu1 %v21940_v61  ;;  %13524 = vmatprep.subr.bf16.mxu0 %v21945_v22  ;;  %v22011_v61 = vld [vmem:[#allocation2 + $0x500] ss:$8 sps:$4 sm:$0xff]   ;;  %v22019_v22 = vld [vmem:[#allocation2 + $0x5f4] ss:$8 sps:$4 sm:$0xff]  }
 0x68d   : > { %13779 = vmatprep.subr.bf16.mxu1 %v21948_v23  ;;  %v22022_v23 = vld [vmem:[#allocation2 + $0x4f4] ss:$8 sps:$4 sm:$0xff]  }
 0x68f   : > { %13525 = vmatpush2.bf16.msra.mxu0 %v21943_v42  ;;  %v22020_v42 = vld [vmem:[#allocation2 + $0x4f0] ss:$8 sps:$4 sm:$0xff]  }
 0x690   : > { %13780 = vmatpush2.bf16.msra.mxu1 %v21946_v32  ;;  %13526 = vmatprep.subr.bf16.mxu0 %v21951_v17  ;;  %v22025_v32 = vld [vmem:[#allocation2 + $0x5e4] ss:$8 sps:$4 sm:$0xff]  }
 0x691   : > { %13781 = vmatprep.subr.bf16.mxu1 %v21954_v3  ;;  %v22028_v17 = vld [vmem:[#allocation2 + $0x4e4] ss:$8 sps:$4 sm:$0xff]   ;;  %v22023_v3 = vld [vmem:[#allocation2 + $0x5e0] ss:$8 sps:$4 sm:$0xff]  }
 0x693   : > { %13527 = vmatpush2.bf16.msra.mxu0 %v21949_v48  ;;  %v22031_v48 = vld [vmem:[#allocation2 + $0x5d4] ss:$8 sps:$4 sm:$0xff]  }
 0x694   : > { %13782 = vmatpush2.bf16.msra.mxu1 %v21952_v51  ;;  %13528 = vmatprep.subr.bf16.mxu0 %v21957_v53  ;;  %v22034_v51 = vld [vmem:[#allocation2 + $0x4d4] ss:$8 sps:$4 sm:$0xff]   ;;  %v22029_v53 = vld [vmem:[#allocation2 + $0x5d0] ss:$8 sps:$4 sm:$0xff]  }
 0x695   : > { %13783 = vmatprep.subr.bf16.mxu1 %v21960_v13  ;;  %v22032_v13 = vld [vmem:[#allocation2 + $0x4d0] ss:$8 sps:$4 sm:$0xff]  }
 0x697   : > { %13529 = vmatpush2.bf16.msra.mxu0 %v21955_v57  ;;  %v22035_v57 = vld [vmem:[#allocation2 + $0x5c0] ss:$8 sps:$4 sm:$0xff]  }
 0x698   : > { %13784 = vmatpush2.bf16.msra.mxu1 %v21958_v43  ;;  %13530 = vmatprep.subr.bf16.mxu0 %v21963_v46  ;;  %v22038_v43 = vld [vmem:[#allocation2 + $0x4c0] ss:$8 sps:$4 sm:$0xff]   ;;  %v22043_v46 = vld [vmem:[#allocation2 + $0x5b4] ss:$8 sps:$4 sm:$0xff]  }
 0x699   : > { %13785 = vmatprep.subr.bf16.mxu1 %v21966_v52  ;;  %v22046_v52 = vld [vmem:[#allocation2 + $0x4b4] ss:$8 sps:$4 sm:$0xff]  }
 0x69b   : > { %13531 = vmatpush2.bf16.msra.mxu0 %v21961_v41  ;;  %v22052_v41 = vld [vmem:[#allocation2 + $0x4a4] ss:$8 sps:$4 sm:$0xff]  }
 0x69c   : > { %13786 = vmatpush2.bf16.msra.mxu1 %v21964_v55  ;;  %14085 = vmatprep.subr.bf16.mxu0 %v21971_v38  ;;  %v18953_v55 = vcombine.low %v23283_v25, %v23311_v47  ;;  %v23318_v38 = vld [vmem:[%s22958_s8 + $0x78] sm:$0x11] }
 0x69d   : > { %14290 = vmatprep.subr.bf16.mxu1 %v21974_v63  ;;  %v22047_v63 = vld [vmem:[#allocation2 + $0x5a0] ss:$8 sps:$4 sm:$0xff]   ;;  %v22056_v25 = vld [vmem:[#allocation2 + $0x490] ss:$8 sps:$4 sm:$0xff]  }
 0x69e   : > { %13533 = vmatmul.mubr.bf16.vlgmr.msra.gmra.mxu0 %v18877_v58  ;;  %v22026_v58 = vld [vmem:[#allocation2 + $0x4e0] ss:$8 sps:$4 sm:$0xff]   ;;  %v12045_v2 = vpop.f32.mrf.mxu0 }
 0x69f   : > { %13788 = vmatmul.mubr.bf16.vlgmr.msra.gmra.mxu1 %v13585_v49  ;;  %14086 = vmatpush1.bf16.msra.mxu0 %v21969_v50  ;;  %v12250_v49 = vpop.f32.mrf.mxu1  ;;  %v22055_v50 = vld [vmem:[#allocation2 + $0x594] ss:$8 sps:$4 sm:$0xff]  }
 0x6a0   : > { %14291 = vmatpush1.bf16.msra.mxu1 %v21972_v7  ;;  %14087 = vmatprep.subr.bf16.mxu0 %v21977_v8  ;;  %v22058_v7 = vld [vmem:[#allocation2 + $0x494] ss:$8 sps:$4 sm:$0xff]   ;;  %v19022_v8 = vcombine.high %v23293_v44, %v23318_v38  ;;  %v12047_v47 = vpop.f32.mrf.mxu0 }
 0x6a1   : > { %14292 = vmatprep.subr.bf16.mxu1 %v21980_v30  ;;  %14117 = vmatprep.mubr.bf16.mxu0 %v13922_v45  ;;  %v13912_v30 = vshll.u32 %v18953_v55, 16  ;;  %v22053_v45 = vld [vmem:[#allocation2 + $0x590] ss:$8 sps:$4 sm:$0xff]  }
 0x6a2   : > { %14322 = vmatprep.mubr.bf16.mxu1 %v18954_v54  ;;  %v22037_v54 = vld [vmem:[#allocation2 + $0x5c4] ss:$8 sps:$4 sm:$0xff]  }
 0x6a3   : > { %14088 = vmatpush1.bf16.msra.mxu0 %v21975_v36  ;;  %v12252_v36 = vpop.f32.mrf.mxu1 }
 0x6a4   : > { %14293 = vmatpush1.bf16.msra.mxu1 %v21978_v26  ;;  %14089 = vmatprep.subr.bf16.mxu0 %v21983_v11  ;;  %v22061_v26 = vld [vmem:[#allocation2 + $0x584] ss:$8 sps:$4 sm:$0xff]  }
 0x6a5   : > { %14294 = vmatprep.subr.bf16.mxu1 %v21986_v56  ;;  %v22064_v11 = vld [vmem:[#allocation2 + $0x484] ss:$8 sps:$4 sm:$0xff]   ;;  %v14626_v56 = vshll.u32 %v19022_v8, 16  ;;  %v12254_v44 = vpop.f32.mrf.mxu1 }
 0x6a7   : > { %14090 = vmatpush1.bf16.msra.mxu0 %v21981_v12  ;;  %v13910_v12 = vshrl.u32 %v18953_v55, 16 }
 0x6a8   : > { %14295 = vmatpush1.bf16.msra.mxu1 %v21984_v15  ;;  %14091 = vmatprep.subr.bf16.mxu0 %v21989_v16  ;;  %v13914_v15 = vrot.slane %v13912_v30, 1  ;;  %v22059_v16 = vld [vmem:[#allocation2 + $0x580] ss:$8 sps:$4 sm:$0xff]   ;;  %v22093_v30 = vld [vmem:[#allocation2 + $0x634] ss:$8 sps:$4 sm:$0xff]  }
 0x6a9   : > { %14296 = vmatprep.subr.bf16.mxu1 %v21992_v62  ;;  %v22062_v62 = vld [vmem:[#allocation2 + $0x480] ss:$8 sps:$4 sm:$0xff]  }
 0x6ab   : > { %14092 = vmatpush1.bf16.msra.mxu0 %v21987_v5  ;;  %v12049_v5 = vpop.f32.mrf.mxu0 }
 0x6ac   : > { %14297 = vmatpush1.bf16.msra.mxu1 %v21990_v18  ;;  %14093 = vmatprep.subr.bf16.mxu0 %v21995_v19  ;;  %v22069_v18 = vld [vmem:[#allocation2 + $0x674] ss:$8 sps:$4 sm:$0xff]  }
 0x6ad   : > { %14298 = vmatprep.subr.bf16.mxu1 %v21998_v14  ;;  %v22072_v19 = vld [vmem:[#allocation2 + $0x774] ss:$8 sps:$4 sm:$0xff]   ;;  %v14624_v14 = vshrl.u32 %v19022_v8, 16 }
 0x6af   : > { %14094 = vmatpush1.bf16.msra.mxu0 %v21993_v20  ;;  %v14628_v20 = vrot.slane %v14626_v56, 1  ;;  %v22099_v56 = vld [vmem:[#allocation2 + $0x624] ss:$8 sps:$4 sm:$0xff]  }
 0x6b0   : > { %14299 = vmatpush1.bf16.msra.mxu1 %v21996_v21  ;;  %14095 = vmatprep.subr.bf16.mxu0 %v22001_v0  ;;  %v13915_v21 = vor.u32 %v13914_v15, %v13910_v12  ;;  %v22067_v0 = vld [vmem:[#allocation2 + $0x670] ss:$8 sps:$4 sm:$0xff]   ;;  %v22102_v12 = vld [vmem:[#allocation2 + $0x724] ss:$8 sps:$4 sm:$0xff]   ;;  %v22097_v15 = vld [vmem:[#allocation2 + $0x620] ss:$8 sps:$4 sm:$0xff]  }
 0x6b1   : > { %14300 = vmatprep.subr.bf16.mxu1 %v22004_v24  ;;  %v22070_v24 = vld [vmem:[#allocation2 + $0x770] ss:$8 sps:$4 sm:$0xff]  }
 0x6b3   : > { %14096 = vmatpush1.bf16.msra.mxu0 %v21999_v6  ;;  %v12051_v6 = vpop.f32.mrf.mxu0 }
 0x6b4   : > { %14301 = vmatpush1.bf16.msra.mxu1 %v22002_v28  ;;  %14097 = vmatprep.subr.bf16.mxu0 %v22007_v29  ;;  %v12256_v28 = vpop.f32.mrf.mxu1  ;;  %v22075_v29 = vld [vmem:[#allocation2 + $0x664] ss:$8 sps:$4 sm:$0xff]  }
 0x6b5   : > { %14302 = vmatprep.subr.bf16.mxu1 %v22010_v34  ;;  %v22078_v34 = vld [vmem:[#allocation2 + $0x764] ss:$8 sps:$4 sm:$0xff]  }
 0x6b7   : > { %14098 = vmatpush1.bf16.msra.mxu0 %v22005_v37  ;;  %v12251_v37 = vadd.f32 %v12250_v49, %v12045_v2 }
 0x6b8   : > { %14303 = vmatpush1.bf16.msra.mxu1 %v22008_v39  ;;  %14099 = vmatprep.subr.bf16.mxu0 %v22013_v31  ;;  %v14629_v39 = vor.u32 %v14628_v20, %v14624_v14  ;;  %v22111_v14 = vld [vmem:[#allocation2 + $0x604] ss:$8 sps:$4 sm:$0xff]  }
 0x6b9   : > { %14304 = vmatprep.subr.bf16.mxu1 %v22016_v4  ;;  %v22114_v20 = vld [vmem:[#allocation2 + $0x704] ss:$8 sps:$4 sm:$0xff]  }
 0x6bb   : > { %14100 = vmatpush1.bf16.msra.mxu0 %v22011_v61  ;;  %v12253_v61 = vadd.f32 %v12252_v36, %v12047_v47 }
 0x6bc   : > { %14305 = vmatpush1.bf16.msra.mxu1 %v22014_v9  ;;  %14101 = vmatprep.subr.bf16.mxu0 %v22019_v22  ;;  %v22073_v22 = vld [vmem:[#allocation2 + $0x660] ss:$8 sps:$4 sm:$0xff]  }
 0x6bd   : > { %14306 = vmatprep.subr.bf16.mxu1 %v22022_v23  ;;  %v22076_v23 = vld [vmem:[#allocation2 + $0x760] ss:$8 sps:$4 sm:$0xff]  }
 0x6bf   : > { %14102 = vmatpush2.bf16.msra.mxu0 %v22017_v10 }
 0x6c0   : > { %14307 = vmatpush2.bf16.msra.mxu1 %v22020_v42  ;;  %14103 = vmatprep.subr.bf16.mxu0 %v22025_v32  ;;  %v22081_v32 = vld [vmem:[#allocation2 + $0x654] ss:$8 sps:$4 sm:$0xff]  }
 0x6c1   : > { %14308 = vmatprep.subr.bf16.mxu1 %v22028_v17  ;;  %v22084_v17 = vld [vmem:[#allocation2 + $0x754] ss:$8 sps:$4 sm:$0xff]  }
 0x6c3   : > { %14104 = vmatpush2.bf16.msra.mxu0 %v22023_v3  ;;  %v12255_v3 = vadd.f32 %v12254_v44, %v12049_v5  ;;  %v22108_v5 = vld [vmem:[#allocation2 + $0x714] ss:$8 sps:$4 sm:$0xff]   ;;  %v22103_v44 = vld [vmem:[#allocation2 + $0x610] ss:$8 sps:$4 sm:$0xff]  }
 0x6c4   : > { %14309 = vmatpush2.bf16.msra.mxu1 %v22026_v58  ;;  %14105 = vmatprep.subr.bf16.mxu0 %v22031_v48 }
 0x6c5   : > { %14310 = vmatprep.subr.bf16.mxu1 %v22034_v51  ;;  %v12257_v51 = vadd.f32 %v12256_v28, %v12051_v6  ;;  %v22109_v6 = vld [vmem:[#allocation2 + $0x600] ss:$8 sps:$4 sm:$0xff]  }
 0x6c6   : > { %v22112_v28 = vld [vmem:[#allocation2 + $0x700] ss:$8 sps:$4 sm:$0xff]  }
 0x6c7   : > { %14106 = vmatpush2.bf16.msra.mxu0 %v22029_v53 }
 0x6c8   : > { %14311 = vmatpush2.bf16.msra.mxu1 %v22032_v13  ;;  %14107 = vmatprep.subr.bf16.mxu0 %v22037_v54 }
 0x6c9   : > { %14312 = vmatprep.subr.bf16.mxu1 %v22040_v27 }
 0x6cb   : > { %14108 = vmatpush2.bf16.msra.mxu0 %v22035_v57 }
 0x6cc   : > { %14313 = vmatpush2.bf16.msra.mxu1 %v22038_v43  ;;  %14109 = vmatprep.subr.bf16.mxu0 %v22043_v46  ;;  %v22079_v43 = vld [vmem:[#allocation2 + $0x650] ss:$8 sps:$4 sm:$0xff]  }
 0x6cd   : > { %14314 = vmatprep.subr.bf16.mxu1 %v22046_v52  ;;  %v22082_v46 = vld [vmem:[#allocation2 + $0x750] ss:$8 sps:$4 sm:$0xff]  }
 0x6cf   : > { %14110 = vmatpush2.bf16.msra.mxu0 %v22041_v59  ;;  %v22087_v59 = vld [vmem:[#allocation2 + $0x644] ss:$8 sps:$4 sm:$0xff]  }
 0x6d0   : > { %14315 = vmatpush2.bf16.msra.mxu1 %v22044_v60  ;;  %14111 = vmatprep.subr.bf16.mxu0 %v22049_v40  ;;  %v22090_v60 = vld [vmem:[#allocation2 + $0x744] ss:$8 sps:$4 sm:$0xff]  }
 0x6d1   : > { %14316 = vmatprep.subr.bf16.mxu1 %v22052_v41 }
 0x6d3   : > { %14112 = vmatpush2.bf16.msra.mxu0 %v22047_v63 }
 0x6d4   : > { %14317 = vmatpush2.bf16.msra.mxu1 %v22050_v1  ;;  %14113 = vmatprep.subr.bf16.mxu0 %v22055_v50 }
 0x6d5   : > { %14318 = vmatprep.subr.bf16.mxu1 %v22058_v7  ;;  %v22085_v7 = vld [vmem:[#allocation2 + $0x640] ss:$8 sps:$4 sm:$0xff]  }
 0x6d7   : > { %14114 = vmatpush2.bf16.msra.mxu0 %v22053_v45  ;;  %v22096_v45 = vld [vmem:[#allocation2 + $0x734] ss:$8 sps:$4 sm:$0xff]  }
 0x6d8   : > { %14319 = vmatpush2.bf16.msra.mxu1 %v22056_v25  ;;  %14115 = vmatprep.subr.bf16.mxu0 %v22061_v26  ;;  %v22091_v26 = vld [vmem:[#allocation2 + $0x630] ss:$8 sps:$4 sm:$0xff]  }
 0x6d9   : > { %14320 = vmatprep.subr.bf16.mxu1 %v22064_v11  ;;  %v22094_v11 = vld [vmem:[#allocation2 + $0x730] ss:$8 sps:$4 sm:$0xff]  }
 0x6db   : > { %14116 = vmatpush2.bf16.msra.mxu0 %v22059_v16  ;;  %v22100_v16 = vld [vmem:[#allocation2 + $0x720] ss:$8 sps:$4 sm:$0xff]  }
 0x6dc   : > { %14321 = vmatpush2.bf16.msra.mxu1 %v22062_v62  ;;  %14537 = vmatprep.subr.bf16.mxu0 %v22069_v18  ;;  %v22105_v62 = vld [vmem:[#allocation2 + $0x614] ss:$8 sps:$4 sm:$0xff]   ;;  %v22106_v18 = vld [vmem:[#allocation2 + $0x710] ss:$8 sps:$4 sm:$0xff]  }
 0x6dd   : > { %14792 = vmatprep.subr.bf16.mxu1 %v22072_v19 }
 0x6de   : > { %v12497_v31 = vpop.f32.mrf.mxu0  ;;  %14118 = vmatmul.mubr.bf16.vlgmr.msra.gmra.mxu0 %v13915_v21 }
 0x6df   : > { %v12752_v4 = vpop.f32.mrf.mxu1  ;;  %14323 = vmatmul.mubr.bf16.vlgmr.msra.gmra.mxu1 %v18953_v55  ;;  %v12506_v9 = vadd.f32 %v12497_v31, %v12251_v37  ;;  %14538 = vmatpush1.bf16.msra.mxu0 %v22067_v0  ;;  %v22120_v37 = vld [vmem:[#allocation2 + $0x7f4] ss:$8 sps:$4 sm:$0xff]  }
 0x6e0   : > { %14793 = vmatpush1.bf16.msra.mxu1 %v22070_v24  ;;  %v12499_v10 = vpop.f32.mrf.mxu0  ;;  %14539 = vmatprep.subr.bf16.mxu0 %v22075_v29 }
 0x6e1   : > { %v12754_v42 = vpop.f32.mrf.mxu1  ;;  %14794 = vmatprep.subr.bf16.mxu1 %v22078_v34  ;;  %v12761_v58 = vadd.f32 %v12752_v4, %v12506_v9  ;;  %v12507_v48 = vadd.f32 %v12499_v10, %v12253_v61  ;;  %14569 = vmatprep.mubr.bf16.mxu0 %v19022_v8  ;;  %v22088_v8 = vld [vmem:[#allocation2 + $0x740] ss:$8 sps:$4 sm:$0xff]   ;;  %v22117_v34 = vld [vmem:[#allocation2 + $0x6f4] ss:$8 sps:$4 sm:$0xff]   ;;  %v22115_v61 = vld [vmem:[#allocation2 + $0x6f0] ss:$8 sps:$4 sm:$0xff]  }
 0x6e2   : > { %14824 = vmatprep.mubr.bf16.mxu1 %v14629_v39  ;;  %v12501_v53 = vpop.f32.mrf.mxu0  ;;  %v22118_v9 = vld [vmem:[#allocation2 + $0x7f0] ss:$8 sps:$4 sm:$0xff]   ;;  %v22121_v10 = vld [vmem:[#allocation2 + $0x6e0] ss:$8 sps:$4 sm:$0xff]  }
 0x6e3   : > { %v12756_v13 = vpop.f32.mrf.mxu1  ;;  %v12765_v54 = vadd.f32 %v12761_v58, %v23015_v33  ;;  %v12762_v27 = vadd.f32 %v12754_v42, %v12507_v48  ;;  %v12508_v57 = vadd.f32 %v12501_v53, %v12255_v3  ;;  %14540 = vmatpush1.bf16.msra.mxu0 %v22073_v22  ;;  %v22123_v22 = vld [vmem:[#allocation2 + $0x6e4] ss:$8 sps:$4 sm:$0xff]   ;;  %v22124_v42 = vld [vmem:[#allocation2 + $0x7e0] ss:$8 sps:$4 sm:$0xff]   ;;  %v22127_v3 = vld [vmem:[#allocation2 + $0x6d0] ss:$8 sps:$4 sm:$0xff]  }
 0x6e4   : > { %14795 = vmatpush1.bf16.msra.mxu1 %v22076_v23  ;;  %v12503_v52 = vpop.f32.mrf.mxu0  ;;  %14541 = vmatprep.subr.bf16.mxu0 %v22081_v32  ;;  %v22126_v23 = vld [vmem:[#allocation2 + $0x7e4] ss:$8 sps:$4 sm:$0xff]   ;;  %v22129_v32 = vld [vmem:[#allocation2 + $0x6d4] ss:$8 sps:$4 sm:$0xff]   ;;  %v22130_v58 = vld [vmem:[#allocation2 + $0x7d0] ss:$8 sps:$4 sm:$0xff]  }
 0x6e5   : > { %14796 = vmatprep.subr.bf16.mxu1 %v22084_v17  ;;  %v18799_v40 = vmul.f32 -1.442695, %v12765_v54  ;;  %v12766_v41 = vadd.f32 %v12762_v27, %v23017_v35  ;;  %v12763_v55 = vadd.f32 %v12756_v13, %v12508_v57  ;;  %v12509_v63 = vadd.f32 %v12503_v52, %v12257_v51  ;;  %v12758_v1 = vpop.f32.mrf.mxu1  ;;  %v22132_v17 = vld [vmem:[#allocation2 + $0x7d4] ss:$8 sps:$4 sm:$0xff]   ;;  %v22135_v51 = vld [vmem:[#allocation2 + $0x6c4] ss:$8 sps:$4 sm:$0xff]  }
 0x6e6   : > { %v22138_v53 = vld [vmem:[#allocation2 + $0x7c4] ss:$8 sps:$4 sm:$0xff]   ;;  %v22133_v54 = vld [vmem:[#allocation2 + $0x6c0] ss:$8 sps:$4 sm:$0xff]  }
 0x6e7   : > { %22733 = vpow2.f32 %v18799_v40  ;;  %v18800_v2 = vmul.f32 -1.442695, %v12766_v41  ;;  %v12767_v49 = vadd.f32 %v12763_v55, %v23015_v33  ;;  %v12764_v50 = vadd.f32 %v12758_v1, %v12509_v63  ;;  %14542 = vmatpush1.bf16.msra.mxu0 %v22079_v43  ;;  %v22136_v27 = vld [vmem:[#allocation2 + $0x7c0] ss:$8 sps:$4 sm:$0xff]   ;;  %v22141_v43 = vld [vmem:[#allocation2 + $0x6b4] ss:$8 sps:$4 sm:$0xff]  }
 0x6e8   : > { %14797 = vmatpush1.bf16.msra.mxu1 %v22082_v46  ;;  %14543 = vmatprep.subr.bf16.mxu0 %v22087_v59  ;;  %v22144_v46 = vld [vmem:[#allocation2 + $0x7b4] ss:$8 sps:$4 sm:$0xff]   ;;  %v22139_v59 = vld [vmem:[#allocation2 + $0x6b0] ss:$8 sps:$4 sm:$0xff]   ;;  %v22147_v40 = vld [vmem:[#allocation2 + $0x6a4] ss:$8 sps:$4 sm:$0xff]  }
 0x6e9   : > { %14798 = vmatprep.subr.bf16.mxu1 %v22090_v60  ;;  %22735 = vpow2.f32 %v18800_v2  ;;  %v18801_v25 = vmul.f32 -1.442695, %v12767_v49  ;;  %v12768_v47 = vadd.f32 %v12764_v50, %v23017_v35  ;;  %v22142_v60 = vld [vmem:[#allocation2 + $0x7b0] ss:$8 sps:$4 sm:$0xff]   ;;  %v22150_v41 = vld [vmem:[#allocation2 + $0x7a4] ss:$8 sps:$4 sm:$0xff]  }
 0x6ea   : > { %v22824_v55 = vld [vmem:[%s22958_s8 + $0x70] sm:$0xff]  ;;  %v23336_v2 = vld [vmem:[%s22958_s8 + $0x78] sm:$0x11]  ;;  %v22145_v49 = vld [vmem:[#allocation2 + $0x6a0] ss:$8 sps:$4 sm:$0xff]  }
 0x6eb   : > { %22737 = vpow2.f32 %v18801_v25  ;;  %v18802_v36 = vmul.f32 -1.442695, %v12768_v47  ;;  %14544 = vmatpush1.bf16.msra.mxu0 %v22085_v7  ;;  %v19021_v63 = vcombine.low %v22824_v55, %v23318_v38  ;;  %v23333_v1 = vld [vmem:[%s22958_s8 + $0x70] sm:$0xff]  ;;  %v22148_v50 = vld [vmem:[#allocation2 + $0x7a0] ss:$8 sps:$4 sm:$0xff]  }
 0x6ec   : > { %14799 = vmatpush1.bf16.msra.mxu1 %v22088_v8  ;;  %14545 = vmatprep.subr.bf16.mxu0 %v22093_v30  ;;  %v22153_v7 = vld [vmem:[#allocation2 + $0x694] ss:$8 sps:$4 sm:$0xff]   ;;  %v19098_v30 = vcombine.high %v23333_v1, %v23336_v2  ;;  %v22151_v25 = vld [vmem:[#allocation2 + $0x690] ss:$8 sps:$4 sm:$0xff]   ;;  %v22159_v47 = vld [vmem:[#allocation2 + $0x684] ss:$8 sps:$4 sm:$0xff]  }
 0x6ed   : > { %14800 = vmatprep.subr.bf16.mxu1 %v22096_v45  ;;  %22739 = vpow2.f32 %v18802_v36  ;;  %v22156_v8 = vld [vmem:[#allocation2 + $0x794] ss:$8 sps:$4 sm:$0xff]   ;;  %v14619_v45 = vshll.u32 %v19021_v63, 16  ;;  %v22154_v38 = vld [vmem:[#allocation2 + $0x790] ss:$8 sps:$4 sm:$0xff]  }
 0x6ee   : > { %v22162_v36 = vld [vmem:[#allocation2 + $0x784] ss:$8 sps:$4 sm:$0xff]   ;;  %v22222_v55 = vld [vmem:[#allocation2 + $0xe0] ss:$8 sps:$4 sm:$0xff]  }
 0x6ef   : > { %14546 = vmatpush1.bf16.msra.mxu0 %v22091_v26  ;;  %v14955_v26 = vshll.u32 %v19098_v30, 16 }
 0x6f0   : > { %14801 = vmatpush1.bf16.msra.mxu1 %v22094_v11  ;;  %14547 = vmatprep.subr.bf16.mxu0 %v22099_v56  ;;  %v14617_v11 = vshrl.u32 %v19021_v63, 16  ;;  %v14621_v56 = vrot.slane %v14619_v45, 1  ;;  %v22231_v45 = vld [vmem:[#allocation2 + $0x1c0] ss:$8 sps:$4 sm:$0xff]  }
 0x6f1   : > { %14802 = vmatprep.subr.bf16.mxu1 %v22102_v12  ;;  %v22157_v12 = vld [vmem:[#allocation2 + $0x680] ss:$8 sps:$4 sm:$0xff]  }
 0x6f3   : > { %14548 = vmatpush1.bf16.msra.mxu0 %v22097_v15  ;;  %v22160_v15 = vld [vmem:[#allocation2 + $0x780] ss:$8 sps:$4 sm:$0xff]  }
 0x6f4   : > { %14803 = vmatpush1.bf16.msra.mxu1 %v22100_v16  ;;  %v22734_v19 = vpop.eup %22733  ;;  %14549 = vmatprep.subr.bf16.mxu0 %v22105_v62  ;;  %v22167_v16 = vld [vmem:[#allocation2 + $0x174] ss:$8 sps:$4 sm:$0xff]  }
 0x6f5   : > { %14804 = vmatprep.subr.bf16.mxu1 %v22108_v5  ;;  %v12781_v21 = vadd.f32 1.0, %v22734_v19  ;;  %v22170_v62 = vld [vmem:[#allocation2 + $0x74] ss:$8 sps:$4 sm:$0xff]   ;;  %v14953_v5 = vshrl.u32 %v19098_v30, 16  ;;  %v22165_v19 = vld [vmem:[#allocation2 + $0x170] ss:$8 sps:$4 sm:$0xff]  }
 0x6f6   : > { %v22736_v0 = vpop.eup %22735 }
 0x6f7   : > { %22741 = vrcp.f32 %v12781_v21  ;;  %v12782_v24 = vadd.f32 1.0, %v22736_v0  ;;  %14550 = vmatpush1.bf16.msra.mxu0 %v22103_v44  ;;  %v14957_v44 = vrot.slane %v14955_v26, 1  ;;  %v22176_v21 = vld [vmem:[#allocation2 + $0x64] ss:$8 sps:$4 sm:$0xff]   ;;  %v22240_v26 = vld [vmem:[#allocation2 + $0xb0] ss:$8 sps:$4 sm:$0xff]  }
 0x6f8   : > { %14805 = vmatpush1.bf16.msra.mxu1 %v22106_v18  ;;  %v22738_v29 = vpop.eup %22737  ;;  %14551 = vmatprep.subr.bf16.mxu0 %v22111_v14  ;;  %v14622_v18 = vor.u32 %v14621_v56, %v14617_v11  ;;  %v22168_v14 = vld [vmem:[#allocation2 + $0x70] ss:$8 sps:$4 sm:$0xff]   ;;  %v22245_v11 = vld [vmem:[#allocation2 + $0x1a4] ss:$8 sps:$4 sm:$0xff]  }
 0x6f9   : > { %14806 = vmatprep.subr.bf16.mxu1 %v22114_v20  ;;  %22743 = vrcp.f32 %v12782_v24  ;;  %v12783_v39 = vadd.f32 1.0, %v22738_v29  ;;  %v22173_v20 = vld [vmem:[#allocation2 + $0x164] ss:$8 sps:$4 sm:$0xff]   ;;  %v14958_v0 = vor.u32 %v14957_v44, %v14953_v5  ;;  %v22171_v24 = vld [vmem:[#allocation2 + $0x160] ss:$8 sps:$4 sm:$0xff]  }
 0x6fa   : > { %v22740_v31 = vpop.eup %22739  ;;  %v22182_v29 = vld [vmem:[#allocation2 + $0x54] ss:$8 sps:$4 sm:$0xff]   ;;  %v22248_v56 = vld [vmem:[#allocation2 + $0xa4] ss:$8 sps:$4 sm:$0xff]   ;;  %v22246_v5 = vld [vmem:[#allocation2 + $0xa0] ss:$8 sps:$4 sm:$0xff]  }
 0x6fb   : > { %22745 = vrcp.f32 %v12783_v39  ;;  %v12784_v4 = vadd.f32 1.0, %v22740_v31  ;;  %14552 = vmatpush1.bf16.msra.mxu0 %v22109_v6  ;;  %v22174_v6 = vld [vmem:[#allocation2 + $0x60] ss:$8 sps:$4 sm:$0xff]   ;;  %v22185_v39 = vld [vmem:[#allocation2 + $0x144] ss:$8 sps:$4 sm:$0xff]  }
 0x6fc   : > { %14807 = vmatpush1.bf16.msra.mxu1 %v22112_v28  ;;  %14553 = vmatprep.subr.bf16.mxu0 %v22117_v34  ;;  %v22179_v28 = vld [vmem:[#allocation2 + $0x154] ss:$8 sps:$4 sm:$0xff]   ;;  %v22177_v34 = vld [vmem:[#allocation2 + $0x150] ss:$8 sps:$4 sm:$0xff]   ;;  %v22188_v31 = vld [vmem:[#allocation2 + $0x44] ss:$8 sps:$4 sm:$0xff]  }
 0x6fd   : > { %14808 = vmatprep.subr.bf16.mxu1 %v22120_v37  ;;  %22747 = vrcp.f32 %v12784_v4  ;;  %v22180_v37 = vld [vmem:[#allocation2 + $0x50] ss:$8 sps:$4 sm:$0xff]   ;;  %v22183_v4 = vld [vmem:[#allocation2 + $0x140] ss:$8 sps:$4 sm:$0xff]  }
 0x6ff   : > { %14554 = vmatpush2.bf16.msra.mxu0 %v22115_v61  ;;  %v22186_v61 = vld [vmem:[#allocation2 + $0x40] ss:$8 sps:$4 sm:$0xff]  }
 0x700   : > { %14809 = vmatpush2.bf16.msra.mxu1 %v22118_v9  ;;  %14555 = vmatprep.subr.bf16.mxu0 %v22123_v22  ;;  %v22191_v9 = vld [vmem:[#allocation2 + $0x134] ss:$8 sps:$4 sm:$0xff]  }
 0x701   : > { %14810 = vmatprep.subr.bf16.mxu1 %v22126_v23  ;;  %v22194_v22 = vld [vmem:[#allocation2 + $0x34] ss:$8 sps:$4 sm:$0xff]   ;;  %v22189_v23 = vld [vmem:[#allocation2 + $0x130] ss:$8 sps:$4 sm:$0xff]  }
 0x703   : > { %14556 = vmatpush2.bf16.msra.mxu0 %v22121_v10  ;;  %v22192_v10 = vld [vmem:[#allocation2 + $0x30] ss:$8 sps:$4 sm:$0xff]  }
 0x704   : > { %14811 = vmatpush2.bf16.msra.mxu1 %v22124_v42  ;;  %v22742_v48 = vpop.eup %22741  ;;  %14557 = vmatprep.subr.bf16.mxu0 %v22129_v32  ;;  %v22197_v42 = vld [vmem:[#allocation2 + $0x124] ss:$8 sps:$4 sm:$0xff]  }
 0x705   : > { %14812 = vmatprep.subr.bf16.mxu1 %v22132_v17  ;;  %18803 = vst [vmem:[%s23031_s15 + $0x150] sm:$0xff] %v22742_v48  ;;  %v22200_v32 = vld [vmem:[#allocation2 + $0x24] ss:$8 sps:$4 sm:$0xff]   ;;  %v22195_v17 = vld [vmem:[#allocation2 + $0x120] ss:$8 sps:$4 sm:$0xff]  }
 0x706   : > { %v22744_v13 = vpop.eup %22743  ;;  %v22206_v48 = vld [vmem:[#allocation2 + $0x14] ss:$8 sps:$4 sm:$0xff]  }
 0x707   : > { %18804 = vst [vmem:[%s23031_s15 + $0x158] sm:$0xff] %v22744_v13  ;;  %14558 = vmatpush2.bf16.msra.mxu0 %v22127_v3  ;;  %v22198_v3 = vld [vmem:[#allocation2 + $0x20] ss:$8 sps:$4 sm:$0xff]   ;;  %v22209_v13 = vld [vmem:[#allocation2 + $0x104] ss:$8 sps:$4 sm:$0xff]  }
 0x708   : > { %14813 = vmatpush2.bf16.msra.mxu1 %v22130_v58  ;;  %v22746_v57 = vpop.eup %22745  ;;  %14559 = vmatprep.subr.bf16.mxu0 %v22135_v51  ;;  %v22203_v58 = vld [vmem:[#allocation2 + $0x114] ss:$8 sps:$4 sm:$0xff]   ;;  %v22201_v51 = vld [vmem:[#allocation2 + $0x110] ss:$8 sps:$4 sm:$0xff]  }
 0x709   : > { %14814 = vmatprep.subr.bf16.mxu1 %v22138_v53  ;;  %18805 = vst [vmem:[%s23031_s15 + $0x170] sm:$0x1] %v22746_v57  ;;  %v22204_v53 = vld [vmem:[#allocation2 + $0x10] ss:$8 sps:$4 sm:$0xff]   ;;  %v22210_v57 = vld [vmem:[#allocation2] ss:$8 sps:$4 sm:$0xff]  }
 0x70a   : > { %v22748_v52 = vpop.eup %22747 }
 0x70b   : > { %18806 = vst [vmem:[%s23031_s15 + $0x178] sm:$0x1] %v22748_v52  ;;  %14560 = vmatpush2.bf16.msra.mxu0 %v22133_v54  ;;  %v22212_v54 = vld [vmem:[#allocation2 + $0x4] ss:$8 sps:$4 sm:$0xff]   ;;  %v22213_v52 = vld [vmem:[#allocation2 + $0x1f0] ss:$8 sps:$4 sm:$0xff]  }
 0x70c   : > { %14815 = vmatpush2.bf16.msra.mxu1 %v22136_v27  ;;  %14561 = vmatprep.subr.bf16.mxu0 %v22141_v43  ;;  %v22207_v27 = vld [vmem:[#allocation2 + $0x100] ss:$8 sps:$4 sm:$0xff]   ;;  %v22215_v43 = vld [vmem:[#allocation2 + $0x1f4] ss:$8 sps:$4 sm:$0xff]  }
 0x70d   : > { %14816 = vmatprep.subr.bf16.mxu1 %v22144_v46  ;;  %v22218_v46 = vld [vmem:[#allocation2 + $0xf4] ss:$8 sps:$4 sm:$0xff]  }
 0x70f   : > { %14562 = vmatpush2.bf16.msra.mxu0 %v22139_v59  ;;  %v22216_v59 = vld [vmem:[#allocation2 + $0xf0] ss:$8 sps:$4 sm:$0xff]  }
 0x710   : > { %14817 = vmatpush2.bf16.msra.mxu1 %v22142_v60  ;;  %14563 = vmatprep.subr.bf16.mxu0 %v22147_v40  ;;  %v22221_v60 = vld [vmem:[#allocation2 + $0x1e4] ss:$8 sps:$4 sm:$0xff]  }
 0x711   : > { %14818 = vmatprep.subr.bf16.mxu1 %v22150_v41  ;;  %v22224_v40 = vld [vmem:[#allocation2 + $0xe4] ss:$8 sps:$4 sm:$0xff]   ;;  %v22219_v41 = vld [vmem:[#allocation2 + $0x1e0] ss:$8 sps:$4 sm:$0xff]  }
 0x713   : > { %14564 = vmatpush2.bf16.msra.mxu0 %v22145_v49  ;;  %v22230_v49 = vld [vmem:[#allocation2 + $0xd4] ss:$8 sps:$4 sm:$0xff]  }
 0x714   : > { %14819 = vmatpush2.bf16.msra.mxu1 %v22148_v50  ;;  %14565 = vmatprep.subr.bf16.mxu0 %v22153_v7  ;;  %v22225_v50 = vld [vmem:[#allocation2 + $0x1d0] ss:$8 sps:$4 sm:$0xff]  }
 0x715   : > { %14820 = vmatprep.subr.bf16.mxu1 %v22156_v8  ;;  %v22228_v7 = vld [vmem:[#allocation2 + $0xd0] ss:$8 sps:$4 sm:$0xff]   ;;  %v22233_v8 = vld [vmem:[#allocation2 + $0x1c4] ss:$8 sps:$4 sm:$0xff]  }
 0x717   : > { %14566 = vmatpush2.bf16.msra.mxu0 %v22151_v25  ;;  %v22234_v25 = vld [vmem:[#allocation2 + $0xc0] ss:$8 sps:$4 sm:$0xff]  }
 0x718   : > { %14821 = vmatpush2.bf16.msra.mxu1 %v22154_v38  ;;  %14567 = vmatprep.subr.bf16.mxu0 %v22159_v47  ;;  %v22239_v38 = vld [vmem:[#allocation2 + $0x1b4] ss:$8 sps:$4 sm:$0xff]  }
 0x719   : > { %14822 = vmatprep.subr.bf16.mxu1 %v22162_v36  ;;  %v22242_v47 = vld [vmem:[#allocation2 + $0xb4] ss:$8 sps:$4 sm:$0xff]   ;;  %v22237_v36 = vld [vmem:[#allocation2 + $0x1b0] ss:$8 sps:$4 sm:$0xff]  }
 0x71b   : > { %14568 = vmatpush2.bf16.msra.mxu0 %v22157_v12  ;;  %v19097_v12 = vcombine.low %v23333_v1, %v23336_v2  ;;  %v22249_v2 = vld [vmem:[#allocation2 + $0x190] ss:$8 sps:$4 sm:$0xff]  }
 0x71c   : > { %14823 = vmatpush2.bf16.msra.mxu1 %v22160_v15  ;;  %15121 = vmatprep.subr.bf16.mxu0 %v22167_v16  ;;  %v23349_v15 = vld [vmem:[%s23344_s23] sm:$0xff]  ;;  %v23352_v16 = vld [vmem:[%s23344_s23 + $0x8] sm:$0x11] }
 0x71d   : > { %15326 = vmatprep.subr.bf16.mxu1 %v22170_v62  ;;  %v22243_v62 = vld [vmem:[#allocation2 + $0x1a0] ss:$8 sps:$4 sm:$0xff]  }
 0x71e   : > { %14570 = vmatmul.mubr.bf16.vlgmr.msra.gmra.mxu0 %v19021_v63  ;;  %v22227_v63 = vld [vmem:[#allocation2 + $0x1d4] ss:$8 sps:$4 sm:$0xff]   ;;  %v13081_v44 = vpop.f32.mrf.mxu0 }
 0x71f   : > { %14825 = vmatmul.mubr.bf16.vlgmr.msra.gmra.mxu1 %v14622_v18  ;;  %15122 = vmatpush1.bf16.msra.mxu0 %v22165_v19  ;;  %v13286_v18 = vpop.f32.mrf.mxu1  ;;  %v22251_v19 = vld [vmem:[#allocation2 + $0x194] ss:$8 sps:$4 sm:$0xff]  }
 0x720   : > { %15327 = vmatpush1.bf16.msra.mxu1 %v22168_v14  ;;  %15123 = vmatprep.subr.bf16.mxu0 %v22173_v20  ;;  %v22254_v14 = vld [vmem:[#allocation2 + $0x94] ss:$8 sps:$4 sm:$0xff]   ;;  %v19164_v20 = vcombine.high %v23349_v15, %v23352_v16 }
 0x721   : > { %15328 = vmatprep.subr.bf16.mxu1 %v22176_v21  ;;  %15153 = vmatprep.mubr.bf16.mxu0 %v14958_v0  ;;  %v14948_v21 = vshll.u32 %v19097_v12, 16  ;;  %v22252_v0 = vld [vmem:[#allocation2 + $0x90] ss:$8 sps:$4 sm:$0xff]  }
 0x722   : > { %15358 = vmatprep.mubr.bf16.mxu1 %v19098_v30  ;;  %v22236_v30 = vld [vmem:[#allocation2 + $0xc4] ss:$8 sps:$4 sm:$0xff]  }
 0x723   : > { %15124 = vmatpush1.bf16.msra.mxu0 %v22171_v24  ;;  %v13083_v24 = vpop.f32.mrf.mxu0 }
 0x724   : > { %15329 = vmatpush1.bf16.msra.mxu1 %v22174_v6  ;;  %15125 = vmatprep.subr.bf16.mxu0 %v22179_v28  ;;  %v13288_v6 = vpop.f32.mrf.mxu1  ;;  %v22257_v28 = vld [vmem:[#allocation2 + $0x184] ss:$8 sps:$4 sm:$0xff]  }
 0x725   : > { %15330 = vmatprep.subr.bf16.mxu1 %v22182_v29  ;;  %v22260_v29 = vld [vmem:[#allocation2 + $0x84] ss:$8 sps:$4 sm:$0xff]  }
 0x727   : > { %15126 = vmatpush1.bf16.msra.mxu0 %v22177_v34  ;;  %v15662_v34 = vshll.u32 %v19164_v20, 16 }
 0x728   : > { %15331 = vmatpush1.bf16.msra.mxu1 %v22180_v37  ;;  %15127 = vmatprep.subr.bf16.mxu0 %v22185_v39  ;;  %v14946_v37 = vshrl.u32 %v19097_v12, 16  ;;  %v14950_v39 = vrot.slane %v14948_v21, 1  ;;  %v22281_v21 = vld [vmem:[#allocation2 + $0x240] ss:$8 sps:$4 sm:$0xff]  }
 0x729   : > { %15332 = vmatprep.subr.bf16.mxu1 %v22188_v31  ;;  %v22255_v31 = vld [vmem:[#allocation2 + $0x180] ss:$8 sps:$4 sm:$0xff]  }
 0x72b   : > { %15128 = vmatpush1.bf16.msra.mxu0 %v22183_v4  ;;  %v22258_v4 = vld [vmem:[#allocation2 + $0x80] ss:$8 sps:$4 sm:$0xff]  }
 0x72c   : > { %15333 = vmatpush1.bf16.msra.mxu1 %v22186_v61  ;;  %15129 = vmatprep.subr.bf16.mxu0 %v22191_v9  ;;  %v13085_v61 = vpop.f32.mrf.mxu0  ;;  %v13290_v9 = vpop.f32.mrf.mxu1 }
 0x72d   : > { %15334 = vmatprep.subr.bf16.mxu1 %v22194_v22  ;;  %v22265_v22 = vld [vmem:[#allocation2 + $0x274] ss:$8 sps:$4 sm:$0xff]  }
 0x72f   : > { %15130 = vmatpush1.bf16.msra.mxu0 %v22189_v23  ;;  %v22268_v23 = vld [vmem:[#allocation2 + $0x374] ss:$8 sps:$4 sm:$0xff]  }
 0x730   : > { %15335 = vmatpush1.bf16.msra.mxu1 %v22192_v10  ;;  %15131 = vmatprep.subr.bf16.mxu0 %v22197_v42  ;;  %v15660_v10 = vshrl.u32 %v19164_v20, 16  ;;  %v15664_v42 = vrot.slane %v15662_v34, 1  ;;  %v22287_v34 = vld [vmem:[#allocation2 + $0x230] ss:$8 sps:$4 sm:$0xff]  }
 0x731   : > { %15336 = vmatprep.subr.bf16.mxu1 %v22200_v32  ;;  %v14951_v32 = vor.u32 %v14950_v39, %v14946_v37  ;;  %v22290_v37 = vld [vmem:[#allocation2 + $0x330] ss:$8 sps:$4 sm:$0xff]   ;;  %v22295_v39 = vld [vmem:[#allocation2 + $0x224] ss:$8 sps:$4 sm:$0xff]  }
 0x733   : > { %15132 = vmatpush1.bf16.msra.mxu0 %v22195_v17  ;;  %v22263_v17 = vld [vmem:[#allocation2 + $0x270] ss:$8 sps:$4 sm:$0xff]  }
 0x734   : > { %15337 = vmatpush1.bf16.msra.mxu1 %v22198_v3  ;;  %15133 = vmatprep.subr.bf16.mxu0 %v22203_v58  ;;  %v22266_v3 = vld [vmem:[#allocation2 + $0x370] ss:$8 sps:$4 sm:$0xff]   ;;  %v13087_v58 = vpop.f32.mrf.mxu0 }
 0x735   : > { %15338 = vmatprep.subr.bf16.mxu1 %v22206_v48  ;;  %v13292_v48 = vpop.f32.mrf.mxu1 }
 0x737   : > { %15134 = vmatpush1.bf16.msra.mxu0 %v22201_v51  ;;  %v22271_v51 = vld [vmem:[#allocation2 + $0x264] ss:$8 sps:$4 sm:$0xff]  }
 0x738   : > { %15339 = vmatpush1.bf16.msra.mxu1 %v22204_v53  ;;  %15135 = vmatprep.subr.bf16.mxu0 %v22209_v13  ;;  %v22274_v53 = vld [vmem:[#allocation2 + $0x364] ss:$8 sps:$4 sm:$0xff]   ;;  %v13287_v13 = vadd.f32 %v13286_v18, %v13081_v44 }
 0x739   : > { %15340 = vmatprep.subr.bf16.mxu1 %v22212_v54  ;;  %v15665_v54 = vor.u32 %v15664_v42, %v15660_v10  ;;  %v22302_v10 = vld [vmem:[#allocation2 + $0x310] ss:$8 sps:$4 sm:$0xff]  }
 0x73b   : > { %15136 = vmatpush1.bf16.msra.mxu0 %v22207_v27 }
 0x73c   : > { %15341 = vmatpush1.bf16.msra.mxu1 %v22210_v57  ;;  %15137 = vmatprep.subr.bf16.mxu0 %v22215_v43  ;;  %v13289_v43 = vadd.f32 %v13288_v6, %v13083_v24  ;;  %v22292_v24 = vld [vmem:[#allocation2 + $0x334] ss:$8 sps:$4 sm:$0xff]  }
 0x73d   : > { %15342 = vmatprep.subr.bf16.mxu1 %v22218_v46 }
 0x73f   : > { %15138 = vmatpush2.bf16.msra.mxu0 %v22213_v52  ;;  %v22269_v52 = vld [vmem:[#allocation2 + $0x260] ss:$8 sps:$4 sm:$0xff]  }
 0x740   : > { %15343 = vmatpush2.bf16.msra.mxu1 %v22216_v59  ;;  %15139 = vmatprep.subr.bf16.mxu0 %v22221_v60  ;;  %v22272_v59 = vld [vmem:[#allocation2 + $0x360] ss:$8 sps:$4 sm:$0xff]  }
 0x741   : > { %15344 = vmatprep.subr.bf16.mxu1 %v22224_v40 }
 0x743   : > { %15140 = vmatpush2.bf16.msra.mxu0 %v22219_v41  ;;  %v22277_v41 = vld [vmem:[#allocation2 + $0x254] ss:$8 sps:$4 sm:$0xff]  }
 0x744   : > { %15345 = vmatpush2.bf16.msra.mxu1 %v22222_v55  ;;  %15141 = vmatprep.subr.bf16.mxu0 %v22227_v63  ;;  %v22280_v55 = vld [vmem:[#allocation2 + $0x354] ss:$8 sps:$4 sm:$0xff]   ;;  %v13291_v63 = vadd.f32 %v13290_v9, %v13085_v61  ;;  %v22296_v61 = vld [vmem:[#allocation2 + $0x320] ss:$8 sps:$4 sm:$0xff]  }
 0x745   : > { %15346 = vmatprep.subr.bf16.mxu1 %v22230_v49  ;;  %v22301_v9 = vld [vmem:[#allocation2 + $0x214] ss:$8 sps:$4 sm:$0xff]  }
 0x747   : > { %15142 = vmatpush2.bf16.msra.mxu0 %v22225_v50 }
 0x748   : > { %15347 = vmatpush2.bf16.msra.mxu1 %v22228_v7  ;;  %15143 = vmatprep.subr.bf16.mxu0 %v22233_v8  ;;  %v13293_v7 = vadd.f32 %v13292_v48, %v13087_v58 }
 0x749   : > { %15348 = vmatprep.subr.bf16.mxu1 %v22236_v30 }
 0x74b   : > { %15144 = vmatpush2.bf16.msra.mxu0 %v22231_v45 }
 0x74c   : > { %15349 = vmatpush2.bf16.msra.mxu1 %v22234_v25  ;;  %15145 = vmatprep.subr.bf16.mxu0 %v22239_v38 }
 0x74d   : > { %15350 = vmatprep.subr.bf16.mxu1 %v22242_v47  ;;  %v22275_v47 = vld [vmem:[#allocation2 + $0x250] ss:$8 sps:$4 sm:$0xff]  }
 0x74f   : > { %15146 = vmatpush2.bf16.msra.mxu0 %v22237_v36  ;;  %v22278_v36 = vld [vmem:[#allocation2 + $0x350] ss:$8 sps:$4 sm:$0xff]  }
 0x750   : > { %15351 = vmatpush2.bf16.msra.mxu1 %v22240_v26  ;;  %15147 = vmatprep.subr.bf16.mxu0 %v22245_v11  ;;  %v22283_v11 = vld [vmem:[#allocation2 + $0x244] ss:$8 sps:$4 sm:$0xff]  }
 0x751   : > { %15352 = vmatprep.subr.bf16.mxu1 %v22248_v56  ;;  %v22286_v56 = vld [vmem:[#allocation2 + $0x344] ss:$8 sps:$4 sm:$0xff]  }
 0x753   : > { %15148 = vmatpush2.bf16.msra.mxu0 %v22243_v62 }
 0x754   : > { %15353 = vmatpush2.bf16.msra.mxu1 %v22246_v5  ;;  %15149 = vmatprep.subr.bf16.mxu0 %v22251_v19 }
 0x755   : > { %15354 = vmatprep.subr.bf16.mxu1 %v22254_v14 }
 0x757   : > { %15150 = vmatpush2.bf16.msra.mxu0 %v22249_v2  ;;  %v22284_v2 = vld [vmem:[#allocation2 + $0x340] ss:$8 sps:$4 sm:$0xff]  }
 0x758   : > { %15355 = vmatpush2.bf16.msra.mxu1 %v22252_v0  ;;  %15151 = vmatprep.subr.bf16.mxu0 %v22257_v28  ;;  %v22289_v0 = vld [vmem:[#allocation2 + $0x234] ss:$8 sps:$4 sm:$0xff]  }
 0x759   : > { %15356 = vmatprep.subr.bf16.mxu1 %v22260_v29 }
 0x75b   : > { %15152 = vmatpush2.bf16.msra.mxu0 %v22255_v31  ;;  %v22298_v31 = vld [vmem:[#allocation2 + $0x324] ss:$8 sps:$4 sm:$0xff]  }
 0x75c   : > { %15357 = vmatpush2.bf16.msra.mxu1 %v22258_v4  ;;  %15573 = vmatprep.subr.bf16.mxu0 %v22265_v22  ;;  %v22293_v4 = vld [vmem:[#allocation2 + $0x220] ss:$8 sps:$4 sm:$0xff]   ;;  %v22304_v22 = vld [vmem:[#allocation2 + $0x314] ss:$8 sps:$4 sm:$0xff]  }
 0x75d   : > { %15828 = vmatprep.subr.bf16.mxu1 %v22268_v23  ;;  %v22299_v23 = vld [vmem:[#allocation2 + $0x210] ss:$8 sps:$4 sm:$0xff]  }
 0x75e   : > { %v13534_v27 = vpop.f32.mrf.mxu0  ;;  %15154 = vmatmul.mubr.bf16.vlgmr.msra.gmra.mxu0 %v14951_v32  ;;  %v22307_v32 = vld [vmem:[#allocation2 + $0x204] ss:$8 sps:$4 sm:$0xff]  }
 0x75f   : > { %v13789_v57 = vpop.f32.mrf.mxu1  ;;  %15359 = vmatmul.mubr.bf16.vlgmr.msra.gmra.mxu1 %v19097_v12  ;;  %v13543_v46 = vadd.f32 %v13534_v27, %v13287_v13  ;;  %15574 = vmatpush1.bf16.msra.mxu0 %v22263_v17  ;;  %v22310_v17 = vld [vmem:[#allocation2 + $0x304] ss:$8 sps:$4 sm:$0xff]   ;;  %v22316_v27 = vld [vmem:[#allocation2 + $0x3f4] ss:$8 sps:$4 sm:$0xff]  }
 0x760   : > { %15829 = vmatpush1.bf16.msra.mxu1 %v22266_v3  ;;  %v13536_v60 = vpop.f32.mrf.mxu0  ;;  %15575 = vmatprep.subr.bf16.mxu0 %v22271_v51  ;;  %v22305_v51 = vld [vmem:[#allocation2 + $0x200] ss:$8 sps:$4 sm:$0xff]  }
 0x761   : > { %v13791_v40 = vpop.f32.mrf.mxu1  ;;  %15830 = vmatprep.subr.bf16.mxu1 %v22274_v53  ;;  %v13798_v49 = vadd.f32 %v13789_v57, %v13543_v46  ;;  %v13544_v50 = vadd.f32 %v13536_v60, %v13289_v43  ;;  %15605 = vmatprep.mubr.bf16.mxu0 %v19164_v20  ;;  %v22308_v53 = vld [vmem:[#allocation2 + $0x300] ss:$8 sps:$4 sm:$0xff]   ;;  %v22319_v60 = vld [vmem:[#allocation2 + $0x2e4] ss:$8 sps:$4 sm:$0xff]  }
 0x762   : > { %15860 = vmatprep.mubr.bf16.mxu1 %v15665_v54  ;;  %v13538_v8 = vpop.f32.mrf.mxu0  ;;  %v22313_v54 = vld [vmem:[#allocation2 + $0x2f4] ss:$8 sps:$4 sm:$0xff]  }
 0x763   : > { %v13793_v30 = vpop.f32.mrf.mxu1  ;;  %v13802_v45 = vadd.f32 %v13798_v49, %v23015_v33  ;;  %v13799_v25 = vadd.f32 %v13791_v40, %v13544_v50  ;;  %v13545_v38 = vadd.f32 %v13538_v8, %v13291_v63  ;;  %15576 = vmatpush1.bf16.msra.mxu0 %v22269_v52  ;;  %v22311_v52 = vld [vmem:[#allocation2 + $0x2f0] ss:$8 sps:$4 sm:$0xff]   ;;  %v22322_v40 = vld [vmem:[#allocation2 + $0x3e4] ss:$8 sps:$4 sm:$0xff]   ;;  %v22325_v63 = vld [vmem:[#allocation2 + $0x2d4] ss:$8 sps:$4 sm:$0xff]  }
 0x764   : > { %15831 = vmatpush1.bf16.msra.mxu1 %v22272_v59  ;;  %v13540_v26 = vpop.f32.mrf.mxu0  ;;  %15577 = vmatprep.subr.bf16.mxu0 %v22277_v41  ;;  %v22314_v59 = vld [vmem:[#allocation2 + $0x3f0] ss:$8 sps:$4 sm:$0xff]   ;;  %v22317_v41 = vld [vmem:[#allocation2 + $0x2e0] ss:$8 sps:$4 sm:$0xff]   ;;  %v22328_v49 = vld [vmem:[#allocation2 + $0x3d4] ss:$8 sps:$4 sm:$0xff]  }
 0x765   : > { %15832 = vmatprep.subr.bf16.mxu1 %v22280_v55  ;;  %v18943_v12 = vmul.f32 -1.442695, %v13802_v45  ;;  %v13803_v62 = vadd.f32 %v13799_v25, %v23017_v35  ;;  %v13800_v5 = vadd.f32 %v13793_v30, %v13545_v38  ;;  %v13546_v44 = vadd.f32 %v13540_v26, %v13293_v7  ;;  %v13795_v18 = vpop.f32.mrf.mxu1  ;;  %v22320_v55 = vld [vmem:[#allocation2 + $0x3e0] ss:$8 sps:$4 sm:$0xff]   ;;  %v22323_v50 = vld [vmem:[#allocation2 + $0x2d0] ss:$8 sps:$4 sm:$0xff]  }
 0x766   : > { %v22326_v7 = vld [vmem:[#allocation2 + $0x3d0] ss:$8 sps:$4 sm:$0xff]   ;;  %v22331_v30 = vld [vmem:[#allocation2 + $0x2c4] ss:$8 sps:$4 sm:$0xff]   ;;  %v22329_v38 = vld [vmem:[#allocation2 + $0x2c0] ss:$8 sps:$4 sm:$0xff]  }
 0x767   : > { %22749 = vpow2.f32 %v18943_v12  ;;  %v18944_v19 = vmul.f32 -1.442695, %v13803_v62  ;;  %v13804_v14 = vadd.f32 %v13800_v5, %v23015_v33  ;;  %v13801_v20 = vadd.f32 %v13795_v18, %v13546_v44  ;;  %15578 = vmatpush1.bf16.msra.mxu0 %v22275_v47  ;;  %v22334_v45 = vld [vmem:[#allocation2 + $0x3c4] ss:$8 sps:$4 sm:$0xff]   ;;  %v22332_v47 = vld [vmem:[#allocation2 + $0x3c0] ss:$8 sps:$4 sm:$0xff]  }
 0x768   : > { %15833 = vmatpush1.bf16.msra.mxu1 %v22278_v36  ;;  %15579 = vmatprep.subr.bf16.mxu0 %v22283_v11  ;;  %v22337_v26 = vld [vmem:[#allocation2 + $0x2b4] ss:$8 sps:$4 sm:$0xff]   ;;  %v22335_v12 = vld [vmem:[#allocation2 + $0x2b0] ss:$8 sps:$4 sm:$0xff]   ;;  %v22343_v5 = vld [vmem:[#allocation2 + $0x2a4] ss:$8 sps:$4 sm:$0xff]   ;;  %v19163_v18 = vcombine.low %v23349_v15, %v23352_v16 }
 0x769   : > { %15834 = vmatprep.subr.bf16.mxu1 %v22286_v56  ;;  %22751 = vpow2.f32 %v18944_v19  ;;  %v18945_v6 = vmul.f32 -1.442695, %v13804_v14  ;;  %v13805_v28 = vadd.f32 %v13801_v20, %v23017_v35  ;;  %v22340_v11 = vld [vmem:[#allocation2 + $0x3b4] ss:$8 sps:$4 sm:$0xff]   ;;  %v22338_v62 = vld [vmem:[#allocation2 + $0x3b0] ss:$8 sps:$4 sm:$0xff]  }
 0x76a   : > { %v22346_v44 = vld [vmem:[#allocation2 + $0x3a4] ss:$8 sps:$4 sm:$0xff]   ;;  %v23367_v19 = vld [vmem:[%s22958_s8 + $0x78] sm:$0x11]  ;;  %v22341_v14 = vld [vmem:[#allocation2 + $0x2a0] ss:$8 sps:$4 sm:$0xff]  }
 0x76b   : > { %22753 = vpow2.f32 %v18945_v6  ;;  %v18946_v29 = vmul.f32 -1.442695, %v13805_v28  ;;  %15580 = vmatpush1.bf16.msra.mxu0 %v22281_v21  ;;  %v22344_v20 = vld [vmem:[#allocation2 + $0x3a0] ss:$8 sps:$4 sm:$0xff]   ;;  %v22349_v21 = vld [vmem:[#allocation2 + $0x294] ss:$8 sps:$4 sm:$0xff]  }
 0x76c   : > { %15835 = vmatpush1.bf16.msra.mxu1 %v22284_v2  ;;  %15581 = vmatprep.subr.bf16.mxu0 %v22289_v0  ;;  %v22352_v2 = vld [vmem:[#allocation2 + $0x394] ss:$8 sps:$4 sm:$0xff]   ;;  %v19240_v0 = vcombine.high %v23333_v1, %v23367_v19  ;;  %v22347_v6 = vld [vmem:[#allocation2 + $0x290] ss:$8 sps:$4 sm:$0xff]   ;;  %v22355_v16 = vld [vmem:[#allocation2 + $0x284] ss:$8 sps:$4 sm:$0xff]  }
 0x76d   : > { %15836 = vmatprep.subr.bf16.mxu1 %v22292_v24  ;;  %22755 = vpow2.f32 %v18946_v29  ;;  %v15655_v24 = vshll.u32 %v19163_v18, 16  ;;  %v22350_v28 = vld [vmem:[#allocation2 + $0x390] ss:$8 sps:$4 sm:$0xff]   ;;  %v22358_v29 = vld [vmem:[#allocation2 + $0x384] ss:$8 sps:$4 sm:$0xff]  }
 0x76f   : > { %15582 = vmatpush1.bf16.msra.mxu0 %v22287_v34  ;;  %v15992_v34 = vshll.u32 %v19240_v0, 16 }
 0x770   : > { %15837 = vmatpush1.bf16.msra.mxu1 %v22290_v37  ;;  %15583 = vmatprep.subr.bf16.mxu0 %v22295_v39  ;;  %v15653_v37 = vshrl.u32 %v19163_v18, 16  ;;  %v15657_v39 = vrot.slane %v15655_v24, 1  ;;  %v22432_v24 = vld [vmem:[#allocation2 + $0x4c4] ss:$8 sps:$4 sm:$0xff]  }
 0x771   : > { %15838 = vmatprep.subr.bf16.mxu1 %v22298_v31  ;;  %v22353_v31 = vld [vmem:[#allocation2 + $0x280] ss:$8 sps:$4 sm:$0xff]  }
 0x773   : > { %15584 = vmatpush1.bf16.msra.mxu0 %v22293_v4  ;;  %v22356_v4 = vld [vmem:[#allocation2 + $0x380] ss:$8 sps:$4 sm:$0xff]  }
 0x774   : > { %15839 = vmatpush1.bf16.msra.mxu1 %v22296_v61  ;;  %v22750_v42 = vpop.eup %22749  ;;  %15585 = vmatprep.subr.bf16.mxu0 %v22301_v9  ;;  %v22363_v61 = vld [vmem:[#allocation2 + $0x574] ss:$8 sps:$4 sm:$0xff]  }
 0x775   : > { %15840 = vmatprep.subr.bf16.mxu1 %v22304_v22  ;;  %v13818_v3 = vadd.f32 1.0, %v22750_v42  ;;  %v22366_v9 = vld [vmem:[#allocation2 + $0x474] ss:$8 sps:$4 sm:$0xff]   ;;  %v15990_v22 = vshrl.u32 %v19240_v0, 16  ;;  %v22361_v42 = vld [vmem:[#allocation2 + $0x570] ss:$8 sps:$4 sm:$0xff]  }
 0x776   : > { %v22752_v58 = vpop.eup %22751 }
 0x777   : > { %22757 = vrcp.f32 %v13818_v3  ;;  %v13819_v48 = vadd.f32 1.0, %v22752_v58  ;;  %15586 = vmatpush1.bf16.msra.mxu0 %v22299_v23  ;;  %v15994_v23 = vrot.slane %v15992_v34, 1  ;;  %v22372_v3 = vld [vmem:[#allocation2 + $0x464] ss:$8 sps:$4 sm:$0xff]   ;;  %v22433_v34 = vld [vmem:[#allocation2 + $0x5b0] ss:$8 sps:$4 sm:$0xff]  }
 0x778   : > { %15841 = vmatpush1.bf16.msra.mxu1 %v22302_v10  ;;  %v22754_v13 = vpop.eup %22753  ;;  %15587 = vmatprep.subr.bf16.mxu0 %v22307_v32  ;;  %v15658_v10 = vor.u32 %v15657_v39, %v15653_v37  ;;  %v22364_v32 = vld [vmem:[#allocation2 + $0x470] ss:$8 sps:$4 sm:$0xff]   ;;  %v22441_v39 = vld [vmem:[#allocation2 + $0x5a4] ss:$8 sps:$4 sm:$0xff]  }
 0x779   : > { %15842 = vmatprep.subr.bf16.mxu1 %v22310_v17  ;;  %22759 = vrcp.f32 %v13819_v48  ;;  %v13820_v57 = vadd.f32 1.0, %v22754_v13  ;;  %v22369_v17 = vld [vmem:[#allocation2 + $0x564] ss:$8 sps:$4 sm:$0xff]   ;;  %v15995_v58 = vor.u32 %v15994_v23, %v15990_v22  ;;  %v22367_v48 = vld [vmem:[#allocation2 + $0x560] ss:$8 sps:$4 sm:$0xff]  }
 0x77a   : > { %v22756_v43 = vpop.eup %22755  ;;  %v22378_v13 = vld [vmem:[#allocation2 + $0x454] ss:$8 sps:$4 sm:$0xff]   ;;  %v22436_v37 = vld [vmem:[#allocation2 + $0x4b0] ss:$8 sps:$4 sm:$0xff]   ;;  %v22442_v22 = vld [vmem:[#allocation2 + $0x4a0] ss:$8 sps:$4 sm:$0xff]  }
 0x77b   : > { %22761 = vrcp.f32 %v13820_v57  ;;  %v13821_v46 = vadd.f32 1.0, %v22756_v43  ;;  %15588 = vmatpush1.bf16.msra.mxu0 %v22305_v51  ;;  %v22370_v51 = vld [vmem:[#allocation2 + $0x460] ss:$8 sps:$4 sm:$0xff]   ;;  %v22381_v57 = vld [vmem:[#allocation2 + $0x544] ss:$8 sps:$4 sm:$0xff]  }
 0x77c   : > { %15843 = vmatpush1.bf16.msra.mxu1 %v22308_v53  ;;  %15589 = vmatprep.subr.bf16.mxu0 %v22313_v54  ;;  %v22375_v53 = vld [vmem:[#allocation2 + $0x554] ss:$8 sps:$4 sm:$0xff]   ;;  %v22373_v54 = vld [vmem:[#allocation2 + $0x550] ss:$8 sps:$4 sm:$0xff]   ;;  %v22384_v43 = vld [vmem:[#allocation2 + $0x444] ss:$8 sps:$4 sm:$0xff]  }
 0x77d   : > { %15844 = vmatprep.subr.bf16.mxu1 %v22316_v27  ;;  %22763 = vrcp.f32 %v13821_v46  ;;  %v22376_v27 = vld [vmem:[#allocation2 + $0x450] ss:$8 sps:$4 sm:$0xff]   ;;  %v22379_v46 = vld [vmem:[#allocation2 + $0x540] ss:$8 sps:$4 sm:$0xff]  }
 0x77f   : > { %15590 = vmatpush2.bf16.msra.mxu0 %v22311_v52  ;;  %v22382_v52 = vld [vmem:[#allocation2 + $0x440] ss:$8 sps:$4 sm:$0xff]  }
 0x780   : > { %15845 = vmatpush2.bf16.msra.mxu1 %v22314_v59  ;;  %15591 = vmatprep.subr.bf16.mxu0 %v22319_v60  ;;  %v22387_v59 = vld [vmem:[#allocation2 + $0x534] ss:$8 sps:$4 sm:$0xff]  }
 0x781   : > { %15846 = vmatprep.subr.bf16.mxu1 %v22322_v40  ;;  %v22390_v60 = vld [vmem:[#allocation2 + $0x434] ss:$8 sps:$4 sm:$0xff]   ;;  %v22385_v40 = vld [vmem:[#allocation2 + $0x530] ss:$8 sps:$4 sm:$0xff]  }
 0x783   : > { %15592 = vmatpush2.bf16.msra.mxu0 %v22317_v41  ;;  %v22388_v41 = vld [vmem:[#allocation2 + $0x430] ss:$8 sps:$4 sm:$0xff]  }
 0x784   : > { %15847 = vmatpush2.bf16.msra.mxu1 %v22320_v55  ;;  %v22758_v8 = vpop.eup %22757  ;;  %15593 = vmatprep.subr.bf16.mxu0 %v22325_v63  ;;  %v22393_v55 = vld [vmem:[#allocation2 + $0x524] ss:$8 sps:$4 sm:$0xff]  }
 0x785   : > { %15848 = vmatprep.subr.bf16.mxu1 %v22328_v49  ;;  %18947 = vst [vmem:[%s23031_s15 + $0x180] sm:$0xff] %v22758_v8  ;;  %v22396_v63 = vld [vmem:[#allocation2 + $0x424] ss:$8 sps:$4 sm:$0xff]   ;;  %v22391_v49 = vld [vmem:[#allocation2 + $0x520] ss:$8 sps:$4 sm:$0xff]  }
 0x786   : > { %v22760_v25 = vpop.eup %22759  ;;  %v22402_v8 = vld [vmem:[#allocation2 + $0x414] ss:$8 sps:$4 sm:$0xff]  }
 0x787   : > { %18948 = vst [vmem:[%s23031_s15 + $0x188] sm:$0xff] %v22760_v25  ;;  %15594 = vmatpush2.bf16.msra.mxu0 %v22323_v50  ;;  %v22394_v50 = vld [vmem:[#allocation2 + $0x420] ss:$8 sps:$4 sm:$0xff]   ;;  %v22405_v25 = vld [vmem:[#allocation2 + $0x504] ss:$8 sps:$4 sm:$0xff]  }
 0x788   : > { %15849 = vmatpush2.bf16.msra.mxu1 %v22326_v7  ;;  %v22762_v36 = vpop.eup %22761  ;;  %15595 = vmatprep.subr.bf16.mxu0 %v22331_v30  ;;  %v22399_v7 = vld [vmem:[#allocation2 + $0x514] ss:$8 sps:$4 sm:$0xff]   ;;  %v22397_v30 = vld [vmem:[#allocation2 + $0x510] ss:$8 sps:$4 sm:$0xff]  }
 0x789   : > { %15850 = vmatprep.subr.bf16.mxu1 %v22334_v45  ;;  %18949 = vst [vmem:[%s23031_s15 + $0x1a0] sm:$0x1] %v22762_v36  ;;  %v22400_v45 = vld [vmem:[#allocation2 + $0x410] ss:$8 sps:$4 sm:$0xff]   ;;  %v22406_v36 = vld [vmem:[#allocation2 + $0x400] ss:$8 sps:$4 sm:$0xff]  }
 0x78a   : > { %v22764_v56 = vpop.eup %22763 }
 0x78b   : > { %18950 = vst [vmem:[%s23031_s15 + $0x1a8] sm:$0x1] %v22764_v56  ;;  %15596 = vmatpush2.bf16.msra.mxu0 %v22329_v38  ;;  %v22408_v38 = vld [vmem:[#allocation2 + $0x404] ss:$8 sps:$4 sm:$0xff]   ;;  %v22409_v56 = vld [vmem:[#allocation2 + $0x5f0] ss:$8 sps:$4 sm:$0xff]  }
 0x78c   : > { %15851 = vmatpush2.bf16.msra.mxu1 %v22332_v47  ;;  %15597 = vmatprep.subr.bf16.mxu0 %v22337_v26  ;;  %v22403_v47 = vld [vmem:[#allocation2 + $0x500] ss:$8 sps:$4 sm:$0xff]   ;;  %v22411_v26 = vld [vmem:[#allocation2 + $0x5f4] ss:$8 sps:$4 sm:$0xff]  }
 0x78d   : > { %15852 = vmatprep.subr.bf16.mxu1 %v22340_v11  ;;  %v22414_v11 = vld [vmem:[#allocation2 + $0x4f4] ss:$8 sps:$4 sm:$0xff]  }
 0x78f   : > { %15598 = vmatpush2.bf16.msra.mxu0 %v22335_v12  ;;  %v22412_v12 = vld [vmem:[#allocation2 + $0x4f0] ss:$8 sps:$4 sm:$0xff]  }
 0x790   : > { %15853 = vmatpush2.bf16.msra.mxu1 %v22338_v62  ;;  %15599 = vmatprep.subr.bf16.mxu0 %v22343_v5  ;;  %v22417_v62 = vld [vmem:[#allocation2 + $0x5e4] ss:$8 sps:$4 sm:$0xff]  }
 0x791   : > { %15854 = vmatprep.subr.bf16.mxu1 %v22346_v44  ;;  %v22420_v5 = vld [vmem:[#allocation2 + $0x4e4] ss:$8 sps:$4 sm:$0xff]   ;;  %v22415_v44 = vld [vmem:[#allocation2 + $0x5e0] ss:$8 sps:$4 sm:$0xff]  }
 0x793   : > { %15600 = vmatpush2.bf16.msra.mxu0 %v22341_v14  ;;  %v22423_v14 = vld [vmem:[#allocation2 + $0x5d4] ss:$8 sps:$4 sm:$0xff]  }
 0x794   : > { %15855 = vmatpush2.bf16.msra.mxu1 %v22344_v20  ;;  %15601 = vmatprep.subr.bf16.mxu0 %v22349_v21  ;;  %v22426_v20 = vld [vmem:[#allocation2 + $0x4d4] ss:$8 sps:$4 sm:$0xff]   ;;  %v22421_v21 = vld [vmem:[#allocation2 + $0x5d0] ss:$8 sps:$4 sm:$0xff]  }
 0x795   : > { %15856 = vmatprep.subr.bf16.mxu1 %v22352_v2  ;;  %v22424_v2 = vld [vmem:[#allocation2 + $0x4d0] ss:$8 sps:$4 sm:$0xff]  }
 0x797   : > { %15602 = vmatpush2.bf16.msra.mxu0 %v22347_v6  ;;  %v22427_v6 = vld [vmem:[#allocation2 + $0x5c0] ss:$8 sps:$4 sm:$0xff]  }
 0x798   : > { %15857 = vmatpush2.bf16.msra.mxu1 %v22350_v28  ;;  %15603 = vmatprep.subr.bf16.mxu0 %v22355_v16  ;;  %v22430_v28 = vld [vmem:[#allocation2 + $0x4c0] ss:$8 sps:$4 sm:$0xff]   ;;  %v22435_v16 = vld [vmem:[#allocation2 + $0x5b4] ss:$8 sps:$4 sm:$0xff]  }
 0x799   : > { %15858 = vmatprep.subr.bf16.mxu1 %v22358_v29  ;;  %v22438_v29 = vld [vmem:[#allocation2 + $0x4b4] ss:$8 sps:$4 sm:$0xff]  }
 0x79b   : > { %15604 = vmatpush2.bf16.msra.mxu0 %v22353_v31  ;;  %v22444_v31 = vld [vmem:[#allocation2 + $0x4a4] ss:$8 sps:$4 sm:$0xff]  }
 0x79c   : > { %15859 = vmatpush2.bf16.msra.mxu1 %v22356_v4  ;;  %16158 = vmatprep.subr.bf16.mxu0 %v22363_v61  ;;  %v19239_v4 = vcombine.low %v23333_v1, %v23367_v19  ;;  %v23374_v61 = vld [vmem:[%s23344_s23 + $0x8] sm:$0x11]  ;;  %v22448_v1 = vld [vmem:[#allocation2 + $0x490] ss:$8 sps:$4 sm:$0xff]  }
 0x79d   : > { %16363 = vmatprep.subr.bf16.mxu1 %v22366_v9  ;;  %v22439_v9 = vld [vmem:[#allocation2 + $0x5a0] ss:$8 sps:$4 sm:$0xff]  }
 0x79e   : > { %15606 = vmatmul.mubr.bf16.vlgmr.msra.gmra.mxu0 %v19163_v18  ;;  %v22418_v18 = vld [vmem:[#allocation2 + $0x4e0] ss:$8 sps:$4 sm:$0xff]   ;;  %v14119_v23 = vpop.f32.mrf.mxu0 }
 0x79f   : > { %15861 = vmatmul.mubr.bf16.vlgmr.msra.gmra.mxu1 %v15658_v10  ;;  %16159 = vmatpush1.bf16.msra.mxu0 %v22361_v42  ;;  %v14324_v10 = vpop.f32.mrf.mxu1  ;;  %v22447_v42 = vld [vmem:[#allocation2 + $0x594] ss:$8 sps:$4 sm:$0xff]  }
 0x7a0   : > { %16364 = vmatpush1.bf16.msra.mxu1 %v22364_v32  ;;  %16160 = vmatprep.subr.bf16.mxu0 %v22369_v17  ;;  %v22450_v32 = vld [vmem:[#allocation2 + $0x494] ss:$8 sps:$4 sm:$0xff]   ;;  %v19306_v17 = vcombine.high %v23349_v15, %v23374_v61  ;;  %v14121_v19 = vpop.f32.mrf.mxu0 }
 0x7a1   : > { %16365 = vmatprep.subr.bf16.mxu1 %v22372_v3  ;;  %16190 = vmatprep.mubr.bf16.mxu0 %v15995_v58  ;;  %v15985_v3 = vshll.u32 %v19239_v4, 16  ;;  %v22445_v58 = vld [vmem:[#allocation2 + $0x590] ss:$8 sps:$4 sm:$0xff]  }
 0x7a2   : > { %16395 = vmatprep.mubr.bf16.mxu1 %v19240_v0  ;;  %v22429_v0 = vld [vmem:[#allocation2 + $0x5c4] ss:$8 sps:$4 sm:$0xff]  }
 0x7a3   : > { %16161 = vmatpush1.bf16.msra.mxu0 %v22367_v48  ;;  %v14326_v48 = vpop.f32.mrf.mxu1 }
 0x7a4   : > { %16366 = vmatpush1.bf16.msra.mxu1 %v22370_v51  ;;  %16162 = vmatprep.subr.bf16.mxu0 %v22375_v53  ;;  %v22453_v51 = vld [vmem:[#allocation2 + $0x584] ss:$8 sps:$4 sm:$0xff]  }
 0x7a5   : > { %16367 = vmatprep.subr.bf16.mxu1 %v22378_v13  ;;  %v22456_v53 = vld [vmem:[#allocation2 + $0x484] ss:$8 sps:$4 sm:$0xff]   ;;  %v16699_v13 = vshll.u32 %v19306_v17, 16  ;;  %v14328_v15 = vpop.f32.mrf.mxu1 }
 0x7a7   : > { %16163 = vmatpush1.bf16.msra.mxu0 %v22373_v54  ;;  %v15983_v54 = vshrl.u32 %v19239_v4, 16 }
 0x7a8   : > { %16368 = vmatpush1.bf16.msra.mxu1 %v22376_v27  ;;  %16164 = vmatprep.subr.bf16.mxu0 %v22381_v57  ;;  %v15987_v27 = vrot.slane %v15985_v3, 1  ;;  %v22451_v57 = vld [vmem:[#allocation2 + $0x580] ss:$8 sps:$4 sm:$0xff]   ;;  %v22485_v3 = vld [vmem:[#allocation2 + $0x634] ss:$8 sps:$4 sm:$0xff]  }
 0x7a9   : > { %16369 = vmatprep.subr.bf16.mxu1 %v22384_v43  ;;  %v22454_v43 = vld [vmem:[#allocation2 + $0x480] ss:$8 sps:$4 sm:$0xff]  }
 0x7ab   : > { %16165 = vmatpush1.bf16.msra.mxu0 %v22379_v46  ;;  %v14123_v46 = vpop.f32.mrf.mxu0 }
 0x7ac   : > { %16370 = vmatpush1.bf16.msra.mxu1 %v22382_v52  ;;  %16166 = vmatprep.subr.bf16.mxu0 %v22387_v59  ;;  %v22461_v52 = vld [vmem:[#allocation2 + $0x674] ss:$8 sps:$4 sm:$0xff]  }
 0x7ad   : > { %16371 = vmatprep.subr.bf16.mxu1 %v22390_v60  ;;  %v22464_v59 = vld [vmem:[#allocation2 + $0x774] ss:$8 sps:$4 sm:$0xff]   ;;  %v16697_v60 = vshrl.u32 %v19306_v17, 16 }
 0x7af   : > { %16167 = vmatpush1.bf16.msra.mxu0 %v22385_v40  ;;  %v16701_v40 = vrot.slane %v16699_v13, 1  ;;  %v22491_v13 = vld [vmem:[#allocation2 + $0x624] ss:$8 sps:$4 sm:$0xff]  }
 0x7b0   : > { %16372 = vmatpush1.bf16.msra.mxu1 %v22388_v41  ;;  %16168 = vmatprep.subr.bf16.mxu0 %v22393_v55  ;;  %v15988_v41 = vor.u32 %v15987_v27, %v15983_v54  ;;  %v22459_v55 = vld [vmem:[#allocation2 + $0x670] ss:$8 sps:$4 sm:$0xff]   ;;  %v22494_v54 = vld [vmem:[#allocation2 + $0x724] ss:$8 sps:$4 sm:$0xff]   ;;  %v22489_v27 = vld [vmem:[#allocation2 + $0x620] ss:$8 sps:$4 sm:$0xff]  }
 0x7b1   : > { %16373 = vmatprep.subr.bf16.mxu1 %v22396_v63  ;;  %v22462_v63 = vld [vmem:[#allocation2 + $0x770] ss:$8 sps:$4 sm:$0xff]  }
 0x7b3   : > { %16169 = vmatpush1.bf16.msra.mxu0 %v22391_v49  ;;  %v14125_v49 = vpop.f32.mrf.mxu0 }
 0x7b4   : > { %16374 = vmatpush1.bf16.msra.mxu1 %v22394_v50  ;;  %16170 = vmatprep.subr.bf16.mxu0 %v22399_v7  ;;  %v14330_v50 = vpop.f32.mrf.mxu1  ;;  %v22467_v7 = vld [vmem:[#allocation2 + $0x664] ss:$8 sps:$4 sm:$0xff]  }
 0x7b5   : > { %16375 = vmatprep.subr.bf16.mxu1 %v22402_v8  ;;  %v22470_v8 = vld [vmem:[#allocation2 + $0x764] ss:$8 sps:$4 sm:$0xff]  }
 0x7b7   : > { %16171 = vmatpush1.bf16.msra.mxu0 %v22397_v30  ;;  %v14325_v30 = vadd.f32 %v14324_v10, %v14119_v23 }
 0x7b8   : > { %16376 = vmatpush1.bf16.msra.mxu1 %v22400_v45  ;;  %16172 = vmatprep.subr.bf16.mxu0 %v22405_v25  ;;  %v16702_v45 = vor.u32 %v16701_v40, %v16697_v60  ;;  %v22503_v60 = vld [vmem:[#allocation2 + $0x604] ss:$8 sps:$4 sm:$0xff]  }
 0x7b9   : > { %16377 = vmatprep.subr.bf16.mxu1 %v22408_v38  ;;  %v22506_v40 = vld [vmem:[#allocation2 + $0x704] ss:$8 sps:$4 sm:$0xff]  }
 0x7bb   : > { %16173 = vmatpush1.bf16.msra.mxu0 %v22403_v47  ;;  %v14327_v47 = vadd.f32 %v14326_v48, %v14121_v19 }
 0x7bc   : > { %16378 = vmatpush1.bf16.msra.mxu1 %v22406_v36  ;;  %16174 = vmatprep.subr.bf16.mxu0 %v22411_v26  ;;  %v22465_v26 = vld [vmem:[#allocation2 + $0x660] ss:$8 sps:$4 sm:$0xff]  }
 0x7bd   : > { %16379 = vmatprep.subr.bf16.mxu1 %v22414_v11  ;;  %v22468_v11 = vld [vmem:[#allocation2 + $0x760] ss:$8 sps:$4 sm:$0xff]  }
 0x7bf   : > { %16175 = vmatpush2.bf16.msra.mxu0 %v22409_v56 }
 0x7c0   : > { %16380 = vmatpush2.bf16.msra.mxu1 %v22412_v12  ;;  %16176 = vmatprep.subr.bf16.mxu0 %v22417_v62  ;;  %v22473_v62 = vld [vmem:[#allocation2 + $0x654] ss:$8 sps:$4 sm:$0xff]  }
 0x7c1   : > { %16381 = vmatprep.subr.bf16.mxu1 %v22420_v5  ;;  %v22476_v5 = vld [vmem:[#allocation2 + $0x754] ss:$8 sps:$4 sm:$0xff]  }
 0x7c3   : > { %16177 = vmatpush2.bf16.msra.mxu0 %v22415_v44  ;;  %v14329_v44 = vadd.f32 %v14328_v15, %v14123_v46  ;;  %v22500_v46 = vld [vmem:[#allocation2 + $0x714] ss:$8 sps:$4 sm:$0xff]   ;;  %v22495_v15 = vld [vmem:[#allocation2 + $0x610] ss:$8 sps:$4 sm:$0xff]  }
 0x7c4   : > { %16382 = vmatpush2.bf16.msra.mxu1 %v22418_v18  ;;  %16178 = vmatprep.subr.bf16.mxu0 %v22423_v14 }
 0x7c5   : > { %16383 = vmatprep.subr.bf16.mxu1 %v22426_v20  ;;  %v14331_v20 = vadd.f32 %v14330_v50, %v14125_v49  ;;  %v22501_v49 = vld [vmem:[#allocation2 + $0x600] ss:$8 sps:$4 sm:$0xff]  }
 0x7c6   : > { %v22504_v50 = vld [vmem:[#allocation2 + $0x700] ss:$8 sps:$4 sm:$0xff]  }
 0x7c7   : > { %16179 = vmatpush2.bf16.msra.mxu0 %v22421_v21 }
 0x7c8   : > { %16384 = vmatpush2.bf16.msra.mxu1 %v22424_v2  ;;  %16180 = vmatprep.subr.bf16.mxu0 %v22429_v0 }
 0x7c9   : > { %16385 = vmatprep.subr.bf16.mxu1 %v22432_v24 }
 0x7cb   : > { %16181 = vmatpush2.bf16.msra.mxu0 %v22427_v6 }
 0x7cc   : > { %16386 = vmatpush2.bf16.msra.mxu1 %v22430_v28  ;;  %16182 = vmatprep.subr.bf16.mxu0 %v22435_v16  ;;  %v22471_v28 = vld [vmem:[#allocation2 + $0x650] ss:$8 sps:$4 sm:$0xff]  }
 0x7cd   : > { %16387 = vmatprep.subr.bf16.mxu1 %v22438_v29  ;;  %v22474_v16 = vld [vmem:[#allocation2 + $0x750] ss:$8 sps:$4 sm:$0xff]  }
 0x7cf   : > { %16183 = vmatpush2.bf16.msra.mxu0 %v22433_v34  ;;  %v22479_v34 = vld [vmem:[#allocation2 + $0x644] ss:$8 sps:$4 sm:$0xff]  }
 0x7d0   : > { %16388 = vmatpush2.bf16.msra.mxu1 %v22436_v37  ;;  %16184 = vmatprep.subr.bf16.mxu0 %v22441_v39  ;;  %v22482_v37 = vld [vmem:[#allocation2 + $0x744] ss:$8 sps:$4 sm:$0xff]  }
 0x7d1   : > { %16389 = vmatprep.subr.bf16.mxu1 %v22444_v31 }
 0x7d3   : > { %16185 = vmatpush2.bf16.msra.mxu0 %v22439_v9 }
 0x7d4   : > { %16390 = vmatpush2.bf16.msra.mxu1 %v22442_v22  ;;  %16186 = vmatprep.subr.bf16.mxu0 %v22447_v42 }
 0x7d5   : > { %16391 = vmatprep.subr.bf16.mxu1 %v22450_v32  ;;  %v22477_v32 = vld [vmem:[#allocation2 + $0x640] ss:$8 sps:$4 sm:$0xff]  }
 0x7d7   : > { %16187 = vmatpush2.bf16.msra.mxu0 %v22445_v58  ;;  %v22488_v58 = vld [vmem:[#allocation2 + $0x734] ss:$8 sps:$4 sm:$0xff]  }
 0x7d8   : > { %16392 = vmatpush2.bf16.msra.mxu1 %v22448_v1  ;;  %16188 = vmatprep.subr.bf16.mxu0 %v22453_v51  ;;  %v22483_v51 = vld [vmem:[#allocation2 + $0x630] ss:$8 sps:$4 sm:$0xff]  }
 0x7d9   : > { %16393 = vmatprep.subr.bf16.mxu1 %v22456_v53  ;;  %v22486_v53 = vld [vmem:[#allocation2 + $0x730] ss:$8 sps:$4 sm:$0xff]  }
 0x7db   : > { %16189 = vmatpush2.bf16.msra.mxu0 %v22451_v57  ;;  %v22492_v57 = vld [vmem:[#allocation2 + $0x720] ss:$8 sps:$4 sm:$0xff]  }
 0x7dc   : > { %16394 = vmatpush2.bf16.msra.mxu1 %v22454_v43  ;;  %16610 = vmatprep.subr.bf16.mxu0 %v22461_v52  ;;  %v22497_v43 = vld [vmem:[#allocation2 + $0x614] ss:$8 sps:$4 sm:$0xff]   ;;  %v22498_v52 = vld [vmem:[#allocation2 + $0x710] ss:$8 sps:$4 sm:$0xff]  }
 0x7dd   : > { %16865 = vmatprep.subr.bf16.mxu1 %v22464_v59 }
 0x7de   : > { %v14571_v25 = vpop.f32.mrf.mxu0  ;;  %16191 = vmatmul.mubr.bf16.vlgmr.msra.gmra.mxu0 %v15988_v41 }
 0x7df   : > { %v14826_v38 = vpop.f32.mrf.mxu1  ;;  %16396 = vmatmul.mubr.bf16.vlgmr.msra.gmra.mxu1 %v19239_v4  ;;  %v14580_v36 = vadd.f32 %v14571_v25, %v14325_v30  ;;  %16611 = vmatpush1.bf16.msra.mxu0 %v22459_v55  ;;  %v22512_v30 = vld [vmem:[#allocation2 + $0x7f4] ss:$8 sps:$4 sm:$0xff]  }
 0x7e0   : > { %16866 = vmatpush1.bf16.msra.mxu1 %v22462_v63  ;;  %v14573_v56 = vpop.f32.mrf.mxu0  ;;  %16612 = vmatprep.subr.bf16.mxu0 %v22467_v7 }
 0x7e1   : > { %v14828_v12 = vpop.f32.mrf.mxu1  ;;  %16867 = vmatprep.subr.bf16.mxu1 %v22470_v8  ;;  %v14835_v18 = vadd.f32 %v14826_v38, %v14580_v36  ;;  %v14581_v14 = vadd.f32 %v14573_v56, %v14327_v47  ;;  %16642 = vmatprep.mubr.bf16.mxu0 %v19306_v17  ;;  %v22480_v17 = vld [vmem:[#allocation2 + $0x740] ss:$8 sps:$4 sm:$0xff]   ;;  %v22509_v8 = vld [vmem:[#allocation2 + $0x6f4] ss:$8 sps:$4 sm:$0xff]   ;;  %v22507_v47 = vld [vmem:[#allocation2 + $0x6f0] ss:$8 sps:$4 sm:$0xff]  }
 0x7e2   : > { %16897 = vmatprep.mubr.bf16.mxu1 %v16702_v45  ;;  %v14575_v21 = vpop.f32.mrf.mxu0  ;;  %v22510_v36 = vld [vmem:[#allocation2 + $0x7f0] ss:$8 sps:$4 sm:$0xff]   ;;  %v22513_v56 = vld [vmem:[#allocation2 + $0x6e0] ss:$8 sps:$4 sm:$0xff]  }
 0x7e3   : > { %v14830_v2 = vpop.f32.mrf.mxu1  ;;  %v14839_v0 = vadd.f32 %v14835_v18, %v23015_v33  ;;  %v14836_v24 = vadd.f32 %v14828_v12, %v14581_v14  ;;  %v14582_v6 = vadd.f32 %v14575_v21, %v14329_v44  ;;  %16613 = vmatpush1.bf16.msra.mxu0 %v22465_v26  ;;  %v22515_v26 = vld [vmem:[#allocation2 + $0x6e4] ss:$8 sps:$4 sm:$0xff]   ;;  %v22516_v12 = vld [vmem:[#allocation2 + $0x7e0] ss:$8 sps:$4 sm:$0xff]   ;;  %v22519_v44 = vld [vmem:[#allocation2 + $0x6d0] ss:$8 sps:$4 sm:$0xff]  }
 0x7e4   : > { %16868 = vmatpush1.bf16.msra.mxu1 %v22468_v11  ;;  %v14577_v29 = vpop.f32.mrf.mxu0  ;;  %16614 = vmatprep.subr.bf16.mxu0 %v22473_v62  ;;  %v22518_v11 = vld [vmem:[#allocation2 + $0x7e4] ss:$8 sps:$4 sm:$0xff]   ;;  %v22521_v62 = vld [vmem:[#allocation2 + $0x6d4] ss:$8 sps:$4 sm:$0xff]   ;;  %v22522_v18 = vld [vmem:[#allocation2 + $0x7d0] ss:$8 sps:$4 sm:$0xff]  }
 0x7e5   : > { %16869 = vmatprep.subr.bf16.mxu1 %v22476_v5  ;;  %v19087_v39 = vmul.f32 -1.442695, %v14839_v0  ;;  %v14840_v31 = vadd.f32 %v14836_v24, %v23017_v35  ;;  %v14837_v4 = vadd.f32 %v14830_v2, %v14582_v6  ;;  %v14583_v9 = vadd.f32 %v14577_v29, %v14331_v20  ;;  %v14832_v22 = vpop.f32.mrf.mxu1  ;;  %v22524_v5 = vld [vmem:[#allocation2 + $0x7d4] ss:$8 sps:$4 sm:$0xff]   ;;  %v22527_v20 = vld [vmem:[#allocation2 + $0x6c4] ss:$8 sps:$4 sm:$0xff]  }
 0x7e6   : > { %v22530_v21 = vld [vmem:[#allocation2 + $0x7c4] ss:$8 sps:$4 sm:$0xff]   ;;  %v22525_v0 = vld [vmem:[#allocation2 + $0x6c0] ss:$8 sps:$4 sm:$0xff]  }
 0x7e7   : > { %22765 = vpow2.f32 %v19087_v39  ;;  %v19088_v23 = vmul.f32 -1.442695, %v14840_v31  ;;  %v14841_v10 = vadd.f32 %v14837_v4, %v23015_v33  ;;  %v14838_v42 = vadd.f32 %v14832_v22, %v14583_v9  ;;  %16615 = vmatpush1.bf16.msra.mxu0 %v22471_v28  ;;  %v22528_v24 = vld [vmem:[#allocation2 + $0x7c0] ss:$8 sps:$4 sm:$0xff]   ;;  %v22533_v28 = vld [vmem:[#allocation2 + $0x6b4] ss:$8 sps:$4 sm:$0xff]  }
 0x7e8   : > { %16870 = vmatpush1.bf16.msra.mxu1 %v22474_v16  ;;  %16616 = vmatprep.subr.bf16.mxu0 %v22479_v34  ;;  %v22536_v16 = vld [vmem:[#allocation2 + $0x7b4] ss:$8 sps:$4 sm:$0xff]   ;;  %v22531_v34 = vld [vmem:[#allocation2 + $0x6b0] ss:$8 sps:$4 sm:$0xff]   ;;  %v22539_v39 = vld [vmem:[#allocation2 + $0x6a4] ss:$8 sps:$4 sm:$0xff]  }
 0x7e9   : > { %16871 = vmatprep.subr.bf16.mxu1 %v22482_v37  ;;  %22767 = vpow2.f32 %v19088_v23  ;;  %v19089_v1 = vmul.f32 -1.442695, %v14841_v10  ;;  %v14842_v19 = vadd.f32 %v14838_v42, %v23017_v35  ;;  %v22534_v37 = vld [vmem:[#allocation2 + $0x7b0] ss:$8 sps:$4 sm:$0xff]   ;;  %v22542_v31 = vld [vmem:[#allocation2 + $0x7a4] ss:$8 sps:$4 sm:$0xff]  }
 0x7ea   : > { %v22825_v4 = vld [vmem:[%s23344_s23] sm:$0xff]  ;;  %v22545_v10 = vld [vmem:[#allocation2 + $0x694] ss:$8 sps:$4 sm:$0xff]  }
 0x7eb   : > { %22769 = vpow2.f32 %v19089_v1  ;;  %v19090_v48 = vmul.f32 -1.442695, %v14842_v19  ;;  %16617 = vmatpush1.bf16.msra.mxu0 %v22477_v32  ;;  %v19305_v9 = vcombine.low %v22825_v4, %v23374_v61  ;;  %v22537_v22 = vld [vmem:[#allocation2 + $0x6a0] ss:$8 sps:$4 sm:$0xff]   ;;  %v22548_v42 = vld [vmem:[#allocation2 + $0x794] ss:$8 sps:$4 sm:$0xff]  }
 0x7ec   : > { %16872 = vmatpush1.bf16.msra.mxu1 %v22480_v17  ;;  %16618 = vmatprep.subr.bf16.mxu0 %v22485_v3  ;;  %v22540_v23 = vld [vmem:[#allocation2 + $0x7a0] ss:$8 sps:$4 sm:$0xff]   ;;  %v22543_v17 = vld [vmem:[#allocation2 + $0x690] ss:$8 sps:$4 sm:$0xff]   ;;  %v22554_v1 = vld [vmem:[#allocation2 + $0x784] ss:$8 sps:$4 sm:$0xff]  }
 0x7ed   : > { %16873 = vmatprep.subr.bf16.mxu1 %v22488_v58  ;;  %22771 = vpow2.f32 %v19090_v48  ;;  %v16692_v32 = vshll.u32 %v19305_v9, 16  ;;  %v22546_v3 = vld [vmem:[#allocation2 + $0x790] ss:$8 sps:$4 sm:$0xff]   ;;  %v22551_v58 = vld [vmem:[#allocation2 + $0x684] ss:$8 sps:$4 sm:$0xff]   ;;  %v16690_v19 = vshrl.u32 %v19305_v9, 16 }
 0x7ee   : > { %v22549_v61 = vld [vmem:[#allocation2 + $0x680] ss:$8 sps:$4 sm:$0xff]  }
 0x7ef   : > { %16619 = vmatpush1.bf16.msra.mxu0 %v22483_v51  ;;  %v16694_v48 = vrot.slane %v16692_v32, 1  ;;  %v22552_v51 = vld [vmem:[#allocation2 + $0x780] ss:$8 sps:$4 sm:$0xff]  }
 0x7f0   : > { %16874 = vmatpush1.bf16.msra.mxu1 %v22486_v53  ;;  %16620 = vmatprep.subr.bf16.mxu0 %v22491_v13 }
 0x7f1   : > { %16875 = vmatprep.subr.bf16.mxu1 %v22494_v54  ;;  %v16695_v53 = vor.u32 %v16694_v48, %v16690_v19 }
 0x7f3   : > { %16621 = vmatpush1.bf16.msra.mxu0 %v22489_v27 }
 0x7f4   : > { %16876 = vmatpush1.bf16.msra.mxu1 %v22492_v57  ;;  %v22766_v59 = vpop.eup %22765  ;;  %16622 = vmatprep.subr.bf16.mxu0 %v22497_v43 }
 0x7f5   : > { %16877 = vmatprep.subr.bf16.mxu1 %v22500_v46  ;;  %v14855_v41 = vadd.f32 1.0, %v22766_v59 }
 0x7f6   : > { %v22768_v55 = vpop.eup %22767 }
 0x7f7   : > { %22773 = vrcp.f32 %v14855_v41  ;;  %v14856_v63 = vadd.f32 1.0, %v22768_v55  ;;  %16623 = vmatpush1.bf16.msra.mxu0 %v22495_v15 }
 0x7f8   : > { %16878 = vmatpush1.bf16.msra.mxu1 %v22498_v52  ;;  %v22770_v7 = vpop.eup %22769  ;;  %16624 = vmatprep.subr.bf16.mxu0 %v22503_v60 }
 0x7f9   : > { %16879 = vmatprep.subr.bf16.mxu1 %v22506_v40  ;;  %22775 = vrcp.f32 %v14856_v63  ;;  %v14857_v45 = vadd.f32 1.0, %v22770_v7 }
 0x7fa   : > { %v22772_v25 = vpop.eup %22771 }
 0x7fb   : > { %22777 = vrcp.f32 %v14857_v45  ;;  %v14858_v38 = vadd.f32 1.0, %v22772_v25  ;;  %16625 = vmatpush1.bf16.msra.mxu0 %v22501_v49 }
 0x7fc   : > { %16880 = vmatpush1.bf16.msra.mxu1 %v22504_v50  ;;  %16626 = vmatprep.subr.bf16.mxu0 %v22509_v8 }
 0x7fd   : > { %16881 = vmatprep.subr.bf16.mxu1 %v22512_v30  ;;  %22779 = vrcp.f32 %v14858_v38 }
 0x7ff   : > { %16627 = vmatpush2.bf16.msra.mxu0 %v22507_v47 }
 0x800   : > { %16882 = vmatpush2.bf16.msra.mxu1 %v22510_v36  ;;  %16628 = vmatprep.subr.bf16.mxu0 %v22515_v26 }
 0x801   : > { %16883 = vmatprep.subr.bf16.mxu1 %v22518_v11 }
 0x803   : > { %16629 = vmatpush2.bf16.msra.mxu0 %v22513_v56 }
 0x804   : > { %16884 = vmatpush2.bf16.msra.mxu1 %v22516_v12  ;;  %v22774_v14 = vpop.eup %22773  ;;  %16630 = vmatprep.subr.bf16.mxu0 %v22521_v62 }
 0x805   : > { %16885 = vmatprep.subr.bf16.mxu1 %v22524_v5  ;;  %19091 = vst [vmem:[%s23031_s15 + $0x190] sm:$0xff] %v22774_v14 }
 0x806   : > { %v22776_v2 = vpop.eup %22775 }
 0x807   : > { %19092 = vst [vmem:[%s23031_s15 + $0x198] sm:$0xff] %v22776_v2  ;;  %16631 = vmatpush2.bf16.msra.mxu0 %v22519_v44 }
 0x808   : > { %16886 = vmatpush2.bf16.msra.mxu1 %v22522_v18  ;;  %v22778_v6 = vpop.eup %22777  ;;  %16632 = vmatprep.subr.bf16.mxu0 %v22527_v20 }
 0x809   : > { %16887 = vmatprep.subr.bf16.mxu1 %v22530_v21  ;;  %19093 = vst [vmem:[%s23031_s15 + $0x1b0] sm:$0x1] %v22778_v6 }
 0x80a   : > { %v22780_v29 = vpop.eup %22779 }
 0x80b   : > { %19094 = vst [vmem:[%s23031_s15 + $0x1b8] sm:$0x1] %v22780_v29  ;;  %16633 = vmatpush2.bf16.msra.mxu0 %v22525_v0 }
 0x80c   : > { %16888 = vmatpush2.bf16.msra.mxu1 %v22528_v24  ;;  %16634 = vmatprep.subr.bf16.mxu0 %v22533_v28 }
 0x80d   : > { %16889 = vmatprep.subr.bf16.mxu1 %v22536_v16 }
 0x80f   : > { %16635 = vmatpush2.bf16.msra.mxu0 %v22531_v34 }
 0x810   : > { %16890 = vmatpush2.bf16.msra.mxu1 %v22534_v37  ;;  %16636 = vmatprep.subr.bf16.mxu0 %v22539_v39 }
 0x811   : > { %16891 = vmatprep.subr.bf16.mxu1 %v22542_v31 }
 0x813   : > { %16637 = vmatpush2.bf16.msra.mxu0 %v22537_v22 }
 0x814   : > { %16892 = vmatpush2.bf16.msra.mxu1 %v22540_v23  ;;  %16638 = vmatprep.subr.bf16.mxu0 %v22545_v10 }
 0x815   : > { %16893 = vmatprep.subr.bf16.mxu1 %v22548_v42 }
 0x817   : > { %16639 = vmatpush2.bf16.msra.mxu0 %v22543_v17 }
 0x818   : > { %16894 = vmatpush2.bf16.msra.mxu1 %v22546_v3  ;;  %16640 = vmatprep.subr.bf16.mxu0 %v22551_v58 }
 0x819   : > { %16895 = vmatprep.subr.bf16.mxu1 %v22554_v1 }
 0x81b   : > { %16641 = vmatpush2.bf16.msra.mxu0 %v22549_v61 }
 0x81c   : > { %16896 = vmatpush2.bf16.msra.mxu1 %v22552_v51 }
 0x81e   : > { %16643 = vmatmul.mubr.bf16.vlgmr.msra.gmra.mxu0 %v19305_v9  ;;  %v15155_v13 = vpop.f32.mrf.mxu0 }
 0x81f   : > { %16898 = vmatmul.mubr.bf16.vlgmr.msra.gmra.mxu1 %v16695_v53  ;;  %v15360_v54 = vpop.f32.mrf.mxu1 }
 0x820   : > { %v15157_v27 = vpop.f32.mrf.mxu0  ;;  %v15361_v59 = vadd.f32 %v15360_v54, %v15155_v13 }
 0x821   : > { %v15362_v57 = vpop.f32.mrf.mxu1 }
 0x822   : > { %v15159_v43 = vpop.f32.mrf.mxu0  ;;  %v15363_v41 = vadd.f32 %v15362_v57, %v15157_v27 }
 0x823   : > { %v15364_v46 = vpop.f32.mrf.mxu1 }
 0x824   : > { %v15161_v15 = vpop.f32.mrf.mxu0  ;;  %v15365_v50 = vadd.f32 %v15364_v46, %v15159_v43 }
 0x825   : > { %v15366_v52 = vpop.f32.mrf.mxu1 }
 0x826   : > { %v15367_v25 = vadd.f32 %v15366_v52, %v15161_v15 }
 0x85e   : > { %v15607_v60 = vpop.f32.mrf.mxu0 }
 0x85f   : > { %v15862_v40 = vpop.f32.mrf.mxu1  ;;  %v15616_v55 = vadd.f32 %v15607_v60, %v15361_v59 }
 0x860   : > { %v15609_v63 = vpop.f32.mrf.mxu0 }
 0x861   : > { %v15864_v49 = vpop.f32.mrf.mxu1  ;;  %v15871_v7 = vadd.f32 %v15862_v40, %v15616_v55  ;;  %v15617_v8 = vadd.f32 %v15609_v63, %v15363_v41 }
 0x862   : > { %v15611_v30 = vpop.f32.mrf.mxu0 }
 0x863   : > { %v15866_v45 = vpop.f32.mrf.mxu1  ;;  %v15875_v38 = vadd.f32 %v15871_v7, %v23015_v33  ;;  %v15872_v47 = vadd.f32 %v15864_v49, %v15617_v8  ;;  %v15618_v36 = vadd.f32 %v15611_v30, %v15365_v50 }
 0x864   : > { %v15613_v26 = vpop.f32.mrf.mxu0 }
 0x865   : > { %v19229_v11 = vmul.f32 -1.442695, %v15875_v38  ;;  %v15876_v56 = vadd.f32 %v15872_v47, %v23017_v35  ;;  %v15873_v12 = vadd.f32 %v15866_v45, %v15618_v36  ;;  %v15619_v62 = vadd.f32 %v15613_v26, %v15367_v25  ;;  %v15868_v5 = vpop.f32.mrf.mxu1 }
 0x867   : > { %22781 = vpow2.f32 %v19229_v11  ;;  %v19230_v44 = vmul.f32 -1.442695, %v15876_v56  ;;  %v15877_v18 = vadd.f32 %v15873_v12, %v23015_v33  ;;  %v15874_v14 = vadd.f32 %v15868_v5, %v15619_v62 }
 0x869   : > { %22783 = vpow2.f32 %v19230_v44  ;;  %v19231_v20 = vmul.f32 -1.442695, %v15877_v18  ;;  %v15878_v21 = vadd.f32 %v15874_v14, %v23017_v35 }
 0x86b   : > { %22785 = vpow2.f32 %v19231_v20  ;;  %v19232_v2 = vmul.f32 -1.442695, %v15878_v21 }
 0x86d   : > { %22787 = vpow2.f32 %v19232_v2 }
 0x874   : > { %v22782_v0 = vpop.eup %22781 }
 0x875   : > { %v15891_v24 = vadd.f32 1.0, %v22782_v0 }
 0x876   : > { %v22784_v6 = vpop.eup %22783 }
 0x877   : > { %22789 = vrcp.f32 %v15891_v24  ;;  %v15892_v28 = vadd.f32 1.0, %v22784_v6 }
 0x878   : > { %v22786_v16 = vpop.eup %22785 }
 0x879   : > { %22791 = vrcp.f32 %v15892_v28  ;;  %v15893_v29 = vadd.f32 1.0, %v22786_v16 }
 0x87a   : > { %v22788_v34 = vpop.eup %22787 }
 0x87b   : > { %22793 = vrcp.f32 %v15893_v29  ;;  %v15894_v37 = vadd.f32 1.0, %v22788_v34 }
 0x87d   : > { %22795 = vrcp.f32 %v15894_v37 }
 0x884   : > { %v22790_v39 = vpop.eup %22789 }
 0x885   : > { %19233 = vst [vmem:[%s23031_s15 + $0x1c0] sm:$0xff] %v22790_v39 }
 0x886   : > { %v22792_v31 = vpop.eup %22791 }
 0x887   : > { %19234 = vst [vmem:[%s23031_s15 + $0x1c8] sm:$0xff] %v22792_v31 }
 0x888   : > { %v22794_v4 = vpop.eup %22793 }
 0x889   : > { %19235 = vst [vmem:[%s23031_s15 + $0x1e0] sm:$0x1] %v22794_v4 }
 0x88a   : > { %v22796_v9 = vpop.eup %22795 }
 0x88b   : > { %19236 = vst [vmem:[%s23031_s15 + $0x1e8] sm:$0x1] %v22796_v9 }
 0x89e   : > { %v16192_v22 = vpop.f32.mrf.mxu0 }
 0x89f   : > { %v16397_v23 = vpop.f32.mrf.mxu1 }
 0x8a0   : > { %v16194_v10 = vpop.f32.mrf.mxu0  ;;  %v16398_v1 = vadd.f32 %v16397_v23, %v16192_v22 }
 0x8a1   : > { %v16399_v42 = vpop.f32.mrf.mxu1 }
 0x8a2   : > { %v16196_v32 = vpop.f32.mrf.mxu0  ;;  %v16400_v61 = vadd.f32 %v16399_v42, %v16194_v10 }
 0x8a3   : > { %v16401_v17 = vpop.f32.mrf.mxu1 }
 0x8a4   : > { %v16198_v3 = vpop.f32.mrf.mxu0  ;;  %v16402_v54 = vadd.f32 %v16401_v17, %v16196_v32 }
 0x8a5   : > { %v16403_v58 = vpop.f32.mrf.mxu1 }
 0x8a6   : > { %v16404_v15 = vadd.f32 %v16403_v58, %v16198_v3 }
 0x8de   : > { %v16644_v19 = vpop.f32.mrf.mxu0 }
 0x8df   : > { %v16899_v48 = vpop.f32.mrf.mxu1  ;;  %v16653_v51 = vadd.f32 %v16644_v19, %v16398_v1 }
 0x8e0   : > { %v16646_v53 = vpop.f32.mrf.mxu0 }
 0x8e1   : > { %v16901_v13 = vpop.f32.mrf.mxu1  ;;  %v16908_v27 = vadd.f32 %v16899_v48, %v16653_v51  ;;  %v16654_v57 = vadd.f32 %v16646_v53, %v16400_v61 }
 0x8e2   : > { %v16648_v43 = vpop.f32.mrf.mxu0 }
 0x8e3   : > { %v16903_v46 = vpop.f32.mrf.mxu1  ;;  %v16912_v52 = vadd.f32 %v16908_v27, %v23015_v33  ;;  %v16909_v59 = vadd.f32 %v16901_v13, %v16654_v57  ;;  %v16655_v60 = vadd.f32 %v16648_v43, %v16402_v54 }
 0x8e4   : > { %v16650_v40 = vpop.f32.mrf.mxu0 }
 0x8e5   : > { %v19371_v41 = vmul.f32 -1.442695, %v16912_v52  ;;  %v16913_v55 = vadd.f32 %v16909_v59, %v23017_v35  ;;  %v16910_v63 = vadd.f32 %v16903_v46, %v16655_v60  ;;  %v16656_v49 = vadd.f32 %v16650_v40, %v16404_v15  ;;  %v16905_v50 = vpop.f32.mrf.mxu1 }
 0x8e7   : > { %22797 = vpow2.f32 %v19371_v41  ;;  %v19372_v7 = vmul.f32 -1.442695, %v16913_v55  ;;  %v16914_v8 = vadd.f32 %v16910_v63, %v23015_v33  ;;  %v16911_v30 = vadd.f32 %v16905_v50, %v16656_v49 }
 0x8e9   : > { %22799 = vpow2.f32 %v19372_v7  ;;  %v19373_v45 = vmul.f32 -1.442695, %v16914_v8  ;;  %v16915_v25 = vadd.f32 %v16911_v30, %v23017_v35 }
 0x8eb   : > { %22801 = vpow2.f32 %v19373_v45  ;;  %v19374_v38 = vmul.f32 -1.442695, %v16915_v25 }
 0x8ed   : > { %22803 = vpow2.f32 %v19374_v38 }
 0x8f4   : > { %v22798_v47 = vpop.eup %22797 }
 0x8f5   : > { %v16928_v36 = vadd.f32 1.0, %v22798_v47 }
 0x8f6   : > { %v22800_v26 = vpop.eup %22799 }
 0x8f7   : > { %22805 = vrcp.f32 %v16928_v36  ;;  %v16929_v11 = vadd.f32 1.0, %v22800_v26 }
 0x8f8   : > { %v22802_v56 = vpop.eup %22801 }
 0x8f9   : > { %22807 = vrcp.f32 %v16929_v11  ;;  %v16930_v33 = vadd.f32 1.0, %v22802_v56 }
 0x8fa   : > { %v22804_v12 = vpop.eup %22803 }
 0x8fb   : > { %22809 = vrcp.f32 %v16930_v33  ;;  %v16931_v62 = vadd.f32 1.0, %v22804_v12 }
 0x8fd   : > { %22811 = vrcp.f32 %v16931_v62 }
 0x904   : > { %v22806_v35 = vpop.eup %22805 }
 0x905   : > { %19375 = vst [vmem:[%s23031_s15 + $0x1d0] sm:$0xff] %v22806_v35 }
 0x906   : > { %v22808_v5 = vpop.eup %22807 }
 0x907   : > { %19376 = vst [vmem:[%s23031_s15 + $0x1d8] sm:$0xff] %v22808_v5 }
 0x908   : > { %v22810_v44 = vpop.eup %22809 }
 0x909   : > { %19377 = vst [vmem:[%s23031_s15 + $0x1f0] sm:$0x1] %v22810_v44 }
 0x90a   : > { %v22812_v18 = vpop.eup %22811 }
 0x90b   : > { %19378 = vst [vmem:[%s23031_s15 + $0x1f8] sm:$0x1] %v22812_v18 }
 0x90c PF: > { %s15_s17 = sadd.s32 1, %s22878_s17   ;;  %s23420_s15 = smov %s22874_s16 }
 0x90d   : > { %p12_p4 = scmp.ge.s32.totalorder %s15_s17, 4   ;;  %s23421_s16 = smov %s23423_s19 }
 0x90f   :  { %14 = sbr.rel (!%p12_p4) target bundleno = 2 (0x2), region = 95 }
 0x914   :  { %16976 = vsyncpa [#allocation3], 1 }
 0x915   :  { %16978 = vsyncpa [#allocation3 + $0x1], 1 }

</bundles_post_ra>
